<compile_context>
chip_gen: v6e
topology: v6e:2x2x1
jax: 0.10.0
libtpu: 0.0.40
codegen_flags: <defaults>
</compile_context>

<pallas_src>
import math
import functools

import jax
import jax.numpy as jnp
from jax.experimental import pallas as pl
from jax.experimental.pallas import tpu as pltpu

# ---- model hyper-parameters (small, consistent with the module's __init__) ----
EMB = 32           # emb_size
NHEAD = 4          # nhead
HEAD_DIM = EMB // NHEAD
FFN = 64           # dim_feedforward
N_ENC = 2          # num_encoder_layers
N_DEC = 2          # num_decoder_layers
SRC_VOCAB = 100
TGT_VOCAB = 100
GEN_PAD = 128      # generator padded to a lane-dense width
LN_EPS = 1e-5
NEG_BIG = -1e30    # finite "-inf": exp() underflows to 0, no NaN risk
MAXLEN = 5000

_vmem = functools.partial(pl.BlockSpec, memory_space=pltpu.MemorySpace.VMEM)


# ============================ fused Pallas kernel ============================

def _make_fused_kernel(S, T, B):
    E, H, Dh = EMB, NHEAD, HEAD_DIM
    scale = 1.0 / math.sqrt(Dh)

    def kernel(src_tok_ref, tgt_tok_ref, pos_src_ref, pos_tgt_ref, head_mask_ref,
               enc_mask_ref, self_mask_ref, cross_mask_ref,
               e_wqkv, e_bqkv, e_wo, e_bo, e_ln1g, e_ln1b,
               e_w1, e_b1, e_w2, e_b2, e_ln2g, e_ln2b,
               enc_ng, enc_nb,
               d_sa_wqkv, d_sa_bqkv, d_sa_wo, d_sa_bo, d_ln1g, d_ln1b,
               d_ca_wq, d_ca_bq, d_ca_wkv, d_ca_bkv, d_ca_wo, d_ca_bo,
               d_ln2g, d_ln2b,
               d_w1, d_b1, d_w2, d_b2, d_ln3g, d_ln3b,
               dec_ng, dec_nb,
               gen_w, gen_b,
               out_ref):

        def lin(x, w, b, relu=False):
            y = jnp.dot(x, w, preferred_element_type=jnp.float32) + b
            return jnp.maximum(y, 0.0) if relu else y

        def layer_norm(x, g, b):
            mu = jnp.mean(x, axis=-1, keepdims=True)
            xc = x - mu
            var = jnp.mean(xc * xc, axis=-1, keepdims=True)
            return xc * jax.lax.rsqrt(var + LN_EPS) * g + b

        # per-head column masks, loaded once and hoisted out of every loop
        head_masks = [head_mask_ref[h] for h in range(H)]   # each (1, E)

        def attend(q, k, v, mask, Tq, Sk):
            # q: (B*Tq, E), k/v: (B*Sk, E), mask: (B*Tq, Sk) additive (finite).
            outs = []
            for b in range(B):
                qb = q[b * Tq:(b + 1) * Tq, :]
                kb = k[b * Sk:(b + 1) * Sk, :]
                vb = v[b * Sk:(b + 1) * Sk, :]
                mb = mask[b * Tq:(b + 1) * Tq, :]
                ob = jnp.zeros((Tq, E), jnp.float32)
                for h in range(H):
                    hm = head_masks[h]
                    # masked full-width contraction == per-head q_h @ k_h^T (lane-dense)
                    s = jax.lax.dot_general(
                        qb, kb * hm, (((1,), (1,)), ((), ())),
                        preferred_element_type=jnp.float32) * scale + mb
                    s = s - jnp.max(s, axis=-1, keepdims=True)
                    p = jnp.exp(s)
                    p = p * pl.reciprocal(jnp.sum(p, axis=-1, keepdims=True), approx=True)
                    # head-h output lands in head-h columns -> concat over heads is a sum
                    ob = ob + jnp.dot(p, vb * hm, preferred_element_type=jnp.float32)
                outs.append(ob)
            return jnp.concatenate(outs, axis=0)            # (B*Tq, E)

        # ---- embeddings: TokenEmbedding * sqrt(E) + PositionalEncoding ----
        x = src_tok_ref[...] * math.sqrt(E) + pos_src_ref[...]   # (B*S, E)
        y = tgt_tok_ref[...] * math.sqrt(E) + pos_tgt_ref[...]   # (B*T, E)
        enc_mask = enc_mask_ref[...]
        self_mask = self_mask_ref[...]
        cross_mask = cross_mask_ref[...]

        # ---- encoder (post-norm, ReLU FFN, eval mode) ----
        for l in range(N_ENC):
            qkv = lin(x, e_wqkv[l], e_bqkv[l])                   # fused QKV: (B*S, 3E)
            a = attend(qkv[:, :E], qkv[:, E:2 * E], qkv[:, 2 * E:], enc_mask, S, S)
            a = lin(a, e_wo[l], e_bo[l])
            x = layer_norm(x + a, e_ln1g[l], e_ln1b[l])
            ff = lin(lin(x, e_w1[l], e_b1[l], relu=True), e_w2[l], e_b2[l])
            x = layer_norm(x + ff, e_ln2g[l], e_ln2b[l])
        memory = layer_norm(x, enc_ng[...], enc_nb[...])

        # ---- decoder ----
        for l in range(N_DEC):
            qkv = lin(y, d_sa_wqkv[l], d_sa_bqkv[l])             # fused QKV: (B*T, 3E)
            sa = attend(qkv[:, :E], qkv[:, E:2 * E], qkv[:, 2 * E:], self_mask, T, T)
            sa = lin(sa, d_sa_wo[l], d_sa_bo[l])
            y = layer_norm(y + sa, d_ln1g[l], d_ln1b[l])

            qc = lin(y, d_ca_wq[l], d_ca_bq[l])
            kv = lin(memory, d_ca_wkv[l], d_ca_bkv[l])           # fused KV: (B*S, 2E)
            ca = attend(qc, kv[:, :E], kv[:, E:], cross_mask, T, S)
            ca = lin(ca, d_ca_wo[l], d_ca_bo[l])
            y = layer_norm(y + ca, d_ln2g[l], d_ln2b[l])

            ff = lin(lin(y, d_w1[l], d_b1[l], relu=True), d_w2[l], d_b2[l])
            y = layer_norm(y + ff, d_ln3g[l], d_ln3b[l])
        y = layer_norm(y, dec_ng[...], dec_nb[...])

        # ---- generator (padded to 128 lanes -> lane-dense matmul and store) ----
        out_ref[...] = jnp.dot(y, gen_w[...], preferred_element_type=jnp.float32) + gen_b[...]

    return kernel


# ============================ model glue (plain JAX) ============================

def build_attn_mask(attn_mask, key_padding_mask, B, Tq, Sk):
    """Combine float attn_mask (Tq,Sk) and bool key_padding_mask (B,Sk) into an
    additive float mask (B, Tq, Sk), clamped to a large finite negative value
    (PyTorch MHA semantics, but NaN-safe)."""
    m = jnp.zeros((B, Tq, Sk), jnp.float32)
    if attn_mask is not None:
        m = m + attn_mask[None, :, :].astype(jnp.float32)
    if key_padding_mask is not None:
        m = m + jnp.where(key_padding_mask, NEG_BIG, 0.0)[:, None, :]
    return jnp.maximum(m, NEG_BIG)


def seq2seq_transformer(params, src, trg, src_mask, tgt_mask,
                        src_padding_mask, tgt_padding_mask,
                        memory_key_padding_mask):
    S, B = src.shape
    T, _ = trg.shape
    E, H, Dh = EMB, NHEAD, HEAD_DIM

    # Embedding gathers + batch-major flatten (cheap XLA glue around the one fused kernel).
    src_tok = jnp.take(params["src_emb"], src, axis=0).transpose(1, 0, 2).reshape(B * S, E)
    tgt_tok = jnp.take(params["tgt_emb"], trg, axis=0).transpose(1, 0, 2).reshape(B * T, E)
    pe = params["pos"]
    pos_src = jnp.broadcast_to(pe[:S][None], (B, S, E)).reshape(B * S, E)
    pos_tgt = jnp.broadcast_to(pe[:T][None], (B, T, E)).reshape(B * T, E)

    enc_mask = build_attn_mask(src_mask, src_padding_mask, B, S, S).reshape(B * S, S)
    self_mask = build_attn_mask(tgt_mask, tgt_padding_mask, B, T, T).reshape(B * T, T)
    cross_mask = build_attn_mask(None, memory_key_padding_mask, B, T, S).reshape(B * T, S)

    head_mask = (jnp.arange(E)[None, :] // Dh == jnp.arange(H)[:, None]) \
        .astype(jnp.float32).reshape(H, 1, E)

    e, d = params["enc"], params["dec"]
    inputs = (
        src_tok, tgt_tok, pos_src, pos_tgt, head_mask,
        enc_mask, self_mask, cross_mask,
        e["wqkv"], e["bqkv"], e["wo"], e["bo"], e["ln1_g"], e["ln1_b"],
        e["w1"], e["b1"], e["w2"], e["b2"], e["ln2_g"], e["ln2_b"],
        params["enc_norm_g"], params["enc_norm_b"],
        d["sa_wqkv"], d["sa_bqkv"], d["sa_wo"], d["sa_bo"], d["ln1_g"], d["ln1_b"],
        d["ca_wq"], d["ca_bq"], d["ca_wkv"], d["ca_bkv"], d["ca_wo"], d["ca_bo"],
        d["ln2_g"], d["ln2_b"],
        d["w1"], d["b1"], d["w2"], d["b2"], d["ln3_g"], d["ln3_b"],
        params["dec_norm_g"], params["dec_norm_b"],
        params["gen_w"], params["gen_b"],
    )
    out = pl.pallas_call(
        _make_fused_kernel(S, T, B),
        out_shape=jax.ShapeDtypeStruct((B * T, GEN_PAD), jnp.float32),
        in_specs=[_vmem() for _ in inputs],
        out_specs=_vmem(),
    )(*inputs)
    # (B*T, 128) -> (T, B, TGT_VOCAB)
    return out.reshape(B, T, GEN_PAD).transpose(1, 0, 2)[:, :, :TGT_VOCAB]


# ============================ pure-JAX reference (for validation) ============================

def reference_forward(params, src, trg, src_mask, tgt_mask,
                      src_padding_mask, tgt_padding_mask, memory_key_padding_mask):
    S, B = src.shape
    T, _ = trg.shape
    E, H, Dh = EMB, NHEAD, HEAD_DIM
    scale = 1.0 / math.sqrt(Dh)

    def ln(x, g, b):
        mu = x.mean(-1, keepdims=True)
        var = ((x - mu) ** 2).mean(-1, keepdims=True)
        return (x - mu) * jax.lax.rsqrt(var + LN_EPS) * g + b

    def heads(x):
        return x.reshape(x.shape[0], x.shape[1], H, Dh).transpose(0, 2, 1, 3)

    def attn(q, k, v, mask):
        s = jnp.einsum("bhtd,bhsd->bhts", heads(q), heads(k)) * scale + mask[:, None]
        p = jax.nn.softmax(s, axis=-1)
        o = jnp.einsum("bhts,bhsd->bhtd", p, heads(v))
        return o.transpose(0, 2, 1, 3).reshape(q.shape)

    x = params["src_emb"][src].transpose(1, 0, 2) * math.sqrt(E) + params["pos"][:S][None]
    y = params["tgt_emb"][trg].transpose(1, 0, 2) * math.sqrt(E) + params["pos"][:T][None]
    enc_m = build_attn_mask(src_mask, src_padding_mask, B, S, S)
    self_m = build_attn_mask(tgt_mask, tgt_padding_mask, B, T, T)
    cross_m = build_attn_mask(None, memory_key_padding_mask, B, T, S)

    e, d = params["enc"], params["dec"]
    for l in range(N_ENC):
        w, b = e["wqkv"][l], e["bqkv"][l]
        q, k, v = (x @ w[:, :E] + b[:, :E], x @ w[:, E:2 * E] + b[:, E:2 * E],
                   x @ w[:, 2 * E:] + b[:, 2 * E:])
        a = attn(q, k, v, enc_m) @ e["wo"][l] + e["bo"][l]
        x = ln(x + a, e["ln1_g"][l], e["ln1_b"][l])
        ff = jnp.maximum(x @ e["w1"][l] + e["b1"][l], 0.0) @ e["w2"][l] + e["b2"][l]
        x = ln(x + ff, e["ln2_g"][l], e["ln2_b"][l])
    mem = ln(x, params["enc_norm_g"], params["enc_norm_b"])

    for l in range(N_DEC):
        w, b = d["sa_wqkv"][l], d["sa_bqkv"][l]
        q, k, v = (y @ w[:, :E] + b[:, :E], y @ w[:, E:2 * E] + b[:, E:2 * E],
                   y @ w[:, 2 * E:] + b[:, 2 * E:])
        sa = attn(q, k, v, self_m) @ d["sa_wo"][l] + d["sa_bo"][l]
        y = ln(y + sa, d["ln1_g"][l], d["ln1_b"][l])
        q = y @ d["ca_wq"][l] + d["ca_bq"][l]
        wkv, bkv = d["ca_wkv"][l], d["ca_bkv"][l]
        k, v = mem @ wkv[:, :E] + bkv[:, :E], mem @ wkv[:, E:] + bkv[:, E:]
        ca = attn(q, k, v, cross_m) @ d["ca_wo"][l] + d["ca_bo"][l]
        y = ln(y + ca, d["ln2_g"][l], d["ln2_b"][l])
        ff = jnp.maximum(y @ d["w1"][l] + d["b1"][l], 0.0) @ d["w2"][l] + d["b2"][l]
        y = ln(y + ff, d["ln3_g"][l], d["ln3_b"][l])
    y = ln(y, params["dec_norm_g"], params["dec_norm_b"])
    logits = (y @ params["gen_w"] + params["gen_b"])[:, :, :TGT_VOCAB]
    return logits.transpose(1, 0, 2)


# ============================ parameter init ============================

def make_pos_embedding(maxlen, emb_size):
    den = jnp.exp(-jnp.arange(0, emb_size, 2, dtype=jnp.float32)
                  * math.log(10000.0) / emb_size)
    pos = jnp.arange(maxlen, dtype=jnp.float32)[:, None]
    pe = jnp.zeros((maxlen, emb_size), jnp.float32)
    pe = pe.at[:, 0::2].set(jnp.sin(pos * den))
    pe = pe.at[:, 1::2].set(jnp.cos(pos * den))
    return pe  # (maxlen, E)


def init_params(key):
    keys = iter(jax.random.split(key, 64))

    def nk():
        return next(keys)

    def stacked_lin(n, fan_in, fan_out):
        lim = 1.0 / math.sqrt(fan_in)
        w = jax.random.uniform(nk(), (n, fan_in, fan_out), jnp.float32, -lim, lim)
        b = jax.random.uniform(nk(), (n, 1, fan_out), jnp.float32, -lim, lim)
        return w, b

    def stacked_ln(n):
        return jnp.ones((n, 1, EMB), jnp.float32), jnp.zeros((n, 1, EMB), jnp.float32)

    e_wqkv, e_bqkv = stacked_lin(N_ENC, EMB, 3 * EMB)
    e_wo, e_bo = stacked_lin(N_ENC, EMB, EMB)
    e_w1, e_b1 = stacked_lin(N_ENC, EMB, FFN)
    e_w2, e_b2 = stacked_lin(N_ENC, FFN, EMB)
    e_ln1_g, e_ln1_b = stacked_ln(N_ENC)
    e_ln2_g, e_ln2_b = stacked_ln(N_ENC)

    d_sa_wqkv, d_sa_bqkv = stacked_lin(N_DEC, EMB, 3 * EMB)
    d_sa_wo, d_sa_bo = stacked_lin(N_DEC, EMB, EMB)
    d_ca_wq, d_ca_bq = stacked_lin(N_DEC, EMB, EMB)
    d_ca_wkv, d_ca_bkv = stacked_lin(N_DEC, EMB, 2 * EMB)
    d_ca_wo, d_ca_bo = stacked_lin(N_DEC, EMB, EMB)
    d_w1, d_b1 = stacked_lin(N_DEC, EMB, FFN)
    d_w2, d_b2 = stacked_lin(N_DEC, FFN, EMB)
    d_ln1_g, d_ln1_b = stacked_ln(N_DEC)
    d_ln2_g, d_ln2_b = stacked_ln(N_DEC)
    d_ln3_g, d_ln3_b = stacked_ln(N_DEC)

    lim = 1.0 / math.sqrt(EMB)
    gw = jax.random.uniform(nk(), (EMB, TGT_VOCAB), jnp.float32, -lim, lim)
    gb = jax.random.uniform(nk(), (TGT_VOCAB,), jnp.float32, -lim, lim)
    gen_w = jnp.zeros((EMB, GEN_PAD), jnp.float32).at[:, :TGT_VOCAB].set(gw)
    gen_b = jnp.zeros((1, GEN_PAD), jnp.float32).at[:, :TGT_VOCAB].set(gb)

    return dict(
        src_emb=jax.random.normal(nk(), (SRC_VOCAB, EMB), jnp.float32),
        tgt_emb=jax.random.normal(nk(), (TGT_VOCAB, EMB), jnp.float32),
        pos=make_pos_embedding(MAXLEN, EMB),
        enc=dict(wqkv=e_wqkv, bqkv=e_bqkv, wo=e_wo, bo=e_bo,
                 ln1_g=e_ln1_g, ln1_b=e_ln1_b,
                 w1=e_w1, b1=e_b1, w2=e_w2, b2=e_b2,
                 ln2_g=e_ln2_g, ln2_b=e_ln2_b),
        dec=dict(sa_wqkv=d_sa_wqkv, sa_bqkv=d_sa_bqkv, sa_wo=d_sa_wo, sa_bo=d_sa_bo,
                 ln1_g=d_ln1_g, ln1_b=d_ln1_b,
                 ca_wq=d_ca_wq, ca_bq=d_ca_bq, ca_wkv=d_ca_wkv, ca_bkv=d_ca_bkv,
                 ca_wo=d_ca_wo, ca_bo=d_ca_bo,
                 ln2_g=d_ln2_g, ln2_b=d_ln2_b,
                 w1=d_w1, b1=d_b1, w2=d_w2, b2=d_b2,
                 ln3_g=d_ln3_g, ln3_b=d_ln3_b),
        enc_norm_g=jnp.ones((1, EMB), jnp.float32),
        enc_norm_b=jnp.zeros((1, EMB), jnp.float32),
        dec_norm_g=jnp.ones((1, EMB), jnp.float32),
        dec_norm_b=jnp.zeros((1, EMB), jnp.float32),
        gen_w=gen_w, gen_b=gen_b,
    )


# ============================ main ============================

if __name__ == "__main__":
    key = jax.random.PRNGKey(0)
    kp, ks, kt = jax.random.split(key, 3)
    params = init_params(kp)

    S, T, B = 8, 8, 2
    src = jax.random.randint(ks, (S, B), 0, SRC_VOCAB, dtype=jnp.int32)
    trg = jax.random.randint(kt, (T, B), 0, TGT_VOCAB, dtype=jnp.int32)

    src_mask = jnp.zeros((S, S), jnp.float32)
    tgt_mask = jnp.where(jnp.triu(jnp.ones((T, T), dtype=bool), k=1),
                         NEG_BIG, 0.0).astype(jnp.float32)          # causal
    src_padding_mask = jnp.zeros((B, S), dtype=bool).at[:, S - 1].set(True)
    tgt_padding_mask = jnp.zeros((B, T), dtype=bool).at[:, T - 1].set(True)
    memory_key_padding_mask = src_padding_mask

    fwd = jax.jit(seq2seq_transformer)
    logits = fwd(params, src, trg, src_mask, tgt_mask,
                 src_padding_mask, tgt_padding_mask, memory_key_padding_mask)
    jax.block_until_ready(logits)

    assert logits.shape == (T, B, TGT_VOCAB)
    assert bool(jnp.all(jnp.isfinite(logits)))

    # validate against a pure-JAX reference of the same eval-mode forward
    ref = reference_forward(params, src, trg, src_mask, tgt_mask,
                            src_padding_mask, tgt_padding_mask,
                            memory_key_padding_mask)
    max_err = float(jnp.max(jnp.abs(logits - ref)))
    assert max_err < 0.1, f"kernel/reference mismatch: max abs err = {max_err}"

    print("KERNEL_OK")
</pallas_src>

<mosaic_0001>
module attributes {stable_mosaic.version = 11 : i64} {
  func.func @kernel(%arg0: memref<16x32xf32, #tpu.memory_space<vmem>>, %arg1: memref<16x32xf32, #tpu.memory_space<vmem>>, %arg2: memref<16x32xf32, #tpu.memory_space<vmem>>, %arg3: memref<16x32xf32, #tpu.memory_space<vmem>>, %arg4: memref<4x1x32xf32, #tpu.memory_space<vmem>>, %arg5: memref<16x8xf32, #tpu.memory_space<vmem>>, %arg6: memref<16x8xf32, #tpu.memory_space<vmem>>, %arg7: memref<16x8xf32, #tpu.memory_space<vmem>>, %arg8: memref<2x32x96xf32, #tpu.memory_space<vmem>>, %arg9: memref<2x1x96xf32, #tpu.memory_space<vmem>>, %arg10: memref<2x32x32xf32, #tpu.memory_space<vmem>>, %arg11: memref<2x1x32xf32, #tpu.memory_space<vmem>>, %arg12: memref<2x1x32xf32, #tpu.memory_space<vmem>>, %arg13: memref<2x1x32xf32, #tpu.memory_space<vmem>>, %arg14: memref<2x32x64xf32, #tpu.memory_space<vmem>>, %arg15: memref<2x1x64xf32, #tpu.memory_space<vmem>>, %arg16: memref<2x64x32xf32, #tpu.memory_space<vmem>>, %arg17: memref<2x1x32xf32, #tpu.memory_space<vmem>>, %arg18: memref<2x1x32xf32, #tpu.memory_space<vmem>>, %arg19: memref<2x1x32xf32, #tpu.memory_space<vmem>>, %arg20: memref<1x32xf32, #tpu.memory_space<vmem>>, %arg21: memref<1x32xf32, #tpu.memory_space<vmem>>, %arg22: memref<2x32x96xf32, #tpu.memory_space<vmem>>, %arg23: memref<2x1x96xf32, #tpu.memory_space<vmem>>, %arg24: memref<2x32x32xf32, #tpu.memory_space<vmem>>, %arg25: memref<2x1x32xf32, #tpu.memory_space<vmem>>, %arg26: memref<2x1x32xf32, #tpu.memory_space<vmem>>, %arg27: memref<2x1x32xf32, #tpu.memory_space<vmem>>, %arg28: memref<2x32x32xf32, #tpu.memory_space<vmem>>, %arg29: memref<2x1x32xf32, #tpu.memory_space<vmem>>, %arg30: memref<2x32x64xf32, #tpu.memory_space<vmem>>, %arg31: memref<2x1x64xf32, #tpu.memory_space<vmem>>, %arg32: memref<2x32x32xf32, #tpu.memory_space<vmem>>, %arg33: memref<2x1x32xf32, #tpu.memory_space<vmem>>, %arg34: memref<2x1x32xf32, #tpu.memory_space<vmem>>, %arg35: memref<2x1x32xf32, #tpu.memory_space<vmem>>, %arg36: memref<2x32x64xf32, #tpu.memory_space<vmem>>, %arg37: memref<2x1x64xf32, #tpu.memory_space<vmem>>, %arg38: memref<2x64x32xf32, #tpu.memory_space<vmem>>, %arg39: memref<2x1x32xf32, #tpu.memory_space<vmem>>, %arg40: memref<2x1x32xf32, #tpu.memory_space<vmem>>, %arg41: memref<2x1x32xf32, #tpu.memory_space<vmem>>, %arg42: memref<1x32xf32, #tpu.memory_space<vmem>>, %arg43: memref<1x32xf32, #tpu.memory_space<vmem>>, %arg44: memref<32x128xf32, #tpu.memory_space<vmem>>, %arg45: memref<1x128xf32, #tpu.memory_space<vmem>>, %arg46: memref<16x128xf32, #tpu.memory_space<vmem>>) attributes {dimension_semantics = [], scalar_prefetch = 0 : i64, scratch_operands = 0 : i64, tpu.core_type = #tpu.core_type<tc>} {
    %c0 = arith.constant 0 : index
    %c0_0 = arith.constant 0 : index
    %c0_1 = arith.constant 0 : index
    %0 = vector.load %arg4[%c0, %c0_0, %c0_1] : memref<4x1x32xf32, #tpu.memory_space<vmem>>, vector<1x1x32xf32>
    %1 = vector.shape_cast %0 : vector<1x1x32xf32> to vector<1x32xf32>
    %c1 = arith.constant 1 : index
    %c0_2 = arith.constant 0 : index
    %c0_3 = arith.constant 0 : index
    %2 = vector.load %arg4[%c1, %c0_2, %c0_3] : memref<4x1x32xf32, #tpu.memory_space<vmem>>, vector<1x1x32xf32>
    %3 = vector.shape_cast %2 : vector<1x1x32xf32> to vector<1x32xf32>
    %c2 = arith.constant 2 : index
    %c0_4 = arith.constant 0 : index
    %c0_5 = arith.constant 0 : index
    %4 = vector.load %arg4[%c2, %c0_4, %c0_5] : memref<4x1x32xf32, #tpu.memory_space<vmem>>, vector<1x1x32xf32>
    %5 = vector.shape_cast %4 : vector<1x1x32xf32> to vector<1x32xf32>
    %c3 = arith.constant 3 : index
    %c0_6 = arith.constant 0 : index
    %c0_7 = arith.constant 0 : index
    %6 = vector.load %arg4[%c3, %c0_6, %c0_7] : memref<4x1x32xf32, #tpu.memory_space<vmem>>, vector<1x1x32xf32>
    %7 = vector.shape_cast %6 : vector<1x1x32xf32> to vector<1x32xf32>
    %c0_8 = arith.constant 0 : index
    %c0_9 = arith.constant 0 : index
    %8 = vector.load %arg0[%c0_8, %c0_9] : memref<16x32xf32, #tpu.memory_space<vmem>>, vector<16x32xf32>
    %cst = arith.constant 5.65685415 : f32
    %9 = vector.broadcast %cst : f32 to vector<16x32xf32>
    %10 = arith.mulf %8, %9 : vector<16x32xf32>
    %c0_10 = arith.constant 0 : index
    %c0_11 = arith.constant 0 : index
    %11 = vector.load %arg2[%c0_10, %c0_11] : memref<16x32xf32, #tpu.memory_space<vmem>>, vector<16x32xf32>
    %12 = arith.addf %10, %11 : vector<16x32xf32>
    %c0_12 = arith.constant 0 : index
    %c0_13 = arith.constant 0 : index
    %13 = vector.load %arg1[%c0_12, %c0_13] : memref<16x32xf32, #tpu.memory_space<vmem>>, vector<16x32xf32>
    %cst_14 = arith.constant 5.65685415 : f32
    %14 = vector.broadcast %cst_14 : f32 to vector<16x32xf32>
    %15 = arith.mulf %13, %14 : vector<16x32xf32>
    %c0_15 = arith.constant 0 : index
    %c0_16 = arith.constant 0 : index
    %16 = vector.load %arg3[%c0_15, %c0_16] : memref<16x32xf32, #tpu.memory_space<vmem>>, vector<16x32xf32>
    %17 = arith.addf %15, %16 : vector<16x32xf32>
    %c0_17 = arith.constant 0 : index
    %c0_18 = arith.constant 0 : index
    %18 = vector.load %arg5[%c0_17, %c0_18] : memref<16x8xf32, #tpu.memory_space<vmem>>, vector<16x8xf32>
    %c0_19 = arith.constant 0 : index
    %c0_20 = arith.constant 0 : index
    %19 = vector.load %arg6[%c0_19, %c0_20] : memref<16x8xf32, #tpu.memory_space<vmem>>, vector<16x8xf32>
    %c0_21 = arith.constant 0 : index
    %c0_22 = arith.constant 0 : index
    %20 = vector.load %arg7[%c0_21, %c0_22] : memref<16x8xf32, #tpu.memory_space<vmem>>, vector<16x8xf32>
    %c0_23 = arith.constant 0 : index
    %c0_24 = arith.constant 0 : index
    %c0_25 = arith.constant 0 : index
    %21 = vector.load %arg8[%c0_23, %c0_24, %c0_25] : memref<2x32x96xf32, #tpu.memory_space<vmem>>, vector<1x32x96xf32>
    %22 = vector.shape_cast %21 : vector<1x32x96xf32> to vector<32x96xf32>
    %c0_26 = arith.constant 0 : index
    %c0_27 = arith.constant 0 : index
    %c0_28 = arith.constant 0 : index
    %23 = vector.load %arg9[%c0_26, %c0_27, %c0_28] : memref<2x1x96xf32, #tpu.memory_space<vmem>>, vector<1x1x96xf32>
    %24 = vector.shape_cast %23 : vector<1x1x96xf32> to vector<1x96xf32>
    %cst_29 = arith.constant dense<0.000000e+00> : vector<16x96xf32>
    %25 = tpu.matmul %12, %22, %cst_29 {dimension_numbers = #tpu.dot_dimension_numbers<[1], [0], [0], [1], [0, 0, 1, 1], [], []>} : vector<16x32xf32>, vector<32x96xf32>, vector<16x96xf32> -> vector<16x96xf32>
    %26 = vector.broadcast %24 : vector<1x96xf32> to vector<16x96xf32>
    %27 = arith.addf %25, %26 : vector<16x96xf32>
    %28 = vector.extract_strided_slice %27 {offsets = [0, 0], sizes = [16, 32], strides = [1, 1]} : vector<16x96xf32> to vector<16x32xf32>
    %29 = vector.extract_strided_slice %27 {offsets = [0, 32], sizes = [16, 32], strides = [1, 1]} : vector<16x96xf32> to vector<16x32xf32>
    %30 = vector.extract_strided_slice %27 {offsets = [0, 64], sizes = [16, 32], strides = [1, 1]} : vector<16x96xf32> to vector<16x32xf32>
    %31 = vector.extract_strided_slice %28 {offsets = [0, 0], sizes = [8, 32], strides = [1, 1]} : vector<16x32xf32> to vector<8x32xf32>
    %32 = vector.extract_strided_slice %29 {offsets = [0, 0], sizes = [8, 32], strides = [1, 1]} : vector<16x32xf32> to vector<8x32xf32>
    %33 = vector.extract_strided_slice %30 {offsets = [0, 0], sizes = [8, 32], strides = [1, 1]} : vector<16x32xf32> to vector<8x32xf32>
    %34 = vector.extract_strided_slice %18 {offsets = [0, 0], sizes = [8, 8], strides = [1, 1]} : vector<16x8xf32> to vector<8x8xf32>
    %cst_30 = arith.constant 0.000000e+00 : f32
    %35 = vector.broadcast %cst_30 : f32 to vector<8x32xf32>
    %36 = vector.broadcast %1 : vector<1x32xf32> to vector<8x32xf32>
    %37 = arith.mulf %32, %36 : vector<8x32xf32>
    %cst_31 = arith.constant dense<0.000000e+00> : vector<8x8xf32>
    %38 = tpu.matmul %31, %37, %cst_31 {dimension_numbers = #tpu.dot_dimension_numbers<[1], [1], [0], [0], [0, 0, 1, 0], [], []>} : vector<8x32xf32>, vector<8x32xf32>, vector<8x8xf32> -> vector<8x8xf32>
    %cst_32 = arith.constant 0.353553385 : f32
    %39 = vector.broadcast %cst_32 : f32 to vector<8x8xf32>
    %40 = arith.mulf %38, %39 : vector<8x8xf32>
    %41 = arith.addf %40, %34 : vector<8x8xf32>
    %cst_33 = arith.constant dense<0xFF800000> : vector<8xf32>
    %42 = vector.multi_reduction <maximumf>, %41, %cst_33 [1] : vector<8x8xf32> to vector<8xf32>
    %43 = vector.shape_cast %42 : vector<8xf32> to vector<8x1xf32>
    %44 = vector.broadcast %43 : vector<8x1xf32> to vector<8x8xf32>
    %45 = arith.subf %41, %44 : vector<8x8xf32>
    %46 = math.exp %45 : vector<8x8xf32>
    %cst_34 = arith.constant dense<0.000000e+00> : vector<8xf32>
    %47 = vector.multi_reduction <add>, %46, %cst_34 [1] : vector<8x8xf32> to vector<8xf32>
    %48 = vector.shape_cast %47 : vector<8xf32> to vector<8x1xf32>
    %49 = tpu.reciprocal %48 {approx = true} : vector<8x1xf32> -> vector<8x1xf32>
    %50 = vector.broadcast %49 : vector<8x1xf32> to vector<8x8xf32>
    %51 = arith.mulf %46, %50 : vector<8x8xf32>
    %52 = vector.broadcast %1 : vector<1x32xf32> to vector<8x32xf32>
    %53 = arith.mulf %33, %52 : vector<8x32xf32>
    %cst_35 = arith.constant dense<0.000000e+00> : vector<8x32xf32>
    %54 = tpu.matmul %51, %53, %cst_35 {dimension_numbers = #tpu.dot_dimension_numbers<[1], [0], [0], [1], [0, 0, 1, 1], [], []>} : vector<8x8xf32>, vector<8x32xf32>, vector<8x32xf32> -> vector<8x32xf32>
    %55 = arith.addf %35, %54 : vector<8x32xf32>
    %56 = vector.broadcast %3 : vector<1x32xf32> to vector<8x32xf32>
    %57 = arith.mulf %32, %56 : vector<8x32xf32>
    %cst_36 = arith.constant dense<0.000000e+00> : vector<8x8xf32>
    %58 = tpu.matmul %31, %57, %cst_36 {dimension_numbers = #tpu.dot_dimension_numbers<[1], [1], [0], [0], [0, 0, 1, 0], [], []>} : vector<8x32xf32>, vector<8x32xf32>, vector<8x8xf32> -> vector<8x8xf32>
    %cst_37 = arith.constant 0.353553385 : f32
    %59 = vector.broadcast %cst_37 : f32 to vector<8x8xf32>
    %60 = arith.mulf %58, %59 : vector<8x8xf32>
    %61 = arith.addf %60, %34 : vector<8x8xf32>
    %cst_38 = arith.constant dense<0xFF800000> : vector<8xf32>
    %62 = vector.multi_reduction <maximumf>, %61, %cst_38 [1] : vector<8x8xf32> to vector<8xf32>
    %63 = vector.shape_cast %62 : vector<8xf32> to vector<8x1xf32>
    %64 = vector.broadcast %63 : vector<8x1xf32> to vector<8x8xf32>
    %65 = arith.subf %61, %64 : vector<8x8xf32>
    %66 = math.exp %65 : vector<8x8xf32>
    %cst_39 = arith.constant dense<0.000000e+00> : vector<8xf32>
    %67 = vector.multi_reduction <add>, %66, %cst_39 [1] : vector<8x8xf32> to vector<8xf32>
    %68 = vector.shape_cast %67 : vector<8xf32> to vector<8x1xf32>
    %69 = tpu.reciprocal %68 {approx = true} : vector<8x1xf32> -> vector<8x1xf32>
    %70 = vector.broadcast %69 : vector<8x1xf32> to vector<8x8xf32>
    %71 = arith.mulf %66, %70 : vector<8x8xf32>
    %72 = vector.broadcast %3 : vector<1x32xf32> to vector<8x32xf32>
    %73 = arith.mulf %33, %72 : vector<8x32xf32>
    %cst_40 = arith.constant dense<0.000000e+00> : vector<8x32xf32>
    %74 = tpu.matmul %71, %73, %cst_40 {dimension_numbers = #tpu.dot_dimension_numbers<[1], [0], [0], [1], [0, 0, 1, 1], [], []>} : vector<8x8xf32>, vector<8x32xf32>, vector<8x32xf32> -> vector<8x32xf32>
    %75 = arith.addf %55, %74 : vector<8x32xf32>
    %76 = vector.broadcast %5 : vector<1x32xf32> to vector<8x32xf32>
    %77 = arith.mulf %32, %76 : vector<8x32xf32>
    %cst_41 = arith.constant dense<0.000000e+00> : vector<8x8xf32>
    %78 = tpu.matmul %31, %77, %cst_41 {dimension_numbers = #tpu.dot_dimension_numbers<[1], [1], [0], [0], [0, 0, 1, 0], [], []>} : vector<8x32xf32>, vector<8x32xf32>, vector<8x8xf32> -> vector<8x8xf32>
    %cst_42 = arith.constant 0.353553385 : f32
    %79 = vector.broadcast %cst_42 : f32 to vector<8x8xf32>
    %80 = arith.mulf %78, %79 : vector<8x8xf32>
    %81 = arith.addf %80, %34 : vector<8x8xf32>
    %cst_43 = arith.constant dense<0xFF800000> : vector<8xf32>
    %82 = vector.multi_reduction <maximumf>, %81, %cst_43 [1] : vector<8x8xf32> to vector<8xf32>
    %83 = vector.shape_cast %82 : vector<8xf32> to vector<8x1xf32>
    %84 = vector.broadcast %83 : vector<8x1xf32> to vector<8x8xf32>
    %85 = arith.subf %81, %84 : vector<8x8xf32>
    %86 = math.exp %85 : vector<8x8xf32>
    %cst_44 = arith.constant dense<0.000000e+00> : vector<8xf32>
    %87 = vector.multi_reduction <add>, %86, %cst_44 [1] : vector<8x8xf32> to vector<8xf32>
    %88 = vector.shape_cast %87 : vector<8xf32> to vector<8x1xf32>
    %89 = tpu.reciprocal %88 {approx = true} : vector<8x1xf32> -> vector<8x1xf32>
    %90 = vector.broadcast %89 : vector<8x1xf32> to vector<8x8xf32>
    %91 = arith.mulf %86, %90 : vector<8x8xf32>
    %92 = vector.broadcast %5 : vector<1x32xf32> to vector<8x32xf32>
    %93 = arith.mulf %33, %92 : vector<8x32xf32>
    %cst_45 = arith.constant dense<0.000000e+00> : vector<8x32xf32>
    %94 = tpu.matmul %91, %93, %cst_45 {dimension_numbers = #tpu.dot_dimension_numbers<[1], [0], [0], [1], [0, 0, 1, 1], [], []>} : vector<8x8xf32>, vector<8x32xf32>, vector<8x32xf32> -> vector<8x32xf32>
    %95 = arith.addf %75, %94 : vector<8x32xf32>
    %96 = vector.broadcast %7 : vector<1x32xf32> to vector<8x32xf32>
    %97 = arith.mulf %32, %96 : vector<8x32xf32>
    %cst_46 = arith.constant dense<0.000000e+00> : vector<8x8xf32>
    %98 = tpu.matmul %31, %97, %cst_46 {dimension_numbers = #tpu.dot_dimension_numbers<[1], [1], [0], [0], [0, 0, 1, 0], [], []>} : vector<8x32xf32>, vector<8x32xf32>, vector<8x8xf32> -> vector<8x8xf32>
    %cst_47 = arith.constant 0.353553385 : f32
    %99 = vector.broadcast %cst_47 : f32 to vector<8x8xf32>
    %100 = arith.mulf %98, %99 : vector<8x8xf32>
    %101 = arith.addf %100, %34 : vector<8x8xf32>
    %cst_48 = arith.constant dense<0xFF800000> : vector<8xf32>
    %102 = vector.multi_reduction <maximumf>, %101, %cst_48 [1] : vector<8x8xf32> to vector<8xf32>
    %103 = vector.shape_cast %102 : vector<8xf32> to vector<8x1xf32>
    %104 = vector.broadcast %103 : vector<8x1xf32> to vector<8x8xf32>
    %105 = arith.subf %101, %104 : vector<8x8xf32>
    %106 = math.exp %105 : vector<8x8xf32>
    %cst_49 = arith.constant dense<0.000000e+00> : vector<8xf32>
    %107 = vector.multi_reduction <add>, %106, %cst_49 [1] : vector<8x8xf32> to vector<8xf32>
    %108 = vector.shape_cast %107 : vector<8xf32> to vector<8x1xf32>
    %109 = tpu.reciprocal %108 {approx = true} : vector<8x1xf32> -> vector<8x1xf32>
    %110 = vector.broadcast %109 : vector<8x1xf32> to vector<8x8xf32>
    %111 = arith.mulf %106, %110 : vector<8x8xf32>
    %112 = vector.broadcast %7 : vector<1x32xf32> to vector<8x32xf32>
    %113 = arith.mulf %33, %112 : vector<8x32xf32>
    %cst_50 = arith.constant dense<0.000000e+00> : vector<8x32xf32>
    %114 = tpu.matmul %111, %113, %cst_50 {dimension_numbers = #tpu.dot_dimension_numbers<[1], [0], [0], [1], [0, 0, 1, 1], [], []>} : vector<8x8xf32>, vector<8x32xf32>, vector<8x32xf32> -> vector<8x32xf32>
    %115 = arith.addf %95, %114 : vector<8x32xf32>
    %116 = vector.extract_strided_slice %28 {offsets = [8, 0], sizes = [8, 32], strides = [1, 1]} : vector<16x32xf32> to vector<8x32xf32>
    %117 = vector.extract_strided_slice %29 {offsets = [8, 0], sizes = [8, 32], strides = [1, 1]} : vector<16x32xf32> to vector<8x32xf32>
    %118 = vector.extract_strided_slice %30 {offsets = [8, 0], sizes = [8, 32], strides = [1, 1]} : vector<16x32xf32> to vector<8x32xf32>
    %119 = vector.extract_strided_slice %18 {offsets = [8, 0], sizes = [8, 8], strides = [1, 1]} : vector<16x8xf32> to vector<8x8xf32>
    %cst_51 = arith.constant 0.000000e+00 : f32
    %120 = vector.broadcast %cst_51 : f32 to vector<8x32xf32>
    %121 = vector.broadcast %1 : vector<1x32xf32> to vector<8x32xf32>
    %122 = arith.mulf %117, %121 : vector<8x32xf32>
    %cst_52 = arith.constant dense<0.000000e+00> : vector<8x8xf32>
    %123 = tpu.matmul %116, %122, %cst_52 {dimension_numbers = #tpu.dot_dimension_numbers<[1], [1], [0], [0], [0, 0, 1, 0], [], []>} : vector<8x32xf32>, vector<8x32xf32>, vector<8x8xf32> -> vector<8x8xf32>
    %cst_53 = arith.constant 0.353553385 : f32
    %124 = vector.broadcast %cst_53 : f32 to vector<8x8xf32>
    %125 = arith.mulf %123, %124 : vector<8x8xf32>
    %126 = arith.addf %125, %119 : vector<8x8xf32>
    %cst_54 = arith.constant dense<0xFF800000> : vector<8xf32>
    %127 = vector.multi_reduction <maximumf>, %126, %cst_54 [1] : vector<8x8xf32> to vector<8xf32>
    %128 = vector.shape_cast %127 : vector<8xf32> to vector<8x1xf32>
    %129 = vector.broadcast %128 : vector<8x1xf32> to vector<8x8xf32>
    %130 = arith.subf %126, %129 : vector<8x8xf32>
    %131 = math.exp %130 : vector<8x8xf32>
    %cst_55 = arith.constant dense<0.000000e+00> : vector<8xf32>
    %132 = vector.multi_reduction <add>, %131, %cst_55 [1] : vector<8x8xf32> to vector<8xf32>
    %133 = vector.shape_cast %132 : vector<8xf32> to vector<8x1xf32>
    %134 = tpu.reciprocal %133 {approx = true} : vector<8x1xf32> -> vector<8x1xf32>
    %135 = vector.broadcast %134 : vector<8x1xf32> to vector<8x8xf32>
    %136 = arith.mulf %131, %135 : vector<8x8xf32>
    %137 = vector.broadcast %1 : vector<1x32xf32> to vector<8x32xf32>
    %138 = arith.mulf %118, %137 : vector<8x32xf32>
    %cst_56 = arith.constant dense<0.000000e+00> : vector<8x32xf32>
    %139 = tpu.matmul %136, %138, %cst_56 {dimension_numbers = #tpu.dot_dimension_numbers<[1], [0], [0], [1], [0, 0, 1, 1], [], []>} : vector<8x8xf32>, vector<8x32xf32>, vector<8x32xf32> -> vector<8x32xf32>
    %140 = arith.addf %120, %139 : vector<8x32xf32>
    %141 = vector.broadcast %3 : vector<1x32xf32> to vector<8x32xf32>
    %142 = arith.mulf %117, %141 : vector<8x32xf32>
    %cst_57 = arith.constant dense<0.000000e+00> : vector<8x8xf32>
    %143 = tpu.matmul %116, %142, %cst_57 {dimension_numbers = #tpu.dot_dimension_numbers<[1], [1], [0], [0], [0, 0, 1, 0], [], []>} : vector<8x32xf32>, vector<8x32xf32>, vector<8x8xf32> -> vector<8x8xf32>
    %cst_58 = arith.constant 0.353553385 : f32
    %144 = vector.broadcast %cst_58 : f32 to vector<8x8xf32>
    %145 = arith.mulf %143, %144 : vector<8x8xf32>
    %146 = arith.addf %145, %119 : vector<8x8xf32>
    %cst_59 = arith.constant dense<0xFF800000> : vector<8xf32>
    %147 = vector.multi_reduction <maximumf>, %146, %cst_59 [1] : vector<8x8xf32> to vector<8xf32>
    %148 = vector.shape_cast %147 : vector<8xf32> to vector<8x1xf32>
    %149 = vector.broadcast %148 : vector<8x1xf32> to vector<8x8xf32>
    %150 = arith.subf %146, %149 : vector<8x8xf32>
    %151 = math.exp %150 : vector<8x8xf32>
    %cst_60 = arith.constant dense<0.000000e+00> : vector<8xf32>
    %152 = vector.multi_reduction <add>, %151, %cst_60 [1] : vector<8x8xf32> to vector<8xf32>
    %153 = vector.shape_cast %152 : vector<8xf32> to vector<8x1xf32>
    %154 = tpu.reciprocal %153 {approx = true} : vector<8x1xf32> -> vector<8x1xf32>
    %155 = vector.broadcast %154 : vector<8x1xf32> to vector<8x8xf32>
    %156 = arith.mulf %151, %155 : vector<8x8xf32>
    %157 = vector.broadcast %3 : vector<1x32xf32> to vector<8x32xf32>
    %158 = arith.mulf %118, %157 : vector<8x32xf32>
    %cst_61 = arith.constant dense<0.000000e+00> : vector<8x32xf32>
    %159 = tpu.matmul %156, %158, %cst_61 {dimension_numbers = #tpu.dot_dimension_numbers<[1], [0], [0], [1], [0, 0, 1, 1], [], []>} : vector<8x8xf32>, vector<8x32xf32>, vector<8x32xf32> -> vector<8x32xf32>
    %160 = arith.addf %140, %159 : vector<8x32xf32>
    %161 = vector.broadcast %5 : vector<1x32xf32> to vector<8x32xf32>
    %162 = arith.mulf %117, %161 : vector<8x32xf32>
    %cst_62 = arith.constant dense<0.000000e+00> : vector<8x8xf32>
    %163 = tpu.matmul %116, %162, %cst_62 {dimension_numbers = #tpu.dot_dimension_numbers<[1], [1], [0], [0], [0, 0, 1, 0], [], []>} : vector<8x32xf32>, vector<8x32xf32>, vector<8x8xf32> -> vector<8x8xf32>
    %cst_63 = arith.constant 0.353553385 : f32
    %164 = vector.broadcast %cst_63 : f32 to vector<8x8xf32>
    %165 = arith.mulf %163, %164 : vector<8x8xf32>
    %166 = arith.addf %165, %119 : vector<8x8xf32>
    %cst_64 = arith.constant dense<0xFF800000> : vector<8xf32>
    %167 = vector.multi_reduction <maximumf>, %166, %cst_64 [1] : vector<8x8xf32> to vector<8xf32>
    %168 = vector.shape_cast %167 : vector<8xf32> to vector<8x1xf32>
    %169 = vector.broadcast %168 : vector<8x1xf32> to vector<8x8xf32>
    %170 = arith.subf %166, %169 : vector<8x8xf32>
    %171 = math.exp %170 : vector<8x8xf32>
    %cst_65 = arith.constant dense<0.000000e+00> : vector<8xf32>
    %172 = vector.multi_reduction <add>, %171, %cst_65 [1] : vector<8x8xf32> to vector<8xf32>
    %173 = vector.shape_cast %172 : vector<8xf32> to vector<8x1xf32>
    %174 = tpu.reciprocal %173 {approx = true} : vector<8x1xf32> -> vector<8x1xf32>
    %175 = vector.broadcast %174 : vector<8x1xf32> to vector<8x8xf32>
    %176 = arith.mulf %171, %175 : vector<8x8xf32>
    %177 = vector.broadcast %5 : vector<1x32xf32> to vector<8x32xf32>
    %178 = arith.mulf %118, %177 : vector<8x32xf32>
    %cst_66 = arith.constant dense<0.000000e+00> : vector<8x32xf32>
    %179 = tpu.matmul %176, %178, %cst_66 {dimension_numbers = #tpu.dot_dimension_numbers<[1], [0], [0], [1], [0, 0, 1, 1], [], []>} : vector<8x8xf32>, vector<8x32xf32>, vector<8x32xf32> -> vector<8x32xf32>
    %180 = arith.addf %160, %179 : vector<8x32xf32>
    %181 = vector.broadcast %7 : vector<1x32xf32> to vector<8x32xf32>
    %182 = arith.mulf %117, %181 : vector<8x32xf32>
    %cst_67 = arith.constant dense<0.000000e+00> : vector<8x8xf32>
    %183 = tpu.matmul %116, %182, %cst_67 {dimension_numbers = #tpu.dot_dimension_numbers<[1], [1], [0], [0], [0, 0, 1, 0], [], []>} : vector<8x32xf32>, vector<8x32xf32>, vector<8x8xf32> -> vector<8x8xf32>
    %cst_68 = arith.constant 0.353553385 : f32
    %184 = vector.broadcast %cst_68 : f32 to vector<8x8xf32>
    %185 = arith.mulf %183, %184 : vector<8x8xf32>
    %186 = arith.addf %185, %119 : vector<8x8xf32>
    %cst_69 = arith.constant dense<0xFF800000> : vector<8xf32>
    %187 = vector.multi_reduction <maximumf>, %186, %cst_69 [1] : vector<8x8xf32> to vector<8xf32>
    %188 = vector.shape_cast %187 : vector<8xf32> to vector<8x1xf32>
    %189 = vector.broadcast %188 : vector<8x1xf32> to vector<8x8xf32>
    %190 = arith.subf %186, %189 : vector<8x8xf32>
    %191 = math.exp %190 : vector<8x8xf32>
    %cst_70 = arith.constant dense<0.000000e+00> : vector<8xf32>
    %192 = vector.multi_reduction <add>, %191, %cst_70 [1] : vector<8x8xf32> to vector<8xf32>
    %193 = vector.shape_cast %192 : vector<8xf32> to vector<8x1xf32>
    %194 = tpu.reciprocal %193 {approx = true} : vector<8x1xf32> -> vector<8x1xf32>
    %195 = vector.broadcast %194 : vector<8x1xf32> to vector<8x8xf32>
    %196 = arith.mulf %191, %195 : vector<8x8xf32>
    %197 = vector.broadcast %7 : vector<1x32xf32> to vector<8x32xf32>
    %198 = arith.mulf %118, %197 : vector<8x32xf32>
    %cst_71 = arith.constant dense<0.000000e+00> : vector<8x32xf32>
    %199 = tpu.matmul %196, %198, %cst_71 {dimension_numbers = #tpu.dot_dimension_numbers<[1], [0], [0], [1], [0, 0, 1, 1], [], []>} : vector<8x8xf32>, vector<8x32xf32>, vector<8x32xf32> -> vector<8x32xf32>
    %200 = arith.addf %180, %199 : vector<8x32xf32>
    %201 = tpu.concatenate %115, %200 in 0 : vector<8x32xf32>, vector<8x32xf32> -> vector<16x32xf32>
    %c0_72 = arith.constant 0 : index
    %c0_73 = arith.constant 0 : index
    %c0_74 = arith.constant 0 : index
    %202 = vector.load %arg10[%c0_72, %c0_73, %c0_74] : memref<2x32x32xf32, #tpu.memory_space<vmem>>, vector<1x32x32xf32>
    %203 = vector.shape_cast %202 : vector<1x32x32xf32> to vector<32x32xf32>
    %c0_75 = arith.constant 0 : index
    %c0_76 = arith.constant 0 : index
    %c0_77 = arith.constant 0 : index
    %204 = vector.load %arg11[%c0_75, %c0_76, %c0_77] : memref<2x1x32xf32, #tpu.memory_space<vmem>>, vector<1x1x32xf32>
    %205 = vector.shape_cast %204 : vector<1x1x32xf32> to vector<1x32xf32>
    %cst_78 = arith.constant dense<0.000000e+00> : vector<16x32xf32>
    %206 = tpu.matmul %201, %203, %cst_78 {dimension_numbers = #tpu.dot_dimension_numbers<[1], [0], [0], [1], [0, 0, 1, 1], [], []>} : vector<16x32xf32>, vector<32x32xf32>, vector<16x32xf32> -> vector<16x32xf32>
    %207 = vector.broadcast %205 : vector<1x32xf32> to vector<16x32xf32>
    %208 = arith.addf %206, %207 : vector<16x32xf32>
    %209 = arith.addf %12, %208 : vector<16x32xf32>
    %c0_79 = arith.constant 0 : index
    %c0_80 = arith.constant 0 : index
    %c0_81 = arith.constant 0 : index
    %210 = vector.load %arg12[%c0_79, %c0_80, %c0_81] : memref<2x1x32xf32, #tpu.memory_space<vmem>>, vector<1x1x32xf32>
    %211 = vector.shape_cast %210 : vector<1x1x32xf32> to vector<1x32xf32>
    %c0_82 = arith.constant 0 : index
    %c0_83 = arith.constant 0 : index
    %c0_84 = arith.constant 0 : index
    %212 = vector.load %arg13[%c0_82, %c0_83, %c0_84] : memref<2x1x32xf32, #tpu.memory_space<vmem>>, vector<1x1x32xf32>
    %213 = vector.shape_cast %212 : vector<1x1x32xf32> to vector<1x32xf32>
    %cst_85 = arith.constant dense<0.000000e+00> : vector<16xf32>
    %214 = vector.multi_reduction <add>, %209, %cst_85 [1] : vector<16x32xf32> to vector<16xf32>
    %215 = vector.shape_cast %214 : vector<16xf32> to vector<16x1xf32>
    %cst_86 = arith.constant 3.200000e+01 : f32
    %216 = vector.broadcast %cst_86 : f32 to vector<16x1xf32>
    %217 = arith.divf %215, %216 : vector<16x1xf32>
    %218 = vector.broadcast %217 : vector<16x1xf32> to vector<16x32xf32>
    %219 = arith.subf %209, %218 : vector<16x32xf32>
    %220 = arith.mulf %219, %219 : vector<16x32xf32>
    %cst_87 = arith.constant dense<0.000000e+00> : vector<16xf32>
    %221 = vector.multi_reduction <add>, %220, %cst_87 [1] : vector<16x32xf32> to vector<16xf32>
    %222 = vector.shape_cast %221 : vector<16xf32> to vector<16x1xf32>
    %cst_88 = arith.constant 3.200000e+01 : f32
    %223 = vector.broadcast %cst_88 : f32 to vector<16x1xf32>
    %224 = arith.divf %222, %223 : vector<16x1xf32>
    %cst_89 = arith.constant 9.99999974E-6 : f32
    %225 = vector.broadcast %cst_89 : f32 to vector<16x1xf32>
    %226 = arith.addf %224, %225 : vector<16x1xf32>
    %227 = math.rsqrt %226 : vector<16x1xf32>
    %228 = vector.broadcast %227 : vector<16x1xf32> to vector<16x32xf32>
    %229 = arith.mulf %219, %228 : vector<16x32xf32>
    %230 = vector.broadcast %211 : vector<1x32xf32> to vector<16x32xf32>
    %231 = arith.mulf %229, %230 : vector<16x32xf32>
    %232 = vector.broadcast %213 : vector<1x32xf32> to vector<16x32xf32>
    %233 = arith.addf %231, %232 : vector<16x32xf32>
    %c0_90 = arith.constant 0 : index
    %c0_91 = arith.constant 0 : index
    %c0_92 = arith.constant 0 : index
    %234 = vector.load %arg14[%c0_90, %c0_91, %c0_92] : memref<2x32x64xf32, #tpu.memory_space<vmem>>, vector<1x32x64xf32>
    %235 = vector.shape_cast %234 : vector<1x32x64xf32> to vector<32x64xf32>
    %c0_93 = arith.constant 0 : index
    %c0_94 = arith.constant 0 : index
    %c0_95 = arith.constant 0 : index
    %236 = vector.load %arg15[%c0_93, %c0_94, %c0_95] : memref<2x1x64xf32, #tpu.memory_space<vmem>>, vector<1x1x64xf32>
    %237 = vector.shape_cast %236 : vector<1x1x64xf32> to vector<1x64xf32>
    %cst_96 = arith.constant dense<0.000000e+00> : vector<16x64xf32>
    %238 = tpu.matmul %233, %235, %cst_96 {dimension_numbers = #tpu.dot_dimension_numbers<[1], [0], [0], [1], [0, 0, 1, 1], [], []>} : vector<16x32xf32>, vector<32x64xf32>, vector<16x64xf32> -> vector<16x64xf32>
    %239 = vector.broadcast %237 : vector<1x64xf32> to vector<16x64xf32>
    %240 = arith.addf %238, %239 : vector<16x64xf32>
    %cst_97 = arith.constant 0.000000e+00 : f32
    %241 = vector.broadcast %cst_97 : f32 to vector<16x64xf32>
    %242 = arith.maximumf %240, %241 : vector<16x64xf32>
    %c0_98 = arith.constant 0 : index
    %c0_99 = arith.constant 0 : index
    %c0_100 = arith.constant 0 : index
    %243 = vector.load %arg16[%c0_98, %c0_99, %c0_100] : memref<2x64x32xf32, #tpu.memory_space<vmem>>, vector<1x64x32xf32>
    %244 = vector.shape_cast %243 : vector<1x64x32xf32> to vector<64x32xf32>
    %c0_101 = arith.constant 0 : index
    %c0_102 = arith.constant 0 : index
    %c0_103 = arith.constant 0 : index
    %245 = vector.load %arg17[%c0_101, %c0_102, %c0_103] : memref<2x1x32xf32, #tpu.memory_space<vmem>>, vector<1x1x32xf32>
    %246 = vector.shape_cast %245 : vector<1x1x32xf32> to vector<1x32xf32>
    %cst_104 = arith.constant dense<0.000000e+00> : vector<16x32xf32>
    %247 = tpu.matmul %242, %244, %cst_104 {dimension_numbers = #tpu.dot_dimension_numbers<[1], [0], [0], [1], [0, 0, 1, 1], [], []>} : vector<16x64xf32>, vector<64x32xf32>, vector<16x32xf32> -> vector<16x32xf32>
    %248 = vector.broadcast %246 : vector<1x32xf32> to vector<16x32xf32>
    %249 = arith.addf %247, %248 : vector<16x32xf32>
    %250 = arith.addf %233, %249 : vector<16x32xf32>
    %c0_105 = arith.constant 0 : index
    %c0_106 = arith.constant 0 : index
    %c0_107 = arith.constant 0 : index
    %251 = vector.load %arg18[%c0_105, %c0_106, %c0_107] : memref<2x1x32xf32, #tpu.memory_space<vmem>>, vector<1x1x32xf32>
    %252 = vector.shape_cast %251 : vector<1x1x32xf32> to vector<1x32xf32>
    %c0_108 = arith.constant 0 : index
    %c0_109 = arith.constant 0 : index
    %c0_110 = arith.constant 0 : index
    %253 = vector.load %arg19[%c0_108, %c0_109, %c0_110] : memref<2x1x32xf32, #tpu.memory_space<vmem>>, vector<1x1x32xf32>
    %254 = vector.shape_cast %253 : vector<1x1x32xf32> to vector<1x32xf32>
    %cst_111 = arith.constant dense<0.000000e+00> : vector<16xf32>
    %255 = vector.multi_reduction <add>, %250, %cst_111 [1] : vector<16x32xf32> to vector<16xf32>
    %256 = vector.shape_cast %255 : vector<16xf32> to vector<16x1xf32>
    %cst_112 = arith.constant 3.200000e+01 : f32
    %257 = vector.broadcast %cst_112 : f32 to vector<16x1xf32>
    %258 = arith.divf %256, %257 : vector<16x1xf32>
    %259 = vector.broadcast %258 : vector<16x1xf32> to vector<16x32xf32>
    %260 = arith.subf %250, %259 : vector<16x32xf32>
    %261 = arith.mulf %260, %260 : vector<16x32xf32>
    %cst_113 = arith.constant dense<0.000000e+00> : vector<16xf32>
    %262 = vector.multi_reduction <add>, %261, %cst_113 [1] : vector<16x32xf32> to vector<16xf32>
    %263 = vector.shape_cast %262 : vector<16xf32> to vector<16x1xf32>
    %cst_114 = arith.constant 3.200000e+01 : f32
    %264 = vector.broadcast %cst_114 : f32 to vector<16x1xf32>
    %265 = arith.divf %263, %264 : vector<16x1xf32>
    %cst_115 = arith.constant 9.99999974E-6 : f32
    %266 = vector.broadcast %cst_115 : f32 to vector<16x1xf32>
    %267 = arith.addf %265, %266 : vector<16x1xf32>
    %268 = math.rsqrt %267 : vector<16x1xf32>
    %269 = vector.broadcast %268 : vector<16x1xf32> to vector<16x32xf32>
    %270 = arith.mulf %260, %269 : vector<16x32xf32>
    %271 = vector.broadcast %252 : vector<1x32xf32> to vector<16x32xf32>
    %272 = arith.mulf %270, %271 : vector<16x32xf32>
    %273 = vector.broadcast %254 : vector<1x32xf32> to vector<16x32xf32>
    %274 = arith.addf %272, %273 : vector<16x32xf32>
    %c1_116 = arith.constant 1 : index
    %c0_117 = arith.constant 0 : index
    %c0_118 = arith.constant 0 : index
    %275 = vector.load %arg8[%c1_116, %c0_117, %c0_118] : memref<2x32x96xf32, #tpu.memory_space<vmem>>, vector<1x32x96xf32>
    %276 = vector.shape_cast %275 : vector<1x32x96xf32> to vector<32x96xf32>
    %c1_119 = arith.constant 1 : index
    %c0_120 = arith.constant 0 : index
    %c0_121 = arith.constant 0 : index
    %277 = vector.load %arg9[%c1_119, %c0_120, %c0_121] : memref<2x1x96xf32, #tpu.memory_space<vmem>>, vector<1x1x96xf32>
    %278 = vector.shape_cast %277 : vector<1x1x96xf32> to vector<1x96xf32>
    %cst_122 = arith.constant dense<0.000000e+00> : vector<16x96xf32>
    %279 = tpu.matmul %274, %276, %cst_122 {dimension_numbers = #tpu.dot_dimension_numbers<[1], [0], [0], [1], [0, 0, 1, 1], [], []>} : vector<16x32xf32>, vector<32x96xf32>, vector<16x96xf32> -> vector<16x96xf32>
    %280 = vector.broadcast %278 : vector<1x96xf32> to vector<16x96xf32>
    %281 = arith.addf %279, %280 : vector<16x96xf32>
    %282 = vector.extract_strided_slice %281 {offsets = [0, 0], sizes = [16, 32], strides = [1, 1]} : vector<16x96xf32> to vector<16x32xf32>
    %283 = vector.extract_strided_slice %281 {offsets = [0, 32], sizes = [16, 32], strides = [1, 1]} : vector<16x96xf32> to vector<16x32xf32>
    %284 = vector.extract_strided_slice %281 {offsets = [0, 64], sizes = [16, 32], strides = [1, 1]} : vector<16x96xf32> to vector<16x32xf32>
    %285 = vector.extract_strided_slice %282 {offsets = [0, 0], sizes = [8, 32], strides = [1, 1]} : vector<16x32xf32> to vector<8x32xf32>
    %286 = vector.extract_strided_slice %283 {offsets = [0, 0], sizes = [8, 32], strides = [1, 1]} : vector<16x32xf32> to vector<8x32xf32>
    %287 = vector.extract_strided_slice %284 {offsets = [0, 0], sizes = [8, 32], strides = [1, 1]} : vector<16x32xf32> to vector<8x32xf32>
    %288 = vector.extract_strided_slice %18 {offsets = [0, 0], sizes = [8, 8], strides = [1, 1]} : vector<16x8xf32> to vector<8x8xf32>
    %cst_123 = arith.constant 0.000000e+00 : f32
    %289 = vector.broadcast %cst_123 : f32 to vector<8x32xf32>
    %290 = vector.broadcast %1 : vector<1x32xf32> to vector<8x32xf32>
    %291 = arith.mulf %286, %290 : vector<8x32xf32>
    %cst_124 = arith.constant dense<0.000000e+00> : vector<8x8xf32>
    %292 = tpu.matmul %285, %291, %cst_124 {dimension_numbers = #tpu.dot_dimension_numbers<[1], [1], [0], [0], [0, 0, 1, 0], [], []>} : vector<8x32xf32>, vector<8x32xf32>, vector<8x8xf32> -> vector<8x8xf32>
    %cst_125 = arith.constant 0.353553385 : f32
    %293 = vector.broadcast %cst_125 : f32 to vector<8x8xf32>
    %294 = arith.mulf %292, %293 : vector<8x8xf32>
    %295 = arith.addf %294, %288 : vector<8x8xf32>
    %cst_126 = arith.constant dense<0xFF800000> : vector<8xf32>
    %296 = vector.multi_reduction <maximumf>, %295, %cst_126 [1] : vector<8x8xf32> to vector<8xf32>
    %297 = vector.shape_cast %296 : vector<8xf32> to vector<8x1xf32>
    %298 = vector.broadcast %297 : vector<8x1xf32> to vector<8x8xf32>
    %299 = arith.subf %295, %298 : vector<8x8xf32>
    %300 = math.exp %299 : vector<8x8xf32>
    %cst_127 = arith.constant dense<0.000000e+00> : vector<8xf32>
    %301 = vector.multi_reduction <add>, %300, %cst_127 [1] : vector<8x8xf32> to vector<8xf32>
    %302 = vector.shape_cast %301 : vector<8xf32> to vector<8x1xf32>
    %303 = tpu.reciprocal %302 {approx = true} : vector<8x1xf32> -> vector<8x1xf32>
    %304 = vector.broadcast %303 : vector<8x1xf32> to vector<8x8xf32>
    %305 = arith.mulf %300, %304 : vector<8x8xf32>
    %306 = vector.broadcast %1 : vector<1x32xf32> to vector<8x32xf32>
    %307 = arith.mulf %287, %306 : vector<8x32xf32>
    %cst_128 = arith.constant dense<0.000000e+00> : vector<8x32xf32>
    %308 = tpu.matmul %305, %307, %cst_128 {dimension_numbers = #tpu.dot_dimension_numbers<[1], [0], [0], [1], [0, 0, 1, 1], [], []>} : vector<8x8xf32>, vector<8x32xf32>, vector<8x32xf32> -> vector<8x32xf32>
    %309 = arith.addf %289, %308 : vector<8x32xf32>
    %310 = vector.broadcast %3 : vector<1x32xf32> to vector<8x32xf32>
    %311 = arith.mulf %286, %310 : vector<8x32xf32>
    %cst_129 = arith.constant dense<0.000000e+00> : vector<8x8xf32>
    %312 = tpu.matmul %285, %311, %cst_129 {dimension_numbers = #tpu.dot_dimension_numbers<[1], [1], [0], [0], [0, 0, 1, 0], [], []>} : vector<8x32xf32>, vector<8x32xf32>, vector<8x8xf32> -> vector<8x8xf32>
    %cst_130 = arith.constant 0.353553385 : f32
    %313 = vector.broadcast %cst_130 : f32 to vector<8x8xf32>
    %314 = arith.mulf %312, %313 : vector<8x8xf32>
    %315 = arith.addf %314, %288 : vector<8x8xf32>
    %cst_131 = arith.constant dense<0xFF800000> : vector<8xf32>
    %316 = vector.multi_reduction <maximumf>, %315, %cst_131 [1] : vector<8x8xf32> to vector<8xf32>
    %317 = vector.shape_cast %316 : vector<8xf32> to vector<8x1xf32>
    %318 = vector.broadcast %317 : vector<8x1xf32> to vector<8x8xf32>
    %319 = arith.subf %315, %318 : vector<8x8xf32>
    %320 = math.exp %319 : vector<8x8xf32>
    %cst_132 = arith.constant dense<0.000000e+00> : vector<8xf32>
    %321 = vector.multi_reduction <add>, %320, %cst_132 [1] : vector<8x8xf32> to vector<8xf32>
    %322 = vector.shape_cast %321 : vector<8xf32> to vector<8x1xf32>
    %323 = tpu.reciprocal %322 {approx = true} : vector<8x1xf32> -> vector<8x1xf32>
    %324 = vector.broadcast %323 : vector<8x1xf32> to vector<8x8xf32>
    %325 = arith.mulf %320, %324 : vector<8x8xf32>
    %326 = vector.broadcast %3 : vector<1x32xf32> to vector<8x32xf32>
    %327 = arith.mulf %287, %326 : vector<8x32xf32>
    %cst_133 = arith.constant dense<0.000000e+00> : vector<8x32xf32>
    %328 = tpu.matmul %325, %327, %cst_133 {dimension_numbers = #tpu.dot_dimension_numbers<[1], [0], [0], [1], [0, 0, 1, 1], [], []>} : vector<8x8xf32>, vector<8x32xf32>, vector<8x32xf32> -> vector<8x32xf32>
    %329 = arith.addf %309, %328 : vector<8x32xf32>
    %330 = vector.broadcast %5 : vector<1x32xf32> to vector<8x32xf32>
    %331 = arith.mulf %286, %330 : vector<8x32xf32>
    %cst_134 = arith.constant dense<0.000000e+00> : vector<8x8xf32>
    %332 = tpu.matmul %285, %331, %cst_134 {dimension_numbers = #tpu.dot_dimension_numbers<[1], [1], [0], [0], [0, 0, 1, 0], [], []>} : vector<8x32xf32>, vector<8x32xf32>, vector<8x8xf32> -> vector<8x8xf32>
    %cst_135 = arith.constant 0.353553385 : f32
    %333 = vector.broadcast %cst_135 : f32 to vector<8x8xf32>
    %334 = arith.mulf %332, %333 : vector<8x8xf32>
    %335 = arith.addf %334, %288 : vector<8x8xf32>
    %cst_136 = arith.constant dense<0xFF800000> : vector<8xf32>
    %336 = vector.multi_reduction <maximumf>, %335, %cst_136 [1] : vector<8x8xf32> to vector<8xf32>
    %337 = vector.shape_cast %336 : vector<8xf32> to vector<8x1xf32>
    %338 = vector.broadcast %337 : vector<8x1xf32> to vector<8x8xf32>
    %339 = arith.subf %335, %338 : vector<8x8xf32>
    %340 = math.exp %339 : vector<8x8xf32>
    %cst_137 = arith.constant dense<0.000000e+00> : vector<8xf32>
    %341 = vector.multi_reduction <add>, %340, %cst_137 [1] : vector<8x8xf32> to vector<8xf32>
    %342 = vector.shape_cast %341 : vector<8xf32> to vector<8x1xf32>
    %343 = tpu.reciprocal %342 {approx = true} : vector<8x1xf32> -> vector<8x1xf32>
    %344 = vector.broadcast %343 : vector<8x1xf32> to vector<8x8xf32>
    %345 = arith.mulf %340, %344 : vector<8x8xf32>
    %346 = vector.broadcast %5 : vector<1x32xf32> to vector<8x32xf32>
    %347 = arith.mulf %287, %346 : vector<8x32xf32>
    %cst_138 = arith.constant dense<0.000000e+00> : vector<8x32xf32>
    %348 = tpu.matmul %345, %347, %cst_138 {dimension_numbers = #tpu.dot_dimension_numbers<[1], [0], [0], [1], [0, 0, 1, 1], [], []>} : vector<8x8xf32>, vector<8x32xf32>, vector<8x32xf32> -> vector<8x32xf32>
    %349 = arith.addf %329, %348 : vector<8x32xf32>
    %350 = vector.broadcast %7 : vector<1x32xf32> to vector<8x32xf32>
    %351 = arith.mulf %286, %350 : vector<8x32xf32>
    %cst_139 = arith.constant dense<0.000000e+00> : vector<8x8xf32>
    %352 = tpu.matmul %285, %351, %cst_139 {dimension_numbers = #tpu.dot_dimension_numbers<[1], [1], [0], [0], [0, 0, 1, 0], [], []>} : vector<8x32xf32>, vector<8x32xf32>, vector<8x8xf32> -> vector<8x8xf32>
    %cst_140 = arith.constant 0.353553385 : f32
    %353 = vector.broadcast %cst_140 : f32 to vector<8x8xf32>
    %354 = arith.mulf %352, %353 : vector<8x8xf32>
    %355 = arith.addf %354, %288 : vector<8x8xf32>
    %cst_141 = arith.constant dense<0xFF800000> : vector<8xf32>
    %356 = vector.multi_reduction <maximumf>, %355, %cst_141 [1] : vector<8x8xf32> to vector<8xf32>
    %357 = vector.shape_cast %356 : vector<8xf32> to vector<8x1xf32>
    %358 = vector.broadcast %357 : vector<8x1xf32> to vector<8x8xf32>
    %359 = arith.subf %355, %358 : vector<8x8xf32>
    %360 = math.exp %359 : vector<8x8xf32>
    %cst_142 = arith.constant dense<0.000000e+00> : vector<8xf32>
    %361 = vector.multi_reduction <add>, %360, %cst_142 [1] : vector<8x8xf32> to vector<8xf32>
    %362 = vector.shape_cast %361 : vector<8xf32> to vector<8x1xf32>
    %363 = tpu.reciprocal %362 {approx = true} : vector<8x1xf32> -> vector<8x1xf32>
    %364 = vector.broadcast %363 : vector<8x1xf32> to vector<8x8xf32>
    %365 = arith.mulf %360, %364 : vector<8x8xf32>
    %366 = vector.broadcast %7 : vector<1x32xf32> to vector<8x32xf32>
    %367 = arith.mulf %287, %366 : vector<8x32xf32>
    %cst_143 = arith.constant dense<0.000000e+00> : vector<8x32xf32>
    %368 = tpu.matmul %365, %367, %cst_143 {dimension_numbers = #tpu.dot_dimension_numbers<[1], [0], [0], [1], [0, 0, 1, 1], [], []>} : vector<8x8xf32>, vector<8x32xf32>, vector<8x32xf32> -> vector<8x32xf32>
    %369 = arith.addf %349, %368 : vector<8x32xf32>
    %370 = vector.extract_strided_slice %282 {offsets = [8, 0], sizes = [8, 32], strides = [1, 1]} : vector<16x32xf32> to vector<8x32xf32>
    %371 = vector.extract_strided_slice %283 {offsets = [8, 0], sizes = [8, 32], strides = [1, 1]} : vector<16x32xf32> to vector<8x32xf32>
    %372 = vector.extract_strided_slice %284 {offsets = [8, 0], sizes = [8, 32], strides = [1, 1]} : vector<16x32xf32> to vector<8x32xf32>
    %373 = vector.extract_strided_slice %18 {offsets = [8, 0], sizes = [8, 8], strides = [1, 1]} : vector<16x8xf32> to vector<8x8xf32>
    %cst_144 = arith.constant 0.000000e+00 : f32
    %374 = vector.broadcast %cst_144 : f32 to vector<8x32xf32>
    %375 = vector.broadcast %1 : vector<1x32xf32> to vector<8x32xf32>
    %376 = arith.mulf %371, %375 : vector<8x32xf32>
    %cst_145 = arith.constant dense<0.000000e+00> : vector<8x8xf32>
    %377 = tpu.matmul %370, %376, %cst_145 {dimension_numbers = #tpu.dot_dimension_numbers<[1], [1], [0], [0], [0, 0, 1, 0], [], []>} : vector<8x32xf32>, vector<8x32xf32>, vector<8x8xf32> -> vector<8x8xf32>
    %cst_146 = arith.constant 0.353553385 : f32
    %378 = vector.broadcast %cst_146 : f32 to vector<8x8xf32>
    %379 = arith.mulf %377, %378 : vector<8x8xf32>
    %380 = arith.addf %379, %373 : vector<8x8xf32>
    %cst_147 = arith.constant dense<0xFF800000> : vector<8xf32>
    %381 = vector.multi_reduction <maximumf>, %380, %cst_147 [1] : vector<8x8xf32> to vector<8xf32>
    %382 = vector.shape_cast %381 : vector<8xf32> to vector<8x1xf32>
    %383 = vector.broadcast %382 : vector<8x1xf32> to vector<8x8xf32>
    %384 = arith.subf %380, %383 : vector<8x8xf32>
    %385 = math.exp %384 : vector<8x8xf32>
    %cst_148 = arith.constant dense<0.000000e+00> : vector<8xf32>
    %386 = vector.multi_reduction <add>, %385, %cst_148 [1] : vector<8x8xf32> to vector<8xf32>
    %387 = vector.shape_cast %386 : vector<8xf32> to vector<8x1xf32>
    %388 = tpu.reciprocal %387 {approx = true} : vector<8x1xf32> -> vector<8x1xf32>
    %389 = vector.broadcast %388 : vector<8x1xf32> to vector<8x8xf32>
    %390 = arith.mulf %385, %389 : vector<8x8xf32>
    %391 = vector.broadcast %1 : vector<1x32xf32> to vector<8x32xf32>
    %392 = arith.mulf %372, %391 : vector<8x32xf32>
    %cst_149 = arith.constant dense<0.000000e+00> : vector<8x32xf32>
    %393 = tpu.matmul %390, %392, %cst_149 {dimension_numbers = #tpu.dot_dimension_numbers<[1], [0], [0], [1], [0, 0, 1, 1], [], []>} : vector<8x8xf32>, vector<8x32xf32>, vector<8x32xf32> -> vector<8x32xf32>
    %394 = arith.addf %374, %393 : vector<8x32xf32>
    %395 = vector.broadcast %3 : vector<1x32xf32> to vector<8x32xf32>
    %396 = arith.mulf %371, %395 : vector<8x32xf32>
    %cst_150 = arith.constant dense<0.000000e+00> : vector<8x8xf32>
    %397 = tpu.matmul %370, %396, %cst_150 {dimension_numbers = #tpu.dot_dimension_numbers<[1], [1], [0], [0], [0, 0, 1, 0], [], []>} : vector<8x32xf32>, vector<8x32xf32>, vector<8x8xf32> -> vector<8x8xf32>
    %cst_151 = arith.constant 0.353553385 : f32
    %398 = vector.broadcast %cst_151 : f32 to vector<8x8xf32>
    %399 = arith.mulf %397, %398 : vector<8x8xf32>
    %400 = arith.addf %399, %373 : vector<8x8xf32>
    %cst_152 = arith.constant dense<0xFF800000> : vector<8xf32>
    %401 = vector.multi_reduction <maximumf>, %400, %cst_152 [1] : vector<8x8xf32> to vector<8xf32>
    %402 = vector.shape_cast %401 : vector<8xf32> to vector<8x1xf32>
    %403 = vector.broadcast %402 : vector<8x1xf32> to vector<8x8xf32>
    %404 = arith.subf %400, %403 : vector<8x8xf32>
    %405 = math.exp %404 : vector<8x8xf32>
    %cst_153 = arith.constant dense<0.000000e+00> : vector<8xf32>
    %406 = vector.multi_reduction <add>, %405, %cst_153 [1] : vector<8x8xf32> to vector<8xf32>
    %407 = vector.shape_cast %406 : vector<8xf32> to vector<8x1xf32>
    %408 = tpu.reciprocal %407 {approx = true} : vector<8x1xf32> -> vector<8x1xf32>
    %409 = vector.broadcast %408 : vector<8x1xf32> to vector<8x8xf32>
    %410 = arith.mulf %405, %409 : vector<8x8xf32>
    %411 = vector.broadcast %3 : vector<1x32xf32> to vector<8x32xf32>
    %412 = arith.mulf %372, %411 : vector<8x32xf32>
    %cst_154 = arith.constant dense<0.000000e+00> : vector<8x32xf32>
    %413 = tpu.matmul %410, %412, %cst_154 {dimension_numbers = #tpu.dot_dimension_numbers<[1], [0], [0], [1], [0, 0, 1, 1], [], []>} : vector<8x8xf32>, vector<8x32xf32>, vector<8x32xf32> -> vector<8x32xf32>
    %414 = arith.addf %394, %413 : vector<8x32xf32>
    %415 = vector.broadcast %5 : vector<1x32xf32> to vector<8x32xf32>
    %416 = arith.mulf %371, %415 : vector<8x32xf32>
    %cst_155 = arith.constant dense<0.000000e+00> : vector<8x8xf32>
    %417 = tpu.matmul %370, %416, %cst_155 {dimension_numbers = #tpu.dot_dimension_numbers<[1], [1], [0], [0], [0, 0, 1, 0], [], []>} : vector<8x32xf32>, vector<8x32xf32>, vector<8x8xf32> -> vector<8x8xf32>
    %cst_156 = arith.constant 0.353553385 : f32
    %418 = vector.broadcast %cst_156 : f32 to vector<8x8xf32>
    %419 = arith.mulf %417, %418 : vector<8x8xf32>
    %420 = arith.addf %419, %373 : vector<8x8xf32>
    %cst_157 = arith.constant dense<0xFF800000> : vector<8xf32>
    %421 = vector.multi_reduction <maximumf>, %420, %cst_157 [1] : vector<8x8xf32> to vector<8xf32>
    %422 = vector.shape_cast %421 : vector<8xf32> to vector<8x1xf32>
    %423 = vector.broadcast %422 : vector<8x1xf32> to vector<8x8xf32>
    %424 = arith.subf %420, %423 : vector<8x8xf32>
    %425 = math.exp %424 : vector<8x8xf32>
    %cst_158 = arith.constant dense<0.000000e+00> : vector<8xf32>
    %426 = vector.multi_reduction <add>, %425, %cst_158 [1] : vector<8x8xf32> to vector<8xf32>
    %427 = vector.shape_cast %426 : vector<8xf32> to vector<8x1xf32>
    %428 = tpu.reciprocal %427 {approx = true} : vector<8x1xf32> -> vector<8x1xf32>
    %429 = vector.broadcast %428 : vector<8x1xf32> to vector<8x8xf32>
    %430 = arith.mulf %425, %429 : vector<8x8xf32>
    %431 = vector.broadcast %5 : vector<1x32xf32> to vector<8x32xf32>
    %432 = arith.mulf %372, %431 : vector<8x32xf32>
    %cst_159 = arith.constant dense<0.000000e+00> : vector<8x32xf32>
    %433 = tpu.matmul %430, %432, %cst_159 {dimension_numbers = #tpu.dot_dimension_numbers<[1], [0], [0], [1], [0, 0, 1, 1], [], []>} : vector<8x8xf32>, vector<8x32xf32>, vector<8x32xf32> -> vector<8x32xf32>
    %434 = arith.addf %414, %433 : vector<8x32xf32>
    %435 = vector.broadcast %7 : vector<1x32xf32> to vector<8x32xf32>
    %436 = arith.mulf %371, %435 : vector<8x32xf32>
    %cst_160 = arith.constant dense<0.000000e+00> : vector<8x8xf32>
    %437 = tpu.matmul %370, %436, %cst_160 {dimension_numbers = #tpu.dot_dimension_numbers<[1], [1], [0], [0], [0, 0, 1, 0], [], []>} : vector<8x32xf32>, vector<8x32xf32>, vector<8x8xf32> -> vector<8x8xf32>
    %cst_161 = arith.constant 0.353553385 : f32
    %438 = vector.broadcast %cst_161 : f32 to vector<8x8xf32>
    %439 = arith.mulf %437, %438 : vector<8x8xf32>
    %440 = arith.addf %439, %373 : vector<8x8xf32>
    %cst_162 = arith.constant dense<0xFF800000> : vector<8xf32>
    %441 = vector.multi_reduction <maximumf>, %440, %cst_162 [1] : vector<8x8xf32> to vector<8xf32>
    %442 = vector.shape_cast %441 : vector<8xf32> to vector<8x1xf32>
    %443 = vector.broadcast %442 : vector<8x1xf32> to vector<8x8xf32>
    %444 = arith.subf %440, %443 : vector<8x8xf32>
    %445 = math.exp %444 : vector<8x8xf32>
    %cst_163 = arith.constant dense<0.000000e+00> : vector<8xf32>
    %446 = vector.multi_reduction <add>, %445, %cst_163 [1] : vector<8x8xf32> to vector<8xf32>
    %447 = vector.shape_cast %446 : vector<8xf32> to vector<8x1xf32>
    %448 = tpu.reciprocal %447 {approx = true} : vector<8x1xf32> -> vector<8x1xf32>
    %449 = vector.broadcast %448 : vector<8x1xf32> to vector<8x8xf32>
    %450 = arith.mulf %445, %449 : vector<8x8xf32>
    %451 = vector.broadcast %7 : vector<1x32xf32> to vector<8x32xf32>
    %452 = arith.mulf %372, %451 : vector<8x32xf32>
    %cst_164 = arith.constant dense<0.000000e+00> : vector<8x32xf32>
    %453 = tpu.matmul %450, %452, %cst_164 {dimension_numbers = #tpu.dot_dimension_numbers<[1], [0], [0], [1], [0, 0, 1, 1], [], []>} : vector<8x8xf32>, vector<8x32xf32>, vector<8x32xf32> -> vector<8x32xf32>
    %454 = arith.addf %434, %453 : vector<8x32xf32>
    %455 = tpu.concatenate %369, %454 in 0 : vector<8x32xf32>, vector<8x32xf32> -> vector<16x32xf32>
    %c1_165 = arith.constant 1 : index
    %c0_166 = arith.constant 0 : index
    %c0_167 = arith.constant 0 : index
    %456 = vector.load %arg10[%c1_165, %c0_166, %c0_167] : memref<2x32x32xf32, #tpu.memory_space<vmem>>, vector<1x32x32xf32>
    %457 = vector.shape_cast %456 : vector<1x32x32xf32> to vector<32x32xf32>
    %c1_168 = arith.constant 1 : index
    %c0_169 = arith.constant 0 : index
    %c0_170 = arith.constant 0 : index
    %458 = vector.load %arg11[%c1_168, %c0_169, %c0_170] : memref<2x1x32xf32, #tpu.memory_space<vmem>>, vector<1x1x32xf32>
    %459 = vector.shape_cast %458 : vector<1x1x32xf32> to vector<1x32xf32>
    %cst_171 = arith.constant dense<0.000000e+00> : vector<16x32xf32>
    %460 = tpu.matmul %455, %457, %cst_171 {dimension_numbers = #tpu.dot_dimension_numbers<[1], [0], [0], [1], [0, 0, 1, 1], [], []>} : vector<16x32xf32>, vector<32x32xf32>, vector<16x32xf32> -> vector<16x32xf32>
    %461 = vector.broadcast %459 : vector<1x32xf32> to vector<16x32xf32>
    %462 = arith.addf %460, %461 : vector<16x32xf32>
    %463 = arith.addf %274, %462 : vector<16x32xf32>
    %c1_172 = arith.constant 1 : index
    %c0_173 = arith.constant 0 : index
    %c0_174 = arith.constant 0 : index
    %464 = vector.load %arg12[%c1_172, %c0_173, %c0_174] : memref<2x1x32xf32, #tpu.memory_space<vmem>>, vector<1x1x32xf32>
    %465 = vector.shape_cast %464 : vector<1x1x32xf32> to vector<1x32xf32>
    %c1_175 = arith.constant 1 : index
    %c0_176 = arith.constant 0 : index
    %c0_177 = arith.constant 0 : index
    %466 = vector.load %arg13[%c1_175, %c0_176, %c0_177] : memref<2x1x32xf32, #tpu.memory_space<vmem>>, vector<1x1x32xf32>
    %467 = vector.shape_cast %466 : vector<1x1x32xf32> to vector<1x32xf32>
    %cst_178 = arith.constant dense<0.000000e+00> : vector<16xf32>
    %468 = vector.multi_reduction <add>, %463, %cst_178 [1] : vector<16x32xf32> to vector<16xf32>
    %469 = vector.shape_cast %468 : vector<16xf32> to vector<16x1xf32>
    %cst_179 = arith.constant 3.200000e+01 : f32
    %470 = vector.broadcast %cst_179 : f32 to vector<16x1xf32>
    %471 = arith.divf %469, %470 : vector<16x1xf32>
    %472 = vector.broadcast %471 : vector<16x1xf32> to vector<16x32xf32>
    %473 = arith.subf %463, %472 : vector<16x32xf32>
    %474 = arith.mulf %473, %473 : vector<16x32xf32>
    %cst_180 = arith.constant dense<0.000000e+00> : vector<16xf32>
    %475 = vector.multi_reduction <add>, %474, %cst_180 [1] : vector<16x32xf32> to vector<16xf32>
    %476 = vector.shape_cast %475 : vector<16xf32> to vector<16x1xf32>
    %cst_181 = arith.constant 3.200000e+01 : f32
    %477 = vector.broadcast %cst_181 : f32 to vector<16x1xf32>
    %478 = arith.divf %476, %477 : vector<16x1xf32>
    %cst_182 = arith.constant 9.99999974E-6 : f32
    %479 = vector.broadcast %cst_182 : f32 to vector<16x1xf32>
    %480 = arith.addf %478, %479 : vector<16x1xf32>
    %481 = math.rsqrt %480 : vector<16x1xf32>
    %482 = vector.broadcast %481 : vector<16x1xf32> to vector<16x32xf32>
    %483 = arith.mulf %473, %482 : vector<16x32xf32>
    %484 = vector.broadcast %465 : vector<1x32xf32> to vector<16x32xf32>
    %485 = arith.mulf %483, %484 : vector<16x32xf32>
    %486 = vector.broadcast %467 : vector<1x32xf32> to vector<16x32xf32>
    %487 = arith.addf %485, %486 : vector<16x32xf32>
    %c1_183 = arith.constant 1 : index
    %c0_184 = arith.constant 0 : index
    %c0_185 = arith.constant 0 : index
    %488 = vector.load %arg14[%c1_183, %c0_184, %c0_185] : memref<2x32x64xf32, #tpu.memory_space<vmem>>, vector<1x32x64xf32>
    %489 = vector.shape_cast %488 : vector<1x32x64xf32> to vector<32x64xf32>
    %c1_186 = arith.constant 1 : index
    %c0_187 = arith.constant 0 : index
    %c0_188 = arith.constant 0 : index
    %490 = vector.load %arg15[%c1_186, %c0_187, %c0_188] : memref<2x1x64xf32, #tpu.memory_space<vmem>>, vector<1x1x64xf32>
    %491 = vector.shape_cast %490 : vector<1x1x64xf32> to vector<1x64xf32>
    %cst_189 = arith.constant dense<0.000000e+00> : vector<16x64xf32>
    %492 = tpu.matmul %487, %489, %cst_189 {dimension_numbers = #tpu.dot_dimension_numbers<[1], [0], [0], [1], [0, 0, 1, 1], [], []>} : vector<16x32xf32>, vector<32x64xf32>, vector<16x64xf32> -> vector<16x64xf32>
    %493 = vector.broadcast %491 : vector<1x64xf32> to vector<16x64xf32>
    %494 = arith.addf %492, %493 : vector<16x64xf32>
    %cst_190 = arith.constant 0.000000e+00 : f32
    %495 = vector.broadcast %cst_190 : f32 to vector<16x64xf32>
    %496 = arith.maximumf %494, %495 : vector<16x64xf32>
    %c1_191 = arith.constant 1 : index
    %c0_192 = arith.constant 0 : index
    %c0_193 = arith.constant 0 : index
    %497 = vector.load %arg16[%c1_191, %c0_192, %c0_193] : memref<2x64x32xf32, #tpu.memory_space<vmem>>, vector<1x64x32xf32>
    %498 = vector.shape_cast %497 : vector<1x64x32xf32> to vector<64x32xf32>
    %c1_194 = arith.constant 1 : index
    %c0_195 = arith.constant 0 : index
    %c0_196 = arith.constant 0 : index
    %499 = vector.load %arg17[%c1_194, %c0_195, %c0_196] : memref<2x1x32xf32, #tpu.memory_space<vmem>>, vector<1x1x32xf32>
    %500 = vector.shape_cast %499 : vector<1x1x32xf32> to vector<1x32xf32>
    %cst_197 = arith.constant dense<0.000000e+00> : vector<16x32xf32>
    %501 = tpu.matmul %496, %498, %cst_197 {dimension_numbers = #tpu.dot_dimension_numbers<[1], [0], [0], [1], [0, 0, 1, 1], [], []>} : vector<16x64xf32>, vector<64x32xf32>, vector<16x32xf32> -> vector<16x32xf32>
    %502 = vector.broadcast %500 : vector<1x32xf32> to vector<16x32xf32>
    %503 = arith.addf %501, %502 : vector<16x32xf32>
    %504 = arith.addf %487, %503 : vector<16x32xf32>
    %c1_198 = arith.constant 1 : index
    %c0_199 = arith.constant 0 : index
    %c0_200 = arith.constant 0 : index
    %505 = vector.load %arg18[%c1_198, %c0_199, %c0_200] : memref<2x1x32xf32, #tpu.memory_space<vmem>>, vector<1x1x32xf32>
    %506 = vector.shape_cast %505 : vector<1x1x32xf32> to vector<1x32xf32>
    %c1_201 = arith.constant 1 : index
    %c0_202 = arith.constant 0 : index
    %c0_203 = arith.constant 0 : index
    %507 = vector.load %arg19[%c1_201, %c0_202, %c0_203] : memref<2x1x32xf32, #tpu.memory_space<vmem>>, vector<1x1x32xf32>
    %508 = vector.shape_cast %507 : vector<1x1x32xf32> to vector<1x32xf32>
    %cst_204 = arith.constant dense<0.000000e+00> : vector<16xf32>
    %509 = vector.multi_reduction <add>, %504, %cst_204 [1] : vector<16x32xf32> to vector<16xf32>
    %510 = vector.shape_cast %509 : vector<16xf32> to vector<16x1xf32>
    %cst_205 = arith.constant 3.200000e+01 : f32
    %511 = vector.broadcast %cst_205 : f32 to vector<16x1xf32>
    %512 = arith.divf %510, %511 : vector<16x1xf32>
    %513 = vector.broadcast %512 : vector<16x1xf32> to vector<16x32xf32>
    %514 = arith.subf %504, %513 : vector<16x32xf32>
    %515 = arith.mulf %514, %514 : vector<16x32xf32>
    %cst_206 = arith.constant dense<0.000000e+00> : vector<16xf32>
    %516 = vector.multi_reduction <add>, %515, %cst_206 [1] : vector<16x32xf32> to vector<16xf32>
    %517 = vector.shape_cast %516 : vector<16xf32> to vector<16x1xf32>
    %cst_207 = arith.constant 3.200000e+01 : f32
    %518 = vector.broadcast %cst_207 : f32 to vector<16x1xf32>
    %519 = arith.divf %517, %518 : vector<16x1xf32>
    %cst_208 = arith.constant 9.99999974E-6 : f32
    %520 = vector.broadcast %cst_208 : f32 to vector<16x1xf32>
    %521 = arith.addf %519, %520 : vector<16x1xf32>
    %522 = math.rsqrt %521 : vector<16x1xf32>
    %523 = vector.broadcast %522 : vector<16x1xf32> to vector<16x32xf32>
    %524 = arith.mulf %514, %523 : vector<16x32xf32>
    %525 = vector.broadcast %506 : vector<1x32xf32> to vector<16x32xf32>
    %526 = arith.mulf %524, %525 : vector<16x32xf32>
    %527 = vector.broadcast %508 : vector<1x32xf32> to vector<16x32xf32>
    %528 = arith.addf %526, %527 : vector<16x32xf32>
    %c0_209 = arith.constant 0 : index
    %c0_210 = arith.constant 0 : index
    %529 = vector.load %arg20[%c0_209, %c0_210] : memref<1x32xf32, #tpu.memory_space<vmem>>, vector<1x32xf32>
    %c0_211 = arith.constant 0 : index
    %c0_212 = arith.constant 0 : index
    %530 = vector.load %arg21[%c0_211, %c0_212] : memref<1x32xf32, #tpu.memory_space<vmem>>, vector<1x32xf32>
    %cst_213 = arith.constant dense<0.000000e+00> : vector<16xf32>
    %531 = vector.multi_reduction <add>, %528, %cst_213 [1] : vector<16x32xf32> to vector<16xf32>
    %532 = vector.shape_cast %531 : vector<16xf32> to vector<16x1xf32>
    %cst_214 = arith.constant 3.200000e+01 : f32
    %533 = vector.broadcast %cst_214 : f32 to vector<16x1xf32>
    %534 = arith.divf %532, %533 : vector<16x1xf32>
    %535 = vector.broadcast %534 : vector<16x1xf32> to vector<16x32xf32>
    %536 = arith.subf %528, %535 : vector<16x32xf32>
    %537 = arith.mulf %536, %536 : vector<16x32xf32>
    %cst_215 = arith.constant dense<0.000000e+00> : vector<16xf32>
    %538 = vector.multi_reduction <add>, %537, %cst_215 [1] : vector<16x32xf32> to vector<16xf32>
    %539 = vector.shape_cast %538 : vector<16xf32> to vector<16x1xf32>
    %cst_216 = arith.constant 3.200000e+01 : f32
    %540 = vector.broadcast %cst_216 : f32 to vector<16x1xf32>
    %541 = arith.divf %539, %540 : vector<16x1xf32>
    %cst_217 = arith.constant 9.99999974E-6 : f32
    %542 = vector.broadcast %cst_217 : f32 to vector<16x1xf32>
    %543 = arith.addf %541, %542 : vector<16x1xf32>
    %544 = math.rsqrt %543 : vector<16x1xf32>
    %545 = vector.broadcast %544 : vector<16x1xf32> to vector<16x32xf32>
    %546 = arith.mulf %536, %545 : vector<16x32xf32>
    %547 = vector.broadcast %529 : vector<1x32xf32> to vector<16x32xf32>
    %548 = arith.mulf %546, %547 : vector<16x32xf32>
    %549 = vector.broadcast %530 : vector<1x32xf32> to vector<16x32xf32>
    %550 = arith.addf %548, %549 : vector<16x32xf32>
    %c0_218 = arith.constant 0 : index
    %c0_219 = arith.constant 0 : index
    %c0_220 = arith.constant 0 : index
    %551 = vector.load %arg22[%c0_218, %c0_219, %c0_220] : memref<2x32x96xf32, #tpu.memory_space<vmem>>, vector<1x32x96xf32>
    %552 = vector.shape_cast %551 : vector<1x32x96xf32> to vector<32x96xf32>
    %c0_221 = arith.constant 0 : index
    %c0_222 = arith.constant 0 : index
    %c0_223 = arith.constant 0 : index
    %553 = vector.load %arg23[%c0_221, %c0_222, %c0_223] : memref<2x1x96xf32, #tpu.memory_space<vmem>>, vector<1x1x96xf32>
    %554 = vector.shape_cast %553 : vector<1x1x96xf32> to vector<1x96xf32>
    %cst_224 = arith.constant dense<0.000000e+00> : vector<16x96xf32>
    %555 = tpu.matmul %17, %552, %cst_224 {dimension_numbers = #tpu.dot_dimension_numbers<[1], [0], [0], [1], [0, 0, 1, 1], [], []>} : vector<16x32xf32>, vector<32x96xf32>, vector<16x96xf32> -> vector<16x96xf32>
    %556 = vector.broadcast %554 : vector<1x96xf32> to vector<16x96xf32>
    %557 = arith.addf %555, %556 : vector<16x96xf32>
    %558 = vector.extract_strided_slice %557 {offsets = [0, 0], sizes = [16, 32], strides = [1, 1]} : vector<16x96xf32> to vector<16x32xf32>
    %559 = vector.extract_strided_slice %557 {offsets = [0, 32], sizes = [16, 32], strides = [1, 1]} : vector<16x96xf32> to vector<16x32xf32>
    %560 = vector.extract_strided_slice %557 {offsets = [0, 64], sizes = [16, 32], strides = [1, 1]} : vector<16x96xf32> to vector<16x32xf32>
    %561 = vector.extract_strided_slice %558 {offsets = [0, 0], sizes = [8, 32], strides = [1, 1]} : vector<16x32xf32> to vector<8x32xf32>
    %562 = vector.extract_strided_slice %559 {offsets = [0, 0], sizes = [8, 32], strides = [1, 1]} : vector<16x32xf32> to vector<8x32xf32>
    %563 = vector.extract_strided_slice %560 {offsets = [0, 0], sizes = [8, 32], strides = [1, 1]} : vector<16x32xf32> to vector<8x32xf32>
    %564 = vector.extract_strided_slice %19 {offsets = [0, 0], sizes = [8, 8], strides = [1, 1]} : vector<16x8xf32> to vector<8x8xf32>
    %cst_225 = arith.constant 0.000000e+00 : f32
    %565 = vector.broadcast %cst_225 : f32 to vector<8x32xf32>
    %566 = vector.broadcast %1 : vector<1x32xf32> to vector<8x32xf32>
    %567 = arith.mulf %562, %566 : vector<8x32xf32>
    %cst_226 = arith.constant dense<0.000000e+00> : vector<8x8xf32>
    %568 = tpu.matmul %561, %567, %cst_226 {dimension_numbers = #tpu.dot_dimension_numbers<[1], [1], [0], [0], [0, 0, 1, 0], [], []>} : vector<8x32xf32>, vector<8x32xf32>, vector<8x8xf32> -> vector<8x8xf32>
    %cst_227 = arith.constant 0.353553385 : f32
    %569 = vector.broadcast %cst_227 : f32 to vector<8x8xf32>
    %570 = arith.mulf %568, %569 : vector<8x8xf32>
    %571 = arith.addf %570, %564 : vector<8x8xf32>
    %cst_228 = arith.constant dense<0xFF800000> : vector<8xf32>
    %572 = vector.multi_reduction <maximumf>, %571, %cst_228 [1] : vector<8x8xf32> to vector<8xf32>
    %573 = vector.shape_cast %572 : vector<8xf32> to vector<8x1xf32>
    %574 = vector.broadcast %573 : vector<8x1xf32> to vector<8x8xf32>
    %575 = arith.subf %571, %574 : vector<8x8xf32>
    %576 = math.exp %575 : vector<8x8xf32>
    %cst_229 = arith.constant dense<0.000000e+00> : vector<8xf32>
    %577 = vector.multi_reduction <add>, %576, %cst_229 [1] : vector<8x8xf32> to vector<8xf32>
    %578 = vector.shape_cast %577 : vector<8xf32> to vector<8x1xf32>
    %579 = tpu.reciprocal %578 {approx = true} : vector<8x1xf32> -> vector<8x1xf32>
    %580 = vector.broadcast %579 : vector<8x1xf32> to vector<8x8xf32>
    %581 = arith.mulf %576, %580 : vector<8x8xf32>
    %582 = vector.broadcast %1 : vector<1x32xf32> to vector<8x32xf32>
    %583 = arith.mulf %563, %582 : vector<8x32xf32>
    %cst_230 = arith.constant dense<0.000000e+00> : vector<8x32xf32>
    %584 = tpu.matmul %581, %583, %cst_230 {dimension_numbers = #tpu.dot_dimension_numbers<[1], [0], [0], [1], [0, 0, 1, 1], [], []>} : vector<8x8xf32>, vector<8x32xf32>, vector<8x32xf32> -> vector<8x32xf32>
    %585 = arith.addf %565, %584 : vector<8x32xf32>
    %586 = vector.broadcast %3 : vector<1x32xf32> to vector<8x32xf32>
    %587 = arith.mulf %562, %586 : vector<8x32xf32>
    %cst_231 = arith.constant dense<0.000000e+00> : vector<8x8xf32>
    %588 = tpu.matmul %561, %587, %cst_231 {dimension_numbers = #tpu.dot_dimension_numbers<[1], [1], [0], [0], [0, 0, 1, 0], [], []>} : vector<8x32xf32>, vector<8x32xf32>, vector<8x8xf32> -> vector<8x8xf32>
    %cst_232 = arith.constant 0.353553385 : f32
    %589 = vector.broadcast %cst_232 : f32 to vector<8x8xf32>
    %590 = arith.mulf %588, %589 : vector<8x8xf32>
    %591 = arith.addf %590, %564 : vector<8x8xf32>
    %cst_233 = arith.constant dense<0xFF800000> : vector<8xf32>
    %592 = vector.multi_reduction <maximumf>, %591, %cst_233 [1] : vector<8x8xf32> to vector<8xf32>
    %593 = vector.shape_cast %592 : vector<8xf32> to vector<8x1xf32>
    %594 = vector.broadcast %593 : vector<8x1xf32> to vector<8x8xf32>
    %595 = arith.subf %591, %594 : vector<8x8xf32>
    %596 = math.exp %595 : vector<8x8xf32>
    %cst_234 = arith.constant dense<0.000000e+00> : vector<8xf32>
    %597 = vector.multi_reduction <add>, %596, %cst_234 [1] : vector<8x8xf32> to vector<8xf32>
    %598 = vector.shape_cast %597 : vector<8xf32> to vector<8x1xf32>
    %599 = tpu.reciprocal %598 {approx = true} : vector<8x1xf32> -> vector<8x1xf32>
    %600 = vector.broadcast %599 : vector<8x1xf32> to vector<8x8xf32>
    %601 = arith.mulf %596, %600 : vector<8x8xf32>
    %602 = vector.broadcast %3 : vector<1x32xf32> to vector<8x32xf32>
    %603 = arith.mulf %563, %602 : vector<8x32xf32>
    %cst_235 = arith.constant dense<0.000000e+00> : vector<8x32xf32>
    %604 = tpu.matmul %601, %603, %cst_235 {dimension_numbers = #tpu.dot_dimension_numbers<[1], [0], [0], [1], [0, 0, 1, 1], [], []>} : vector<8x8xf32>, vector<8x32xf32>, vector<8x32xf32> -> vector<8x32xf32>
    %605 = arith.addf %585, %604 : vector<8x32xf32>
    %606 = vector.broadcast %5 : vector<1x32xf32> to vector<8x32xf32>
    %607 = arith.mulf %562, %606 : vector<8x32xf32>
    %cst_236 = arith.constant dense<0.000000e+00> : vector<8x8xf32>
    %608 = tpu.matmul %561, %607, %cst_236 {dimension_numbers = #tpu.dot_dimension_numbers<[1], [1], [0], [0], [0, 0, 1, 0], [], []>} : vector<8x32xf32>, vector<8x32xf32>, vector<8x8xf32> -> vector<8x8xf32>
    %cst_237 = arith.constant 0.353553385 : f32
    %609 = vector.broadcast %cst_237 : f32 to vector<8x8xf32>
    %610 = arith.mulf %608, %609 : vector<8x8xf32>
    %611 = arith.addf %610, %564 : vector<8x8xf32>
    %cst_238 = arith.constant dense<0xFF800000> : vector<8xf32>
    %612 = vector.multi_reduction <maximumf>, %611, %cst_238 [1] : vector<8x8xf32> to vector<8xf32>
    %613 = vector.shape_cast %612 : vector<8xf32> to vector<8x1xf32>
    %614 = vector.broadcast %613 : vector<8x1xf32> to vector<8x8xf32>
    %615 = arith.subf %611, %614 : vector<8x8xf32>
    %616 = math.exp %615 : vector<8x8xf32>
    %cst_239 = arith.constant dense<0.000000e+00> : vector<8xf32>
    %617 = vector.multi_reduction <add>, %616, %cst_239 [1] : vector<8x8xf32> to vector<8xf32>
    %618 = vector.shape_cast %617 : vector<8xf32> to vector<8x1xf32>
    %619 = tpu.reciprocal %618 {approx = true} : vector<8x1xf32> -> vector<8x1xf32>
    %620 = vector.broadcast %619 : vector<8x1xf32> to vector<8x8xf32>
    %621 = arith.mulf %616, %620 : vector<8x8xf32>
    %622 = vector.broadcast %5 : vector<1x32xf32> to vector<8x32xf32>
    %623 = arith.mulf %563, %622 : vector<8x32xf32>
    %cst_240 = arith.constant dense<0.000000e+00> : vector<8x32xf32>
    %624 = tpu.matmul %621, %623, %cst_240 {dimension_numbers = #tpu.dot_dimension_numbers<[1], [0], [0], [1], [0, 0, 1, 1], [], []>} : vector<8x8xf32>, vector<8x32xf32>, vector<8x32xf32> -> vector<8x32xf32>
    %625 = arith.addf %605, %624 : vector<8x32xf32>
    %626 = vector.broadcast %7 : vector<1x32xf32> to vector<8x32xf32>
    %627 = arith.mulf %562, %626 : vector<8x32xf32>
    %cst_241 = arith.constant dense<0.000000e+00> : vector<8x8xf32>
    %628 = tpu.matmul %561, %627, %cst_241 {dimension_numbers = #tpu.dot_dimension_numbers<[1], [1], [0], [0], [0, 0, 1, 0], [], []>} : vector<8x32xf32>, vector<8x32xf32>, vector<8x8xf32> -> vector<8x8xf32>
    %cst_242 = arith.constant 0.353553385 : f32
    %629 = vector.broadcast %cst_242 : f32 to vector<8x8xf32>
    %630 = arith.mulf %628, %629 : vector<8x8xf32>
    %631 = arith.addf %630, %564 : vector<8x8xf32>
    %cst_243 = arith.constant dense<0xFF800000> : vector<8xf32>
    %632 = vector.multi_reduction <maximumf>, %631, %cst_243 [1] : vector<8x8xf32> to vector<8xf32>
    %633 = vector.shape_cast %632 : vector<8xf32> to vector<8x1xf32>
    %634 = vector.broadcast %633 : vector<8x1xf32> to vector<8x8xf32>
    %635 = arith.subf %631, %634 : vector<8x8xf32>
    %636 = math.exp %635 : vector<8x8xf32>
    %cst_244 = arith.constant dense<0.000000e+00> : vector<8xf32>
    %637 = vector.multi_reduction <add>, %636, %cst_244 [1] : vector<8x8xf32> to vector<8xf32>
    %638 = vector.shape_cast %637 : vector<8xf32> to vector<8x1xf32>
    %639 = tpu.reciprocal %638 {approx = true} : vector<8x1xf32> -> vector<8x1xf32>
    %640 = vector.broadcast %639 : vector<8x1xf32> to vector<8x8xf32>
    %641 = arith.mulf %636, %640 : vector<8x8xf32>
    %642 = vector.broadcast %7 : vector<1x32xf32> to vector<8x32xf32>
    %643 = arith.mulf %563, %642 : vector<8x32xf32>
    %cst_245 = arith.constant dense<0.000000e+00> : vector<8x32xf32>
    %644 = tpu.matmul %641, %643, %cst_245 {dimension_numbers = #tpu.dot_dimension_numbers<[1], [0], [0], [1], [0, 0, 1, 1], [], []>} : vector<8x8xf32>, vector<8x32xf32>, vector<8x32xf32> -> vector<8x32xf32>
    %645 = arith.addf %625, %644 : vector<8x32xf32>
    %646 = vector.extract_strided_slice %558 {offsets = [8, 0], sizes = [8, 32], strides = [1, 1]} : vector<16x32xf32> to vector<8x32xf32>
    %647 = vector.extract_strided_slice %559 {offsets = [8, 0], sizes = [8, 32], strides = [1, 1]} : vector<16x32xf32> to vector<8x32xf32>
    %648 = vector.extract_strided_slice %560 {offsets = [8, 0], sizes = [8, 32], strides = [1, 1]} : vector<16x32xf32> to vector<8x32xf32>
    %649 = vector.extract_strided_slice %19 {offsets = [8, 0], sizes = [8, 8], strides = [1, 1]} : vector<16x8xf32> to vector<8x8xf32>
    %cst_246 = arith.constant 0.000000e+00 : f32
    %650 = vector.broadcast %cst_246 : f32 to vector<8x32xf32>
    %651 = vector.broadcast %1 : vector<1x32xf32> to vector<8x32xf32>
    %652 = arith.mulf %647, %651 : vector<8x32xf32>
    %cst_247 = arith.constant dense<0.000000e+00> : vector<8x8xf32>
    %653 = tpu.matmul %646, %652, %cst_247 {dimension_numbers = #tpu.dot_dimension_numbers<[1], [1], [0], [0], [0, 0, 1, 0], [], []>} : vector<8x32xf32>, vector<8x32xf32>, vector<8x8xf32> -> vector<8x8xf32>
    %cst_248 = arith.constant 0.353553385 : f32
    %654 = vector.broadcast %cst_248 : f32 to vector<8x8xf32>
    %655 = arith.mulf %653, %654 : vector<8x8xf32>
    %656 = arith.addf %655, %649 : vector<8x8xf32>
    %cst_249 = arith.constant dense<0xFF800000> : vector<8xf32>
    %657 = vector.multi_reduction <maximumf>, %656, %cst_249 [1] : vector<8x8xf32> to vector<8xf32>
    %658 = vector.shape_cast %657 : vector<8xf32> to vector<8x1xf32>
    %659 = vector.broadcast %658 : vector<8x1xf32> to vector<8x8xf32>
    %660 = arith.subf %656, %659 : vector<8x8xf32>
    %661 = math.exp %660 : vector<8x8xf32>
    %cst_250 = arith.constant dense<0.000000e+00> : vector<8xf32>
    %662 = vector.multi_reduction <add>, %661, %cst_250 [1] : vector<8x8xf32> to vector<8xf32>
    %663 = vector.shape_cast %662 : vector<8xf32> to vector<8x1xf32>
    %664 = tpu.reciprocal %663 {approx = true} : vector<8x1xf32> -> vector<8x1xf32>
    %665 = vector.broadcast %664 : vector<8x1xf32> to vector<8x8xf32>
    %666 = arith.mulf %661, %665 : vector<8x8xf32>
    %667 = vector.broadcast %1 : vector<1x32xf32> to vector<8x32xf32>
    %668 = arith.mulf %648, %667 : vector<8x32xf32>
    %cst_251 = arith.constant dense<0.000000e+00> : vector<8x32xf32>
    %669 = tpu.matmul %666, %668, %cst_251 {dimension_numbers = #tpu.dot_dimension_numbers<[1], [0], [0], [1], [0, 0, 1, 1], [], []>} : vector<8x8xf32>, vector<8x32xf32>, vector<8x32xf32> -> vector<8x32xf32>
    %670 = arith.addf %650, %669 : vector<8x32xf32>
    %671 = vector.broadcast %3 : vector<1x32xf32> to vector<8x32xf32>
    %672 = arith.mulf %647, %671 : vector<8x32xf32>
    %cst_252 = arith.constant dense<0.000000e+00> : vector<8x8xf32>
    %673 = tpu.matmul %646, %672, %cst_252 {dimension_numbers = #tpu.dot_dimension_numbers<[1], [1], [0], [0], [0, 0, 1, 0], [], []>} : vector<8x32xf32>, vector<8x32xf32>, vector<8x8xf32> -> vector<8x8xf32>
    %cst_253 = arith.constant 0.353553385 : f32
    %674 = vector.broadcast %cst_253 : f32 to vector<8x8xf32>
    %675 = arith.mulf %673, %674 : vector<8x8xf32>
    %676 = arith.addf %675, %649 : vector<8x8xf32>
    %cst_254 = arith.constant dense<0xFF800000> : vector<8xf32>
    %677 = vector.multi_reduction <maximumf>, %676, %cst_254 [1] : vector<8x8xf32> to vector<8xf32>
    %678 = vector.shape_cast %677 : vector<8xf32> to vector<8x1xf32>
    %679 = vector.broadcast %678 : vector<8x1xf32> to vector<8x8xf32>
    %680 = arith.subf %676, %679 : vector<8x8xf32>
    %681 = math.exp %680 : vector<8x8xf32>
    %cst_255 = arith.constant dense<0.000000e+00> : vector<8xf32>
    %682 = vector.multi_reduction <add>, %681, %cst_255 [1] : vector<8x8xf32> to vector<8xf32>
    %683 = vector.shape_cast %682 : vector<8xf32> to vector<8x1xf32>
    %684 = tpu.reciprocal %683 {approx = true} : vector<8x1xf32> -> vector<8x1xf32>
    %685 = vector.broadcast %684 : vector<8x1xf32> to vector<8x8xf32>
    %686 = arith.mulf %681, %685 : vector<8x8xf32>
    %687 = vector.broadcast %3 : vector<1x32xf32> to vector<8x32xf32>
    %688 = arith.mulf %648, %687 : vector<8x32xf32>
    %cst_256 = arith.constant dense<0.000000e+00> : vector<8x32xf32>
    %689 = tpu.matmul %686, %688, %cst_256 {dimension_numbers = #tpu.dot_dimension_numbers<[1], [0], [0], [1], [0, 0, 1, 1], [], []>} : vector<8x8xf32>, vector<8x32xf32>, vector<8x32xf32> -> vector<8x32xf32>
    %690 = arith.addf %670, %689 : vector<8x32xf32>
    %691 = vector.broadcast %5 : vector<1x32xf32> to vector<8x32xf32>
    %692 = arith.mulf %647, %691 : vector<8x32xf32>
    %cst_257 = arith.constant dense<0.000000e+00> : vector<8x8xf32>
    %693 = tpu.matmul %646, %692, %cst_257 {dimension_numbers = #tpu.dot_dimension_numbers<[1], [1], [0], [0], [0, 0, 1, 0], [], []>} : vector<8x32xf32>, vector<8x32xf32>, vector<8x8xf32> -> vector<8x8xf32>
    %cst_258 = arith.constant 0.353553385 : f32
    %694 = vector.broadcast %cst_258 : f32 to vector<8x8xf32>
    %695 = arith.mulf %693, %694 : vector<8x8xf32>
    %696 = arith.addf %695, %649 : vector<8x8xf32>
    %cst_259 = arith.constant dense<0xFF800000> : vector<8xf32>
    %697 = vector.multi_reduction <maximumf>, %696, %cst_259 [1] : vector<8x8xf32> to vector<8xf32>
    %698 = vector.shape_cast %697 : vector<8xf32> to vector<8x1xf32>
    %699 = vector.broadcast %698 : vector<8x1xf32> to vector<8x8xf32>
    %700 = arith.subf %696, %699 : vector<8x8xf32>
    %701 = math.exp %700 : vector<8x8xf32>
    %cst_260 = arith.constant dense<0.000000e+00> : vector<8xf32>
    %702 = vector.multi_reduction <add>, %701, %cst_260 [1] : vector<8x8xf32> to vector<8xf32>
    %703 = vector.shape_cast %702 : vector<8xf32> to vector<8x1xf32>
    %704 = tpu.reciprocal %703 {approx = true} : vector<8x1xf32> -> vector<8x1xf32>
    %705 = vector.broadcast %704 : vector<8x1xf32> to vector<8x8xf32>
    %706 = arith.mulf %701, %705 : vector<8x8xf32>
    %707 = vector.broadcast %5 : vector<1x32xf32> to vector<8x32xf32>
    %708 = arith.mulf %648, %707 : vector<8x32xf32>
    %cst_261 = arith.constant dense<0.000000e+00> : vector<8x32xf32>
    %709 = tpu.matmul %706, %708, %cst_261 {dimension_numbers = #tpu.dot_dimension_numbers<[1], [0], [0], [1], [0, 0, 1, 1], [], []>} : vector<8x8xf32>, vector<8x32xf32>, vector<8x32xf32> -> vector<8x32xf32>
    %710 = arith.addf %690, %709 : vector<8x32xf32>
    %711 = vector.broadcast %7 : vector<1x32xf32> to vector<8x32xf32>
    %712 = arith.mulf %647, %711 : vector<8x32xf32>
    %cst_262 = arith.constant dense<0.000000e+00> : vector<8x8xf32>
    %713 = tpu.matmul %646, %712, %cst_262 {dimension_numbers = #tpu.dot_dimension_numbers<[1], [1], [0], [0], [0, 0, 1, 0], [], []>} : vector<8x32xf32>, vector<8x32xf32>, vector<8x8xf32> -> vector<8x8xf32>
    %cst_263 = arith.constant 0.353553385 : f32
    %714 = vector.broadcast %cst_263 : f32 to vector<8x8xf32>
    %715 = arith.mulf %713, %714 : vector<8x8xf32>
    %716 = arith.addf %715, %649 : vector<8x8xf32>
    %cst_264 = arith.constant dense<0xFF800000> : vector<8xf32>
    %717 = vector.multi_reduction <maximumf>, %716, %cst_264 [1] : vector<8x8xf32> to vector<8xf32>
    %718 = vector.shape_cast %717 : vector<8xf32> to vector<8x1xf32>
    %719 = vector.broadcast %718 : vector<8x1xf32> to vector<8x8xf32>
    %720 = arith.subf %716, %719 : vector<8x8xf32>
    %721 = math.exp %720 : vector<8x8xf32>
    %cst_265 = arith.constant dense<0.000000e+00> : vector<8xf32>
    %722 = vector.multi_reduction <add>, %721, %cst_265 [1] : vector<8x8xf32> to vector<8xf32>
    %723 = vector.shape_cast %722 : vector<8xf32> to vector<8x1xf32>
    %724 = tpu.reciprocal %723 {approx = true} : vector<8x1xf32> -> vector<8x1xf32>
    %725 = vector.broadcast %724 : vector<8x1xf32> to vector<8x8xf32>
    %726 = arith.mulf %721, %725 : vector<8x8xf32>
    %727 = vector.broadcast %7 : vector<1x32xf32> to vector<8x32xf32>
    %728 = arith.mulf %648, %727 : vector<8x32xf32>
    %cst_266 = arith.constant dense<0.000000e+00> : vector<8x32xf32>
    %729 = tpu.matmul %726, %728, %cst_266 {dimension_numbers = #tpu.dot_dimension_numbers<[1], [0], [0], [1], [0, 0, 1, 1], [], []>} : vector<8x8xf32>, vector<8x32xf32>, vector<8x32xf32> -> vector<8x32xf32>
    %730 = arith.addf %710, %729 : vector<8x32xf32>
    %731 = tpu.concatenate %645, %730 in 0 : vector<8x32xf32>, vector<8x32xf32> -> vector<16x32xf32>
    %c0_267 = arith.constant 0 : index
    %c0_268 = arith.constant 0 : index
    %c0_269 = arith.constant 0 : index
    %732 = vector.load %arg24[%c0_267, %c0_268, %c0_269] : memref<2x32x32xf32, #tpu.memory_space<vmem>>, vector<1x32x32xf32>
    %733 = vector.shape_cast %732 : vector<1x32x32xf32> to vector<32x32xf32>
    %c0_270 = arith.constant 0 : index
    %c0_271 = arith.constant 0 : index
    %c0_272 = arith.constant 0 : index
    %734 = vector.load %arg25[%c0_270, %c0_271, %c0_272] : memref<2x1x32xf32, #tpu.memory_space<vmem>>, vector<1x1x32xf32>
    %735 = vector.shape_cast %734 : vector<1x1x32xf32> to vector<1x32xf32>
    %cst_273 = arith.constant dense<0.000000e+00> : vector<16x32xf32>
    %736 = tpu.matmul %731, %733, %cst_273 {dimension_numbers = #tpu.dot_dimension_numbers<[1], [0], [0], [1], [0, 0, 1, 1], [], []>} : vector<16x32xf32>, vector<32x32xf32>, vector<16x32xf32> -> vector<16x32xf32>
    %737 = vector.broadcast %735 : vector<1x32xf32> to vector<16x32xf32>
    %738 = arith.addf %736, %737 : vector<16x32xf32>
    %739 = arith.addf %17, %738 : vector<16x32xf32>
    %c0_274 = arith.constant 0 : index
    %c0_275 = arith.constant 0 : index
    %c0_276 = arith.constant 0 : index
    %740 = vector.load %arg26[%c0_274, %c0_275, %c0_276] : memref<2x1x32xf32, #tpu.memory_space<vmem>>, vector<1x1x32xf32>
    %741 = vector.shape_cast %740 : vector<1x1x32xf32> to vector<1x32xf32>
    %c0_277 = arith.constant 0 : index
    %c0_278 = arith.constant 0 : index
    %c0_279 = arith.constant 0 : index
    %742 = vector.load %arg27[%c0_277, %c0_278, %c0_279] : memref<2x1x32xf32, #tpu.memory_space<vmem>>, vector<1x1x32xf32>
    %743 = vector.shape_cast %742 : vector<1x1x32xf32> to vector<1x32xf32>
    %cst_280 = arith.constant dense<0.000000e+00> : vector<16xf32>
    %744 = vector.multi_reduction <add>, %739, %cst_280 [1] : vector<16x32xf32> to vector<16xf32>
    %745 = vector.shape_cast %744 : vector<16xf32> to vector<16x1xf32>
    %cst_281 = arith.constant 3.200000e+01 : f32
    %746 = vector.broadcast %cst_281 : f32 to vector<16x1xf32>
    %747 = arith.divf %745, %746 : vector<16x1xf32>
    %748 = vector.broadcast %747 : vector<16x1xf32> to vector<16x32xf32>
    %749 = arith.subf %739, %748 : vector<16x32xf32>
    %750 = arith.mulf %749, %749 : vector<16x32xf32>
    %cst_282 = arith.constant dense<0.000000e+00> : vector<16xf32>
    %751 = vector.multi_reduction <add>, %750, %cst_282 [1] : vector<16x32xf32> to vector<16xf32>
    %752 = vector.shape_cast %751 : vector<16xf32> to vector<16x1xf32>
    %cst_283 = arith.constant 3.200000e+01 : f32
    %753 = vector.broadcast %cst_283 : f32 to vector<16x1xf32>
    %754 = arith.divf %752, %753 : vector<16x1xf32>
    %cst_284 = arith.constant 9.99999974E-6 : f32
    %755 = vector.broadcast %cst_284 : f32 to vector<16x1xf32>
    %756 = arith.addf %754, %755 : vector<16x1xf32>
    %757 = math.rsqrt %756 : vector<16x1xf32>
    %758 = vector.broadcast %757 : vector<16x1xf32> to vector<16x32xf32>
    %759 = arith.mulf %749, %758 : vector<16x32xf32>
    %760 = vector.broadcast %741 : vector<1x32xf32> to vector<16x32xf32>
    %761 = arith.mulf %759, %760 : vector<16x32xf32>
    %762 = vector.broadcast %743 : vector<1x32xf32> to vector<16x32xf32>
    %763 = arith.addf %761, %762 : vector<16x32xf32>
    %c0_285 = arith.constant 0 : index
    %c0_286 = arith.constant 0 : index
    %c0_287 = arith.constant 0 : index
    %764 = vector.load %arg28[%c0_285, %c0_286, %c0_287] : memref<2x32x32xf32, #tpu.memory_space<vmem>>, vector<1x32x32xf32>
    %765 = vector.shape_cast %764 : vector<1x32x32xf32> to vector<32x32xf32>
    %c0_288 = arith.constant 0 : index
    %c0_289 = arith.constant 0 : index
    %c0_290 = arith.constant 0 : index
    %766 = vector.load %arg29[%c0_288, %c0_289, %c0_290] : memref<2x1x32xf32, #tpu.memory_space<vmem>>, vector<1x1x32xf32>
    %767 = vector.shape_cast %766 : vector<1x1x32xf32> to vector<1x32xf32>
    %cst_291 = arith.constant dense<0.000000e+00> : vector<16x32xf32>
    %768 = tpu.matmul %763, %765, %cst_291 {dimension_numbers = #tpu.dot_dimension_numbers<[1], [0], [0], [1], [0, 0, 1, 1], [], []>} : vector<16x32xf32>, vector<32x32xf32>, vector<16x32xf32> -> vector<16x32xf32>
    %769 = vector.broadcast %767 : vector<1x32xf32> to vector<16x32xf32>
    %770 = arith.addf %768, %769 : vector<16x32xf32>
    %c0_292 = arith.constant 0 : index
    %c0_293 = arith.constant 0 : index
    %c0_294 = arith.constant 0 : index
    %771 = vector.load %arg30[%c0_292, %c0_293, %c0_294] : memref<2x32x64xf32, #tpu.memory_space<vmem>>, vector<1x32x64xf32>
    %772 = vector.shape_cast %771 : vector<1x32x64xf32> to vector<32x64xf32>
    %c0_295 = arith.constant 0 : index
    %c0_296 = arith.constant 0 : index
    %c0_297 = arith.constant 0 : index
    %773 = vector.load %arg31[%c0_295, %c0_296, %c0_297] : memref<2x1x64xf32, #tpu.memory_space<vmem>>, vector<1x1x64xf32>
    %774 = vector.shape_cast %773 : vector<1x1x64xf32> to vector<1x64xf32>
    %cst_298 = arith.constant dense<0.000000e+00> : vector<16x64xf32>
    %775 = tpu.matmul %550, %772, %cst_298 {dimension_numbers = #tpu.dot_dimension_numbers<[1], [0], [0], [1], [0, 0, 1, 1], [], []>} : vector<16x32xf32>, vector<32x64xf32>, vector<16x64xf32> -> vector<16x64xf32>
    %776 = vector.broadcast %774 : vector<1x64xf32> to vector<16x64xf32>
    %777 = arith.addf %775, %776 : vector<16x64xf32>
    %778 = vector.extract_strided_slice %777 {offsets = [0, 0], sizes = [16, 32], strides = [1, 1]} : vector<16x64xf32> to vector<16x32xf32>
    %779 = vector.extract_strided_slice %777 {offsets = [0, 32], sizes = [16, 32], strides = [1, 1]} : vector<16x64xf32> to vector<16x32xf32>
    %780 = vector.extract_strided_slice %770 {offsets = [0, 0], sizes = [8, 32], strides = [1, 1]} : vector<16x32xf32> to vector<8x32xf32>
    %781 = vector.extract_strided_slice %778 {offsets = [0, 0], sizes = [8, 32], strides = [1, 1]} : vector<16x32xf32> to vector<8x32xf32>
    %782 = vector.extract_strided_slice %779 {offsets = [0, 0], sizes = [8, 32], strides = [1, 1]} : vector<16x32xf32> to vector<8x32xf32>
    %783 = vector.extract_strided_slice %20 {offsets = [0, 0], sizes = [8, 8], strides = [1, 1]} : vector<16x8xf32> to vector<8x8xf32>
    %cst_299 = arith.constant 0.000000e+00 : f32
    %784 = vector.broadcast %cst_299 : f32 to vector<8x32xf32>
    %785 = vector.broadcast %1 : vector<1x32xf32> to vector<8x32xf32>
    %786 = arith.mulf %781, %785 : vector<8x32xf32>
    %cst_300 = arith.constant dense<0.000000e+00> : vector<8x8xf32>
    %787 = tpu.matmul %780, %786, %cst_300 {dimension_numbers = #tpu.dot_dimension_numbers<[1], [1], [0], [0], [0, 0, 1, 0], [], []>} : vector<8x32xf32>, vector<8x32xf32>, vector<8x8xf32> -> vector<8x8xf32>
    %cst_301 = arith.constant 0.353553385 : f32
    %788 = vector.broadcast %cst_301 : f32 to vector<8x8xf32>
    %789 = arith.mulf %787, %788 : vector<8x8xf32>
    %790 = arith.addf %789, %783 : vector<8x8xf32>
    %cst_302 = arith.constant dense<0xFF800000> : vector<8xf32>
    %791 = vector.multi_reduction <maximumf>, %790, %cst_302 [1] : vector<8x8xf32> to vector<8xf32>
    %792 = vector.shape_cast %791 : vector<8xf32> to vector<8x1xf32>
    %793 = vector.broadcast %792 : vector<8x1xf32> to vector<8x8xf32>
    %794 = arith.subf %790, %793 : vector<8x8xf32>
    %795 = math.exp %794 : vector<8x8xf32>
    %cst_303 = arith.constant dense<0.000000e+00> : vector<8xf32>
    %796 = vector.multi_reduction <add>, %795, %cst_303 [1] : vector<8x8xf32> to vector<8xf32>
    %797 = vector.shape_cast %796 : vector<8xf32> to vector<8x1xf32>
    %798 = tpu.reciprocal %797 {approx = true} : vector<8x1xf32> -> vector<8x1xf32>
    %799 = vector.broadcast %798 : vector<8x1xf32> to vector<8x8xf32>
    %800 = arith.mulf %795, %799 : vector<8x8xf32>
    %801 = vector.broadcast %1 : vector<1x32xf32> to vector<8x32xf32>
    %802 = arith.mulf %782, %801 : vector<8x32xf32>
    %cst_304 = arith.constant dense<0.000000e+00> : vector<8x32xf32>
    %803 = tpu.matmul %800, %802, %cst_304 {dimension_numbers = #tpu.dot_dimension_numbers<[1], [0], [0], [1], [0, 0, 1, 1], [], []>} : vector<8x8xf32>, vector<8x32xf32>, vector<8x32xf32> -> vector<8x32xf32>
    %804 = arith.addf %784, %803 : vector<8x32xf32>
    %805 = vector.broadcast %3 : vector<1x32xf32> to vector<8x32xf32>
    %806 = arith.mulf %781, %805 : vector<8x32xf32>
    %cst_305 = arith.constant dense<0.000000e+00> : vector<8x8xf32>
    %807 = tpu.matmul %780, %806, %cst_305 {dimension_numbers = #tpu.dot_dimension_numbers<[1], [1], [0], [0], [0, 0, 1, 0], [], []>} : vector<8x32xf32>, vector<8x32xf32>, vector<8x8xf32> -> vector<8x8xf32>
    %cst_306 = arith.constant 0.353553385 : f32
    %808 = vector.broadcast %cst_306 : f32 to vector<8x8xf32>
    %809 = arith.mulf %807, %808 : vector<8x8xf32>
    %810 = arith.addf %809, %783 : vector<8x8xf32>
    %cst_307 = arith.constant dense<0xFF800000> : vector<8xf32>
    %811 = vector.multi_reduction <maximumf>, %810, %cst_307 [1] : vector<8x8xf32> to vector<8xf32>
    %812 = vector.shape_cast %811 : vector<8xf32> to vector<8x1xf32>
    %813 = vector.broadcast %812 : vector<8x1xf32> to vector<8x8xf32>
    %814 = arith.subf %810, %813 : vector<8x8xf32>
    %815 = math.exp %814 : vector<8x8xf32>
    %cst_308 = arith.constant dense<0.000000e+00> : vector<8xf32>
    %816 = vector.multi_reduction <add>, %815, %cst_308 [1] : vector<8x8xf32> to vector<8xf32>
    %817 = vector.shape_cast %816 : vector<8xf32> to vector<8x1xf32>
    %818 = tpu.reciprocal %817 {approx = true} : vector<8x1xf32> -> vector<8x1xf32>
    %819 = vector.broadcast %818 : vector<8x1xf32> to vector<8x8xf32>
    %820 = arith.mulf %815, %819 : vector<8x8xf32>
    %821 = vector.broadcast %3 : vector<1x32xf32> to vector<8x32xf32>
    %822 = arith.mulf %782, %821 : vector<8x32xf32>
    %cst_309 = arith.constant dense<0.000000e+00> : vector<8x32xf32>
    %823 = tpu.matmul %820, %822, %cst_309 {dimension_numbers = #tpu.dot_dimension_numbers<[1], [0], [0], [1], [0, 0, 1, 1], [], []>} : vector<8x8xf32>, vector<8x32xf32>, vector<8x32xf32> -> vector<8x32xf32>
    %824 = arith.addf %804, %823 : vector<8x32xf32>
    %825 = vector.broadcast %5 : vector<1x32xf32> to vector<8x32xf32>
    %826 = arith.mulf %781, %825 : vector<8x32xf32>
    %cst_310 = arith.constant dense<0.000000e+00> : vector<8x8xf32>
    %827 = tpu.matmul %780, %826, %cst_310 {dimension_numbers = #tpu.dot_dimension_numbers<[1], [1], [0], [0], [0, 0, 1, 0], [], []>} : vector<8x32xf32>, vector<8x32xf32>, vector<8x8xf32> -> vector<8x8xf32>
    %cst_311 = arith.constant 0.353553385 : f32
    %828 = vector.broadcast %cst_311 : f32 to vector<8x8xf32>
    %829 = arith.mulf %827, %828 : vector<8x8xf32>
    %830 = arith.addf %829, %783 : vector<8x8xf32>
    %cst_312 = arith.constant dense<0xFF800000> : vector<8xf32>
    %831 = vector.multi_reduction <maximumf>, %830, %cst_312 [1] : vector<8x8xf32> to vector<8xf32>
    %832 = vector.shape_cast %831 : vector<8xf32> to vector<8x1xf32>
    %833 = vector.broadcast %832 : vector<8x1xf32> to vector<8x8xf32>
    %834 = arith.subf %830, %833 : vector<8x8xf32>
    %835 = math.exp %834 : vector<8x8xf32>
    %cst_313 = arith.constant dense<0.000000e+00> : vector<8xf32>
    %836 = vector.multi_reduction <add>, %835, %cst_313 [1] : vector<8x8xf32> to vector<8xf32>
    %837 = vector.shape_cast %836 : vector<8xf32> to vector<8x1xf32>
    %838 = tpu.reciprocal %837 {approx = true} : vector<8x1xf32> -> vector<8x1xf32>
    %839 = vector.broadcast %838 : vector<8x1xf32> to vector<8x8xf32>
    %840 = arith.mulf %835, %839 : vector<8x8xf32>
    %841 = vector.broadcast %5 : vector<1x32xf32> to vector<8x32xf32>
    %842 = arith.mulf %782, %841 : vector<8x32xf32>
    %cst_314 = arith.constant dense<0.000000e+00> : vector<8x32xf32>
    %843 = tpu.matmul %840, %842, %cst_314 {dimension_numbers = #tpu.dot_dimension_numbers<[1], [0], [0], [1], [0, 0, 1, 1], [], []>} : vector<8x8xf32>, vector<8x32xf32>, vector<8x32xf32> -> vector<8x32xf32>
    %844 = arith.addf %824, %843 : vector<8x32xf32>
    %845 = vector.broadcast %7 : vector<1x32xf32> to vector<8x32xf32>
    %846 = arith.mulf %781, %845 : vector<8x32xf32>
    %cst_315 = arith.constant dense<0.000000e+00> : vector<8x8xf32>
    %847 = tpu.matmul %780, %846, %cst_315 {dimension_numbers = #tpu.dot_dimension_numbers<[1], [1], [0], [0], [0, 0, 1, 0], [], []>} : vector<8x32xf32>, vector<8x32xf32>, vector<8x8xf32> -> vector<8x8xf32>
    %cst_316 = arith.constant 0.353553385 : f32
    %848 = vector.broadcast %cst_316 : f32 to vector<8x8xf32>
    %849 = arith.mulf %847, %848 : vector<8x8xf32>
    %850 = arith.addf %849, %783 : vector<8x8xf32>
    %cst_317 = arith.constant dense<0xFF800000> : vector<8xf32>
    %851 = vector.multi_reduction <maximumf>, %850, %cst_317 [1] : vector<8x8xf32> to vector<8xf32>
    %852 = vector.shape_cast %851 : vector<8xf32> to vector<8x1xf32>
    %853 = vector.broadcast %852 : vector<8x1xf32> to vector<8x8xf32>
    %854 = arith.subf %850, %853 : vector<8x8xf32>
    %855 = math.exp %854 : vector<8x8xf32>
    %cst_318 = arith.constant dense<0.000000e+00> : vector<8xf32>
    %856 = vector.multi_reduction <add>, %855, %cst_318 [1] : vector<8x8xf32> to vector<8xf32>
    %857 = vector.shape_cast %856 : vector<8xf32> to vector<8x1xf32>
    %858 = tpu.reciprocal %857 {approx = true} : vector<8x1xf32> -> vector<8x1xf32>
    %859 = vector.broadcast %858 : vector<8x1xf32> to vector<8x8xf32>
    %860 = arith.mulf %855, %859 : vector<8x8xf32>
    %861 = vector.broadcast %7 : vector<1x32xf32> to vector<8x32xf32>
    %862 = arith.mulf %782, %861 : vector<8x32xf32>
    %cst_319 = arith.constant dense<0.000000e+00> : vector<8x32xf32>
    %863 = tpu.matmul %860, %862, %cst_319 {dimension_numbers = #tpu.dot_dimension_numbers<[1], [0], [0], [1], [0, 0, 1, 1], [], []>} : vector<8x8xf32>, vector<8x32xf32>, vector<8x32xf32> -> vector<8x32xf32>
    %864 = arith.addf %844, %863 : vector<8x32xf32>
    %865 = vector.extract_strided_slice %770 {offsets = [8, 0], sizes = [8, 32], strides = [1, 1]} : vector<16x32xf32> to vector<8x32xf32>
    %866 = vector.extract_strided_slice %778 {offsets = [8, 0], sizes = [8, 32], strides = [1, 1]} : vector<16x32xf32> to vector<8x32xf32>
    %867 = vector.extract_strided_slice %779 {offsets = [8, 0], sizes = [8, 32], strides = [1, 1]} : vector<16x32xf32> to vector<8x32xf32>
    %868 = vector.extract_strided_slice %20 {offsets = [8, 0], sizes = [8, 8], strides = [1, 1]} : vector<16x8xf32> to vector<8x8xf32>
    %cst_320 = arith.constant 0.000000e+00 : f32
    %869 = vector.broadcast %cst_320 : f32 to vector<8x32xf32>
    %870 = vector.broadcast %1 : vector<1x32xf32> to vector<8x32xf32>
    %871 = arith.mulf %866, %870 : vector<8x32xf32>
    %cst_321 = arith.constant dense<0.000000e+00> : vector<8x8xf32>
    %872 = tpu.matmul %865, %871, %cst_321 {dimension_numbers = #tpu.dot_dimension_numbers<[1], [1], [0], [0], [0, 0, 1, 0], [], []>} : vector<8x32xf32>, vector<8x32xf32>, vector<8x8xf32> -> vector<8x8xf32>
    %cst_322 = arith.constant 0.353553385 : f32
    %873 = vector.broadcast %cst_322 : f32 to vector<8x8xf32>
    %874 = arith.mulf %872, %873 : vector<8x8xf32>
    %875 = arith.addf %874, %868 : vector<8x8xf32>
    %cst_323 = arith.constant dense<0xFF800000> : vector<8xf32>
    %876 = vector.multi_reduction <maximumf>, %875, %cst_323 [1] : vector<8x8xf32> to vector<8xf32>
    %877 = vector.shape_cast %876 : vector<8xf32> to vector<8x1xf32>
    %878 = vector.broadcast %877 : vector<8x1xf32> to vector<8x8xf32>
    %879 = arith.subf %875, %878 : vector<8x8xf32>
    %880 = math.exp %879 : vector<8x8xf32>
    %cst_324 = arith.constant dense<0.000000e+00> : vector<8xf32>
    %881 = vector.multi_reduction <add>, %880, %cst_324 [1] : vector<8x8xf32> to vector<8xf32>
    %882 = vector.shape_cast %881 : vector<8xf32> to vector<8x1xf32>
    %883 = tpu.reciprocal %882 {approx = true} : vector<8x1xf32> -> vector<8x1xf32>
    %884 = vector.broadcast %883 : vector<8x1xf32> to vector<8x8xf32>
    %885 = arith.mulf %880, %884 : vector<8x8xf32>
    %886 = vector.broadcast %1 : vector<1x32xf32> to vector<8x32xf32>
    %887 = arith.mulf %867, %886 : vector<8x32xf32>
    %cst_325 = arith.constant dense<0.000000e+00> : vector<8x32xf32>
    %888 = tpu.matmul %885, %887, %cst_325 {dimension_numbers = #tpu.dot_dimension_numbers<[1], [0], [0], [1], [0, 0, 1, 1], [], []>} : vector<8x8xf32>, vector<8x32xf32>, vector<8x32xf32> -> vector<8x32xf32>
    %889 = arith.addf %869, %888 : vector<8x32xf32>
    %890 = vector.broadcast %3 : vector<1x32xf32> to vector<8x32xf32>
    %891 = arith.mulf %866, %890 : vector<8x32xf32>
    %cst_326 = arith.constant dense<0.000000e+00> : vector<8x8xf32>
    %892 = tpu.matmul %865, %891, %cst_326 {dimension_numbers = #tpu.dot_dimension_numbers<[1], [1], [0], [0], [0, 0, 1, 0], [], []>} : vector<8x32xf32>, vector<8x32xf32>, vector<8x8xf32> -> vector<8x8xf32>
    %cst_327 = arith.constant 0.353553385 : f32
    %893 = vector.broadcast %cst_327 : f32 to vector<8x8xf32>
    %894 = arith.mulf %892, %893 : vector<8x8xf32>
    %895 = arith.addf %894, %868 : vector<8x8xf32>
    %cst_328 = arith.constant dense<0xFF800000> : vector<8xf32>
    %896 = vector.multi_reduction <maximumf>, %895, %cst_328 [1] : vector<8x8xf32> to vector<8xf32>
    %897 = vector.shape_cast %896 : vector<8xf32> to vector<8x1xf32>
    %898 = vector.broadcast %897 : vector<8x1xf32> to vector<8x8xf32>
    %899 = arith.subf %895, %898 : vector<8x8xf32>
    %900 = math.exp %899 : vector<8x8xf32>
    %cst_329 = arith.constant dense<0.000000e+00> : vector<8xf32>
    %901 = vector.multi_reduction <add>, %900, %cst_329 [1] : vector<8x8xf32> to vector<8xf32>
    %902 = vector.shape_cast %901 : vector<8xf32> to vector<8x1xf32>
    %903 = tpu.reciprocal %902 {approx = true} : vector<8x1xf32> -> vector<8x1xf32>
    %904 = vector.broadcast %903 : vector<8x1xf32> to vector<8x8xf32>
    %905 = arith.mulf %900, %904 : vector<8x8xf32>
    %906 = vector.broadcast %3 : vector<1x32xf32> to vector<8x32xf32>
    %907 = arith.mulf %867, %906 : vector<8x32xf32>
    %cst_330 = arith.constant dense<0.000000e+00> : vector<8x32xf32>
    %908 = tpu.matmul %905, %907, %cst_330 {dimension_numbers = #tpu.dot_dimension_numbers<[1], [0], [0], [1], [0, 0, 1, 1], [], []>} : vector<8x8xf32>, vector<8x32xf32>, vector<8x32xf32> -> vector<8x32xf32>
    %909 = arith.addf %889, %908 : vector<8x32xf32>
    %910 = vector.broadcast %5 : vector<1x32xf32> to vector<8x32xf32>
    %911 = arith.mulf %866, %910 : vector<8x32xf32>
    %cst_331 = arith.constant dense<0.000000e+00> : vector<8x8xf32>
    %912 = tpu.matmul %865, %911, %cst_331 {dimension_numbers = #tpu.dot_dimension_numbers<[1], [1], [0], [0], [0, 0, 1, 0], [], []>} : vector<8x32xf32>, vector<8x32xf32>, vector<8x8xf32> -> vector<8x8xf32>
    %cst_332 = arith.constant 0.353553385 : f32
    %913 = vector.broadcast %cst_332 : f32 to vector<8x8xf32>
    %914 = arith.mulf %912, %913 : vector<8x8xf32>
    %915 = arith.addf %914, %868 : vector<8x8xf32>
    %cst_333 = arith.constant dense<0xFF800000> : vector<8xf32>
    %916 = vector.multi_reduction <maximumf>, %915, %cst_333 [1] : vector<8x8xf32> to vector<8xf32>
    %917 = vector.shape_cast %916 : vector<8xf32> to vector<8x1xf32>
    %918 = vector.broadcast %917 : vector<8x1xf32> to vector<8x8xf32>
    %919 = arith.subf %915, %918 : vector<8x8xf32>
    %920 = math.exp %919 : vector<8x8xf32>
    %cst_334 = arith.constant dense<0.000000e+00> : vector<8xf32>
    %921 = vector.multi_reduction <add>, %920, %cst_334 [1] : vector<8x8xf32> to vector<8xf32>
    %922 = vector.shape_cast %921 : vector<8xf32> to vector<8x1xf32>
    %923 = tpu.reciprocal %922 {approx = true} : vector<8x1xf32> -> vector<8x1xf32>
    %924 = vector.broadcast %923 : vector<8x1xf32> to vector<8x8xf32>
    %925 = arith.mulf %920, %924 : vector<8x8xf32>
    %926 = vector.broadcast %5 : vector<1x32xf32> to vector<8x32xf32>
    %927 = arith.mulf %867, %926 : vector<8x32xf32>
    %cst_335 = arith.constant dense<0.000000e+00> : vector<8x32xf32>
    %928 = tpu.matmul %925, %927, %cst_335 {dimension_numbers = #tpu.dot_dimension_numbers<[1], [0], [0], [1], [0, 0, 1, 1], [], []>} : vector<8x8xf32>, vector<8x32xf32>, vector<8x32xf32> -> vector<8x32xf32>
    %929 = arith.addf %909, %928 : vector<8x32xf32>
    %930 = vector.broadcast %7 : vector<1x32xf32> to vector<8x32xf32>
    %931 = arith.mulf %866, %930 : vector<8x32xf32>
    %cst_336 = arith.constant dense<0.000000e+00> : vector<8x8xf32>
    %932 = tpu.matmul %865, %931, %cst_336 {dimension_numbers = #tpu.dot_dimension_numbers<[1], [1], [0], [0], [0, 0, 1, 0], [], []>} : vector<8x32xf32>, vector<8x32xf32>, vector<8x8xf32> -> vector<8x8xf32>
    %cst_337 = arith.constant 0.353553385 : f32
    %933 = vector.broadcast %cst_337 : f32 to vector<8x8xf32>
    %934 = arith.mulf %932, %933 : vector<8x8xf32>
    %935 = arith.addf %934, %868 : vector<8x8xf32>
    %cst_338 = arith.constant dense<0xFF800000> : vector<8xf32>
    %936 = vector.multi_reduction <maximumf>, %935, %cst_338 [1] : vector<8x8xf32> to vector<8xf32>
    %937 = vector.shape_cast %936 : vector<8xf32> to vector<8x1xf32>
    %938 = vector.broadcast %937 : vector<8x1xf32> to vector<8x8xf32>
    %939 = arith.subf %935, %938 : vector<8x8xf32>
    %940 = math.exp %939 : vector<8x8xf32>
    %cst_339 = arith.constant dense<0.000000e+00> : vector<8xf32>
    %941 = vector.multi_reduction <add>, %940, %cst_339 [1] : vector<8x8xf32> to vector<8xf32>
    %942 = vector.shape_cast %941 : vector<8xf32> to vector<8x1xf32>
    %943 = tpu.reciprocal %942 {approx = true} : vector<8x1xf32> -> vector<8x1xf32>
    %944 = vector.broadcast %943 : vector<8x1xf32> to vector<8x8xf32>
    %945 = arith.mulf %940, %944 : vector<8x8xf32>
    %946 = vector.broadcast %7 : vector<1x32xf32> to vector<8x32xf32>
    %947 = arith.mulf %867, %946 : vector<8x32xf32>
    %cst_340 = arith.constant dense<0.000000e+00> : vector<8x32xf32>
    %948 = tpu.matmul %945, %947, %cst_340 {dimension_numbers = #tpu.dot_dimension_numbers<[1], [0], [0], [1], [0, 0, 1, 1], [], []>} : vector<8x8xf32>, vector<8x32xf32>, vector<8x32xf32> -> vector<8x32xf32>
    %949 = arith.addf %929, %948 : vector<8x32xf32>
    %950 = tpu.concatenate %864, %949 in 0 : vector<8x32xf32>, vector<8x32xf32> -> vector<16x32xf32>
    %c0_341 = arith.constant 0 : index
    %c0_342 = arith.constant 0 : index
    %c0_343 = arith.constant 0 : index
    %951 = vector.load %arg32[%c0_341, %c0_342, %c0_343] : memref<2x32x32xf32, #tpu.memory_space<vmem>>, vector<1x32x32xf32>
    %952 = vector.shape_cast %951 : vector<1x32x32xf32> to vector<32x32xf32>
    %c0_344 = arith.constant 0 : index
    %c0_345 = arith.constant 0 : index
    %c0_346 = arith.constant 0 : index
    %953 = vector.load %arg33[%c0_344, %c0_345, %c0_346] : memref<2x1x32xf32, #tpu.memory_space<vmem>>, vector<1x1x32xf32>
    %954 = vector.shape_cast %953 : vector<1x1x32xf32> to vector<1x32xf32>
    %cst_347 = arith.constant dense<0.000000e+00> : vector<16x32xf32>
    %955 = tpu.matmul %950, %952, %cst_347 {dimension_numbers = #tpu.dot_dimension_numbers<[1], [0], [0], [1], [0, 0, 1, 1], [], []>} : vector<16x32xf32>, vector<32x32xf32>, vector<16x32xf32> -> vector<16x32xf32>
    %956 = vector.broadcast %954 : vector<1x32xf32> to vector<16x32xf32>
    %957 = arith.addf %955, %956 : vector<16x32xf32>
    %958 = arith.addf %763, %957 : vector<16x32xf32>
    %c0_348 = arith.constant 0 : index
    %c0_349 = arith.constant 0 : index
    %c0_350 = arith.constant 0 : index
    %959 = vector.load %arg34[%c0_348, %c0_349, %c0_350] : memref<2x1x32xf32, #tpu.memory_space<vmem>>, vector<1x1x32xf32>
    %960 = vector.shape_cast %959 : vector<1x1x32xf32> to vector<1x32xf32>
    %c0_351 = arith.constant 0 : index
    %c0_352 = arith.constant 0 : index
    %c0_353 = arith.constant 0 : index
    %961 = vector.load %arg35[%c0_351, %c0_352, %c0_353] : memref<2x1x32xf32, #tpu.memory_space<vmem>>, vector<1x1x32xf32>
    %962 = vector.shape_cast %961 : vector<1x1x32xf32> to vector<1x32xf32>
    %cst_354 = arith.constant dense<0.000000e+00> : vector<16xf32>
    %963 = vector.multi_reduction <add>, %958, %cst_354 [1] : vector<16x32xf32> to vector<16xf32>
    %964 = vector.shape_cast %963 : vector<16xf32> to vector<16x1xf32>
    %cst_355 = arith.constant 3.200000e+01 : f32
    %965 = vector.broadcast %cst_355 : f32 to vector<16x1xf32>
    %966 = arith.divf %964, %965 : vector<16x1xf32>
    %967 = vector.broadcast %966 : vector<16x1xf32> to vector<16x32xf32>
    %968 = arith.subf %958, %967 : vector<16x32xf32>
    %969 = arith.mulf %968, %968 : vector<16x32xf32>
    %cst_356 = arith.constant dense<0.000000e+00> : vector<16xf32>
    %970 = vector.multi_reduction <add>, %969, %cst_356 [1] : vector<16x32xf32> to vector<16xf32>
    %971 = vector.shape_cast %970 : vector<16xf32> to vector<16x1xf32>
    %cst_357 = arith.constant 3.200000e+01 : f32
    %972 = vector.broadcast %cst_357 : f32 to vector<16x1xf32>
    %973 = arith.divf %971, %972 : vector<16x1xf32>
    %cst_358 = arith.constant 9.99999974E-6 : f32
    %974 = vector.broadcast %cst_358 : f32 to vector<16x1xf32>
    %975 = arith.addf %973, %974 : vector<16x1xf32>
    %976 = math.rsqrt %975 : vector<16x1xf32>
    %977 = vector.broadcast %976 : vector<16x1xf32> to vector<16x32xf32>
    %978 = arith.mulf %968, %977 : vector<16x32xf32>
    %979 = vector.broadcast %960 : vector<1x32xf32> to vector<16x32xf32>
    %980 = arith.mulf %978, %979 : vector<16x32xf32>
    %981 = vector.broadcast %962 : vector<1x32xf32> to vector<16x32xf32>
    %982 = arith.addf %980, %981 : vector<16x32xf32>
    %c0_359 = arith.constant 0 : index
    %c0_360 = arith.constant 0 : index
    %c0_361 = arith.constant 0 : index
    %983 = vector.load %arg36[%c0_359, %c0_360, %c0_361] : memref<2x32x64xf32, #tpu.memory_space<vmem>>, vector<1x32x64xf32>
    %984 = vector.shape_cast %983 : vector<1x32x64xf32> to vector<32x64xf32>
    %c0_362 = arith.constant 0 : index
    %c0_363 = arith.constant 0 : index
    %c0_364 = arith.constant 0 : index
    %985 = vector.load %arg37[%c0_362, %c0_363, %c0_364] : memref<2x1x64xf32, #tpu.memory_space<vmem>>, vector<1x1x64xf32>
    %986 = vector.shape_cast %985 : vector<1x1x64xf32> to vector<1x64xf32>
    %cst_365 = arith.constant dense<0.000000e+00> : vector<16x64xf32>
    %987 = tpu.matmul %982, %984, %cst_365 {dimension_numbers = #tpu.dot_dimension_numbers<[1], [0], [0], [1], [0, 0, 1, 1], [], []>} : vector<16x32xf32>, vector<32x64xf32>, vector<16x64xf32> -> vector<16x64xf32>
    %988 = vector.broadcast %986 : vector<1x64xf32> to vector<16x64xf32>
    %989 = arith.addf %987, %988 : vector<16x64xf32>
    %cst_366 = arith.constant 0.000000e+00 : f32
    %990 = vector.broadcast %cst_366 : f32 to vector<16x64xf32>
    %991 = arith.maximumf %989, %990 : vector<16x64xf32>
    %c0_367 = arith.constant 0 : index
    %c0_368 = arith.constant 0 : index
    %c0_369 = arith.constant 0 : index
    %992 = vector.load %arg38[%c0_367, %c0_368, %c0_369] : memref<2x64x32xf32, #tpu.memory_space<vmem>>, vector<1x64x32xf32>
    %993 = vector.shape_cast %992 : vector<1x64x32xf32> to vector<64x32xf32>
    %c0_370 = arith.constant 0 : index
    %c0_371 = arith.constant 0 : index
    %c0_372 = arith.constant 0 : index
    %994 = vector.load %arg39[%c0_370, %c0_371, %c0_372] : memref<2x1x32xf32, #tpu.memory_space<vmem>>, vector<1x1x32xf32>
    %995 = vector.shape_cast %994 : vector<1x1x32xf32> to vector<1x32xf32>
    %cst_373 = arith.constant dense<0.000000e+00> : vector<16x32xf32>
    %996 = tpu.matmul %991, %993, %cst_373 {dimension_numbers = #tpu.dot_dimension_numbers<[1], [0], [0], [1], [0, 0, 1, 1], [], []>} : vector<16x64xf32>, vector<64x32xf32>, vector<16x32xf32> -> vector<16x32xf32>
    %997 = vector.broadcast %995 : vector<1x32xf32> to vector<16x32xf32>
    %998 = arith.addf %996, %997 : vector<16x32xf32>
    %999 = arith.addf %982, %998 : vector<16x32xf32>
    %c0_374 = arith.constant 0 : index
    %c0_375 = arith.constant 0 : index
    %c0_376 = arith.constant 0 : index
    %1000 = vector.load %arg40[%c0_374, %c0_375, %c0_376] : memref<2x1x32xf32, #tpu.memory_space<vmem>>, vector<1x1x32xf32>
    %1001 = vector.shape_cast %1000 : vector<1x1x32xf32> to vector<1x32xf32>
    %c0_377 = arith.constant 0 : index
    %c0_378 = arith.constant 0 : index
    %c0_379 = arith.constant 0 : index
    %1002 = vector.load %arg41[%c0_377, %c0_378, %c0_379] : memref<2x1x32xf32, #tpu.memory_space<vmem>>, vector<1x1x32xf32>
    %1003 = vector.shape_cast %1002 : vector<1x1x32xf32> to vector<1x32xf32>
    %cst_380 = arith.constant dense<0.000000e+00> : vector<16xf32>
    %1004 = vector.multi_reduction <add>, %999, %cst_380 [1] : vector<16x32xf32> to vector<16xf32>
    %1005 = vector.shape_cast %1004 : vector<16xf32> to vector<16x1xf32>
    %cst_381 = arith.constant 3.200000e+01 : f32
    %1006 = vector.broadcast %cst_381 : f32 to vector<16x1xf32>
    %1007 = arith.divf %1005, %1006 : vector<16x1xf32>
    %1008 = vector.broadcast %1007 : vector<16x1xf32> to vector<16x32xf32>
    %1009 = arith.subf %999, %1008 : vector<16x32xf32>
    %1010 = arith.mulf %1009, %1009 : vector<16x32xf32>
    %cst_382 = arith.constant dense<0.000000e+00> : vector<16xf32>
    %1011 = vector.multi_reduction <add>, %1010, %cst_382 [1] : vector<16x32xf32> to vector<16xf32>
    %1012 = vector.shape_cast %1011 : vector<16xf32> to vector<16x1xf32>
    %cst_383 = arith.constant 3.200000e+01 : f32
    %1013 = vector.broadcast %cst_383 : f32 to vector<16x1xf32>
    %1014 = arith.divf %1012, %1013 : vector<16x1xf32>
    %cst_384 = arith.constant 9.99999974E-6 : f32
    %1015 = vector.broadcast %cst_384 : f32 to vector<16x1xf32>
    %1016 = arith.addf %1014, %1015 : vector<16x1xf32>
    %1017 = math.rsqrt %1016 : vector<16x1xf32>
    %1018 = vector.broadcast %1017 : vector<16x1xf32> to vector<16x32xf32>
    %1019 = arith.mulf %1009, %1018 : vector<16x32xf32>
    %1020 = vector.broadcast %1001 : vector<1x32xf32> to vector<16x32xf32>
    %1021 = arith.mulf %1019, %1020 : vector<16x32xf32>
    %1022 = vector.broadcast %1003 : vector<1x32xf32> to vector<16x32xf32>
    %1023 = arith.addf %1021, %1022 : vector<16x32xf32>
    %c1_385 = arith.constant 1 : index
    %c0_386 = arith.constant 0 : index
    %c0_387 = arith.constant 0 : index
    %1024 = vector.load %arg22[%c1_385, %c0_386, %c0_387] : memref<2x32x96xf32, #tpu.memory_space<vmem>>, vector<1x32x96xf32>
    %1025 = vector.shape_cast %1024 : vector<1x32x96xf32> to vector<32x96xf32>
    %c1_388 = arith.constant 1 : index
    %c0_389 = arith.constant 0 : index
    %c0_390 = arith.constant 0 : index
    %1026 = vector.load %arg23[%c1_388, %c0_389, %c0_390] : memref<2x1x96xf32, #tpu.memory_space<vmem>>, vector<1x1x96xf32>
    %1027 = vector.shape_cast %1026 : vector<1x1x96xf32> to vector<1x96xf32>
    %cst_391 = arith.constant dense<0.000000e+00> : vector<16x96xf32>
    %1028 = tpu.matmul %1023, %1025, %cst_391 {dimension_numbers = #tpu.dot_dimension_numbers<[1], [0], [0], [1], [0, 0, 1, 1], [], []>} : vector<16x32xf32>, vector<32x96xf32>, vector<16x96xf32> -> vector<16x96xf32>
    %1029 = vector.broadcast %1027 : vector<1x96xf32> to vector<16x96xf32>
    %1030 = arith.addf %1028, %1029 : vector<16x96xf32>
    %1031 = vector.extract_strided_slice %1030 {offsets = [0, 0], sizes = [16, 32], strides = [1, 1]} : vector<16x96xf32> to vector<16x32xf32>
    %1032 = vector.extract_strided_slice %1030 {offsets = [0, 32], sizes = [16, 32], strides = [1, 1]} : vector<16x96xf32> to vector<16x32xf32>
    %1033 = vector.extract_strided_slice %1030 {offsets = [0, 64], sizes = [16, 32], strides = [1, 1]} : vector<16x96xf32> to vector<16x32xf32>
    %1034 = vector.extract_strided_slice %1031 {offsets = [0, 0], sizes = [8, 32], strides = [1, 1]} : vector<16x32xf32> to vector<8x32xf32>
    %1035 = vector.extract_strided_slice %1032 {offsets = [0, 0], sizes = [8, 32], strides = [1, 1]} : vector<16x32xf32> to vector<8x32xf32>
    %1036 = vector.extract_strided_slice %1033 {offsets = [0, 0], sizes = [8, 32], strides = [1, 1]} : vector<16x32xf32> to vector<8x32xf32>
    %1037 = vector.extract_strided_slice %19 {offsets = [0, 0], sizes = [8, 8], strides = [1, 1]} : vector<16x8xf32> to vector<8x8xf32>
    %cst_392 = arith.constant 0.000000e+00 : f32
    %1038 = vector.broadcast %cst_392 : f32 to vector<8x32xf32>
    %1039 = vector.broadcast %1 : vector<1x32xf32> to vector<8x32xf32>
    %1040 = arith.mulf %1035, %1039 : vector<8x32xf32>
    %cst_393 = arith.constant dense<0.000000e+00> : vector<8x8xf32>
    %1041 = tpu.matmul %1034, %1040, %cst_393 {dimension_numbers = #tpu.dot_dimension_numbers<[1], [1], [0], [0], [0, 0, 1, 0], [], []>} : vector<8x32xf32>, vector<8x32xf32>, vector<8x8xf32> -> vector<8x8xf32>
    %cst_394 = arith.constant 0.353553385 : f32
    %1042 = vector.broadcast %cst_394 : f32 to vector<8x8xf32>
    %1043 = arith.mulf %1041, %1042 : vector<8x8xf32>
    %1044 = arith.addf %1043, %1037 : vector<8x8xf32>
    %cst_395 = arith.constant dense<0xFF800000> : vector<8xf32>
    %1045 = vector.multi_reduction <maximumf>, %1044, %cst_395 [1] : vector<8x8xf32> to vector<8xf32>
    %1046 = vector.shape_cast %1045 : vector<8xf32> to vector<8x1xf32>
    %1047 = vector.broadcast %1046 : vector<8x1xf32> to vector<8x8xf32>
    %1048 = arith.subf %1044, %1047 : vector<8x8xf32>
    %1049 = math.exp %1048 : vector<8x8xf32>
    %cst_396 = arith.constant dense<0.000000e+00> : vector<8xf32>
    %1050 = vector.multi_reduction <add>, %1049, %cst_396 [1] : vector<8x8xf32> to vector<8xf32>
    %1051 = vector.shape_cast %1050 : vector<8xf32> to vector<8x1xf32>
    %1052 = tpu.reciprocal %1051 {approx = true} : vector<8x1xf32> -> vector<8x1xf32>
    %1053 = vector.broadcast %1052 : vector<8x1xf32> to vector<8x8xf32>
    %1054 = arith.mulf %1049, %1053 : vector<8x8xf32>
    %1055 = vector.broadcast %1 : vector<1x32xf32> to vector<8x32xf32>
    %1056 = arith.mulf %1036, %1055 : vector<8x32xf32>
    %cst_397 = arith.constant dense<0.000000e+00> : vector<8x32xf32>
    %1057 = tpu.matmul %1054, %1056, %cst_397 {dimension_numbers = #tpu.dot_dimension_numbers<[1], [0], [0], [1], [0, 0, 1, 1], [], []>} : vector<8x8xf32>, vector<8x32xf32>, vector<8x32xf32> -> vector<8x32xf32>
    %1058 = arith.addf %1038, %1057 : vector<8x32xf32>
    %1059 = vector.broadcast %3 : vector<1x32xf32> to vector<8x32xf32>
    %1060 = arith.mulf %1035, %1059 : vector<8x32xf32>
    %cst_398 = arith.constant dense<0.000000e+00> : vector<8x8xf32>
    %1061 = tpu.matmul %1034, %1060, %cst_398 {dimension_numbers = #tpu.dot_dimension_numbers<[1], [1], [0], [0], [0, 0, 1, 0], [], []>} : vector<8x32xf32>, vector<8x32xf32>, vector<8x8xf32> -> vector<8x8xf32>
    %cst_399 = arith.constant 0.353553385 : f32
    %1062 = vector.broadcast %cst_399 : f32 to vector<8x8xf32>
    %1063 = arith.mulf %1061, %1062 : vector<8x8xf32>
    %1064 = arith.addf %1063, %1037 : vector<8x8xf32>
    %cst_400 = arith.constant dense<0xFF800000> : vector<8xf32>
    %1065 = vector.multi_reduction <maximumf>, %1064, %cst_400 [1] : vector<8x8xf32> to vector<8xf32>
    %1066 = vector.shape_cast %1065 : vector<8xf32> to vector<8x1xf32>
    %1067 = vector.broadcast %1066 : vector<8x1xf32> to vector<8x8xf32>
    %1068 = arith.subf %1064, %1067 : vector<8x8xf32>
    %1069 = math.exp %1068 : vector<8x8xf32>
    %cst_401 = arith.constant dense<0.000000e+00> : vector<8xf32>
    %1070 = vector.multi_reduction <add>, %1069, %cst_401 [1] : vector<8x8xf32> to vector<8xf32>
    %1071 = vector.shape_cast %1070 : vector<8xf32> to vector<8x1xf32>
    %1072 = tpu.reciprocal %1071 {approx = true} : vector<8x1xf32> -> vector<8x1xf32>
    %1073 = vector.broadcast %1072 : vector<8x1xf32> to vector<8x8xf32>
    %1074 = arith.mulf %1069, %1073 : vector<8x8xf32>
    %1075 = vector.broadcast %3 : vector<1x32xf32> to vector<8x32xf32>
    %1076 = arith.mulf %1036, %1075 : vector<8x32xf32>
    %cst_402 = arith.constant dense<0.000000e+00> : vector<8x32xf32>
    %1077 = tpu.matmul %1074, %1076, %cst_402 {dimension_numbers = #tpu.dot_dimension_numbers<[1], [0], [0], [1], [0, 0, 1, 1], [], []>} : vector<8x8xf32>, vector<8x32xf32>, vector<8x32xf32> -> vector<8x32xf32>
    %1078 = arith.addf %1058, %1077 : vector<8x32xf32>
    %1079 = vector.broadcast %5 : vector<1x32xf32> to vector<8x32xf32>
    %1080 = arith.mulf %1035, %1079 : vector<8x32xf32>
    %cst_403 = arith.constant dense<0.000000e+00> : vector<8x8xf32>
    %1081 = tpu.matmul %1034, %1080, %cst_403 {dimension_numbers = #tpu.dot_dimension_numbers<[1], [1], [0], [0], [0, 0, 1, 0], [], []>} : vector<8x32xf32>, vector<8x32xf32>, vector<8x8xf32> -> vector<8x8xf32>
    %cst_404 = arith.constant 0.353553385 : f32
    %1082 = vector.broadcast %cst_404 : f32 to vector<8x8xf32>
    %1083 = arith.mulf %1081, %1082 : vector<8x8xf32>
    %1084 = arith.addf %1083, %1037 : vector<8x8xf32>
    %cst_405 = arith.constant dense<0xFF800000> : vector<8xf32>
    %1085 = vector.multi_reduction <maximumf>, %1084, %cst_405 [1] : vector<8x8xf32> to vector<8xf32>
    %1086 = vector.shape_cast %1085 : vector<8xf32> to vector<8x1xf32>
    %1087 = vector.broadcast %1086 : vector<8x1xf32> to vector<8x8xf32>
    %1088 = arith.subf %1084, %1087 : vector<8x8xf32>
    %1089 = math.exp %1088 : vector<8x8xf32>
    %cst_406 = arith.constant dense<0.000000e+00> : vector<8xf32>
    %1090 = vector.multi_reduction <add>, %1089, %cst_406 [1] : vector<8x8xf32> to vector<8xf32>
    %1091 = vector.shape_cast %1090 : vector<8xf32> to vector<8x1xf32>
    %1092 = tpu.reciprocal %1091 {approx = true} : vector<8x1xf32> -> vector<8x1xf32>
    %1093 = vector.broadcast %1092 : vector<8x1xf32> to vector<8x8xf32>
    %1094 = arith.mulf %1089, %1093 : vector<8x8xf32>
    %1095 = vector.broadcast %5 : vector<1x32xf32> to vector<8x32xf32>
    %1096 = arith.mulf %1036, %1095 : vector<8x32xf32>
    %cst_407 = arith.constant dense<0.000000e+00> : vector<8x32xf32>
    %1097 = tpu.matmul %1094, %1096, %cst_407 {dimension_numbers = #tpu.dot_dimension_numbers<[1], [0], [0], [1], [0, 0, 1, 1], [], []>} : vector<8x8xf32>, vector<8x32xf32>, vector<8x32xf32> -> vector<8x32xf32>
    %1098 = arith.addf %1078, %1097 : vector<8x32xf32>
    %1099 = vector.broadcast %7 : vector<1x32xf32> to vector<8x32xf32>
    %1100 = arith.mulf %1035, %1099 : vector<8x32xf32>
    %cst_408 = arith.constant dense<0.000000e+00> : vector<8x8xf32>
    %1101 = tpu.matmul %1034, %1100, %cst_408 {dimension_numbers = #tpu.dot_dimension_numbers<[1], [1], [0], [0], [0, 0, 1, 0], [], []>} : vector<8x32xf32>, vector<8x32xf32>, vector<8x8xf32> -> vector<8x8xf32>
    %cst_409 = arith.constant 0.353553385 : f32
    %1102 = vector.broadcast %cst_409 : f32 to vector<8x8xf32>
    %1103 = arith.mulf %1101, %1102 : vector<8x8xf32>
    %1104 = arith.addf %1103, %1037 : vector<8x8xf32>
    %cst_410 = arith.constant dense<0xFF800000> : vector<8xf32>
    %1105 = vector.multi_reduction <maximumf>, %1104, %cst_410 [1] : vector<8x8xf32> to vector<8xf32>
    %1106 = vector.shape_cast %1105 : vector<8xf32> to vector<8x1xf32>
    %1107 = vector.broadcast %1106 : vector<8x1xf32> to vector<8x8xf32>
    %1108 = arith.subf %1104, %1107 : vector<8x8xf32>
    %1109 = math.exp %1108 : vector<8x8xf32>
    %cst_411 = arith.constant dense<0.000000e+00> : vector<8xf32>
    %1110 = vector.multi_reduction <add>, %1109, %cst_411 [1] : vector<8x8xf32> to vector<8xf32>
    %1111 = vector.shape_cast %1110 : vector<8xf32> to vector<8x1xf32>
    %1112 = tpu.reciprocal %1111 {approx = true} : vector<8x1xf32> -> vector<8x1xf32>
    %1113 = vector.broadcast %1112 : vector<8x1xf32> to vector<8x8xf32>
    %1114 = arith.mulf %1109, %1113 : vector<8x8xf32>
    %1115 = vector.broadcast %7 : vector<1x32xf32> to vector<8x32xf32>
    %1116 = arith.mulf %1036, %1115 : vector<8x32xf32>
    %cst_412 = arith.constant dense<0.000000e+00> : vector<8x32xf32>
    %1117 = tpu.matmul %1114, %1116, %cst_412 {dimension_numbers = #tpu.dot_dimension_numbers<[1], [0], [0], [1], [0, 0, 1, 1], [], []>} : vector<8x8xf32>, vector<8x32xf32>, vector<8x32xf32> -> vector<8x32xf32>
    %1118 = arith.addf %1098, %1117 : vector<8x32xf32>
    %1119 = vector.extract_strided_slice %1031 {offsets = [8, 0], sizes = [8, 32], strides = [1, 1]} : vector<16x32xf32> to vector<8x32xf32>
    %1120 = vector.extract_strided_slice %1032 {offsets = [8, 0], sizes = [8, 32], strides = [1, 1]} : vector<16x32xf32> to vector<8x32xf32>
    %1121 = vector.extract_strided_slice %1033 {offsets = [8, 0], sizes = [8, 32], strides = [1, 1]} : vector<16x32xf32> to vector<8x32xf32>
    %1122 = vector.extract_strided_slice %19 {offsets = [8, 0], sizes = [8, 8], strides = [1, 1]} : vector<16x8xf32> to vector<8x8xf32>
    %cst_413 = arith.constant 0.000000e+00 : f32
    %1123 = vector.broadcast %cst_413 : f32 to vector<8x32xf32>
    %1124 = vector.broadcast %1 : vector<1x32xf32> to vector<8x32xf32>
    %1125 = arith.mulf %1120, %1124 : vector<8x32xf32>
    %cst_414 = arith.constant dense<0.000000e+00> : vector<8x8xf32>
    %1126 = tpu.matmul %1119, %1125, %cst_414 {dimension_numbers = #tpu.dot_dimension_numbers<[1], [1], [0], [0], [0, 0, 1, 0], [], []>} : vector<8x32xf32>, vector<8x32xf32>, vector<8x8xf32> -> vector<8x8xf32>
    %cst_415 = arith.constant 0.353553385 : f32
    %1127 = vector.broadcast %cst_415 : f32 to vector<8x8xf32>
    %1128 = arith.mulf %1126, %1127 : vector<8x8xf32>
    %1129 = arith.addf %1128, %1122 : vector<8x8xf32>
    %cst_416 = arith.constant dense<0xFF800000> : vector<8xf32>
    %1130 = vector.multi_reduction <maximumf>, %1129, %cst_416 [1] : vector<8x8xf32> to vector<8xf32>
    %1131 = vector.shape_cast %1130 : vector<8xf32> to vector<8x1xf32>
    %1132 = vector.broadcast %1131 : vector<8x1xf32> to vector<8x8xf32>
    %1133 = arith.subf %1129, %1132 : vector<8x8xf32>
    %1134 = math.exp %1133 : vector<8x8xf32>
    %cst_417 = arith.constant dense<0.000000e+00> : vector<8xf32>
    %1135 = vector.multi_reduction <add>, %1134, %cst_417 [1] : vector<8x8xf32> to vector<8xf32>
    %1136 = vector.shape_cast %1135 : vector<8xf32> to vector<8x1xf32>
    %1137 = tpu.reciprocal %1136 {approx = true} : vector<8x1xf32> -> vector<8x1xf32>
    %1138 = vector.broadcast %1137 : vector<8x1xf32> to vector<8x8xf32>
    %1139 = arith.mulf %1134, %1138 : vector<8x8xf32>
    %1140 = vector.broadcast %1 : vector<1x32xf32> to vector<8x32xf32>
    %1141 = arith.mulf %1121, %1140 : vector<8x32xf32>
    %cst_418 = arith.constant dense<0.000000e+00> : vector<8x32xf32>
    %1142 = tpu.matmul %1139, %1141, %cst_418 {dimension_numbers = #tpu.dot_dimension_numbers<[1], [0], [0], [1], [0, 0, 1, 1], [], []>} : vector<8x8xf32>, vector<8x32xf32>, vector<8x32xf32> -> vector<8x32xf32>
    %1143 = arith.addf %1123, %1142 : vector<8x32xf32>
    %1144 = vector.broadcast %3 : vector<1x32xf32> to vector<8x32xf32>
    %1145 = arith.mulf %1120, %1144 : vector<8x32xf32>
    %cst_419 = arith.constant dense<0.000000e+00> : vector<8x8xf32>
    %1146 = tpu.matmul %1119, %1145, %cst_419 {dimension_numbers = #tpu.dot_dimension_numbers<[1], [1], [0], [0], [0, 0, 1, 0], [], []>} : vector<8x32xf32>, vector<8x32xf32>, vector<8x8xf32> -> vector<8x8xf32>
    %cst_420 = arith.constant 0.353553385 : f32
    %1147 = vector.broadcast %cst_420 : f32 to vector<8x8xf32>
    %1148 = arith.mulf %1146, %1147 : vector<8x8xf32>
    %1149 = arith.addf %1148, %1122 : vector<8x8xf32>
    %cst_421 = arith.constant dense<0xFF800000> : vector<8xf32>
    %1150 = vector.multi_reduction <maximumf>, %1149, %cst_421 [1] : vector<8x8xf32> to vector<8xf32>
    %1151 = vector.shape_cast %1150 : vector<8xf32> to vector<8x1xf32>
    %1152 = vector.broadcast %1151 : vector<8x1xf32> to vector<8x8xf32>
    %1153 = arith.subf %1149, %1152 : vector<8x8xf32>
    %1154 = math.exp %1153 : vector<8x8xf32>
    %cst_422 = arith.constant dense<0.000000e+00> : vector<8xf32>
    %1155 = vector.multi_reduction <add>, %1154, %cst_422 [1] : vector<8x8xf32> to vector<8xf32>
    %1156 = vector.shape_cast %1155 : vector<8xf32> to vector<8x1xf32>
    %1157 = tpu.reciprocal %1156 {approx = true} : vector<8x1xf32> -> vector<8x1xf32>
    %1158 = vector.broadcast %1157 : vector<8x1xf32> to vector<8x8xf32>
    %1159 = arith.mulf %1154, %1158 : vector<8x8xf32>
    %1160 = vector.broadcast %3 : vector<1x32xf32> to vector<8x32xf32>
    %1161 = arith.mulf %1121, %1160 : vector<8x32xf32>
    %cst_423 = arith.constant dense<0.000000e+00> : vector<8x32xf32>
    %1162 = tpu.matmul %1159, %1161, %cst_423 {dimension_numbers = #tpu.dot_dimension_numbers<[1], [0], [0], [1], [0, 0, 1, 1], [], []>} : vector<8x8xf32>, vector<8x32xf32>, vector<8x32xf32> -> vector<8x32xf32>
    %1163 = arith.addf %1143, %1162 : vector<8x32xf32>
    %1164 = vector.broadcast %5 : vector<1x32xf32> to vector<8x32xf32>
    %1165 = arith.mulf %1120, %1164 : vector<8x32xf32>
    %cst_424 = arith.constant dense<0.000000e+00> : vector<8x8xf32>
    %1166 = tpu.matmul %1119, %1165, %cst_424 {dimension_numbers = #tpu.dot_dimension_numbers<[1], [1], [0], [0], [0, 0, 1, 0], [], []>} : vector<8x32xf32>, vector<8x32xf32>, vector<8x8xf32> -> vector<8x8xf32>
    %cst_425 = arith.constant 0.353553385 : f32
    %1167 = vector.broadcast %cst_425 : f32 to vector<8x8xf32>
    %1168 = arith.mulf %1166, %1167 : vector<8x8xf32>
    %1169 = arith.addf %1168, %1122 : vector<8x8xf32>
    %cst_426 = arith.constant dense<0xFF800000> : vector<8xf32>
    %1170 = vector.multi_reduction <maximumf>, %1169, %cst_426 [1] : vector<8x8xf32> to vector<8xf32>
    %1171 = vector.shape_cast %1170 : vector<8xf32> to vector<8x1xf32>
    %1172 = vector.broadcast %1171 : vector<8x1xf32> to vector<8x8xf32>
    %1173 = arith.subf %1169, %1172 : vector<8x8xf32>
    %1174 = math.exp %1173 : vector<8x8xf32>
    %cst_427 = arith.constant dense<0.000000e+00> : vector<8xf32>
    %1175 = vector.multi_reduction <add>, %1174, %cst_427 [1] : vector<8x8xf32> to vector<8xf32>
    %1176 = vector.shape_cast %1175 : vector<8xf32> to vector<8x1xf32>
    %1177 = tpu.reciprocal %1176 {approx = true} : vector<8x1xf32> -> vector<8x1xf32>
    %1178 = vector.broadcast %1177 : vector<8x1xf32> to vector<8x8xf32>
    %1179 = arith.mulf %1174, %1178 : vector<8x8xf32>
    %1180 = vector.broadcast %5 : vector<1x32xf32> to vector<8x32xf32>
    %1181 = arith.mulf %1121, %1180 : vector<8x32xf32>
    %cst_428 = arith.constant dense<0.000000e+00> : vector<8x32xf32>
    %1182 = tpu.matmul %1179, %1181, %cst_428 {dimension_numbers = #tpu.dot_dimension_numbers<[1], [0], [0], [1], [0, 0, 1, 1], [], []>} : vector<8x8xf32>, vector<8x32xf32>, vector<8x32xf32> -> vector<8x32xf32>
    %1183 = arith.addf %1163, %1182 : vector<8x32xf32>
    %1184 = vector.broadcast %7 : vector<1x32xf32> to vector<8x32xf32>
    %1185 = arith.mulf %1120, %1184 : vector<8x32xf32>
    %cst_429 = arith.constant dense<0.000000e+00> : vector<8x8xf32>
    %1186 = tpu.matmul %1119, %1185, %cst_429 {dimension_numbers = #tpu.dot_dimension_numbers<[1], [1], [0], [0], [0, 0, 1, 0], [], []>} : vector<8x32xf32>, vector<8x32xf32>, vector<8x8xf32> -> vector<8x8xf32>
    %cst_430 = arith.constant 0.353553385 : f32
    %1187 = vector.broadcast %cst_430 : f32 to vector<8x8xf32>
    %1188 = arith.mulf %1186, %1187 : vector<8x8xf32>
    %1189 = arith.addf %1188, %1122 : vector<8x8xf32>
    %cst_431 = arith.constant dense<0xFF800000> : vector<8xf32>
    %1190 = vector.multi_reduction <maximumf>, %1189, %cst_431 [1] : vector<8x8xf32> to vector<8xf32>
    %1191 = vector.shape_cast %1190 : vector<8xf32> to vector<8x1xf32>
    %1192 = vector.broadcast %1191 : vector<8x1xf32> to vector<8x8xf32>
    %1193 = arith.subf %1189, %1192 : vector<8x8xf32>
    %1194 = math.exp %1193 : vector<8x8xf32>
    %cst_432 = arith.constant dense<0.000000e+00> : vector<8xf32>
    %1195 = vector.multi_reduction <add>, %1194, %cst_432 [1] : vector<8x8xf32> to vector<8xf32>
    %1196 = vector.shape_cast %1195 : vector<8xf32> to vector<8x1xf32>
    %1197 = tpu.reciprocal %1196 {approx = true} : vector<8x1xf32> -> vector<8x1xf32>
    %1198 = vector.broadcast %1197 : vector<8x1xf32> to vector<8x8xf32>
    %1199 = arith.mulf %1194, %1198 : vector<8x8xf32>
    %1200 = vector.broadcast %7 : vector<1x32xf32> to vector<8x32xf32>
    %1201 = arith.mulf %1121, %1200 : vector<8x32xf32>
    %cst_433 = arith.constant dense<0.000000e+00> : vector<8x32xf32>
    %1202 = tpu.matmul %1199, %1201, %cst_433 {dimension_numbers = #tpu.dot_dimension_numbers<[1], [0], [0], [1], [0, 0, 1, 1], [], []>} : vector<8x8xf32>, vector<8x32xf32>, vector<8x32xf32> -> vector<8x32xf32>
    %1203 = arith.addf %1183, %1202 : vector<8x32xf32>
    %1204 = tpu.concatenate %1118, %1203 in 0 : vector<8x32xf32>, vector<8x32xf32> -> vector<16x32xf32>
    %c1_434 = arith.constant 1 : index
    %c0_435 = arith.constant 0 : index
    %c0_436 = arith.constant 0 : index
    %1205 = vector.load %arg24[%c1_434, %c0_435, %c0_436] : memref<2x32x32xf32, #tpu.memory_space<vmem>>, vector<1x32x32xf32>
    %1206 = vector.shape_cast %1205 : vector<1x32x32xf32> to vector<32x32xf32>
    %c1_437 = arith.constant 1 : index
    %c0_438 = arith.constant 0 : index
    %c0_439 = arith.constant 0 : index
    %1207 = vector.load %arg25[%c1_437, %c0_438, %c0_439] : memref<2x1x32xf32, #tpu.memory_space<vmem>>, vector<1x1x32xf32>
    %1208 = vector.shape_cast %1207 : vector<1x1x32xf32> to vector<1x32xf32>
    %cst_440 = arith.constant dense<0.000000e+00> : vector<16x32xf32>
    %1209 = tpu.matmul %1204, %1206, %cst_440 {dimension_numbers = #tpu.dot_dimension_numbers<[1], [0], [0], [1], [0, 0, 1, 1], [], []>} : vector<16x32xf32>, vector<32x32xf32>, vector<16x32xf32> -> vector<16x32xf32>
    %1210 = vector.broadcast %1208 : vector<1x32xf32> to vector<16x32xf32>
    %1211 = arith.addf %1209, %1210 : vector<16x32xf32>
    %1212 = arith.addf %1023, %1211 : vector<16x32xf32>
    %c1_441 = arith.constant 1 : index
    %c0_442 = arith.constant 0 : index
    %c0_443 = arith.constant 0 : index
    %1213 = vector.load %arg26[%c1_441, %c0_442, %c0_443] : memref<2x1x32xf32, #tpu.memory_space<vmem>>, vector<1x1x32xf32>
    %1214 = vector.shape_cast %1213 : vector<1x1x32xf32> to vector<1x32xf32>
    %c1_444 = arith.constant 1 : index
    %c0_445 = arith.constant 0 : index
    %c0_446 = arith.constant 0 : index
    %1215 = vector.load %arg27[%c1_444, %c0_445, %c0_446] : memref<2x1x32xf32, #tpu.memory_space<vmem>>, vector<1x1x32xf32>
    %1216 = vector.shape_cast %1215 : vector<1x1x32xf32> to vector<1x32xf32>
    %cst_447 = arith.constant dense<0.000000e+00> : vector<16xf32>
    %1217 = vector.multi_reduction <add>, %1212, %cst_447 [1] : vector<16x32xf32> to vector<16xf32>
    %1218 = vector.shape_cast %1217 : vector<16xf32> to vector<16x1xf32>
    %cst_448 = arith.constant 3.200000e+01 : f32
    %1219 = vector.broadcast %cst_448 : f32 to vector<16x1xf32>
    %1220 = arith.divf %1218, %1219 : vector<16x1xf32>
    %1221 = vector.broadcast %1220 : vector<16x1xf32> to vector<16x32xf32>
    %1222 = arith.subf %1212, %1221 : vector<16x32xf32>
    %1223 = arith.mulf %1222, %1222 : vector<16x32xf32>
    %cst_449 = arith.constant dense<0.000000e+00> : vector<16xf32>
    %1224 = vector.multi_reduction <add>, %1223, %cst_449 [1] : vector<16x32xf32> to vector<16xf32>
    %1225 = vector.shape_cast %1224 : vector<16xf32> to vector<16x1xf32>
    %cst_450 = arith.constant 3.200000e+01 : f32
    %1226 = vector.broadcast %cst_450 : f32 to vector<16x1xf32>
    %1227 = arith.divf %1225, %1226 : vector<16x1xf32>
    %cst_451 = arith.constant 9.99999974E-6 : f32
    %1228 = vector.broadcast %cst_451 : f32 to vector<16x1xf32>
    %1229 = arith.addf %1227, %1228 : vector<16x1xf32>
    %1230 = math.rsqrt %1229 : vector<16x1xf32>
    %1231 = vector.broadcast %1230 : vector<16x1xf32> to vector<16x32xf32>
    %1232 = arith.mulf %1222, %1231 : vector<16x32xf32>
    %1233 = vector.broadcast %1214 : vector<1x32xf32> to vector<16x32xf32>
    %1234 = arith.mulf %1232, %1233 : vector<16x32xf32>
    %1235 = vector.broadcast %1216 : vector<1x32xf32> to vector<16x32xf32>
    %1236 = arith.addf %1234, %1235 : vector<16x32xf32>
    %c1_452 = arith.constant 1 : index
    %c0_453 = arith.constant 0 : index
    %c0_454 = arith.constant 0 : index
    %1237 = vector.load %arg28[%c1_452, %c0_453, %c0_454] : memref<2x32x32xf32, #tpu.memory_space<vmem>>, vector<1x32x32xf32>
    %1238 = vector.shape_cast %1237 : vector<1x32x32xf32> to vector<32x32xf32>
    %c1_455 = arith.constant 1 : index
    %c0_456 = arith.constant 0 : index
    %c0_457 = arith.constant 0 : index
    %1239 = vector.load %arg29[%c1_455, %c0_456, %c0_457] : memref<2x1x32xf32, #tpu.memory_space<vmem>>, vector<1x1x32xf32>
    %1240 = vector.shape_cast %1239 : vector<1x1x32xf32> to vector<1x32xf32>
    %cst_458 = arith.constant dense<0.000000e+00> : vector<16x32xf32>
    %1241 = tpu.matmul %1236, %1238, %cst_458 {dimension_numbers = #tpu.dot_dimension_numbers<[1], [0], [0], [1], [0, 0, 1, 1], [], []>} : vector<16x32xf32>, vector<32x32xf32>, vector<16x32xf32> -> vector<16x32xf32>
    %1242 = vector.broadcast %1240 : vector<1x32xf32> to vector<16x32xf32>
    %1243 = arith.addf %1241, %1242 : vector<16x32xf32>
    %c1_459 = arith.constant 1 : index
    %c0_460 = arith.constant 0 : index
    %c0_461 = arith.constant 0 : index
    %1244 = vector.load %arg30[%c1_459, %c0_460, %c0_461] : memref<2x32x64xf32, #tpu.memory_space<vmem>>, vector<1x32x64xf32>
    %1245 = vector.shape_cast %1244 : vector<1x32x64xf32> to vector<32x64xf32>
    %c1_462 = arith.constant 1 : index
    %c0_463 = arith.constant 0 : index
    %c0_464 = arith.constant 0 : index
    %1246 = vector.load %arg31[%c1_462, %c0_463, %c0_464] : memref<2x1x64xf32, #tpu.memory_space<vmem>>, vector<1x1x64xf32>
    %1247 = vector.shape_cast %1246 : vector<1x1x64xf32> to vector<1x64xf32>
    %cst_465 = arith.constant dense<0.000000e+00> : vector<16x64xf32>
    %1248 = tpu.matmul %550, %1245, %cst_465 {dimension_numbers = #tpu.dot_dimension_numbers<[1], [0], [0], [1], [0, 0, 1, 1], [], []>} : vector<16x32xf32>, vector<32x64xf32>, vector<16x64xf32> -> vector<16x64xf32>
    %1249 = vector.broadcast %1247 : vector<1x64xf32> to vector<16x64xf32>
    %1250 = arith.addf %1248, %1249 : vector<16x64xf32>
    %1251 = vector.extract_strided_slice %1250 {offsets = [0, 0], sizes = [16, 32], strides = [1, 1]} : vector<16x64xf32> to vector<16x32xf32>
    %1252 = vector.extract_strided_slice %1250 {offsets = [0, 32], sizes = [16, 32], strides = [1, 1]} : vector<16x64xf32> to vector<16x32xf32>
    %1253 = vector.extract_strided_slice %1243 {offsets = [0, 0], sizes = [8, 32], strides = [1, 1]} : vector<16x32xf32> to vector<8x32xf32>
    %1254 = vector.extract_strided_slice %1251 {offsets = [0, 0], sizes = [8, 32], strides = [1, 1]} : vector<16x32xf32> to vector<8x32xf32>
    %1255 = vector.extract_strided_slice %1252 {offsets = [0, 0], sizes = [8, 32], strides = [1, 1]} : vector<16x32xf32> to vector<8x32xf32>
    %1256 = vector.extract_strided_slice %20 {offsets = [0, 0], sizes = [8, 8], strides = [1, 1]} : vector<16x8xf32> to vector<8x8xf32>
    %cst_466 = arith.constant 0.000000e+00 : f32
    %1257 = vector.broadcast %cst_466 : f32 to vector<8x32xf32>
    %1258 = vector.broadcast %1 : vector<1x32xf32> to vector<8x32xf32>
    %1259 = arith.mulf %1254, %1258 : vector<8x32xf32>
    %cst_467 = arith.constant dense<0.000000e+00> : vector<8x8xf32>
    %1260 = tpu.matmul %1253, %1259, %cst_467 {dimension_numbers = #tpu.dot_dimension_numbers<[1], [1], [0], [0], [0, 0, 1, 0], [], []>} : vector<8x32xf32>, vector<8x32xf32>, vector<8x8xf32> -> vector<8x8xf32>
    %cst_468 = arith.constant 0.353553385 : f32
    %1261 = vector.broadcast %cst_468 : f32 to vector<8x8xf32>
    %1262 = arith.mulf %1260, %1261 : vector<8x8xf32>
    %1263 = arith.addf %1262, %1256 : vector<8x8xf32>
    %cst_469 = arith.constant dense<0xFF800000> : vector<8xf32>
    %1264 = vector.multi_reduction <maximumf>, %1263, %cst_469 [1] : vector<8x8xf32> to vector<8xf32>
    %1265 = vector.shape_cast %1264 : vector<8xf32> to vector<8x1xf32>
    %1266 = vector.broadcast %1265 : vector<8x1xf32> to vector<8x8xf32>
    %1267 = arith.subf %1263, %1266 : vector<8x8xf32>
    %1268 = math.exp %1267 : vector<8x8xf32>
    %cst_470 = arith.constant dense<0.000000e+00> : vector<8xf32>
    %1269 = vector.multi_reduction <add>, %1268, %cst_470 [1] : vector<8x8xf32> to vector<8xf32>
    %1270 = vector.shape_cast %1269 : vector<8xf32> to vector<8x1xf32>
    %1271 = tpu.reciprocal %1270 {approx = true} : vector<8x1xf32> -> vector<8x1xf32>
    %1272 = vector.broadcast %1271 : vector<8x1xf32> to vector<8x8xf32>
    %1273 = arith.mulf %1268, %1272 : vector<8x8xf32>
    %1274 = vector.broadcast %1 : vector<1x32xf32> to vector<8x32xf32>
    %1275 = arith.mulf %1255, %1274 : vector<8x32xf32>
    %cst_471 = arith.constant dense<0.000000e+00> : vector<8x32xf32>
    %1276 = tpu.matmul %1273, %1275, %cst_471 {dimension_numbers = #tpu.dot_dimension_numbers<[1], [0], [0], [1], [0, 0, 1, 1], [], []>} : vector<8x8xf32>, vector<8x32xf32>, vector<8x32xf32> -> vector<8x32xf32>
    %1277 = arith.addf %1257, %1276 : vector<8x32xf32>
    %1278 = vector.broadcast %3 : vector<1x32xf32> to vector<8x32xf32>
    %1279 = arith.mulf %1254, %1278 : vector<8x32xf32>
    %cst_472 = arith.constant dense<0.000000e+00> : vector<8x8xf32>
    %1280 = tpu.matmul %1253, %1279, %cst_472 {dimension_numbers = #tpu.dot_dimension_numbers<[1], [1], [0], [0], [0, 0, 1, 0], [], []>} : vector<8x32xf32>, vector<8x32xf32>, vector<8x8xf32> -> vector<8x8xf32>
    %cst_473 = arith.constant 0.353553385 : f32
    %1281 = vector.broadcast %cst_473 : f32 to vector<8x8xf32>
    %1282 = arith.mulf %1280, %1281 : vector<8x8xf32>
    %1283 = arith.addf %1282, %1256 : vector<8x8xf32>
    %cst_474 = arith.constant dense<0xFF800000> : vector<8xf32>
    %1284 = vector.multi_reduction <maximumf>, %1283, %cst_474 [1] : vector<8x8xf32> to vector<8xf32>
    %1285 = vector.shape_cast %1284 : vector<8xf32> to vector<8x1xf32>
    %1286 = vector.broadcast %1285 : vector<8x1xf32> to vector<8x8xf32>
    %1287 = arith.subf %1283, %1286 : vector<8x8xf32>
    %1288 = math.exp %1287 : vector<8x8xf32>
    %cst_475 = arith.constant dense<0.000000e+00> : vector<8xf32>
    %1289 = vector.multi_reduction <add>, %1288, %cst_475 [1] : vector<8x8xf32> to vector<8xf32>
    %1290 = vector.shape_cast %1289 : vector<8xf32> to vector<8x1xf32>
    %1291 = tpu.reciprocal %1290 {approx = true} : vector<8x1xf32> -> vector<8x1xf32>
    %1292 = vector.broadcast %1291 : vector<8x1xf32> to vector<8x8xf32>
    %1293 = arith.mulf %1288, %1292 : vector<8x8xf32>
    %1294 = vector.broadcast %3 : vector<1x32xf32> to vector<8x32xf32>
    %1295 = arith.mulf %1255, %1294 : vector<8x32xf32>
    %cst_476 = arith.constant dense<0.000000e+00> : vector<8x32xf32>
    %1296 = tpu.matmul %1293, %1295, %cst_476 {dimension_numbers = #tpu.dot_dimension_numbers<[1], [0], [0], [1], [0, 0, 1, 1], [], []>} : vector<8x8xf32>, vector<8x32xf32>, vector<8x32xf32> -> vector<8x32xf32>
    %1297 = arith.addf %1277, %1296 : vector<8x32xf32>
    %1298 = vector.broadcast %5 : vector<1x32xf32> to vector<8x32xf32>
    %1299 = arith.mulf %1254, %1298 : vector<8x32xf32>
    %cst_477 = arith.constant dense<0.000000e+00> : vector<8x8xf32>
    %1300 = tpu.matmul %1253, %1299, %cst_477 {dimension_numbers = #tpu.dot_dimension_numbers<[1], [1], [0], [0], [0, 0, 1, 0], [], []>} : vector<8x32xf32>, vector<8x32xf32>, vector<8x8xf32> -> vector<8x8xf32>
    %cst_478 = arith.constant 0.353553385 : f32
    %1301 = vector.broadcast %cst_478 : f32 to vector<8x8xf32>
    %1302 = arith.mulf %1300, %1301 : vector<8x8xf32>
    %1303 = arith.addf %1302, %1256 : vector<8x8xf32>
    %cst_479 = arith.constant dense<0xFF800000> : vector<8xf32>
    %1304 = vector.multi_reduction <maximumf>, %1303, %cst_479 [1] : vector<8x8xf32> to vector<8xf32>
    %1305 = vector.shape_cast %1304 : vector<8xf32> to vector<8x1xf32>
    %1306 = vector.broadcast %1305 : vector<8x1xf32> to vector<8x8xf32>
    %1307 = arith.subf %1303, %1306 : vector<8x8xf32>
    %1308 = math.exp %1307 : vector<8x8xf32>
    %cst_480 = arith.constant dense<0.000000e+00> : vector<8xf32>
    %1309 = vector.multi_reduction <add>, %1308, %cst_480 [1] : vector<8x8xf32> to vector<8xf32>
    %1310 = vector.shape_cast %1309 : vector<8xf32> to vector<8x1xf32>
    %1311 = tpu.reciprocal %1310 {approx = true} : vector<8x1xf32> -> vector<8x1xf32>
    %1312 = vector.broadcast %1311 : vector<8x1xf32> to vector<8x8xf32>
    %1313 = arith.mulf %1308, %1312 : vector<8x8xf32>
    %1314 = vector.broadcast %5 : vector<1x32xf32> to vector<8x32xf32>
    %1315 = arith.mulf %1255, %1314 : vector<8x32xf32>
    %cst_481 = arith.constant dense<0.000000e+00> : vector<8x32xf32>
    %1316 = tpu.matmul %1313, %1315, %cst_481 {dimension_numbers = #tpu.dot_dimension_numbers<[1], [0], [0], [1], [0, 0, 1, 1], [], []>} : vector<8x8xf32>, vector<8x32xf32>, vector<8x32xf32> -> vector<8x32xf32>
    %1317 = arith.addf %1297, %1316 : vector<8x32xf32>
    %1318 = vector.broadcast %7 : vector<1x32xf32> to vector<8x32xf32>
    %1319 = arith.mulf %1254, %1318 : vector<8x32xf32>
    %cst_482 = arith.constant dense<0.000000e+00> : vector<8x8xf32>
    %1320 = tpu.matmul %1253, %1319, %cst_482 {dimension_numbers = #tpu.dot_dimension_numbers<[1], [1], [0], [0], [0, 0, 1, 0], [], []>} : vector<8x32xf32>, vector<8x32xf32>, vector<8x8xf32> -> vector<8x8xf32>
    %cst_483 = arith.constant 0.353553385 : f32
    %1321 = vector.broadcast %cst_483 : f32 to vector<8x8xf32>
    %1322 = arith.mulf %1320, %1321 : vector<8x8xf32>
    %1323 = arith.addf %1322, %1256 : vector<8x8xf32>
    %cst_484 = arith.constant dense<0xFF800000> : vector<8xf32>
    %1324 = vector.multi_reduction <maximumf>, %1323, %cst_484 [1] : vector<8x8xf32> to vector<8xf32>
    %1325 = vector.shape_cast %1324 : vector<8xf32> to vector<8x1xf32>
    %1326 = vector.broadcast %1325 : vector<8x1xf32> to vector<8x8xf32>
    %1327 = arith.subf %1323, %1326 : vector<8x8xf32>
    %1328 = math.exp %1327 : vector<8x8xf32>
    %cst_485 = arith.constant dense<0.000000e+00> : vector<8xf32>
    %1329 = vector.multi_reduction <add>, %1328, %cst_485 [1] : vector<8x8xf32> to vector<8xf32>
    %1330 = vector.shape_cast %1329 : vector<8xf32> to vector<8x1xf32>
    %1331 = tpu.reciprocal %1330 {approx = true} : vector<8x1xf32> -> vector<8x1xf32>
    %1332 = vector.broadcast %1331 : vector<8x1xf32> to vector<8x8xf32>
    %1333 = arith.mulf %1328, %1332 : vector<8x8xf32>
    %1334 = vector.broadcast %7 : vector<1x32xf32> to vector<8x32xf32>
    %1335 = arith.mulf %1255, %1334 : vector<8x32xf32>
    %cst_486 = arith.constant dense<0.000000e+00> : vector<8x32xf32>
    %1336 = tpu.matmul %1333, %1335, %cst_486 {dimension_numbers = #tpu.dot_dimension_numbers<[1], [0], [0], [1], [0, 0, 1, 1], [], []>} : vector<8x8xf32>, vector<8x32xf32>, vector<8x32xf32> -> vector<8x32xf32>
    %1337 = arith.addf %1317, %1336 : vector<8x32xf32>
    %1338 = vector.extract_strided_slice %1243 {offsets = [8, 0], sizes = [8, 32], strides = [1, 1]} : vector<16x32xf32> to vector<8x32xf32>
    %1339 = vector.extract_strided_slice %1251 {offsets = [8, 0], sizes = [8, 32], strides = [1, 1]} : vector<16x32xf32> to vector<8x32xf32>
    %1340 = vector.extract_strided_slice %1252 {offsets = [8, 0], sizes = [8, 32], strides = [1, 1]} : vector<16x32xf32> to vector<8x32xf32>
    %1341 = vector.extract_strided_slice %20 {offsets = [8, 0], sizes = [8, 8], strides = [1, 1]} : vector<16x8xf32> to vector<8x8xf32>
    %cst_487 = arith.constant 0.000000e+00 : f32
    %1342 = vector.broadcast %cst_487 : f32 to vector<8x32xf32>
    %1343 = vector.broadcast %1 : vector<1x32xf32> to vector<8x32xf32>
    %1344 = arith.mulf %1339, %1343 : vector<8x32xf32>
    %cst_488 = arith.constant dense<0.000000e+00> : vector<8x8xf32>
    %1345 = tpu.matmul %1338, %1344, %cst_488 {dimension_numbers = #tpu.dot_dimension_numbers<[1], [1], [0], [0], [0, 0, 1, 0], [], []>} : vector<8x32xf32>, vector<8x32xf32>, vector<8x8xf32> -> vector<8x8xf32>
    %cst_489 = arith.constant 0.353553385 : f32
    %1346 = vector.broadcast %cst_489 : f32 to vector<8x8xf32>
    %1347 = arith.mulf %1345, %1346 : vector<8x8xf32>
    %1348 = arith.addf %1347, %1341 : vector<8x8xf32>
    %cst_490 = arith.constant dense<0xFF800000> : vector<8xf32>
    %1349 = vector.multi_reduction <maximumf>, %1348, %cst_490 [1] : vector<8x8xf32> to vector<8xf32>
    %1350 = vector.shape_cast %1349 : vector<8xf32> to vector<8x1xf32>
    %1351 = vector.broadcast %1350 : vector<8x1xf32> to vector<8x8xf32>
    %1352 = arith.subf %1348, %1351 : vector<8x8xf32>
    %1353 = math.exp %1352 : vector<8x8xf32>
    %cst_491 = arith.constant dense<0.000000e+00> : vector<8xf32>
    %1354 = vector.multi_reduction <add>, %1353, %cst_491 [1] : vector<8x8xf32> to vector<8xf32>
    %1355 = vector.shape_cast %1354 : vector<8xf32> to vector<8x1xf32>
    %1356 = tpu.reciprocal %1355 {approx = true} : vector<8x1xf32> -> vector<8x1xf32>
    %1357 = vector.broadcast %1356 : vector<8x1xf32> to vector<8x8xf32>
    %1358 = arith.mulf %1353, %1357 : vector<8x8xf32>
    %1359 = vector.broadcast %1 : vector<1x32xf32> to vector<8x32xf32>
    %1360 = arith.mulf %1340, %1359 : vector<8x32xf32>
    %cst_492 = arith.constant dense<0.000000e+00> : vector<8x32xf32>
    %1361 = tpu.matmul %1358, %1360, %cst_492 {dimension_numbers = #tpu.dot_dimension_numbers<[1], [0], [0], [1], [0, 0, 1, 1], [], []>} : vector<8x8xf32>, vector<8x32xf32>, vector<8x32xf32> -> vector<8x32xf32>
    %1362 = arith.addf %1342, %1361 : vector<8x32xf32>
    %1363 = vector.broadcast %3 : vector<1x32xf32> to vector<8x32xf32>
    %1364 = arith.mulf %1339, %1363 : vector<8x32xf32>
    %cst_493 = arith.constant dense<0.000000e+00> : vector<8x8xf32>
    %1365 = tpu.matmul %1338, %1364, %cst_493 {dimension_numbers = #tpu.dot_dimension_numbers<[1], [1], [0], [0], [0, 0, 1, 0], [], []>} : vector<8x32xf32>, vector<8x32xf32>, vector<8x8xf32> -> vector<8x8xf32>
    %cst_494 = arith.constant 0.353553385 : f32
    %1366 = vector.broadcast %cst_494 : f32 to vector<8x8xf32>
    %1367 = arith.mulf %1365, %1366 : vector<8x8xf32>
    %1368 = arith.addf %1367, %1341 : vector<8x8xf32>
    %cst_495 = arith.constant dense<0xFF800000> : vector<8xf32>
    %1369 = vector.multi_reduction <maximumf>, %1368, %cst_495 [1] : vector<8x8xf32> to vector<8xf32>
    %1370 = vector.shape_cast %1369 : vector<8xf32> to vector<8x1xf32>
    %1371 = vector.broadcast %1370 : vector<8x1xf32> to vector<8x8xf32>
    %1372 = arith.subf %1368, %1371 : vector<8x8xf32>
    %1373 = math.exp %1372 : vector<8x8xf32>
    %cst_496 = arith.constant dense<0.000000e+00> : vector<8xf32>
    %1374 = vector.multi_reduction <add>, %1373, %cst_496 [1] : vector<8x8xf32> to vector<8xf32>
    %1375 = vector.shape_cast %1374 : vector<8xf32> to vector<8x1xf32>
    %1376 = tpu.reciprocal %1375 {approx = true} : vector<8x1xf32> -> vector<8x1xf32>
    %1377 = vector.broadcast %1376 : vector<8x1xf32> to vector<8x8xf32>
    %1378 = arith.mulf %1373, %1377 : vector<8x8xf32>
    %1379 = vector.broadcast %3 : vector<1x32xf32> to vector<8x32xf32>
    %1380 = arith.mulf %1340, %1379 : vector<8x32xf32>
    %cst_497 = arith.constant dense<0.000000e+00> : vector<8x32xf32>
    %1381 = tpu.matmul %1378, %1380, %cst_497 {dimension_numbers = #tpu.dot_dimension_numbers<[1], [0], [0], [1], [0, 0, 1, 1], [], []>} : vector<8x8xf32>, vector<8x32xf32>, vector<8x32xf32> -> vector<8x32xf32>
    %1382 = arith.addf %1362, %1381 : vector<8x32xf32>
    %1383 = vector.broadcast %5 : vector<1x32xf32> to vector<8x32xf32>
    %1384 = arith.mulf %1339, %1383 : vector<8x32xf32>
    %cst_498 = arith.constant dense<0.000000e+00> : vector<8x8xf32>
    %1385 = tpu.matmul %1338, %1384, %cst_498 {dimension_numbers = #tpu.dot_dimension_numbers<[1], [1], [0], [0], [0, 0, 1, 0], [], []>} : vector<8x32xf32>, vector<8x32xf32>, vector<8x8xf32> -> vector<8x8xf32>
    %cst_499 = arith.constant 0.353553385 : f32
    %1386 = vector.broadcast %cst_499 : f32 to vector<8x8xf32>
    %1387 = arith.mulf %1385, %1386 : vector<8x8xf32>
    %1388 = arith.addf %1387, %1341 : vector<8x8xf32>
    %cst_500 = arith.constant dense<0xFF800000> : vector<8xf32>
    %1389 = vector.multi_reduction <maximumf>, %1388, %cst_500 [1] : vector<8x8xf32> to vector<8xf32>
    %1390 = vector.shape_cast %1389 : vector<8xf32> to vector<8x1xf32>
    %1391 = vector.broadcast %1390 : vector<8x1xf32> to vector<8x8xf32>
    %1392 = arith.subf %1388, %1391 : vector<8x8xf32>
    %1393 = math.exp %1392 : vector<8x8xf32>
    %cst_501 = arith.constant dense<0.000000e+00> : vector<8xf32>
    %1394 = vector.multi_reduction <add>, %1393, %cst_501 [1] : vector<8x8xf32> to vector<8xf32>
    %1395 = vector.shape_cast %1394 : vector<8xf32> to vector<8x1xf32>
    %1396 = tpu.reciprocal %1395 {approx = true} : vector<8x1xf32> -> vector<8x1xf32>
    %1397 = vector.broadcast %1396 : vector<8x1xf32> to vector<8x8xf32>
    %1398 = arith.mulf %1393, %1397 : vector<8x8xf32>
    %1399 = vector.broadcast %5 : vector<1x32xf32> to vector<8x32xf32>
    %1400 = arith.mulf %1340, %1399 : vector<8x32xf32>
    %cst_502 = arith.constant dense<0.000000e+00> : vector<8x32xf32>
    %1401 = tpu.matmul %1398, %1400, %cst_502 {dimension_numbers = #tpu.dot_dimension_numbers<[1], [0], [0], [1], [0, 0, 1, 1], [], []>} : vector<8x8xf32>, vector<8x32xf32>, vector<8x32xf32> -> vector<8x32xf32>
    %1402 = arith.addf %1382, %1401 : vector<8x32xf32>
    %1403 = vector.broadcast %7 : vector<1x32xf32> to vector<8x32xf32>
    %1404 = arith.mulf %1339, %1403 : vector<8x32xf32>
    %cst_503 = arith.constant dense<0.000000e+00> : vector<8x8xf32>
    %1405 = tpu.matmul %1338, %1404, %cst_503 {dimension_numbers = #tpu.dot_dimension_numbers<[1], [1], [0], [0], [0, 0, 1, 0], [], []>} : vector<8x32xf32>, vector<8x32xf32>, vector<8x8xf32> -> vector<8x8xf32>
    %cst_504 = arith.constant 0.353553385 : f32
    %1406 = vector.broadcast %cst_504 : f32 to vector<8x8xf32>
    %1407 = arith.mulf %1405, %1406 : vector<8x8xf32>
    %1408 = arith.addf %1407, %1341 : vector<8x8xf32>
    %cst_505 = arith.constant dense<0xFF800000> : vector<8xf32>
    %1409 = vector.multi_reduction <maximumf>, %1408, %cst_505 [1] : vector<8x8xf32> to vector<8xf32>
    %1410 = vector.shape_cast %1409 : vector<8xf32> to vector<8x1xf32>
    %1411 = vector.broadcast %1410 : vector<8x1xf32> to vector<8x8xf32>
    %1412 = arith.subf %1408, %1411 : vector<8x8xf32>
    %1413 = math.exp %1412 : vector<8x8xf32>
    %cst_506 = arith.constant dense<0.000000e+00> : vector<8xf32>
    %1414 = vector.multi_reduction <add>, %1413, %cst_506 [1] : vector<8x8xf32> to vector<8xf32>
    %1415 = vector.shape_cast %1414 : vector<8xf32> to vector<8x1xf32>
    %1416 = tpu.reciprocal %1415 {approx = true} : vector<8x1xf32> -> vector<8x1xf32>
    %1417 = vector.broadcast %1416 : vector<8x1xf32> to vector<8x8xf32>
    %1418 = arith.mulf %1413, %1417 : vector<8x8xf32>
    %1419 = vector.broadcast %7 : vector<1x32xf32> to vector<8x32xf32>
    %1420 = arith.mulf %1340, %1419 : vector<8x32xf32>
    %cst_507 = arith.constant dense<0.000000e+00> : vector<8x32xf32>
    %1421 = tpu.matmul %1418, %1420, %cst_507 {dimension_numbers = #tpu.dot_dimension_numbers<[1], [0], [0], [1], [0, 0, 1, 1], [], []>} : vector<8x8xf32>, vector<8x32xf32>, vector<8x32xf32> -> vector<8x32xf32>
    %1422 = arith.addf %1402, %1421 : vector<8x32xf32>
    %1423 = tpu.concatenate %1337, %1422 in 0 : vector<8x32xf32>, vector<8x32xf32> -> vector<16x32xf32>
    %c1_508 = arith.constant 1 : index
    %c0_509 = arith.constant 0 : index
    %c0_510 = arith.constant 0 : index
    %1424 = vector.load %arg32[%c1_508, %c0_509, %c0_510] : memref<2x32x32xf32, #tpu.memory_space<vmem>>, vector<1x32x32xf32>
    %1425 = vector.shape_cast %1424 : vector<1x32x32xf32> to vector<32x32xf32>
    %c1_511 = arith.constant 1 : index
    %c0_512 = arith.constant 0 : index
    %c0_513 = arith.constant 0 : index
    %1426 = vector.load %arg33[%c1_511, %c0_512, %c0_513] : memref<2x1x32xf32, #tpu.memory_space<vmem>>, vector<1x1x32xf32>
    %1427 = vector.shape_cast %1426 : vector<1x1x32xf32> to vector<1x32xf32>
    %cst_514 = arith.constant dense<0.000000e+00> : vector<16x32xf32>
    %1428 = tpu.matmul %1423, %1425, %cst_514 {dimension_numbers = #tpu.dot_dimension_numbers<[1], [0], [0], [1], [0, 0, 1, 1], [], []>} : vector<16x32xf32>, vector<32x32xf32>, vector<16x32xf32> -> vector<16x32xf32>
    %1429 = vector.broadcast %1427 : vector<1x32xf32> to vector<16x32xf32>
    %1430 = arith.addf %1428, %1429 : vector<16x32xf32>
    %1431 = arith.addf %1236, %1430 : vector<16x32xf32>
    %c1_515 = arith.constant 1 : index
    %c0_516 = arith.constant 0 : index
    %c0_517 = arith.constant 0 : index
    %1432 = vector.load %arg34[%c1_515, %c0_516, %c0_517] : memref<2x1x32xf32, #tpu.memory_space<vmem>>, vector<1x1x32xf32>
    %1433 = vector.shape_cast %1432 : vector<1x1x32xf32> to vector<1x32xf32>
    %c1_518 = arith.constant 1 : index
    %c0_519 = arith.constant 0 : index
    %c0_520 = arith.constant 0 : index
    %1434 = vector.load %arg35[%c1_518, %c0_519, %c0_520] : memref<2x1x32xf32, #tpu.memory_space<vmem>>, vector<1x1x32xf32>
    %1435 = vector.shape_cast %1434 : vector<1x1x32xf32> to vector<1x32xf32>
    %cst_521 = arith.constant dense<0.000000e+00> : vector<16xf32>
    %1436 = vector.multi_reduction <add>, %1431, %cst_521 [1] : vector<16x32xf32> to vector<16xf32>
    %1437 = vector.shape_cast %1436 : vector<16xf32> to vector<16x1xf32>
    %cst_522 = arith.constant 3.200000e+01 : f32
    %1438 = vector.broadcast %cst_522 : f32 to vector<16x1xf32>
    %1439 = arith.divf %1437, %1438 : vector<16x1xf32>
    %1440 = vector.broadcast %1439 : vector<16x1xf32> to vector<16x32xf32>
    %1441 = arith.subf %1431, %1440 : vector<16x32xf32>
    %1442 = arith.mulf %1441, %1441 : vector<16x32xf32>
    %cst_523 = arith.constant dense<0.000000e+00> : vector<16xf32>
    %1443 = vector.multi_reduction <add>, %1442, %cst_523 [1] : vector<16x32xf32> to vector<16xf32>
    %1444 = vector.shape_cast %1443 : vector<16xf32> to vector<16x1xf32>
    %cst_524 = arith.constant 3.200000e+01 : f32
    %1445 = vector.broadcast %cst_524 : f32 to vector<16x1xf32>
    %1446 = arith.divf %1444, %1445 : vector<16x1xf32>
    %cst_525 = arith.constant 9.99999974E-6 : f32
    %1447 = vector.broadcast %cst_525 : f32 to vector<16x1xf32>
    %1448 = arith.addf %1446, %1447 : vector<16x1xf32>
    %1449 = math.rsqrt %1448 : vector<16x1xf32>
    %1450 = vector.broadcast %1449 : vector<16x1xf32> to vector<16x32xf32>
    %1451 = arith.mulf %1441, %1450 : vector<16x32xf32>
    %1452 = vector.broadcast %1433 : vector<1x32xf32> to vector<16x32xf32>
    %1453 = arith.mulf %1451, %1452 : vector<16x32xf32>
    %1454 = vector.broadcast %1435 : vector<1x32xf32> to vector<16x32xf32>
    %1455 = arith.addf %1453, %1454 : vector<16x32xf32>
    %c1_526 = arith.constant 1 : index
    %c0_527 = arith.constant 0 : index
    %c0_528 = arith.constant 0 : index
    %1456 = vector.load %arg36[%c1_526, %c0_527, %c0_528] : memref<2x32x64xf32, #tpu.memory_space<vmem>>, vector<1x32x64xf32>
    %1457 = vector.shape_cast %1456 : vector<1x32x64xf32> to vector<32x64xf32>
    %c1_529 = arith.constant 1 : index
    %c0_530 = arith.constant 0 : index
    %c0_531 = arith.constant 0 : index
    %1458 = vector.load %arg37[%c1_529, %c0_530, %c0_531] : memref<2x1x64xf32, #tpu.memory_space<vmem>>, vector<1x1x64xf32>
    %1459 = vector.shape_cast %1458 : vector<1x1x64xf32> to vector<1x64xf32>
    %cst_532 = arith.constant dense<0.000000e+00> : vector<16x64xf32>
    %1460 = tpu.matmul %1455, %1457, %cst_532 {dimension_numbers = #tpu.dot_dimension_numbers<[1], [0], [0], [1], [0, 0, 1, 1], [], []>} : vector<16x32xf32>, vector<32x64xf32>, vector<16x64xf32> -> vector<16x64xf32>
    %1461 = vector.broadcast %1459 : vector<1x64xf32> to vector<16x64xf32>
    %1462 = arith.addf %1460, %1461 : vector<16x64xf32>
    %cst_533 = arith.constant 0.000000e+00 : f32
    %1463 = vector.broadcast %cst_533 : f32 to vector<16x64xf32>
    %1464 = arith.maximumf %1462, %1463 : vector<16x64xf32>
    %c1_534 = arith.constant 1 : index
    %c0_535 = arith.constant 0 : index
    %c0_536 = arith.constant 0 : index
    %1465 = vector.load %arg38[%c1_534, %c0_535, %c0_536] : memref<2x64x32xf32, #tpu.memory_space<vmem>>, vector<1x64x32xf32>
    %1466 = vector.shape_cast %1465 : vector<1x64x32xf32> to vector<64x32xf32>
    %c1_537 = arith.constant 1 : index
    %c0_538 = arith.constant 0 : index
    %c0_539 = arith.constant 0 : index
    %1467 = vector.load %arg39[%c1_537, %c0_538, %c0_539] : memref<2x1x32xf32, #tpu.memory_space<vmem>>, vector<1x1x32xf32>
    %1468 = vector.shape_cast %1467 : vector<1x1x32xf32> to vector<1x32xf32>
    %cst_540 = arith.constant dense<0.000000e+00> : vector<16x32xf32>
    %1469 = tpu.matmul %1464, %1466, %cst_540 {dimension_numbers = #tpu.dot_dimension_numbers<[1], [0], [0], [1], [0, 0, 1, 1], [], []>} : vector<16x64xf32>, vector<64x32xf32>, vector<16x32xf32> -> vector<16x32xf32>
    %1470 = vector.broadcast %1468 : vector<1x32xf32> to vector<16x32xf32>
    %1471 = arith.addf %1469, %1470 : vector<16x32xf32>
    %1472 = arith.addf %1455, %1471 : vector<16x32xf32>
    %c1_541 = arith.constant 1 : index
    %c0_542 = arith.constant 0 : index
    %c0_543 = arith.constant 0 : index
    %1473 = vector.load %arg40[%c1_541, %c0_542, %c0_543] : memref<2x1x32xf32, #tpu.memory_space<vmem>>, vector<1x1x32xf32>
    %1474 = vector.shape_cast %1473 : vector<1x1x32xf32> to vector<1x32xf32>
    %c1_544 = arith.constant 1 : index
    %c0_545 = arith.constant 0 : index
    %c0_546 = arith.constant 0 : index
    %1475 = vector.load %arg41[%c1_544, %c0_545, %c0_546] : memref<2x1x32xf32, #tpu.memory_space<vmem>>, vector<1x1x32xf32>
    %1476 = vector.shape_cast %1475 : vector<1x1x32xf32> to vector<1x32xf32>
    %cst_547 = arith.constant dense<0.000000e+00> : vector<16xf32>
    %1477 = vector.multi_reduction <add>, %1472, %cst_547 [1] : vector<16x32xf32> to vector<16xf32>
    %1478 = vector.shape_cast %1477 : vector<16xf32> to vector<16x1xf32>
    %cst_548 = arith.constant 3.200000e+01 : f32
    %1479 = vector.broadcast %cst_548 : f32 to vector<16x1xf32>
    %1480 = arith.divf %1478, %1479 : vector<16x1xf32>
    %1481 = vector.broadcast %1480 : vector<16x1xf32> to vector<16x32xf32>
    %1482 = arith.subf %1472, %1481 : vector<16x32xf32>
    %1483 = arith.mulf %1482, %1482 : vector<16x32xf32>
    %cst_549 = arith.constant dense<0.000000e+00> : vector<16xf32>
    %1484 = vector.multi_reduction <add>, %1483, %cst_549 [1] : vector<16x32xf32> to vector<16xf32>
    %1485 = vector.shape_cast %1484 : vector<16xf32> to vector<16x1xf32>
    %cst_550 = arith.constant 3.200000e+01 : f32
    %1486 = vector.broadcast %cst_550 : f32 to vector<16x1xf32>
    %1487 = arith.divf %1485, %1486 : vector<16x1xf32>
    %cst_551 = arith.constant 9.99999974E-6 : f32
    %1488 = vector.broadcast %cst_551 : f32 to vector<16x1xf32>
    %1489 = arith.addf %1487, %1488 : vector<16x1xf32>
    %1490 = math.rsqrt %1489 : vector<16x1xf32>
    %1491 = vector.broadcast %1490 : vector<16x1xf32> to vector<16x32xf32>
    %1492 = arith.mulf %1482, %1491 : vector<16x32xf32>
    %1493 = vector.broadcast %1474 : vector<1x32xf32> to vector<16x32xf32>
    %1494 = arith.mulf %1492, %1493 : vector<16x32xf32>
    %1495 = vector.broadcast %1476 : vector<1x32xf32> to vector<16x32xf32>
    %1496 = arith.addf %1494, %1495 : vector<16x32xf32>
    %c0_552 = arith.constant 0 : index
    %c0_553 = arith.constant 0 : index
    %1497 = vector.load %arg42[%c0_552, %c0_553] : memref<1x32xf32, #tpu.memory_space<vmem>>, vector<1x32xf32>
    %c0_554 = arith.constant 0 : index
    %c0_555 = arith.constant 0 : index
    %1498 = vector.load %arg43[%c0_554, %c0_555] : memref<1x32xf32, #tpu.memory_space<vmem>>, vector<1x32xf32>
    %cst_556 = arith.constant dense<0.000000e+00> : vector<16xf32>
    %1499 = vector.multi_reduction <add>, %1496, %cst_556 [1] : vector<16x32xf32> to vector<16xf32>
    %1500 = vector.shape_cast %1499 : vector<16xf32> to vector<16x1xf32>
    %cst_557 = arith.constant 3.200000e+01 : f32
    %1501 = vector.broadcast %cst_557 : f32 to vector<16x1xf32>
    %1502 = arith.divf %1500, %1501 : vector<16x1xf32>
    %1503 = vector.broadcast %1502 : vector<16x1xf32> to vector<16x32xf32>
    %1504 = arith.subf %1496, %1503 : vector<16x32xf32>
    %1505 = arith.mulf %1504, %1504 : vector<16x32xf32>
    %cst_558 = arith.constant dense<0.000000e+00> : vector<16xf32>
    %1506 = vector.multi_reduction <add>, %1505, %cst_558 [1] : vector<16x32xf32> to vector<16xf32>
    %1507 = vector.shape_cast %1506 : vector<16xf32> to vector<16x1xf32>
    %cst_559 = arith.constant 3.200000e+01 : f32
    %1508 = vector.broadcast %cst_559 : f32 to vector<16x1xf32>
    %1509 = arith.divf %1507, %1508 : vector<16x1xf32>
    %cst_560 = arith.constant 9.99999974E-6 : f32
    %1510 = vector.broadcast %cst_560 : f32 to vector<16x1xf32>
    %1511 = arith.addf %1509, %1510 : vector<16x1xf32>
    %1512 = math.rsqrt %1511 : vector<16x1xf32>
    %1513 = vector.broadcast %1512 : vector<16x1xf32> to vector<16x32xf32>
    %1514 = arith.mulf %1504, %1513 : vector<16x32xf32>
    %1515 = vector.broadcast %1497 : vector<1x32xf32> to vector<16x32xf32>
    %1516 = arith.mulf %1514, %1515 : vector<16x32xf32>
    %1517 = vector.broadcast %1498 : vector<1x32xf32> to vector<16x32xf32>
    %1518 = arith.addf %1516, %1517 : vector<16x32xf32>
    %c0_561 = arith.constant 0 : index
    %c0_562 = arith.constant 0 : index
    %1519 = vector.load %arg44[%c0_561, %c0_562] : memref<32x128xf32, #tpu.memory_space<vmem>>, vector<32x128xf32>
    %cst_563 = arith.constant dense<0.000000e+00> : vector<16x128xf32>
    %1520 = tpu.matmul %1518, %1519, %cst_563 {dimension_numbers = #tpu.dot_dimension_numbers<[1], [0], [0], [1], [0, 0, 1, 1], [], []>} : vector<16x32xf32>, vector<32x128xf32>, vector<16x128xf32> -> vector<16x128xf32>
    %c0_564 = arith.constant 0 : index
    %c0_565 = arith.constant 0 : index
    %1521 = vector.load %arg45[%c0_564, %c0_565] : memref<1x128xf32, #tpu.memory_space<vmem>>, vector<1x128xf32>
    %1522 = vector.broadcast %1521 : vector<1x128xf32> to vector<16x128xf32>
    %1523 = arith.addf %1520, %1522 : vector<16x128xf32>
    %c0_566 = arith.constant 0 : index
    %c0_567 = arith.constant 0 : index
    %1524 = vector.load %arg46[%c0_566, %c0_567] : memref<16x128xf32, #tpu.memory_space<vmem>>, vector<16x128xf32>
    tpu.vector_store %arg46[%c0_566, %c0_567], %1523 {strides = array<i32>} : memref<16x128xf32, #tpu.memory_space<vmem>>, vector<16x128xf32>,
    return
  }
}

</mosaic_0001>

<bundles_post_ra>
// kernel: seq2seq_transformer.1
= control target key start
LH: loop header
LB: loop body
LE: loop exit
PB: predicated region body
PF: predicated region fallthrough
CT: control target
= control target key end

     0   :  { %s12813_s3 = smov 8   ;;  %s12814_s10 = smov 2   ;;  %vm230_vm0 = vcmask 261120   ;;  %v12817_v16 = vmov 0.0   ;;  %vm12819_vm1 = vmmov 0   ;;  %vm402_vm2 = vcmask 64512   ;;  %s14402_s0 = inlined_call_operand.smem [shape: u32[47], index: -1, kind: input, shape index: {}] }
   0x1   :  { %s12871_s6 = sld [smem:[%s14402_s0 + %s12813_s3]]   ;;  %s12815_s14 = smov 4   ;;  %11755 = vmatprep.subr.mxu1 %v12817_v16  ;;  %11757 = vmatprep.mubr.msk.f32.mxu1 %vm12819_vm1, %v12817_v16  ;;  %vm1955_vm3 = vcmask 523264  }
   0x2   :  { %s1_s9 = sld [smem:[%s14402_s0]]   ;;  %s12816_s18 = smov 32  }
   0x3   :  { %s11036_s13 = sld [smem:[%s14402_s0 + %s12814_s10]]   ;;  %s12818_s19 = smov 9  }
   0x4   :  { %s12882_s17 = sld [smem:[%s14402_s0 + %s12815_s14]]   ;;  %s12820_s23 = smov 96  }
   0x5   :  { %s12921_s22 = sld [smem:[%s14402_s0 + %s12818_s19]]   ;;  %s12821_s24 = smov 5  }
   0x6   :  { %s12979_s27 = sld [smem:[%s14402_s0 + %s12821_s24]]   ;;  %s12822_s28 = smov 64  }
   0x7   :  { %v222_v0 = vld [vmem:[%s12871_s6 + $0x18] sm:$0xff]  ;;  %v221_v1 = vld [vmem:[%s12871_s6 + $0x10] sm:$0xff]  ;;  %v220_v2 = vld [vmem:[%s12871_s6 + $0x8] sm:$0xff]  ;;  %s12823_s29 = smov 10   ;;  %s12824_s3 = smov 11  }
   0x8   :  { %11744 = vmatprep.subr.mxu0 %v222_v0  ;;  %v197_v3 = vld [vmem:[%s1_s9] sm:$0xff]  ;;  %v198_v4 = vld [vmem:[%s1_s9 + $0x8] sm:$0xff]  ;;  %s13119_s2 = sld [smem:[%s14402_s0 + %s12823_s29]]   ;;  %s12825_s8 = smov 14  }
   0x9   :  { %11745 = vmatpush3.msra.mxu0 %v222_v0  ;;  %v199_v5 = vmul.f32 5.656854, %v197_v3  ;;  %v201_v6 = vld [vmem:[%s11036_s13] sm:$0xff]  ;;  %v200_v7 = vmul.f32 5.656854, %v198_v4  ;;  %v202_v8 = vld [vmem:[%s11036_s13 + $0x8] sm:$0xff]  ;;  %s13130_s7 = sld [smem:[%s14402_s0 + %s12824_s3]]  }
   0xa   :  { %11746 = vmatprep.subr.mxu0 %v221_v1  ;;  %v12888_v9 = vld [vmem:[%s12882_s17 + $0x2] ss:$0 sm:$0xff]  ;;  %v12891_v10 = vld [vmem:[%s12882_s17] ss:$0 sm:$0xff]  ;;  %v12903_v14 = vld [vmem:[%s12882_s17 + $0x3] ss:$0 sm:$0xff]  ;;  %s13142_s11 = sld [smem:[%s14402_s0 + %s12825_s8]]  }
   0xb   :  { %11747 = vmatpush3.msra.mxu0 %v221_v1  ;;  %v219_v11 = vld [vmem:[%s12871_s6] sm:$0xff]  ;;  %v12894_v12 = vadd.f32 %v201_v6, %v199_v5  ;;  %680 = vrot.lane.b32.xlu1 %v12888_v9, %s12816_s18  ;;  %v12898_v13 = vadd.f32 %v202_v8, %v200_v7  ;;  %s12826_s12 = smov 16   ;;  %s12827_s16 = smov 12  }
   0xc   :  { %11748 = vmatprep.subr.mxu0 %v220_v2  ;;  %318 = vrot.lane.b32.xlu0 %v12891_v10, %s12816_s18  ;;  %v12908_v15 = vld [vmem:[%s12882_s17 + $0x1] ss:$0 sm:$0xff]  ;;  %v11084_v18 = vld [vmem:[%s12921_s22] ss:$0 sm:$0xff]  ;;  %s13151_s15 = sld [smem:[%s14402_s0 + %s12826_s12]]   ;;  %s12828_s24 = smov 13  }
   0xd   :  { %11749 = vmatpush3.msra.mxu0 %v220_v2  ;;  %11752 = vmatprep.mubr.msk.f32.mxu0 %vm230_vm0, %v12894_v12  ;;  %v12982_v35 = vld [vmem:[%s12979_s27] sm:$0xff]  ;;  %s13160_s21 = sld [smem:[%s14402_s0 + %s12827_s16]]   ;;  %s12829_s30 = smov 15  }
   0xe   :  { %11750 = vmatprep.subr.mxu0 %v219_v11  ;;  %s13165_s29 = sld [smem:[%s14402_s0 + %s12828_s24]]   ;;  %s12830_s5 = smov 17  }
   0xf   :  { %11751 = vmatpush3.msra.mxu0 %v219_v11  ;;  %860 = vrot.lane.b32.xlu1 %v12903_v14, %s12816_s18  ;;  %s13179_s4 = sld [smem:[%s14402_s0 + %s12829_s30]]   ;;  %s12831_s12 = smov 18  }
  0x10   :  { %11753 = vmatmul.mubr.msk.f32.vlgmr.msra.gmra.mxu0 %vm230_vm0, %v12898_v13  ;;  %424 = vrot.lane.b32.xlu0 %v12908_v15, %s12816_s18  ;;  %s13189_s10 = sld [smem:[%s14402_s0 + %s12830_s5]]   ;;  %s12835_s1 = smov 3  }
  0x11   :  { %11775 = vmatprep.subr.mxu0 %v12817_v16  ;;  %11777 = vmatprep.mubr.msk.f32.mxu0 %vm12819_vm1, %v12817_v16  ;;  %s13204_s16 = sld [smem:[%s14402_s0 + %s12831_s12]]   ;;  %s12852_s19 = smov 34  }
  0x12   :  { %s11037_s8 = sld [smem:[%s14402_s0 + %s12835_s1]]   ;;  %s12850_s1 = smov 36  }
  0x13   :  { %s12856_s3 = smov 40  }
  0x7d   :  { %v12932_v21 = vpop.permute.xlu1 %680 }
  0x7e   :  { %v12927_v17 = vpop.permute.xlu0 %318 }
  0x81   :  { %v12944_v27 = vpop.permute.xlu1 %860 }
  0x82   :  { %v12936_v24 = vpop.permute.xlu0 %424 }
  0xd0   :  { %v11754_v19 = vpop.f32.mrf.mxu0 }
  0xd1   :  { %v12930_v20 = vadd.f32 %v11754_v19, %v11084_v18 }
  0xd2   :  { %v303_v22 = vpop.f32.mrf.mxu0 }
  0xd3   :  { %v12934_v23 = vadd.f32 %v11084_v18, %v303_v22 }
  0xd5   :  { %v427_v25 = vmul.f32 %v12936_v24, %v12934_v23  ;;  %v321_v26 = vmul.f32 %v12927_v17, %v12934_v23  ;;  %v863_v28 = vmul.f32 %v12944_v27, %v12934_v23  ;;  %v683_v29 = vmul.f32 %v12932_v21, %v12934_v23 }
  0xd7   :  { %429 = vrot.lane.b32.xlu1 %v427_v25, %s12820_s23  ;;  %323 = vrot.lane.b32.xlu0 %v321_v26, %s12820_s23 }
  0xdb   :  { %865 = vrot.lane.b32.xlu1 %v863_v28, %s12820_s23  ;;  %685 = vrot.lane.b32.xlu0 %v683_v29, %s12820_s23  ;;  %v1127_v28 = vmul.f32 %v12936_v24, %v12930_v20 }
 0x149   :  { %v324_v30 = vpop.permute.xlu0 %323  ;;  %v430_v31 = vpop.permute.xlu1 %429 }
 0x14a   :  { %11756 = vmatpush3.xpose.msk.msra.mxu1 %vm230_vm0, %v324_v30 }
 0x14b   :  { %11760 = vmatprep.subr.mxu1 %v12817_v16 }
 0x14d   :  { %11758 = vmatmul.mubr.msk.f32.vlgmr.msra.gmra.mxu1 %vm230_vm0, %v12934_v23  ;;  %v686_v32 = vpop.permute.xlu0 %685  ;;  %v866_v33 = vpop.permute.xlu1 %865 }
 0x14e   :  { %11761 = vmatpush3.xpose.msk.msra.mxu1 %vm230_vm0, %v430_v31  ;;  %11776 = vmatpush3.xpose.msk.msra.mxu0 %vm230_vm0, %v686_v32 }
 0x14f   :  { %11762 = vmatprep.mubr.msk.f32.mxu1 %vm12819_vm1, %v12817_v16  ;;  %11785 = vmatprep.subr.mxu0 %v12817_v16 }
 0x150   :  { %11765 = vmatprep.subr.mxu1 %v12817_v16 }
 0x151   :  { %11763 = vmatmul.mubr.msk.f32.vlgmr.msra.gmra.mxu1 %vm230_vm0, %v12934_v23  ;;  %11778 = vmatmul.mubr.msk.f32.vlgmr.msra.gmra.mxu0 %vm230_vm0, %v12934_v23 }
 0x152   :  { %11786 = vmatpush3.xpose.msk.msra.mxu0 %vm230_vm0, %v866_v33  ;;  %11787 = vmatprep.mubr.msk.f32.mxu0 %vm12819_vm1, %v12817_v16 }
 0x153   :  { %11767 = vmatprep.mubr.msk.f32.mxu1 %vm12819_vm1, %v12817_v16  ;;  %11795 = vmatprep.subr.mxu0 %v12817_v16 }
 0x155   :  { %11788 = vmatmul.mubr.msk.f32.vlgmr.msra.gmra.mxu0 %vm230_vm0, %v12934_v23 }
 0x156   :  { %11797 = vmatprep.mubr.msk.f32.mxu0 %vm12819_vm1, %v12817_v16 }
 0x20d   :  { %v396_v34 = vpop.f32.mrf.mxu1 }
 0x20e   :  { %v400_v36 = vmul.f32 0.35355338, %v396_v34 }
 0x20f   :  { %v11759_v37 = vpop.f32.mrf.mxu1 }
 0x210   :  { %v401_v38 = vadd.f32 %v400_v36, %v12982_v35 }
 0x211   :  { %v499_v39 = vpop.f32.mrf.mxu1  ;;  %v755_v40 = vpop.f32.mrf.mxu0 }
 0x212   :  { %v503_v41 = vmul.f32 0.35355338, %v499_v39  ;;  %v759_v42 = vmul.f32 0.35355338, %v755_v40  ;;  %v403_v43 = vsel %vm402_vm2, %v401_v38, -inf }
 0x213   :  { %404 = vmax.xlane.f32.xlu1 %v403_v43  ;;  %v11764_v44 = vpop.f32.mrf.mxu1  ;;  %v11779_v45 = vpop.f32.mrf.mxu0 }
 0x214   :  { %v760_v46 = vadd.f32 %v759_v42, %v12982_v35  ;;  %v504_v50 = vadd.f32 %v503_v41, %v12982_v35 }
 0x215   :  { %v935_v47 = vpop.f32.mrf.mxu0 }
 0x216   :  { %v939_v48 = vmul.f32 0.35355338, %v935_v47  ;;  %v761_v49 = vsel %vm402_vm2, %v760_v46, -inf  ;;  %v505_v52 = vsel %vm402_vm2, %v504_v50, -inf }
 0x217   :  { %762 = vmax.xlane.f32.xlu0 %v761_v49  ;;  %v11789_v51 = vpop.f32.mrf.mxu0 }
 0x218   :  { %v940_v53 = vadd.f32 %v939_v48, %v12982_v35 }
 0x21a   :  { %v941_v54 = vsel %vm402_vm2, %v940_v53, -inf }
 0x21b   :  { %506 = vmax.xlane.f32.xlu0 %v505_v52 }
 0x21f   :  { %942 = vmax.xlane.f32.xlu0 %v941_v54 }
 0x224   :  { %516 = vrot.lane.b32.xlu1 %v12908_v15, %s12822_s28 }
 0x228   :  { %772 = vrot.lane.b32.xlu1 %v12888_v9, %s12822_s28 }
 0x22c   :  { %952 = vrot.lane.b32.xlu1 %v12903_v14, %s12822_s28 }
 0x235   :  { %414 = vrot.lane.b32.xlu0 %v12891_v10, %s12822_s28 }
 0x29c   :  { %v405_v55 = vpop.xlane.xlu1 %404 }
 0x29d   :  { %v406_v0 = vsub.f32 %v401_v38, %v405_v55 }
 0x29f   :  { %v407_v2 = vmul.f32 1.442695, %v406_v0 }
 0x2a0   :  { %v13000_v56 = vpop.permute.xlu1 %516  ;;  %v763_v57 = vpop.xlane.xlu0 %762 }
 0x2a1   :  { %v764_v58 = vsub.f32 %v760_v46, %v763_v57  ;;  %v519_v59 = vmul.f32 %v13000_v56, %v12934_v23  ;;  %v1216_v0 = vmul.f32 %v13000_v56, %v12930_v20 }
 0x2a3   :  { %v765_v60 = vmul.f32 1.442695, %v764_v58  ;;  %521 = vrot.lane.b32.xlu1 %v519_v59, %s12822_s28  ;;  %v13050_v59 = vld [vmem:[%s12979_s27 + $0x8] sm:$0xff] }
 0x2a4   :  { %v507_v61 = vpop.xlane.xlu0 %506  ;;  %v13013_v11 = vpop.permute.xlu1 %772 }
 0x2a5   :  { %12559 = vpow2.f32 %v765_v60  ;;  %v508_v62 = vsub.f32 %v504_v50, %v507_v61  ;;  %v775_v15 = vmul.f32 %v13013_v11, %v12934_v23 }
 0x2a7   :  { %v509_v63 = vmul.f32 1.442695, %v508_v62 }
 0x2a8   :  { %v943_v7 = vpop.xlane.xlu0 %942  ;;  %v13017_v18 = vpop.permute.xlu1 %952 }
 0x2a9   :  { %12561 = vpow2.f32 %v509_v63  ;;  %v944_v14 = vsub.f32 %v940_v53, %v943_v7  ;;  %v955_v22 = vmul.f32 %v13017_v18, %v12934_v23  ;;  %v1034_v7 = vmul.f32 %v12927_v17, %v12930_v20 }
 0x2aa   :  { %12563 = vpow2.f32 %v407_v2 }
 0x2ab   :  { %v945_v19 = vmul.f32 1.442695, %v944_v14 }
 0x2ac   :  { %v13008_v9 = vpop.permute.xlu0 %414 }
 0x2ad   :  { %v417_v10 = vmul.f32 %v13008_v9, %v12934_v23  ;;  %12565 = vpow2.f32 %v945_v19 }
 0x2b2   :  { %v12560_v1 = vpop.eup %12559 }
 0x2b3   :  { %v767_v3 = vsel %vm402_vm2, %v12560_v1, 0.0 }
 0x2b4   :  { %768 = vadd.xlane.f32.xlu0 %v767_v3 }
 0x2b6   :  { %v12562_v4 = vpop.eup %12561 }
 0x2b7   :  { %v511_v5 = vsel %vm402_vm2, %v12562_v4, 0.0  ;;  %v12564_v6 = vpop.eup %12563 }
 0x2b8   :  { %512 = vadd.xlane.f32.xlu0 %v511_v5  ;;  %v409_v8 = vsel %vm402_vm2, %v12564_v6, 0.0 }
 0x2ba   :  { %v12566_v25 = vpop.eup %12565 }
 0x2bb   :  { %v947_v26 = vsel %vm402_vm2, %v12566_v25, 0.0 }
 0x2c7   :  { %410 = vadd.xlane.f32.xlu1 %v409_v8  ;;  %v1539_v8 = vmul.f32 %v12944_v27, %v12930_v20 }
 0x2ce   :  { %598 = vrot.lane.b32.xlu0 %v417_v10, %s12822_s28 }
 0x2d8   :  { %777 = vrot.lane.b32.xlu1 %v775_v15, %s12822_s28 }
 0x2dc   :  { %957 = vrot.lane.b32.xlu1 %v955_v22, %s12822_s28 }
 0x2ed   :  { %948 = vadd.xlane.f32.xlu0 %v947_v26 }
 0x303   :  { %1129 = vrot.lane.b32.xlu0 %v1127_v28, %s12820_s23 }
 0x315   :  { %v522_v29 = vpop.permute.xlu1 %521 }
 0x316   :  { %11766 = vmatpush3.msra.mxu1 %v522_v29 }
 0x317   :  { %11770 = vmatprep.subr.mxu1 %v12817_v16 }
 0x33d   :  { %v769_v30 = vpop.xlane.xlu0 %768 }
 0x341   :  { %v513_v31 = vpop.xlane.xlu0 %512 }
 0x342   :  { %12567 = vrcp.f32 %v513_v31 }
 0x345   :  { %v599_v34 = vpop.permute.xlu0 %598 }
 0x34f   :  { %v12568_v23 = vpop.eup %12567 }
 0x350   :  { %v411_v32 = vpop.xlane.xlu1 %410  ;;  %v515_v33 = vmul.f32 %v12568_v23, %v12562_v4 }
 0x351   :  { %12569 = vrcp.f32 %v411_v32 }
 0x352   :  { %11768 = vmatmul.mubr.msk.f32.vlgmr.msra.gmra.mxu1 %vm402_vm2, %v515_v33  ;;  %12571 = vrcp.f32 %v769_v30 }
 0x353   :  { %11771 = vmatpush3.msra.mxu1 %v599_v34  ;;  %11772 = vmatprep.mubr.msk.f32.mxu1 %vm12819_vm1, %v12817_v16 }
 0x354   :  { %11780 = vmatprep.subr.mxu1 %v12817_v16  ;;  %v778_v37 = vpop.permute.xlu1 %777 }
 0x358   :  { %v958_v41 = vpop.permute.xlu1 %957 }
 0x35e   :  { %v12570_v36 = vpop.eup %12569 }
 0x35f   :  { %v413_v38 = vmul.f32 %v12570_v36, %v12564_v6  ;;  %v12572_v39 = vpop.eup %12571 }
 0x360   :  { %v771_v40 = vmul.f32 %v12572_v39, %v12560_v1  ;;  %v1371_v1 = vmul.f32 %v12932_v21, %v12930_v20 }
 0x361   :  { %11773 = vmatmul.mubr.msk.f32.vlgmr.msra.gmra.mxu1 %vm402_vm2, %v413_v38 }
 0x362   :  { %11781 = vmatpush3.msra.mxu1 %v778_v37  ;;  %11782 = vmatprep.mubr.msk.f32.mxu1 %vm12819_vm1, %v12817_v16 }
 0x363   :  { %11790 = vmatprep.subr.mxu1 %v12817_v16 }
 0x365   :  { %11783 = vmatmul.mubr.msk.f32.vlgmr.msra.gmra.mxu1 %vm402_vm2, %v771_v40 }
 0x366   :  { %11791 = vmatpush3.msra.mxu1 %v958_v41  ;;  %11792 = vmatprep.mubr.msk.f32.mxu1 %vm12819_vm1, %v12817_v16 }
 0x367   :  { %11800 = vmatprep.subr.mxu1 %v12817_v16 }
 0x376   :  { %v949_v42 = vpop.xlane.xlu0 %948 }
 0x377   :  { %12573 = vrcp.f32 %v949_v42 }
 0x37a   :  { %v1130_v45 = vpop.permute.xlu0 %1129 }
 0x384   :  { %v12574_v43 = vpop.eup %12573 }
 0x385   :  { %v951_v44 = vmul.f32 %v12574_v43, %v12566_v25 }
 0x387   :  { %11793 = vmatmul.mubr.msk.f32.vlgmr.msra.gmra.mxu1 %vm402_vm2, %v951_v44 }
 0x388   :  { %11801 = vmatpush3.xpose.msk.msra.mxu1 %vm230_vm0, %v1130_v45  ;;  %11802 = vmatprep.mubr.msk.f32.mxu1 %vm12819_vm1, %v12817_v16 }
 0x389   :  { %11810 = vmatprep.subr.mxu1 %v12817_v16 }
 0x38b   :  { %11803 = vmatmul.mubr.msk.f32.vlgmr.msra.gmra.mxu1 %vm230_vm0, %v12930_v20 }
 0x38c   :  { %11812 = vmatprep.mubr.msk.f32.mxu1 %vm12819_vm1, %v12817_v16 }
 0x412   :  { %v593_v46 = vpop.f32.mrf.mxu1 }
 0x414   :  { %v11769_v47 = vpop.f32.mrf.mxu1 }
 0x421   :  { %v670_v48 = vpop.f32.mrf.mxu1 }
 0x422   :  { %v671_v49 = vadd.f32 %v670_v48, %v593_v46 }
 0x423   :  { %v11774_v50 = vpop.f32.mrf.mxu1 }
 0x425   :  { %v849_v51 = vpop.f32.mrf.mxu1 }
 0x426   :  { %v853_v52 = vadd.f32 %v849_v51, %v671_v49 }
 0x427   :  { %v11784_v53 = vpop.f32.mrf.mxu1 }
 0x447   :  { %v1029_v54 = vpop.f32.mrf.mxu1 }
 0x448   :  { %v1033_v55 = vadd.f32 %v1029_v54, %v853_v52 }
 0x449   :  { %v11794_v57 = vpop.f32.mrf.mxu1 }
 0x44b   :  { %v1199_v58 = vpop.f32.mrf.mxu1 }
 0x44c   :  { %v1203_v60 = vmul.f32 0.35355338, %v1199_v58 }
 0x44d   :  { %v11804_v61 = vpop.f32.mrf.mxu1 }
 0x44e   :  { %v1204_v62 = vadd.f32 %v1203_v60, %v13050_v59  ;;  %v1126_v61 = vmul.f32 %v13008_v9, %v12930_v20 }
 0x450   :  { %v1205_v63 = vsel %vm402_vm2, %v1204_v62, -inf }
 0x451   :  { %1206 = vmax.xlane.f32.xlu1 %v1205_v63 }
 0x462   :  { %1218 = vrot.lane.b32.xlu1 %v1216_v0, %s12822_s28  ;;  %v1628_v0 = vmul.f32 %v13017_v18, %v12930_v20 }
 0x466   :  { %1373 = vrot.lane.b32.xlu1 %v1371_v1, %s12820_s23 }
 0x4da   :  { %v1207_v2 = vpop.xlane.xlu1 %1206 }
 0x4db   :  { %v1208_v3 = vsub.f32 %v1204_v62, %v1207_v2 }
 0x4dd   :  { %v1209_v4 = vmul.f32 1.442695, %v1208_v3 }
 0x4de   :  { %v1219_v15 = vpop.permute.xlu1 %1218 }
 0x4df   :  { %12575 = vpow2.f32 %v1209_v4 }
 0x4e2   :  { %v1374_v25 = vpop.permute.xlu1 %1373 }
 0x4ec   :  { %v12576_v5 = vpop.eup %12575 }
 0x4ed   :  { %v1211_v6 = vsel %vm402_vm2, %v12576_v5, 0.0 }
 0x4ee   :  { %1212 = vadd.xlane.f32.xlu0 %v1211_v6 }
 0x504   :  { %1036 = vrot.lane.b32.xlu0 %v1034_v7, %s12820_s23 }
 0x508   :  { %1541 = vrot.lane.b32.xlu0 %v1539_v8, %s12820_s23 }
 0x577   :  { %v1213_v10 = vpop.xlane.xlu0 %1212 }
 0x578   :  { %12577 = vrcp.f32 %v1213_v10 }
 0x57b   :  { %v1037_v14 = vpop.permute.xlu0 %1036 }
 0x57c   :  { %11796 = vmatpush3.xpose.msk.msra.mxu0 %vm230_vm0, %v1037_v14 }
 0x57d   :  { %11805 = vmatprep.subr.mxu0 %v12817_v16 }
 0x57f   :  { %11798 = vmatmul.mubr.msk.f32.vlgmr.msra.gmra.mxu0 %vm230_vm0, %v12930_v20  ;;  %v1542_v26 = vpop.permute.xlu0 %1541 }
 0x580   :  { %11806 = vmatpush3.msra.mxu0 %v1219_v15  ;;  %11807 = vmatprep.mubr.msk.f32.mxu0 %vm12819_vm1, %v12817_v16 }
 0x581   :  { %11815 = vmatprep.subr.mxu0 %v12817_v16 }
 0x585   :  { %v12578_v19 = vpop.eup %12577 }
 0x586   :  { %v1215_v22 = vmul.f32 %v12578_v19, %v12576_v5  ;;  %v1710_v19 = vld [vmem:[%s13119_s2 + $0x18] sm:$0xff] }
 0x588   :  { %11808 = vmatmul.mubr.msk.f32.vlgmr.msra.gmra.mxu0 %vm402_vm2, %v1215_v22  ;;  %v1709_v22 = vld [vmem:[%s13119_s2 + $0x10] sm:$0xff] }
 0x589   :  { %11816 = vmatpush3.xpose.msk.msra.mxu0 %vm230_vm0, %v1374_v25  ;;  %11817 = vmatprep.mubr.msk.f32.mxu0 %vm12819_vm1, %v12817_v16  ;;  %v1708_v25 = vld [vmem:[%s13119_s2 + $0x8] sm:$0xff] }
 0x58a   :  { %11825 = vmatprep.subr.mxu0 %v12817_v16 }
 0x58c   :  { %11818 = vmatmul.mubr.msk.f32.vlgmr.msra.gmra.mxu0 %vm230_vm0, %v12930_v20 }
 0x58d   :  { %11826 = vmatpush3.xpose.msk.msra.mxu0 %vm230_vm0, %v1542_v26  ;;  %11827 = vmatprep.mubr.msk.f32.mxu0 %vm12819_vm1, %v12817_v16  ;;  %v1707_v26 = vld [vmem:[%s13119_s2] sm:$0xff] }
 0x58e   :  { %11835 = vmatprep.subr.mxu0 %v1710_v19 }
 0x590   :  { %11828 = vmatmul.mubr.msk.f32.vlgmr.msra.gmra.mxu0 %vm230_vm0, %v12930_v20 }
 0x591   :  { %11843 = vmatprep.mubr.msk.f32.mxu0 %vm230_vm0, %v1033_v55  ;;  %v1460_v55 = vmul.f32 %v13013_v11, %v12930_v20  ;;  %11836 = vmatpush3.msra.mxu0 %v1710_v19 }
 0x592   :  { %11837 = vmatprep.subr.mxu0 %v1709_v22 }
 0x593   :  { %11838 = vmatpush3.msra.mxu0 %v1709_v22 }
 0x594   :  { %11839 = vmatprep.subr.mxu0 %v1708_v25 }
 0x595   :  { %11840 = vmatpush3.msra.mxu0 %v1708_v25 }
 0x596   :  { %11841 = vmatprep.subr.mxu0 %v1707_v26 }
 0x597   :  { %11842 = vmatpush3.msra.mxu0 %v1707_v26  ;;  %v1943_v26 = vld [vmem:[%s13151_s15 + $0x18] sm:$0xff] }
 0x63f   :  { %v1109_v28 = vpop.f32.mrf.mxu0 }
 0x640   :  { %v1113_v29 = vmul.f32 0.35355338, %v1109_v28 }
 0x641   :  { %v11799_v30 = vpop.f32.mrf.mxu0 }
 0x642   :  { %v1114_v31 = vadd.f32 %v1113_v29, %v13050_v59 }
 0x644   :  { %v1115_v23 = vsel %vm402_vm2, %v1114_v31, -inf }
 0x645   :  { %1116 = vmax.xlane.f32.xlu1 %v1115_v23 }
 0x648   :  { %v13089_v32 = vpop.f32.mrf.mxu0 }
 0x64a   :  { %v11809_v33 = vpop.f32.mrf.mxu0 }
 0x64c   :  { %v1443_v34 = vpop.f32.mrf.mxu0 }
 0x64d   :  { %v1447_v36 = vmul.f32 0.35355338, %v1443_v34 }
 0x64e   :  { %v11819_v37 = vpop.f32.mrf.mxu0 }
 0x64f   :  { %v1448_v38 = vadd.f32 %v1447_v36, %v13050_v59 }
 0x650   :  { %v1611_v39 = vpop.f32.mrf.mxu0 }
 0x651   :  { %v1615_v40 = vmul.f32 0.35355338, %v1611_v39  ;;  %v1449_v41 = vsel %vm402_vm2, %v1448_v38, -inf }
 0x652   :  { %1450 = vmax.xlane.f32.xlu0 %v1449_v41  ;;  %v11829_v42 = vpop.f32.mrf.mxu0 }
 0x653   :  { %v1616_v43 = vadd.f32 %v1615_v40, %v13050_v59 }
 0x655   :  { %v1617_v44 = vsel %vm402_vm2, %v1616_v43, -inf }
 0x656   :  { %1618 = vmax.xlane.f32.xlu0 %v1617_v44 }
 0x6ce   :  { %v1117_v45 = vpop.xlane.xlu1 %1116 }
 0x6cf   :  { %v1118_v46 = vsub.f32 %v1114_v31, %v1117_v45 }
 0x6d1   :  { %v1119_v47 = vmul.f32 1.442695, %v1118_v46 }
 0x6d3   :  { %12579 = vpow2.f32 %v1119_v47 }
 0x6db   :  { %v1451_v48 = vpop.xlane.xlu0 %1450 }
 0x6dc   :  { %v1452_v49 = vsub.f32 %v1448_v38, %v1451_v48  ;;  %v11115_v38 = vld [vmem:[%s13130_s7] ss:$0 sm:$0xff] }
 0x6de   :  { %v1453_v50 = vmul.f32 1.442695, %v1452_v49 }
 0x6df   :  { %v1619_v57 = vpop.xlane.xlu0 %1618 }
 0x6e0   :  { %v12580_v51 = vpop.eup %12579  ;;  %12581 = vpow2.f32 %v1453_v50  ;;  %v1620_v58 = vsub.f32 %v1616_v43, %v1619_v57  ;;  %v1847_v57 = vld [vmem:[%s13142_s11 + $0x8] sm:$0xff] }
 0x6e1   :  { %v1121_v52 = vsel %vm402_vm2, %v12580_v51, 0.0 }
 0x6e2   :  { %1122 = vadd.xlane.f32.xlu1 %v1121_v52  ;;  %v1621_v60 = vmul.f32 1.442695, %v1620_v58  ;;  %v1846_v58 = vld [vmem:[%s13142_s11] sm:$0xff] }
 0x6e4   :  { %12583 = vpow2.f32 %v1621_v60  ;;  %v1947_v60 = vld [vmem:[%s13151_s15 + $0x38] sm:$0xff] }
 0x6e5   :  { %11857 = vmatprep.subr.mxu0 %v1947_v60 }
 0x6ed   :  { %v12582_v53 = vpop.eup %12581 }
 0x6ee   :  { %v1455_v54 = vsel %vm402_vm2, %v12582_v53, 0.0 }
 0x6ef   :  { %1456 = vadd.xlane.f32.xlu0 %v1455_v54 }
 0x6f1   :  { %v12584_v62 = vpop.eup %12583 }
 0x6f2   :  { %v1623_v63 = vsel %vm402_vm2, %v12584_v62, 0.0 }
 0x6f3   :  { %1462 = vrot.lane.b32.xlu1 %v1460_v55, %s12822_s28  ;;  %v1848_v55 = vld [vmem:[%s13142_s11 + $0x10] sm:$0xff] }
 0x705   :  { %1295 = vrot.lane.b32.xlu0 %v1126_v61, %s12822_s28  ;;  %v1946_v61 = vld [vmem:[%s13151_s15 + $0x30] sm:$0xff] }
 0x717   :  { %1624 = vadd.xlane.f32.xlu1 %v1623_v63  ;;  %v1944_v63 = vld [vmem:[%s13151_s15 + $0x20] sm:$0xff] }
 0x728   :  { %1630 = vrot.lane.b32.xlu1 %v1628_v0, %s12822_s28 }
 0x76b   :  { %v1123_v1 = vpop.xlane.xlu1 %1122 }
 0x76c   :  { %12585 = vrcp.f32 %v1123_v1 }
 0x76f   :  { %v1463_v6 = vpop.permute.xlu1 %1462 }
 0x778   :  { %v1457_v2 = vpop.xlane.xlu0 %1456 }
 0x779   :  { %v12586_v3 = vpop.eup %12585  ;;  %12587 = vrcp.f32 %v1457_v2 }
 0x77a   :  { %v1125_v5 = vmul.f32 %v12586_v3, %v12580_v51 }
 0x77c   :  { %v1296_v4 = vpop.permute.xlu0 %1295 }
 0x77d   :  { %11811 = vmatpush3.msra.mxu1 %v1296_v4 }
 0x77e   :  { %11813 = vmatmul.mubr.msk.f32.vlgmr.msra.gmra.mxu1 %vm402_vm2, %v1125_v5  ;;  %11820 = vmatprep.subr.mxu1 %v12817_v16 }
 0x77f   :  { %11821 = vmatpush3.msra.mxu1 %v1463_v6  ;;  %11822 = vmatprep.mubr.msk.f32.mxu1 %vm12819_vm1, %v12817_v16 }
 0x780   :  { %11830 = vmatprep.subr.mxu1 %v12817_v16 }
 0x786   :  { %v12588_v20 = vpop.eup %12587 }
 0x787   :  { %v1459_v7 = vmul.f32 %v12588_v20, %v12582_v53  ;;  %v11118_v20 = vld [vmem:[%s13160_s21] ss:$0 sm:$0xff] }
 0x789   :  { %11823 = vmatmul.mubr.msk.f32.vlgmr.msra.gmra.mxu1 %vm402_vm2, %v1459_v7 }
 0x78a   :  { %11832 = vmatprep.mubr.msk.f32.mxu1 %vm12819_vm1, %v12817_v16 }
 0x7a0   :  { %v1625_v8 = vpop.xlane.xlu1 %1624 }
 0x7a1   :  { %12589 = vrcp.f32 %v1625_v8  ;;  %v11119_v8 = vld [vmem:[%s13165_s29] ss:$0 sm:$0xff] }
 0x7a4   :  { %v1631_v10 = vpop.permute.xlu1 %1630 }
 0x7a5   :  { %11831 = vmatpush3.msra.mxu1 %v1631_v10 }
 0x7ae   :  { %v12590_v14 = vpop.eup %12589 }
 0x7af   :  { %v1627_v15 = vmul.f32 %v12590_v14, %v12584_v62  ;;  %v1945_v62 = vld [vmem:[%s13151_s15 + $0x28] sm:$0xff] }
 0x7b1   :  { %11833 = vmatmul.mubr.msk.f32.vlgmr.msra.gmra.mxu1 %vm402_vm2, %v1627_v15 }
 0x83e   :  { %v1367_v28 = vpop.f32.mrf.mxu1 }
 0x83f   :  { %v1368_v23 = vadd.f32 %v1367_v28, %v13089_v32  ;;  %v1942_v28 = vld [vmem:[%s13151_s15 + $0x10] sm:$0xff] }
 0x840   :  { %v11814_v29 = vpop.f32.mrf.mxu1 }
 0x841   :  { %v1941_v29 = vld [vmem:[%s13151_s15 + $0x8] sm:$0xff] }
 0x849   :  { %v1534_v30 = vpop.f32.mrf.mxu1 }
 0x84a   :  { %v1538_v33 = vadd.f32 %v1534_v30, %v1368_v23  ;;  %v1940_v30 = vld [vmem:[%s13151_s15] sm:$0xff] }
 0x84b   :  { %v11824_v31 = vpop.f32.mrf.mxu1 }
 0x84c   :  { %v11120_v31 = vld [vmem:[%s13179_s4] ss:$0 sm:$0xff] }
 0x871   :  { %v1702_v34 = vpop.f32.mrf.mxu1 }
 0x872   :  { %v1706_v36 = vadd.f32 %v1702_v34, %v1538_v33 }
 0x873   :  { %v11834_v37 = vpop.f32.mrf.mxu1 }
 0x874   :  { %11844 = vmatmul.mubr.msk.f32.vlgmr.msra.gmra.mxu0 %vm230_vm0, %v1706_v36 }
 0x875   :  { %11858 = vmatpush3.msra.mxu0 %v1947_v60  ;;  %v11128_v60 = vld [vmem:[%s12871_s6 + $0x20] sm:$0xff] }
 0x876   :  { %11859 = vmatprep.subr.mxu0 %v1946_v61 }
 0x877   :  { %11860 = vmatpush3.msra.mxu0 %v1946_v61 }
 0x878   :  { %11861 = vmatprep.subr.mxu0 %v1945_v62 }
 0x879   :  { %11862 = vmatpush3.msra.mxu0 %v1945_v62 }
 0x87a   :  { %11863 = vmatprep.subr.mxu0 %v1944_v63 }
 0x87b   :  { %11864 = vmatpush3.msra.mxu0 %v1944_v63 }
 0x87c   :  { %11865 = vmatprep.subr.mxu0 %v1943_v26 }
 0x87d   :  { %11866 = vmatpush3.msra.mxu0 %v1943_v26 }
 0x87e   :  { %11867 = vmatprep.subr.mxu0 %v1942_v28 }
 0x87f   :  { %11868 = vmatpush3.msra.mxu0 %v1942_v28 }
 0x880   :  { %11869 = vmatprep.subr.mxu0 %v1941_v29 }
 0x881   :  { %11870 = vmatpush3.msra.mxu0 %v1941_v29 }
 0x882   :  { %11871 = vmatprep.subr.mxu0 %v1940_v30 }
 0x883   :  { %11872 = vmatpush3.msra.mxu0 %v1940_v30 }
 0x884   :  { %11897 = vmatprep.subr.mxu0 %v12817_v16 }
 0x934   :  { %v11845_v39 = vpop.f32.mrf.mxu0 }
 0x935   :  { %v1796_v40 = vadd.f32 %v11845_v39, %v11115_v38  ;;  %v11123_v39 = vld [vmem:[%s13189_s10] ss:$0 sm:$0xff] }
 0x936   :  { %v1790_v41 = vpop.f32.mrf.mxu0 }
 0x937   :  { %v1791_v42 = vadd.f32 %v11115_v38, %v1790_v41  ;;  %v1800_v32 = vadd.f32 %v1796_v40, %v12898_v13 }
 0x939   :  { %v1806_v43 = vsel %vm230_vm0, %v1800_v32, 0.0  ;;  %v1799_v44 = vadd.f32 %v1791_v42, %v12894_v12  ;;  %v1849_v12 = vld [vmem:[%s13142_s11 + $0x18] sm:$0xff] }
 0x93a   :  { %1807 = vadd.xlane.f32.xlu1 %v1806_v43  ;;  %11846 = vmatprep.subr.mxu1 %v1849_v12 }
 0x93b   :  { %v1803_v45 = vsel %vm230_vm0, %v1799_v44, 0.0  ;;  %11847 = vmatpush3.msra.mxu1 %v1849_v12 }
 0x93c   :  { %1804 = vadd.xlane.f32.xlu0 %v1803_v45  ;;  %11848 = vmatprep.subr.mxu1 %v1848_v55 }
 0x93d   :  { %11849 = vmatpush3.msra.mxu1 %v1848_v55  ;;  %v11131_v55 = vld [vmem:[%s12871_s6 + $0x38] sm:$0xff] }
 0x93e   :  { %11850 = vmatprep.subr.mxu1 %v1847_v57 }
 0x93f   :  { %11851 = vmatpush3.msra.mxu1 %v1847_v57  ;;  %v11130_v57 = vld [vmem:[%s12871_s6 + $0x30] sm:$0xff] }
 0x940   :  { %11852 = vmatprep.subr.mxu1 %v1846_v58 }
 0x941   :  { %11853 = vmatpush3.msra.mxu1 %v1846_v58  ;;  %v11129_v58 = vld [vmem:[%s12871_s6 + $0x28] sm:$0xff]  ;;  %s12832_s6 = smov 19  }
 0x942   :  { %11876 = vmatprep.subr.mxu1 %v11131_v55  ;;  %s13209_s24 = sld [smem:[%s14402_s0 + %s12832_s6]]   ;;  %s12844_s6 = smov 26  }
 0x9c3   :  { %v1808_v46 = vpop.xlane.xlu1 %1807 }
 0x9c4   :  { %v1811_v47 = vmul.f32 0.03125, %v1808_v46 }
 0x9c5   :  { %v1805_v48 = vpop.xlane.xlu0 %1804 }
 0x9c6   :  { %v1810_v49 = vmul.f32 0.03125, %v1805_v48  ;;  %v1813_v50 = vsub.f32 %v1800_v32, %v1811_v47 }
 0x9c8   :  { %v1812_v51 = vsub.f32 %v1799_v44, %v1810_v49  ;;  %v1815_v54 = vmul.f32 %v1813_v50, %v1813_v50 }
 0x9ca   :  { %v1814_v52 = vmul.f32 %v1812_v51, %v1812_v51  ;;  %v1819_v13 = vsel %vm230_vm0, %v1815_v54, 0.0 }
 0x9cc   :  { %v1816_v53 = vsel %vm230_vm0, %v1814_v52, 0.0 }
 0x9cd   :  { %1817 = vadd.xlane.f32.xlu0 %v1816_v53 }
 0x9d1   :  { %1820 = vadd.xlane.f32.xlu0 %v1819_v13 }
 0xa56   :  { %v1818_v0 = vpop.xlane.xlu0 %1817 }
 0xa57   :  { %v1822_v1 = vmul.f32 0.03125, %v1818_v0 }
 0xa59   :  { %v1824_v2 = vadd.f32 1e-05, %v1822_v1 }
 0xa5a   :  { %v1821_v3 = vpop.xlane.xlu0 %1820 }
 0xa5b   :  { %12591 = vrsqrt.f32 %v1824_v2  ;;  %v1823_v4 = vmul.f32 0.03125, %v1821_v3 }
 0xa5d   :  { %v1825_v5 = vadd.f32 1e-05, %v1823_v4  ;;  %v11126_v4 = vld [vmem:[%s13204_s16] ss:$0 sm:$0xff] }
 0xa5f   :  { %12593 = vrsqrt.f32 %v1825_v5 }
 0xa68   :  { %v12592_v6 = vpop.eup %12591 }
 0xa69   :  { %v1828_v7 = vmul.f32 %v12592_v6, %v1812_v51 }
 0xa6b   :  { %v1836_v10 = vmul.f32 %v11118_v20, %v1828_v7 }
 0xa6c   :  { %v12594_v14 = vpop.eup %12593 }
 0xa6d   :  { %v1829_v15 = vmul.f32 %v12594_v14, %v1813_v50  ;;  %v1844_v19 = vadd.f32 %v11119_v8, %v1836_v10 }
 0xa6f   :  { %v1837_v22 = vmul.f32 %v11118_v20, %v1829_v15  ;;  %11854 = vmatprep.mubr.msk.f32.mxu1 %vm230_vm0, %v1844_v19 }
 0xa71   :  { %v1845_v25 = vadd.f32 %v11119_v8, %v1837_v22  ;;  %v11127_v8 = vld [vmem:[%s13209_s24] ss:$0 sm:$0xff] }
 0xa73   :  { %11855 = vmatmul.mubr.msk.f32.vlgmr.msra.gmra.mxu1 %vm230_vm0, %v1845_v25 }
 0xa74   :  { %11877 = vmatpush3.msra.mxu1 %v11131_v55 }
 0xa75   :  { %11878 = vmatprep.subr.mxu1 %v11130_v57 }
 0xa76   :  { %11879 = vmatpush3.msra.mxu1 %v11130_v57 }
 0xa77   :  { %11880 = vmatprep.subr.mxu1 %v11129_v58 }
 0xa78   :  { %11881 = vmatpush3.msra.mxu1 %v11129_v58 }
 0xa79   :  { %11882 = vmatprep.subr.mxu1 %v11128_v60 }
 0xa7a   :  { %11883 = vmatpush3.msra.mxu1 %v11128_v60 }
 0xa7b   :  { %11887 = vmatprep.subr.mxu1 %v12817_v16 }
 0xb33   :  { %v11856_v23 = vpop.f32.mrf.mxu1 }
 0xb34   :  { %v1935_v33 = vadd.f32 %v11856_v23, %v11120_v31 }
 0xb35   :  { %v1929_v34 = vpop.f32.mrf.mxu1 }
 0xb36   :  { %v1930_v36 = vadd.f32 %v11120_v31, %v1929_v34  ;;  %v1939_v38 = vmax.f32 %v1935_v33, 0.0 }
 0xb38   :  { %v1938_v37 = vmax.f32 %v1930_v36, 0.0 }
 0xb3a   :  { %11873 = vmatprep.mubr.msk.f32.mxu0 %vm1955_vm3, %v1938_v37 }
 0xb3b   :  { %11874 = vmatmul.mubr.msk.f32.vlgmr.msra.gmra.mxu0 %vm1955_vm3, %v1939_v38 }
 0xb3c   :  { %11899 = vmatprep.mubr.msk.f32.mxu0 %vm12819_vm1, %v12817_v16 }
 0xbfb   :  { %v11875_v40 = vpop.f32.mrf.mxu0 }
 0xbfc   :  { %v2034_v41 = vadd.f32 %v11875_v40, %v11123_v39 }
 0xbfd   :  { %v2028_v42 = vpop.f32.mrf.mxu0 }
 0xbfe   :  { %v2029_v32 = vadd.f32 %v11123_v39, %v2028_v42  ;;  %v2038_v43 = vadd.f32 %v2034_v41, %v1845_v25 }
 0xc00   :  { %v2044_v44 = vsel %vm230_vm0, %v2038_v43, 0.0  ;;  %v2037_v45 = vadd.f32 %v2029_v32, %v1844_v19  ;;  %v11133_v19 = vld [vmem:[%s12921_s22 + $0x1] ss:$0 sm:$0xff]  ;;  %s12833_s22 = smov 22  }
 0xc01   :  { %2045 = vadd.xlane.f32.xlu0 %v2044_v44 }
 0xc02   :  { %v2041_v46 = vsel %vm230_vm0, %v2037_v45, 0.0 }
 0xc03   :  { %2042 = vadd.xlane.f32.xlu1 %v2041_v46 }
 0xc8a   :  { %v2046_v47 = vpop.xlane.xlu0 %2045 }
 0xc8b   :  { %v2048_v48 = vmul.f32 0.03125, %v2046_v47 }
 0xc8c   :  { %v2043_v49 = vpop.xlane.xlu1 %2042 }
 0xc8d   :  { %v2050_v50 = vsub.f32 %v2038_v43, %v2048_v48  ;;  %v2047_v51 = vmul.f32 0.03125, %v2043_v49 }
 0xc8f   :  { %v2049_v52 = vsub.f32 %v2037_v45, %v2047_v51  ;;  %v2052_v53 = vmul.f32 %v2050_v50, %v2050_v50 }
 0xc91   :  { %v2056_v54 = vsel %vm230_vm0, %v2052_v53, 0.0  ;;  %v2051_v13 = vmul.f32 %v2049_v52, %v2049_v52 }
 0xc92   :  { %2057 = vadd.xlane.f32.xlu0 %v2056_v54 }
 0xc93   :  { %v2053_v12 = vsel %vm230_vm0, %v2051_v13, 0.0 }
 0xc94   :  { %2054 = vadd.xlane.f32.xlu1 %v2053_v12 }
 0xd1b   :  { %v2058_v61 = vpop.xlane.xlu0 %2057 }
 0xd1c   :  { %v2060_v62 = vmul.f32 0.03125, %v2058_v61 }
 0xd1d   :  { %v2055_v63 = vpop.xlane.xlu1 %2054 }
 0xd1e   :  { %v2062_v0 = vadd.f32 1e-05, %v2060_v62  ;;  %v2059_v1 = vmul.f32 0.03125, %v2055_v63 }
 0xd20   :  { %12595 = vrsqrt.f32 %v2062_v0  ;;  %v2061_v2 = vadd.f32 1e-05, %v2059_v1 }
 0xd22   :  { %12597 = vrsqrt.f32 %v2061_v2 }
 0xd2d   :  { %v12596_v3 = vpop.eup %12595 }
 0xd2e   :  { %v2066_v5 = vmul.f32 %v12596_v3, %v2050_v50 }
 0xd2f   :  { %v12598_v6 = vpop.eup %12597 }
 0xd30   :  { %v2065_v20 = vmul.f32 %v12598_v6, %v2049_v52  ;;  %v2074_v7 = vmul.f32 %v11126_v4, %v2066_v5 }
 0xd32   :  { %v2073_v10 = vmul.f32 %v11126_v4, %v2065_v20  ;;  %v13215_v15 = vadd.f32 %v11127_v8, %v2074_v7 }
 0xd34   :  { %v13213_v14 = vadd.f32 %v11127_v8, %v2073_v10  ;;  %v12799_v8 = vld [vmem:[%s12979_s27] sm:$0xff] }
 0xd36   :  { %11884 = vmatprep.mubr.msk.f32.mxu1 %vm230_vm0, %v13213_v14 }
 0xd37   :  { %11885 = vmatmul.mubr.msk.f32.vlgmr.msra.gmra.mxu1 %vm230_vm0, %v13215_v15 }
 0xd38   :  { %11889 = vmatprep.mubr.msk.f32.mxu1 %vm12819_vm1, %v12817_v16 }
 0xdf7   :  { %v11886_v22 = vpop.f32.mrf.mxu1 }
 0xdf8   :  { %v13224_v25 = vadd.f32 %v11886_v22, %v11133_v19 }
 0xdf9   :  { %v2168_v26 = vpop.f32.mrf.mxu1 }
 0xdfa   :  { %v13226_v28 = vadd.f32 %v11133_v19, %v2168_v26 }
 0xdfc   :  { %v2270_v29 = vmul.f32 %v13226_v28, %v12936_v24  ;;  %v2177_v30 = vmul.f32 %v13226_v28, %v12927_v17  ;;  %v2359_v41 = vmul.f32 %v13226_v28, %v13000_v56  ;;  %v2682_v42 = vmul.f32 %v13226_v28, %v12944_v27 }
 0xdfd   :  { %v2514_v51 = vmul.f32 %v13226_v28, %v12932_v21  ;;  %v2603_v57 = vmul.f32 %v13226_v28, %v13013_v11 }
 0xdfe   :  { %2272 = vrot.lane.b32.xlu0 %v2270_v29, %s12820_s23  ;;  %2179 = vrot.lane.b32.xlu1 %v2177_v30, %s12820_s23 }
 0xe70   :  { %v2180_v31 = vpop.permute.xlu1 %2179  ;;  %v2273_v23 = vpop.permute.xlu0 %2272 }
 0xe71   :  { %11888 = vmatpush3.xpose.msk.msra.mxu1 %vm230_vm0, %v2180_v31 }
 0xe72   :  { %11892 = vmatprep.subr.mxu1 %v12817_v16 }
 0xe74   :  { %11890 = vmatmul.mubr.msk.f32.vlgmr.msra.gmra.mxu1 %vm230_vm0, %v13226_v28 }
 0xe75   :  { %11893 = vmatpush3.xpose.msk.msra.mxu1 %vm230_vm0, %v2273_v23  ;;  %11894 = vmatprep.mubr.msk.f32.mxu1 %vm12819_vm1, %v12817_v16 }
 0xe76   :  { %11902 = vmatprep.subr.mxu1 %v12817_v16 }
 0xe78   :  { %11895 = vmatmul.mubr.msk.f32.vlgmr.msra.gmra.mxu1 %vm230_vm0, %v13226_v28 }
 0xe79   :  { %11904 = vmatprep.mubr.msk.f32.mxu1 %vm12819_vm1, %v12817_v16 }
 0xf34   :  { %v2252_v33 = vpop.f32.mrf.mxu1 }
 0xf35   :  { %v2256_v32 = vmul.f32 0.35355338, %v2252_v33 }
 0xf36   :  { %v11891_v34 = vpop.f32.mrf.mxu1 }
 0xf37   :  { %v2257_v43 = vadd.f32 %v2256_v32, %v12982_v35 }
 0xf38   :  { %v2342_v36 = vpop.f32.mrf.mxu1 }
 0xf39   :  { %v2346_v37 = vmul.f32 0.35355338, %v2342_v36  ;;  %v2258_v44 = vsel %vm402_vm2, %v2257_v43, -inf }
 0xf3a   :  { %v11896_v38 = vpop.f32.mrf.mxu1 }
 0xf3b   :  { %v2347_v39 = vadd.f32 %v2346_v37, %v12982_v35  ;;  %v2771_v37 = vmul.f32 %v13226_v28, %v13017_v18  ;;  %v2269_v38 = vmul.f32 %v13226_v28, %v13008_v9 }
 0xf3d   :  { %v2348_v40 = vsel %vm402_vm2, %v2347_v39, -inf }
 0xf3e   :  { %2349 = vmax.xlane.f32.xlu1 %v2348_v40 }
 0xf4f   :  { %2361 = vrot.lane.b32.xlu1 %v2359_v41, %s12822_s28 }
 0xf53   :  { %2684 = vrot.lane.b32.xlu1 %v2682_v42, %s12820_s23 }
 0xf77   :  { %2259 = vmax.xlane.f32.xlu1 %v2258_v44 }
 0xfc7   :  { %v2350_v45 = vpop.xlane.xlu1 %2349 }
 0xfc8   :  { %v2351_v46 = vsub.f32 %v2347_v39, %v2350_v45  ;;  %v2943_v39 = vmul.f32 %v13224_v25, %v12936_v24 }
 0xfca   :  { %v2352_v47 = vmul.f32 1.442695, %v2351_v46 }
 0xfcb   :  { %v2362_v48 = vpop.permute.xlu1 %2361 }
 0xfcc   :  { %12599 = vpow2.f32 %v2352_v47  ;;  %11898 = vmatpush3.msra.mxu0 %v2362_v48 }
 0xfcd   :  { %11907 = vmatprep.subr.mxu0 %v12817_v16 }
 0xfcf   :  { %v2685_v52 = vpop.permute.xlu1 %2684 }
 0xfd9   :  { %v12600_v49 = vpop.eup %12599 }
 0xfda   :  { %v2354_v50 = vsel %vm402_vm2, %v12600_v49, 0.0 }
 0xfdb   :  { %2355 = vadd.xlane.f32.xlu0 %v2354_v50 }
 0xff1   :  { %2516 = vrot.lane.b32.xlu0 %v2514_v51, %s12820_s23 }
0x1000   :  { %v2260_v53 = vpop.xlane.xlu1 %2259 }
0x1001   :  { %v2261_v54 = vsub.f32 %v2257_v43, %v2260_v53 }
0x1003   :  { %v2262_v13 = vmul.f32 1.442695, %v2261_v54 }
0x1005   :  { %12601 = vpow2.f32 %v2262_v13 }
0x1012   :  { %v13261_v12 = vpop.eup %12601 }
0x1013   :  { %v2264_v55 = vsel %vm402_vm2, %v13261_v12, 0.0 }
0x1014   :  { %2265 = vadd.xlane.f32.xlu1 %v2264_v55 }
0x1025   :  { %2605 = vrot.lane.b32.xlu1 %v2603_v57, %s12822_s28 }
0x1064   :  { %v2356_v58 = vpop.xlane.xlu0 %2355 }
0x1065   :  { %12603 = vrcp.f32 %v2356_v58 }
0x1068   :  { %v2517_v62 = vpop.permute.xlu0 %2516 }
0x1072   :  { %v12604_v60 = vpop.eup %12603 }
0x1073   :  { %v2358_v61 = vmul.f32 %v12604_v60, %v12600_v49 }
0x1075   :  { %11900 = vmatmul.mubr.msk.f32.vlgmr.msra.gmra.mxu0 %vm402_vm2, %v2358_v61 }
0x1076   :  { %11908 = vmatpush3.xpose.msk.msra.mxu0 %vm230_vm0, %v2517_v62  ;;  %11909 = vmatprep.mubr.msk.f32.mxu0 %vm12819_vm1, %v12817_v16 }
0x1077   :  { %11917 = vmatprep.subr.mxu0 %v12817_v16 }
0x1079   :  { %11910 = vmatmul.mubr.msk.f32.vlgmr.msra.gmra.mxu0 %vm230_vm0, %v13226_v28 }
0x107a   :  { %11918 = vmatpush3.xpose.msk.msra.mxu0 %vm230_vm0, %v2685_v52  ;;  %11919 = vmatprep.mubr.msk.f32.mxu0 %vm12819_vm1, %v12817_v16 }
0x107b   :  { %11927 = vmatprep.subr.mxu0 %v12817_v16 }
0x107d   :  { %11920 = vmatmul.mubr.msk.f32.vlgmr.msra.gmra.mxu0 %vm230_vm0, %v13226_v28 }
0x107e   :  { %11929 = vmatprep.mubr.msk.f32.mxu0 %vm12819_vm1, %v12817_v16 }
0x109d   :  { %v2266_v40 = vpop.xlane.xlu1 %2265 }
0x10a1   :  { %v2606_v41 = vpop.permute.xlu1 %2605 }
0x1135   :  { %v13283_v63 = vpop.f32.mrf.mxu0 }
0x1137   :  { %v11901_v0 = vpop.f32.mrf.mxu0 }
0x1139   :  { %v2586_v1 = vpop.f32.mrf.mxu0 }
0x113a   :  { %v2590_v2 = vmul.f32 0.35355338, %v2586_v1 }
0x113b   :  { %v11911_v3 = vpop.f32.mrf.mxu0 }
0x113c   :  { %v2591_v4 = vadd.f32 %v2590_v2, %v12982_v35  ;;  %v3032_v2 = vmul.f32 %v13224_v25, %v13000_v56 }
0x113d   :  { %v2754_v5 = vpop.f32.mrf.mxu0 }
0x113e   :  { %v2758_v6 = vmul.f32 0.35355338, %v2754_v5  ;;  %v2592_v20 = vsel %vm402_vm2, %v2591_v4, -inf }
0x113f   :  { %2593 = vmax.xlane.f32.xlu0 %v2592_v20  ;;  %v11921_v7 = vpop.f32.mrf.mxu0 }
0x1140   :  { %v2759_v10 = vadd.f32 %v12799_v8, %v2758_v6  ;;  %v2850_v7 = vmul.f32 %v13224_v25, %v12927_v17  ;;  %v3355_v8 = vmul.f32 %v13224_v25, %v12944_v27 }
0x1142   :  { %v2760_v19 = vsel %vm402_vm2, %v2759_v10, -inf }
0x1143   :  { %2761 = vmax.xlane.f32.xlu0 %v2760_v19 }
0x11c8   :  { %v2594_v22 = vpop.xlane.xlu0 %2593 }
0x11c9   :  { %v2595_v26 = vsub.f32 %v2591_v4, %v2594_v22 }
0x11cb   :  { %v2596_v29 = vmul.f32 1.442695, %v2595_v26 }
0x11cc   :  { %v2762_v30 = vpop.xlane.xlu0 %2761 }
0x11cd   :  { %12605 = vpow2.f32 %v2596_v29  ;;  %v2763_v31 = vsub.f32 %v2759_v10, %v2762_v30 }
0x11cf   :  { %v2764_v23 = vmul.f32 1.442695, %v2763_v31 }
0x11d1   :  { %12607 = vpow2.f32 %v2764_v23 }
0x11d2   :  { %12609 = vrcp.f32 %v2266_v40 }
0x11da   :  { %v12606_v35 = vpop.eup %12605 }
0x11db   :  { %v2598_v33 = vsel %vm402_vm2, %v12606_v35, 0.0 }
0x11dc   :  { %2599 = vadd.xlane.f32.xlu0 %v2598_v33 }
0x11de   :  { %v12608_v34 = vpop.eup %12607 }
0x11df   :  { %v2766_v36 = vsel %vm402_vm2, %v12608_v34, 0.0  ;;  %v12610_v32 = vpop.eup %12609 }
0x11e0   :  { %2767 = vadd.xlane.f32.xlu1 %v2766_v36  ;;  %v2268_v45 = vmul.f32 %v12610_v32, %v13261_v12 }
0x11f1   :  { %2773 = vrot.lane.b32.xlu1 %v2771_v37, %s12822_s28 }
0x11f2   :  { %2438 = vrot.lane.b32.xlu0 %v2269_v38, %s12822_s28 }
0x11f6   :  { %2945 = vrot.lane.b32.xlu0 %v2943_v39, %s12820_s23 }
0x1265   :  { %v2600_v42 = vpop.xlane.xlu0 %2599 }
0x1266   :  { %12611 = vrcp.f32 %v2600_v42 }
0x1269   :  { %v2439_v43 = vpop.permute.xlu0 %2438  ;;  %v2768_v44 = vpop.xlane.xlu1 %2767 }
0x126a   :  { %12613 = vrcp.f32 %v2768_v44  ;;  %11903 = vmatpush3.msra.mxu1 %v2439_v43 }
0x126b   :  { %11905 = vmatmul.mubr.msk.f32.vlgmr.msra.gmra.mxu1 %vm402_vm2, %v2268_v45  ;;  %11912 = vmatprep.subr.mxu1 %v12817_v16 }
0x126c   :  { %11913 = vmatpush3.msra.mxu1 %v2606_v41  ;;  %11914 = vmatprep.mubr.msk.f32.mxu1 %vm12819_vm1, %v12817_v16 }
0x126d   :  { %11922 = vmatprep.subr.mxu1 %v12817_v16  ;;  %v2774_v47 = vpop.permute.xlu1 %2773  ;;  %v2946_v50 = vpop.permute.xlu0 %2945 }
0x1273   :  { %v12612_v28 = vpop.eup %12611 }
0x1274   :  { %v2602_v46 = vmul.f32 %v12612_v28, %v12606_v35  ;;  %v12800_v28 = vld [vmem:[%s12979_s27 + $0x8] sm:$0xff] }
0x1276   :  { %11915 = vmatmul.mubr.msk.f32.vlgmr.msra.gmra.mxu1 %vm402_vm2, %v2602_v46 }
0x1277   :  { %v12614_v48 = vpop.eup %12613  ;;  %11923 = vmatpush3.msra.mxu1 %v2774_v47  ;;  %11924 = vmatprep.mubr.msk.f32.mxu1 %vm12819_vm1, %v12817_v16 }
0x1278   :  { %11932 = vmatprep.subr.mxu1 %v12817_v16  ;;  %v2770_v49 = vmul.f32 %v12614_v48, %v12608_v34 }
0x127a   :  { %11925 = vmatmul.mubr.msk.f32.vlgmr.msra.gmra.mxu1 %vm402_vm2, %v2770_v49 }
0x127b   :  { %11933 = vmatpush3.xpose.msk.msra.mxu1 %vm230_vm0, %v2946_v50  ;;  %11934 = vmatprep.mubr.msk.f32.mxu1 %vm12819_vm1, %v12817_v16 }
0x127c   :  { %11942 = vmatprep.subr.mxu1 %v12817_v16 }
0x127e   :  { %11935 = vmatmul.mubr.msk.f32.vlgmr.msra.gmra.mxu1 %vm230_vm0, %v13224_v25 }
0x127f   :  { %11944 = vmatprep.mubr.msk.f32.mxu1 %vm12819_vm1, %v12817_v16 }
0x132b   :  { %v2510_v51 = vpop.f32.mrf.mxu1 }
0x132c   :  { %v2511_v53 = vadd.f32 %v2510_v51, %v13283_v63  ;;  %v3187_v63 = vmul.f32 %v13224_v25, %v12932_v21 }
0x132d   :  { %v11906_v52 = vpop.f32.mrf.mxu1 }
0x1336   :  { %v2677_v54 = vpop.f32.mrf.mxu1 }
0x1337   :  { %v2681_v13 = vadd.f32 %v2677_v54, %v2511_v53 }
0x1338   :  { %v11916_v12 = vpop.f32.mrf.mxu1 }
0x133a   :  { %v2845_v55 = vpop.f32.mrf.mxu1 }
0x133b   :  { %v2849_v57 = vadd.f32 %v2845_v55, %v2681_v13  ;;  %v3276_v55 = vmul.f32 %v13224_v25, %v13013_v11 }
0x133c   :  { %v11926_v58 = vpop.f32.mrf.mxu1 }
0x133e   :  { %v3015_v60 = vpop.f32.mrf.mxu1 }
0x133f   :  { %v3019_v61 = vmul.f32 0.35355338, %v3015_v60 }
0x1340   :  { %v11936_v62 = vpop.f32.mrf.mxu1 }
0x1341   :  { %v3020_v0 = vadd.f32 %v3019_v61, %v13050_v59  ;;  %v2942_v61 = vmul.f32 %v13224_v25, %v13008_v9 }
0x1343   :  { %v3021_v1 = vsel %vm402_vm2, %v3020_v0, -inf }
0x1344   :  { %3022 = vmax.xlane.f32.xlu1 %v3021_v1  ;;  %v3444_v1 = vmul.f32 %v13224_v25, %v13017_v18 }
0x1355   :  { %3034 = vrot.lane.b32.xlu1 %v3032_v2, %s12822_s28 }
0x1359   :  { %3189 = vrot.lane.b32.xlu1 %v3187_v63, %s12820_s23 }
0x13cd   :  { %v3023_v3 = vpop.xlane.xlu1 %3022 }
0x13ce   :  { %v3024_v4 = vsub.f32 %v3020_v0, %v3023_v3 }
0x13d0   :  { %v3025_v5 = vmul.f32 1.442695, %v3024_v4 }
0x13d1   :  { %v3035_v22 = vpop.permute.xlu1 %3034 }
0x13d2   :  { %12615 = vpow2.f32 %v3025_v5 }
0x13d5   :  { %v3190_v30 = vpop.permute.xlu1 %3189 }
0x13df   :  { %v12616_v6 = vpop.eup %12615 }
0x13e0   :  { %v3027_v20 = vsel %vm402_vm2, %v12616_v6, 0.0 }
0x13e1   :  { %3028 = vadd.xlane.f32.xlu0 %v3027_v20 }
0x13f7   :  { %2852 = vrot.lane.b32.xlu0 %v2850_v7, %s12820_s23 }
0x13fb   :  { %3357 = vrot.lane.b32.xlu0 %v3355_v8, %s12820_s23 }
0x146a   :  { %v3029_v10 = vpop.xlane.xlu0 %3028 }
0x146b   :  { %12617 = vrcp.f32 %v3029_v10 }
0x146e   :  { %v2853_v19 = vpop.permute.xlu0 %2852 }
0x146f   :  { %11928 = vmatpush3.xpose.msk.msra.mxu0 %vm230_vm0, %v2853_v19 }
0x1470   :  { %11937 = vmatprep.subr.mxu0 %v12817_v16 }
0x1472   :  { %11930 = vmatmul.mubr.msk.f32.vlgmr.msra.gmra.mxu0 %vm230_vm0, %v13224_v25  ;;  %v3358_v31 = vpop.permute.xlu0 %3357 }
0x1473   :  { %11938 = vmatpush3.msra.mxu0 %v3035_v22  ;;  %11939 = vmatprep.mubr.msk.f32.mxu0 %vm12819_vm1, %v12817_v16  ;;  %v11163_v22 = vld [vmem:[%s13119_s2 + $0x38] sm:$0xff] }
0x1474   :  { %11947 = vmatprep.subr.mxu0 %v12817_v16 }
0x1478   :  { %v12618_v26 = vpop.eup %12617 }
0x1479   :  { %v3031_v29 = vmul.f32 %v12618_v26, %v12616_v6  ;;  %v11162_v26 = vld [vmem:[%s13119_s2 + $0x30] sm:$0xff] }
0x147b   :  { %11940 = vmatmul.mubr.msk.f32.vlgmr.msra.gmra.mxu0 %vm402_vm2, %v3031_v29  ;;  %v11161_v29 = vld [vmem:[%s13119_s2 + $0x28] sm:$0xff] }
0x147c   :  { %11948 = vmatpush3.xpose.msk.msra.mxu0 %vm230_vm0, %v3190_v30  ;;  %11949 = vmatprep.mubr.msk.f32.mxu0 %vm12819_vm1, %v12817_v16  ;;  %v11160_v30 = vld [vmem:[%s13119_s2 + $0x20] sm:$0xff]  ;;  %s12840_s2 = smov 30  }
0x147d   :  { %11957 = vmatprep.subr.mxu0 %v12817_v16  ;;  %s13659_s26 = sld [smem:[%s14402_s0 + %s12840_s2]]  }
0x147e   :  { %s13934_s2 = sld [smem:[%s14402_s0 + %s12852_s19]]  }
0x147f   :  { %11950 = vmatmul.mubr.msk.f32.vlgmr.msra.gmra.mxu0 %vm230_vm0, %v13224_v25 }
0x1480   :  { %11958 = vmatpush3.xpose.msk.msra.mxu0 %vm230_vm0, %v3358_v31  ;;  %11959 = vmatprep.mubr.msk.f32.mxu0 %vm12819_vm1, %v12817_v16 }
0x1481   :  { %11967 = vmatprep.subr.mxu0 %v11163_v22 }
0x1483   :  { %11960 = vmatmul.mubr.msk.f32.vlgmr.msra.gmra.mxu0 %vm230_vm0, %v13224_v25 }
0x1484   :  { %11975 = vmatprep.mubr.msk.f32.mxu0 %vm230_vm0, %v2849_v57  ;;  %11968 = vmatpush3.msra.mxu0 %v11163_v22 }
0x1485   :  { %11969 = vmatprep.subr.mxu0 %v11162_v26 }
0x1486   :  { %11970 = vmatpush3.msra.mxu0 %v11162_v26 }
0x1487   :  { %11971 = vmatprep.subr.mxu0 %v11161_v29 }
0x1488   :  { %11972 = vmatpush3.msra.mxu0 %v11161_v29  ;;  %v209_v29 = vld [vmem:[%s11037_s8] sm:$0xff] }
0x1489   :  { %11973 = vmatprep.subr.mxu0 %v11160_v30 }
0x148a   :  { %11974 = vmatpush3.msra.mxu0 %v11160_v30 }
0x1532   :  { %v2925_v23 = vpop.f32.mrf.mxu0 }
0x1533   :  { %v2929_v35 = vmul.f32 0.35355338, %v2925_v23 }
0x1534   :  { %v11931_v33 = vpop.f32.mrf.mxu0 }
0x1535   :  { %v2930_v34 = vadd.f32 %v2929_v35, %v13050_v59 }
0x1537   :  { %v2931_v36 = vsel %vm402_vm2, %v2930_v34, -inf }
0x1538   :  { %2932 = vmax.xlane.f32.xlu1 %v2931_v36 }
0x153b   :  { %v13357_v37 = vpop.f32.mrf.mxu0 }
0x153d   :  { %v11941_v38 = vpop.f32.mrf.mxu0 }
0x153f   :  { %v3259_v39 = vpop.f32.mrf.mxu0 }
0x1540   :  { %v3263_v40 = vmul.f32 0.35355338, %v3259_v39 }
0x1541   :  { %v11951_v41 = vpop.f32.mrf.mxu0 }
0x1542   :  { %v3264_v42 = vadd.f32 %v3263_v40, %v13050_v59  ;;  %v11165_v41 = vld [vmem:[%s13130_s7 + $0x1] ss:$0 sm:$0xff]  ;;  %s13403_s7 = sld [smem:[%s14402_s0 + %s12833_s22]]   ;;  %s12845_s22 = smov 27  }
0x1543   :  { %v3427_v32 = vpop.f32.mrf.mxu0  ;;  %s13706_s25 = sld [smem:[%s14402_s0 + %s12845_s22]]  }
0x1544   :  { %v3431_v43 = vmul.f32 0.35355338, %v3427_v32  ;;  %v3265_v44 = vsel %vm402_vm2, %v3264_v42, -inf  ;;  %s13889_s22 = sld [smem:[%s14402_s0 + %s12816_s18]]   ;;  %s12849_s18 = smov 33  }
0x1545   :  { %3266 = vmax.xlane.f32.xlu0 %v3265_v44  ;;  %v11961_v45 = vpop.f32.mrf.mxu0 }
0x1546   :  { %v3432_v46 = vadd.f32 %v12800_v28, %v3431_v43 }
0x1548   :  { %v3433_v47 = vsel %vm402_vm2, %v3432_v46, -inf }
0x1549   :  { %3434 = vmax.xlane.f32.xlu0 %v3433_v47 }
0x15c1   :  { %v2933_v48 = vpop.xlane.xlu1 %2932 }
0x15c2   :  { %v2934_v49 = vsub.f32 %v2930_v34, %v2933_v48 }
0x15c4   :  { %v2935_v50 = vmul.f32 1.442695, %v2934_v49 }
0x15c6   :  { %12619 = vpow2.f32 %v2935_v50 }
0x15ce   :  { %v3267_v51 = vpop.xlane.xlu0 %3266 }
0x15cf   :  { %v3268_v52 = vsub.f32 %v3264_v42, %v3267_v51 }
0x15d1   :  { %v3269_v53 = vmul.f32 1.442695, %v3268_v52 }
0x15d2   :  { %v3435_v57 = vpop.xlane.xlu0 %3434 }
0x15d3   :  { %v12620_v54 = vpop.eup %12619  ;;  %12621 = vpow2.f32 %v3269_v53  ;;  %v3436_v58 = vsub.f32 %v3432_v46, %v3435_v57  ;;  %v3954_v57 = vld [vmem:[%s13403_s7 + $0x18] sm:$0xff] }
0x15d4   :  { %v2937_v59 = vsel %vm402_vm2, %v12620_v54, 0.0 }
0x15d5   :  { %2938 = vadd.xlane.f32.xlu1 %v2937_v59  ;;  %v3437_v60 = vmul.f32 1.442695, %v3436_v58  ;;  %v11175_v59 = vld [vmem:[%s13142_s11 + $0x38] sm:$0xff] }
0x15d6   :  { %v11187_v58 = vld [vmem:[%s13151_s15 + $0x78] sm:$0xff] }
0x15d7   :  { %12623 = vpow2.f32 %v3437_v60  ;;  %v11186_v60 = vld [vmem:[%s13151_s15 + $0x70] sm:$0xff]  ;;  %11989 = vmatprep.subr.mxu0 %v11187_v58 }
0x15e0   :  { %v12622_v13 = vpop.eup %12621 }
0x15e1   :  { %v3271_v12 = vsel %vm402_vm2, %v12622_v13, 0.0 }
0x15e2   :  { %3272 = vadd.xlane.f32.xlu0 %v3271_v12  ;;  %v11173_v12 = vld [vmem:[%s13142_s11 + $0x28] sm:$0xff] }
0x15e4   :  { %v12624_v62 = vpop.eup %12623 }
0x15e5   :  { %v3439_v0 = vsel %vm402_vm2, %v12624_v62, 0.0 }
0x15e6   :  { %3278 = vrot.lane.b32.xlu1 %v3276_v55, %s12822_s28  ;;  %v11172_v55 = vld [vmem:[%s13142_s11 + $0x20] sm:$0xff] }
0x15f8   :  { %3111 = vrot.lane.b32.xlu0 %v2942_v61, %s12822_s28  ;;  %v11185_v61 = vld [vmem:[%s13151_s15 + $0x68] sm:$0xff] }
0x160a   :  { %3440 = vadd.xlane.f32.xlu1 %v3439_v0 }
0x161b   :  { %3446 = vrot.lane.b32.xlu1 %v3444_v1, %s12822_s28 }
0x165e   :  { %v2939_v2 = vpop.xlane.xlu1 %2938 }
0x165f   :  { %12625 = vrcp.f32 %v2939_v2 }
0x1662   :  { %v3279_v6 = vpop.permute.xlu1 %3278 }
0x166b   :  { %v3273_v63 = vpop.xlane.xlu0 %3272 }
0x166c   :  { %v12626_v3 = vpop.eup %12625  ;;  %12627 = vrcp.f32 %v3273_v63 }
0x166d   :  { %v2941_v5 = vmul.f32 %v12626_v3, %v12620_v54 }
0x166f   :  { %v3112_v4 = vpop.permute.xlu0 %3111 }
0x1670   :  { %11943 = vmatpush3.msra.mxu1 %v3112_v4 }
0x1671   :  { %11945 = vmatmul.mubr.msk.f32.vlgmr.msra.gmra.mxu1 %vm402_vm2, %v2941_v5  ;;  %11952 = vmatprep.subr.mxu1 %v12817_v16 }
0x1672   :  { %11953 = vmatpush3.msra.mxu1 %v3279_v6  ;;  %11954 = vmatprep.mubr.msk.f32.mxu1 %vm12819_vm1, %v12817_v16  ;;  %v11170_v6 = vld [vmem:[%s13160_s21 + $0x1] ss:$0 sm:$0xff]  ;;  %s12836_s21 = smov 23  }
0x1673   :  { %11962 = vmatprep.subr.mxu1 %v12817_v16  ;;  %s13449_s12 = sld [smem:[%s14402_s0 + %s12836_s21]]  }
0x1674   :  { %s13916_s21 = sld [smem:[%s14402_s0 + %s12850_s1]]  }
0x1679   :  { %v12628_v25 = vpop.eup %12627 }
0x167a   :  { %v3275_v20 = vmul.f32 %v12628_v25, %v12622_v13  ;;  %v11174_v13 = vld [vmem:[%s13142_s11 + $0x30] sm:$0xff]  ;;  %s12834_s11 = smov 1  }
0x167b   :  { %s11035_s30 = sld [smem:[%s14402_s0 + %s12834_s11]]   ;;  %s12853_s11 = smov 35  }
0x167c   :  { %11955 = vmatmul.mubr.msk.f32.vlgmr.msra.gmra.mxu1 %vm402_vm2, %v3275_v20 }
0x167d   :  { %11964 = vmatprep.mubr.msk.f32.mxu1 %vm12819_vm1, %v12817_v16 }
0x1681   :  { %v205_v20 = vld [vmem:[%s11035_s30] sm:$0xff] }
0x1693   :  { %v3441_v7 = vpop.xlane.xlu1 %3440 }
0x1694   :  { %12629 = vrcp.f32 %v3441_v7  ;;  %v11171_v7 = vld [vmem:[%s13165_s29 + $0x1] ss:$0 sm:$0xff]  ;;  %s12851_s29 = smov 38  }
0x1695   :  { %s13925_s13 = sld [smem:[%s14402_s0 + %s12851_s29]]   ;;  %s12854_s29 = smov 37  }
0x1696   :  { %s13953_s19 = sld [smem:[%s14402_s0 + %s12854_s29]]  }
0x1697   :  { %v3447_v8 = vpop.permute.xlu1 %3446 }
0x1698   :  { %11963 = vmatpush3.msra.mxu1 %v3447_v8 }
0x1699   :  { %11978 = vmatprep.subr.mxu1 %v11175_v59 }
0x16a1   :  { %v12630_v10 = vpop.eup %12629 }
0x16a2   :  { %v3443_v19 = vmul.f32 %v12630_v10, %v12624_v62  ;;  %v11184_v62 = vld [vmem:[%s13151_s15 + $0x60] sm:$0xff] }
0x16a4   :  { %11965 = vmatmul.mubr.msk.f32.vlgmr.msra.gmra.mxu1 %vm402_vm2, %v3443_v19  ;;  %v207_v19 = vmul.f32 5.656854, %v205_v20 }
0x16a5   :  { %11979 = vmatpush3.msra.mxu1 %v11175_v59 }
0x16a6   :  { %11980 = vmatprep.subr.mxu1 %v11174_v13 }
0x16a7   :  { %11981 = vmatpush3.msra.mxu1 %v11174_v13 }
0x16a8   :  { %11982 = vmatprep.subr.mxu1 %v11173_v12 }
0x16a9   :  { %11983 = vmatpush3.msra.mxu1 %v11173_v12 }
0x16aa   :  { %11984 = vmatprep.subr.mxu1 %v11172_v55 }
0x16ab   :  { %11985 = vmatpush3.msra.mxu1 %v11172_v55 }
0x16ac   :  { %12008 = vmatprep.subr.mxu1 %v3954_v57 }
0x1731   :  { %v3183_v31 = vpop.f32.mrf.mxu1 }
0x1732   :  { %v3184_v34 = vadd.f32 %v3183_v31, %v13357_v37  ;;  %v13423_v31 = vadd.f32 %v209_v29, %v207_v19 }
0x1733   :  { %v11946_v23 = vpop.f32.mrf.mxu1 }
0x1734   :  { %v206_v23 = vld [vmem:[%s11035_s30 + $0x8] sm:$0xff]  ;;  %s12841_s30 = smov 20  }
0x1735   :  { %s11054_s5 = sld [smem:[%s14402_s0 + %s12841_s30]]   ;;  %s12846_s30 = smov 31  }
0x173c   :  { %v3350_v35 = vpop.f32.mrf.mxu1 }
0x173d   :  { %v3354_v36 = vadd.f32 %v3350_v35, %v3184_v34  ;;  %v208_v34 = vmul.f32 5.656854, %v206_v23 }
0x173e   :  { %v11956_v33 = vpop.f32.mrf.mxu1 }
0x173f   :  { %v3953_v33 = vld [vmem:[%s13403_s7 + $0x10] sm:$0xff] }
0x1764   :  { %v3518_v38 = vpop.f32.mrf.mxu1 }
0x1765   :  { %v3522_v39 = vadd.f32 %v3518_v38, %v3354_v36  ;;  %v3952_v36 = vld [vmem:[%s13403_s7 + $0x8] sm:$0xff] }
0x1766   :  { %v11966_v40 = vpop.f32.mrf.mxu1  ;;  %v210_v38 = vld [vmem:[%s11037_s8 + $0x8] sm:$0xff]  ;;  %s12842_s8 = smov 21  }
0x1767   :  { %11976 = vmatmul.mubr.msk.f32.vlgmr.msra.gmra.mxu0 %vm230_vm0, %v3522_v39  ;;  %v3951_v39 = vld [vmem:[%s13403_s7] sm:$0xff]  ;;  %v13434_v40 = vadd.f32 %v210_v38, %v208_v34  ;;  %s11055_s9 = sld [smem:[%s14402_s0 + %s12842_s8]]   ;;  %s12847_s8 = smov 29  }
0x1768   :  { %11990 = vmatpush3.msra.mxu0 %v11187_v58 }
0x1769   :  { %11991 = vmatprep.subr.mxu0 %v11186_v60 }
0x176a   :  { %11992 = vmatpush3.msra.mxu0 %v11186_v60 }
0x176b   :  { %11993 = vmatprep.subr.mxu0 %v11185_v61 }
0x176c   :  { %11994 = vmatpush3.msra.mxu0 %v11185_v61 }
0x176d   :  { %11995 = vmatprep.subr.mxu0 %v11184_v62 }
0x176e   :  { %11996 = vmatpush3.msra.mxu0 %v11184_v62 }
0x1827   :  { %v11977_v42 = vpop.f32.mrf.mxu0 }
0x1828   :  { %v3614_v32 = vadd.f32 %v11977_v42, %v11165_v41  ;;  %v11182_v42 = vld [vmem:[%s13151_s15 + $0x50] sm:$0xff] }
0x1829   :  { %v3608_v43 = vpop.f32.mrf.mxu0 }
0x182a   :  { %v3609_v44 = vadd.f32 %v11165_v41, %v3608_v43  ;;  %v3618_v45 = vadd.f32 %v3614_v32, %v13215_v15  ;;  %v11183_v41 = vld [vmem:[%s13151_s15 + $0x58] sm:$0xff]  ;;  %v11181_v32 = vld [vmem:[%s13151_s15 + $0x48] sm:$0xff]  ;;  %v11180_v43 = vld [vmem:[%s13151_s15 + $0x40] sm:$0xff]  ;;  %s12837_s15 = smov 6  }
0x182b   :  { %11997 = vmatprep.subr.mxu0 %v11183_v41  ;;  %s13482_s14 = sld [smem:[%s14402_s0 + %s12837_s15]]   ;;  %s12843_s15 = smov 28  }
0x182c   :  { %v3626_v28 = vsel %vm230_vm0, %v3618_v45, 0.0  ;;  %v3617_v46 = vadd.f32 %v3609_v44, %v13213_v14  ;;  %11998 = vmatpush3.msra.mxu0 %v11183_v41  ;;  %v11177_v44 = vld [vmem:[%s13179_s4 + $0x1] ss:$0 sm:$0xff]  ;;  %s13978_s4 = sld [smem:[%s14402_s0 + %s12856_s3]]  }
0x182d   :  { %3627 = vadd.xlane.f32.xlu1 %v3626_v28  ;;  %11999 = vmatprep.subr.mxu0 %v11182_v42 }
0x182e   :  { %v3623_v37 = vsel %vm230_vm0, %v3617_v46, 0.0  ;;  %12000 = vmatpush3.msra.mxu0 %v11182_v42 }
0x182f   :  { %3624 = vadd.xlane.f32.xlu0 %v3623_v37  ;;  %12001 = vmatprep.subr.mxu0 %v11181_v32 }
0x1830   :  { %12002 = vmatpush3.msra.mxu0 %v11181_v32 }
0x1831   :  { %12003 = vmatprep.subr.mxu0 %v11180_v43  ;;  %v215_v60 = vld [vmem:[%s13482_s14] sm:$0xff] }
0x1832   :  { %12004 = vmatpush3.msra.mxu0 %v11180_v43 }
0x1833   :  { %12029 = vmatprep.subr.mxu0 %v12817_v16 }
0x18b6   :  { %v3628_v47 = vpop.xlane.xlu1 %3627 }
0x18b7   :  { %v3630_v48 = vmul.f32 0.03125, %v3628_v47 }
0x18b8   :  { %v3625_v49 = vpop.xlane.xlu0 %3624 }
0x18b9   :  { %v3629_v50 = vmul.f32 0.03125, %v3625_v49  ;;  %v3632_v51 = vsub.f32 %v3618_v45, %v3630_v48  ;;  %v11198_v49 = vld [vmem:[%s13449_s12] ss:$0 sm:$0xff] }
0x18bb   :  { %v3631_v52 = vsub.f32 %v3617_v46, %v3629_v50  ;;  %v3634_v54 = vmul.f32 %v3632_v51, %v3632_v51 }
0x18bd   :  { %v3633_v53 = vmul.f32 %v3631_v52, %v3631_v52  ;;  %v3638_v14 = vsel %vm230_vm0, %v3634_v54, 0.0 }
0x18bf   :  { %v3635_v15 = vsel %vm230_vm0, %v3633_v53, 0.0 }
0x18c0   :  { %3636 = vadd.xlane.f32.xlu0 %v3635_v15 }
0x18c4   :  { %3639 = vadd.xlane.f32.xlu0 %v3638_v14 }
0x1949   :  { %v3637_v0 = vpop.xlane.xlu0 %3636 }
0x194a   :  { %v3641_v1 = vmul.f32 0.03125, %v3637_v0 }
0x194c   :  { %v3643_v2 = vadd.f32 1e-05, %v3641_v1 }
0x194d   :  { %v3640_v63 = vpop.xlane.xlu0 %3639 }
0x194e   :  { %12631 = vrsqrt.f32 %v3643_v2  ;;  %v3642_v3 = vmul.f32 0.03125, %v3640_v63 }
0x1950   :  { %v3644_v4 = vadd.f32 1e-05, %v3642_v3 }
0x1952   :  { %12633 = vrsqrt.f32 %v3644_v4 }
0x195b   :  { %v12632_v5 = vpop.eup %12631 }
0x195c   :  { %v3647_v25 = vmul.f32 %v12632_v5, %v3631_v52 }
0x195e   :  { %v3655_v8 = vmul.f32 %v11170_v6, %v3647_v25 }
0x195f   :  { %v12634_v10 = vpop.eup %12633 }
0x1960   :  { %v3648_v22 = vmul.f32 %v12634_v10, %v3632_v51  ;;  %v13419_v26 = vadd.f32 %v11171_v7, %v3655_v8 }
0x1962   :  { %v3656_v30 = vmul.f32 %v11170_v6, %v3648_v22  ;;  %11986 = vmatprep.mubr.msk.f32.mxu1 %vm230_vm0, %v13419_v26 }
0x1964   :  { %v13425_v35 = vadd.f32 %v11171_v7, %v3656_v30 }
0x1966   :  { %11987 = vmatmul.mubr.msk.f32.vlgmr.msra.gmra.mxu1 %vm230_vm0, %v13425_v35 }
0x1967   :  { %12009 = vmatpush3.msra.mxu1 %v3954_v57  ;;  %12016 = vmatprep.mubr.msk.f32.mxu1 %vm230_vm0, %v13423_v31 }
0x1968   :  { %12010 = vmatprep.subr.mxu1 %v3953_v33 }
0x1969   :  { %12011 = vmatpush3.msra.mxu1 %v3953_v33 }
0x196a   :  { %12012 = vmatprep.subr.mxu1 %v3952_v36 }
0x196b   :  { %12013 = vmatpush3.msra.mxu1 %v3952_v36 }
0x196c   :  { %12014 = vmatprep.subr.mxu1 %v3951_v39 }
0x196d   :  { %12015 = vmatpush3.msra.mxu1 %v3951_v39 }
0x196e   :  { %12017 = vmatmul.mubr.msk.f32.vlgmr.msra.gmra.mxu1 %vm230_vm0, %v13434_v40  ;;  %12019 = vmatprep.subr.mxu1 %v12817_v16 }
0x196f   :  { %12021 = vmatprep.mubr.msk.f32.mxu1 %vm12819_vm1, %v12817_v16 }
0x1a26   :  { %v11988_v45 = vpop.f32.mrf.mxu1 }
0x1a27   :  { %v3756_v28 = vadd.f32 %v11988_v45, %v11177_v44 }
0x1a28   :  { %v3750_v46 = vpop.f32.mrf.mxu1 }
0x1a29   :  { %v3751_v37 = vadd.f32 %v11177_v44, %v3750_v46  ;;  %v3760_v48 = vmax.f32 %v3756_v28, 0.0 }
0x1a2b   :  { %v3759_v47 = vmax.f32 %v3751_v37, 0.0 }
0x1a2d   :  { %12005 = vmatprep.mubr.msk.f32.mxu0 %vm1955_vm3, %v3759_v47 }
0x1a2e   :  { %v12018_v50 = vpop.f32.mrf.mxu1  ;;  %12006 = vmatmul.mubr.msk.f32.vlgmr.msra.gmra.mxu0 %vm1955_vm3, %v3760_v48 }
0x1a2f   :  { %v13455_v51 = vadd.f32 %v12018_v50, %v11198_v49  ;;  %12031 = vmatprep.mubr.msk.f32.mxu0 %vm12819_vm1, %v12817_v16 }
0x1a30   :  { %v4034_v52 = vpop.f32.mrf.mxu1 }
0x1a31   :  { %v13459_v53 = vadd.f32 %v11198_v49, %v4034_v52 }
0x1a33   :  { %v4136_v15 = vmul.f32 %v13459_v53, %v12936_v24  ;;  %v4043_v54 = vmul.f32 %v13459_v53, %v12927_v17  ;;  %v4225_v0 = vmul.f32 %v13459_v53, %v13000_v56  ;;  %v4548_v1 = vmul.f32 %v13459_v53, %v12944_v27 }
0x1a34   :  { %v4380_v8 = vmul.f32 %v13459_v53, %v12932_v21  ;;  %v4469_v33 = vmul.f32 %v13459_v53, %v13013_v11 }
0x1a35   :  { %4138 = vrot.lane.b32.xlu0 %v4136_v15, %s12820_s23  ;;  %4045 = vrot.lane.b32.xlu1 %v4043_v54, %s12820_s23 }
0x1aa7   :  { %v4046_v14 = vpop.permute.xlu1 %4045  ;;  %v4139_v59 = vpop.permute.xlu0 %4138 }
0x1aa8   :  { %12020 = vmatpush3.xpose.msk.msra.mxu1 %vm230_vm0, %v4046_v14 }
0x1aa9   :  { %12024 = vmatprep.subr.mxu1 %v12817_v16 }
0x1aab   :  { %12022 = vmatmul.mubr.msk.f32.vlgmr.msra.gmra.mxu1 %vm230_vm0, %v13459_v53 }
0x1aac   :  { %12025 = vmatpush3.xpose.msk.msra.mxu1 %vm230_vm0, %v4139_v59  ;;  %12026 = vmatprep.mubr.msk.f32.mxu1 %vm12819_vm1, %v12817_v16 }
0x1aad   :  { %12034 = vmatprep.subr.mxu1 %v12817_v16 }
0x1aaf   :  { %12027 = vmatmul.mubr.msk.f32.vlgmr.msra.gmra.mxu1 %vm230_vm0, %v13459_v53 }
0x1ab0   :  { %12036 = vmatprep.mubr.msk.f32.mxu1 %vm12819_vm1, %v12817_v16 }
0x1aee   :  { %v13520_v41 = vpop.f32.mrf.mxu0 }
0x1af0   :  { %v13522_v42 = vpop.f32.mrf.mxu0 }
0x1b6b   :  { %v4118_v13 = vpop.f32.mrf.mxu1 }
0x1b6c   :  { %v4122_v2 = vmul.f32 0.35355338, %v4118_v13 }
0x1b6d   :  { %v12023_v12 = vpop.f32.mrf.mxu1 }
0x1b6e   :  { %v4123_v63 = vadd.f32 %v4122_v2, %v215_v60 }
0x1b6f   :  { %v4208_v55 = vpop.f32.mrf.mxu1 }
0x1b70   :  { %v4212_v57 = vmul.f32 0.35355338, %v4208_v55  ;;  %v4124_v3 = vsel %vm402_vm2, %v4123_v63, -inf }
0x1b71   :  { %v12028_v58 = vpop.f32.mrf.mxu1 }
0x1b72   :  { %v4213_v61 = vadd.f32 %v4212_v57, %v215_v60 }
0x1b74   :  { %v4214_v62 = vsel %vm402_vm2, %v4213_v61, -inf }
0x1b75   :  { %4215 = vmax.xlane.f32.xlu1 %v4214_v62  ;;  %v4135_v62 = vmul.f32 %v13459_v53, %v13008_v9 }
0x1b86   :  { %4227 = vrot.lane.b32.xlu1 %v4225_v0, %s12822_s28  ;;  %v4809_v0 = vmul.f32 %v13455_v51, %v12936_v24 }
0x1b8a   :  { %4550 = vrot.lane.b32.xlu1 %v4548_v1, %s12820_s23 }
0x1bae   :  { %4125 = vmax.xlane.f32.xlu1 %v4124_v3 }
0x1bfe   :  { %v4216_v4 = vpop.xlane.xlu1 %4215 }
0x1bff   :  { %v4217_v5 = vsub.f32 %v4213_v61, %v4216_v4 }
0x1c01   :  { %v4218_v6 = vmul.f32 1.442695, %v4217_v5 }
0x1c02   :  { %v4228_v25 = vpop.permute.xlu1 %4227 }
0x1c03   :  { %12635 = vpow2.f32 %v4218_v6  ;;  %12030 = vmatpush3.msra.mxu0 %v4228_v25 }
0x1c04   :  { %12039 = vmatprep.subr.mxu0 %v12817_v16 }
0x1c06   :  { %v4551_v10 = vpop.permute.xlu1 %4550 }
0x1c10   :  { %v12636_v20 = vpop.eup %12635 }
0x1c11   :  { %v4220_v7 = vsel %vm402_vm2, %v12636_v20, 0.0 }
0x1c12   :  { %4221 = vadd.xlane.f32.xlu0 %v4220_v7 }
0x1c28   :  { %4382 = vrot.lane.b32.xlu0 %v4380_v8, %s12820_s23 }
0x1c37   :  { %v4126_v19 = vpop.xlane.xlu1 %4125 }
0x1c38   :  { %v4127_v22 = vsub.f32 %v4123_v63, %v4126_v19 }
0x1c3a   :  { %v4128_v29 = vmul.f32 1.442695, %v4127_v22 }
0x1c3c   :  { %12637 = vpow2.f32 %v4128_v29 }
0x1c49   :  { %v13498_v30 = vpop.eup %12637 }
0x1c4a   :  { %v4130_v23 = vsel %vm402_vm2, %v13498_v30, 0.0 }
0x1c4b   :  { %4131 = vadd.xlane.f32.xlu1 %v4130_v23 }
0x1c5c   :  { %4471 = vrot.lane.b32.xlu1 %v4469_v33, %s12822_s28 }
0x1c9b   :  { %v4222_v34 = vpop.xlane.xlu0 %4221 }
0x1c9c   :  { %12639 = vrcp.f32 %v4222_v34 }
0x1c9f   :  { %v4383_v39 = vpop.permute.xlu0 %4382 }
0x1ca9   :  { %v12640_v36 = vpop.eup %12639 }
0x1caa   :  { %v4224_v38 = vmul.f32 %v12640_v36, %v12636_v20 }
0x1cac   :  { %12032 = vmatmul.mubr.msk.f32.vlgmr.msra.gmra.mxu0 %vm402_vm2, %v4224_v38 }
0x1cad   :  { %12040 = vmatpush3.xpose.msk.msra.mxu0 %vm230_vm0, %v4383_v39  ;;  %12041 = vmatprep.mubr.msk.f32.mxu0 %vm12819_vm1, %v12817_v16  ;;  %v216_v39 = vld [vmem:[%s13482_s14 + $0x8] sm:$0xff] }
0x1cae   :  { %12049 = vmatprep.subr.mxu0 %v12817_v16 }
0x1cb0   :  { %12042 = vmatmul.mubr.msk.f32.vlgmr.msra.gmra.mxu0 %vm230_vm0, %v13459_v53 }
0x1cb1   :  { %12050 = vmatpush3.xpose.msk.msra.mxu0 %vm230_vm0, %v4551_v10  ;;  %12051 = vmatprep.mubr.msk.f32.mxu0 %vm12819_vm1, %v12817_v16 }
0x1cb2   :  { %12059 = vmatprep.subr.mxu0 %v12817_v16 }
0x1cb4   :  { %12052 = vmatmul.mubr.msk.f32.vlgmr.msra.gmra.mxu0 %vm230_vm0, %v13459_v53 }
0x1cb5   :  { %12061 = vmatprep.mubr.msk.f32.mxu0 %vm12819_vm1, %v12817_v16 }
0x1cd4   :  { %v4132_v1 = vpop.xlane.xlu1 %4131 }
0x1cd8   :  { %v4472_v2 = vpop.permute.xlu1 %4471 }
0x1d6c   :  { %v13524_v32 = vpop.f32.mrf.mxu0 }
0x1d6e   :  { %v12033_v43 = vpop.f32.mrf.mxu0 }
0x1d70   :  { %v4452_v44 = vpop.f32.mrf.mxu0 }
0x1d71   :  { %v4456_v45 = vmul.f32 0.35355338, %v4452_v44 }
0x1d72   :  { %v12043_v28 = vpop.f32.mrf.mxu0 }
0x1d73   :  { %v4457_v46 = vadd.f32 %v4456_v45, %v215_v60 }
0x1d74   :  { %v4620_v37 = vpop.f32.mrf.mxu0 }
0x1d75   :  { %v4624_v47 = vmul.f32 0.35355338, %v4620_v37  ;;  %v4458_v48 = vsel %vm402_vm2, %v4457_v46, -inf  ;;  %v4898_v37 = vmul.f32 %v13455_v51, %v13000_v56 }
0x1d76   :  { %4459 = vmax.xlane.f32.xlu0 %v4458_v48  ;;  %v12053_v49 = vpop.f32.mrf.mxu0 }
0x1d77   :  { %v4625_v50 = vadd.f32 %v4624_v47, %v215_v60  ;;  %v4637_v60 = vmul.f32 %v13459_v53, %v13017_v18 }
0x1d79   :  { %v4626_v52 = vsel %vm402_vm2, %v4625_v50, -inf }
0x1d7a   :  { %4627 = vmax.xlane.f32.xlu0 %v4626_v52 }
0x1dff   :  { %v4460_v15 = vpop.xlane.xlu0 %4459 }
0x1e00   :  { %v4461_v54 = vsub.f32 %v4457_v46, %v4460_v15  ;;  %v4716_v15 = vmul.f32 %v13455_v51, %v12927_v17 }
0x1e02   :  { %v4462_v14 = vmul.f32 1.442695, %v4461_v54  ;;  %v5221_v54 = vmul.f32 %v13455_v51, %v12944_v27 }
0x1e03   :  { %v4628_v59 = vpop.xlane.xlu0 %4627 }
0x1e04   :  { %12641 = vpow2.f32 %v4462_v14  ;;  %v4629_v13 = vsub.f32 %v4625_v50, %v4628_v59 }
0x1e06   :  { %v4630_v12 = vmul.f32 1.442695, %v4629_v13 }
0x1e08   :  { %12643 = vpow2.f32 %v4630_v12 }
0x1e09   :  { %12645 = vrcp.f32 %v4132_v1 }
0x1e11   :  { %v12642_v55 = vpop.eup %12641 }
0x1e12   :  { %v4464_v57 = vsel %vm402_vm2, %v12642_v55, 0.0 }
0x1e13   :  { %4465 = vadd.xlane.f32.xlu0 %v4464_v57 }
0x1e15   :  { %v12644_v58 = vpop.eup %12643 }
0x1e16   :  { %v4632_v61 = vsel %vm402_vm2, %v12644_v58, 0.0  ;;  %v12646_v3 = vpop.eup %12645 }
0x1e17   :  { %4633 = vadd.xlane.f32.xlu1 %v4632_v61  ;;  %v4134_v6 = vmul.f32 %v12646_v3, %v13498_v30 }
0x1e28   :  { %4639 = vrot.lane.b32.xlu1 %v4637_v60, %s12822_s28 }
0x1e29   :  { %4304 = vrot.lane.b32.xlu0 %v4135_v62, %s12822_s28 }
0x1e2d   :  { %4811 = vrot.lane.b32.xlu0 %v4809_v0, %s12820_s23 }
0x1e9c   :  { %v4466_v63 = vpop.xlane.xlu0 %4465 }
0x1e9d   :  { %12647 = vrcp.f32 %v4466_v63 }
0x1ea0   :  { %v4634_v4 = vpop.xlane.xlu1 %4633  ;;  %v4305_v5 = vpop.permute.xlu0 %4304 }
0x1ea1   :  { %12649 = vrcp.f32 %v4634_v4  ;;  %12035 = vmatpush3.msra.mxu1 %v4305_v5 }
0x1ea2   :  { %12037 = vmatmul.mubr.msk.f32.vlgmr.msra.gmra.mxu1 %vm402_vm2, %v4134_v6  ;;  %12044 = vmatprep.subr.mxu1 %v12817_v16 }
0x1ea3   :  { %12045 = vmatpush3.msra.mxu1 %v4472_v2  ;;  %12046 = vmatprep.mubr.msk.f32.mxu1 %vm12819_vm1, %v12817_v16 }
0x1ea4   :  { %12054 = vmatprep.subr.mxu1 %v12817_v16  ;;  %v4640_v20 = vpop.permute.xlu1 %4639  ;;  %v4812_v10 = vpop.permute.xlu0 %4811 }
0x1eaa   :  { %v12648_v53 = vpop.eup %12647 }
0x1eab   :  { %v4468_v25 = vmul.f32 %v12648_v53, %v12642_v55 }
0x1ead   :  { %12047 = vmatmul.mubr.msk.f32.vlgmr.msra.gmra.mxu1 %vm402_vm2, %v4468_v25 }
0x1eae   :  { %v12650_v7 = vpop.eup %12649  ;;  %12055 = vmatpush3.msra.mxu1 %v4640_v20  ;;  %12056 = vmatprep.mubr.msk.f32.mxu1 %vm12819_vm1, %v12817_v16 }
0x1eaf   :  { %12064 = vmatprep.subr.mxu1 %v12817_v16  ;;  %v4636_v8 = vmul.f32 %v12650_v7, %v12644_v58 }
0x1eb1   :  { %12057 = vmatmul.mubr.msk.f32.vlgmr.msra.gmra.mxu1 %vm402_vm2, %v4636_v8 }
0x1eb2   :  { %12065 = vmatpush3.xpose.msk.msra.mxu1 %vm230_vm0, %v4812_v10  ;;  %12066 = vmatprep.mubr.msk.f32.mxu1 %vm12819_vm1, %v12817_v16 }
0x1eb3   :  { %12074 = vmatprep.subr.mxu1 %v12817_v16 }
0x1eb5   :  { %12067 = vmatmul.mubr.msk.f32.vlgmr.msra.gmra.mxu1 %vm230_vm0, %v13455_v51 }
0x1eb6   :  { %12076 = vmatprep.mubr.msk.f32.mxu1 %vm12819_vm1, %v12817_v16 }
0x1f62   :  { %v4376_v19 = vpop.f32.mrf.mxu1 }
0x1f63   :  { %v4377_v29 = vadd.f32 %v4376_v19, %v13524_v32  ;;  %v5053_v32 = vmul.f32 %v13455_v51, %v12932_v21 }
0x1f64   :  { %v12038_v22 = vpop.f32.mrf.mxu1 }
0x1f6d   :  { %v4543_v30 = vpop.f32.mrf.mxu1 }
0x1f6e   :  { %v4547_v23 = vadd.f32 %v4543_v30, %v4377_v29 }
0x1f6f   :  { %v12048_v33 = vpop.f32.mrf.mxu1 }
0x1f71   :  { %v4711_v34 = vpop.f32.mrf.mxu1 }
0x1f72   :  { %v4715_v36 = vadd.f32 %v4711_v34, %v4547_v23 }
0x1f73   :  { %v12058_v38 = vpop.f32.mrf.mxu1 }
0x1f75   :  { %v4881_v43 = vpop.f32.mrf.mxu1 }
0x1f76   :  { %v4885_v44 = vmul.f32 0.35355338, %v4881_v43 }
0x1f77   :  { %v12068_v45 = vpop.f32.mrf.mxu1 }
0x1f78   :  { %v4886_v28 = vadd.f32 %v4885_v44, %v216_v39 }
0x1f7a   :  { %v4887_v46 = vsel %vm402_vm2, %v4886_v28, -inf }
0x1f7b   :  { %4888 = vmax.xlane.f32.xlu1 %v4887_v46  ;;  %v4808_v46 = vmul.f32 %v13455_v51, %v13008_v9 }
0x1f8c   :  { %4900 = vrot.lane.b32.xlu1 %v4898_v37, %s12822_s28 }
0x1f90   :  { %5055 = vrot.lane.b32.xlu1 %v5053_v32, %s12820_s23 }
0x2004   :  { %v4889_v47 = vpop.xlane.xlu1 %4888 }
0x2005   :  { %v4890_v48 = vsub.f32 %v4886_v28, %v4889_v47  ;;  %v11189_v47 = vld [vmem:[%s13189_s10 + $0x1] ss:$0 sm:$0xff]  ;;  %s12838_s10 = smov 24  }
0x2006   :  { %s13632_s20 = sld [smem:[%s14402_s0 + %s12838_s10]]  }
0x2007   :  { %v4891_v49 = vmul.f32 1.442695, %v4890_v48  ;;  %v3851_v48 = vadd.f32 %v11189_v47, %v13522_v42  ;;  %s13681_s10 = sld [smem:[%s14402_s0 + %s12843_s15]]   ;;  %s12848_s15 = smov 7  }
0x2008   :  { %v4901_v13 = vpop.permute.xlu1 %4900 }
0x2009   :  { %12651 = vpow2.f32 %v4891_v49  ;;  %v3859_v49 = vadd.f32 %v3851_v48, %v13419_v26 }
0x200c   :  { %v5056_v57 = vpop.permute.xlu1 %5055 }
0x2016   :  { %v12652_v50 = vpop.eup %12651 }
0x2017   :  { %v4893_v52 = vsel %vm402_vm2, %v12652_v50, 0.0 }
0x2018   :  { %4894 = vadd.xlane.f32.xlu0 %v4893_v52  ;;  %v5310_v52 = vmul.f32 %v13455_v51, %v13017_v18 }
0x202e   :  { %4718 = vrot.lane.b32.xlu0 %v4716_v15, %s12820_s23  ;;  %v3856_v15 = vadd.f32 %v13520_v41, %v11189_v47 }
0x2032   :  { %5223 = vrot.lane.b32.xlu0 %v5221_v54, %s12820_s23  ;;  %v3860_v54 = vadd.f32 %v3856_v15, %v13425_v35 }
0x20a1   :  { %v4895_v14 = vpop.xlane.xlu0 %4894 }
0x20a2   :  { %12653 = vrcp.f32 %v4895_v14  ;;  %v3868_v14 = vsel %vm230_vm0, %v3860_v54, 0.0 }
0x20a5   :  { %v4719_v59 = vpop.permute.xlu0 %4718 }
0x20a6   :  { %12060 = vmatpush3.xpose.msk.msra.mxu0 %vm230_vm0, %v4719_v59 }
0x20a7   :  { %12069 = vmatprep.subr.mxu0 %v12817_v16 }
0x20a9   :  { %12062 = vmatmul.mubr.msk.f32.vlgmr.msra.gmra.mxu0 %vm230_vm0, %v13455_v51  ;;  %v5224_v58 = vpop.permute.xlu0 %5223 }
0x20aa   :  { %12070 = vmatpush3.msra.mxu0 %v4901_v13  ;;  %12071 = vmatprep.mubr.msk.f32.mxu0 %vm12819_vm1, %v12817_v16 }
0x20ab   :  { %12079 = vmatprep.subr.mxu0 %v12817_v16 }
0x20af   :  { %v12654_v12 = vpop.eup %12653 }
0x20b0   :  { %v4897_v55 = vmul.f32 %v12654_v12, %v12652_v50  ;;  %v3865_v50 = vsel %vm230_vm0, %v3859_v49, 0.0 }
0x20b2   :  { %12072 = vmatmul.mubr.msk.f32.vlgmr.msra.gmra.mxu0 %vm402_vm2, %v4897_v55 }
0x20b3   :  { %12080 = vmatpush3.xpose.msk.msra.mxu0 %vm230_vm0, %v5056_v57  ;;  %12081 = vmatprep.mubr.msk.f32.mxu0 %vm12819_vm1, %v12817_v16 }
0x20b4   :  { %12089 = vmatprep.subr.mxu0 %v12817_v16 }
0x20b6   :  { %12082 = vmatmul.mubr.msk.f32.vlgmr.msra.gmra.mxu0 %vm230_vm0, %v13455_v51 }
0x20b7   :  { %12090 = vmatpush3.xpose.msk.msra.mxu0 %vm230_vm0, %v5224_v58  ;;  %12091 = vmatprep.mubr.msk.f32.mxu0 %vm12819_vm1, %v12817_v16 }
0x20ba   :  { %12092 = vmatmul.mubr.msk.f32.vlgmr.msra.gmra.mxu0 %vm230_vm0, %v13455_v51 }
0x20bb   :  { %12107 = vmatprep.mubr.msk.f32.mxu0 %vm230_vm0, %v4715_v36 }
0x2169   :  { %v4791_v61 = vpop.f32.mrf.mxu0 }
0x216a   :  { %v4795_v60 = vmul.f32 0.35355338, %v4791_v61 }
0x216b   :  { %v12063_v62 = vpop.f32.mrf.mxu0 }
0x216c   :  { %v4796_v0 = vadd.f32 %v4795_v60, %v216_v39 }
0x216e   :  { %v4797_v1 = vsel %vm402_vm2, %v4796_v0, -inf }
0x216f   :  { %4798 = vmax.xlane.f32.xlu1 %v4797_v1 }
0x2172   :  { %v13595_v2 = vpop.f32.mrf.mxu0 }
0x2174   :  { %v12073_v63 = vpop.f32.mrf.mxu0 }
0x2176   :  { %v5125_v3 = vpop.f32.mrf.mxu0 }
0x2177   :  { %v5129_v4 = vmul.f32 0.35355338, %v5125_v3 }
0x2178   :  { %v12083_v5 = vpop.f32.mrf.mxu0 }
0x2179   :  { %v5130_v6 = vadd.f32 %v5129_v4, %v216_v39 }
0x217a   :  { %v5293_v53 = vpop.f32.mrf.mxu0 }
0x217b   :  { %v5297_v25 = vmul.f32 0.35355338, %v5293_v53  ;;  %v5131_v20 = vsel %vm402_vm2, %v5130_v6, -inf }
0x217c   :  { %5132 = vmax.xlane.f32.xlu0 %v5131_v20  ;;  %v12093_v7 = vpop.f32.mrf.mxu0  ;;  %v5391_v20 = vld [vmem:[%s13632_s20 + $0x10] sm:$0xff] }
0x217d   :  { %v5298_v8 = vadd.f32 %v5297_v25, %v216_v39  ;;  %v5142_v39 = vmul.f32 %v13455_v51, %v13013_v11  ;;  %v5392_v25 = vld [vmem:[%s13632_s20 + $0x18] sm:$0xff]  ;;  %v5390_v7 = vld [vmem:[%s13632_s20 + $0x8] sm:$0xff] }
0x217e   :  { %12099 = vmatprep.subr.mxu0 %v5392_v25 }
0x217f   :  { %v5299_v10 = vsel %vm402_vm2, %v5298_v8, -inf  ;;  %12100 = vmatpush3.msra.mxu0 %v5392_v25 }
0x2180   :  { %5300 = vmax.xlane.f32.xlu0 %v5299_v10  ;;  %12101 = vmatprep.subr.mxu0 %v5391_v20 }
0x2181   :  { %12102 = vmatpush3.msra.mxu0 %v5391_v20 }
0x2182   :  { %12103 = vmatprep.subr.mxu0 %v5390_v7 }
0x2183   :  { %12104 = vmatpush3.msra.mxu0 %v5390_v7 }
0x21f8   :  { %v4799_v19 = vpop.xlane.xlu1 %4798 }
0x21f9   :  { %v4800_v22 = vsub.f32 %v4796_v0, %v4799_v19 }
0x21fb   :  { %v4801_v29 = vmul.f32 1.442695, %v4800_v22 }
0x21fd   :  { %12655 = vpow2.f32 %v4801_v29 }
0x2205   :  { %v5133_v30 = vpop.xlane.xlu0 %5132 }
0x2206   :  { %v5134_v23 = vsub.f32 %v5130_v6, %v5133_v30 }
0x2208   :  { %v5135_v33 = vmul.f32 1.442695, %v5134_v23 }
0x2209   :  { %v5301_v44 = vpop.xlane.xlu0 %5300 }
0x220a   :  { %v12656_v34 = vpop.eup %12655  ;;  %12657 = vpow2.f32 %v5135_v33  ;;  %v5302_v45 = vsub.f32 %v5298_v8, %v5301_v44  ;;  %v5389_v8 = vld [vmem:[%s13632_s20] sm:$0xff] }
0x220b   :  { %v4803_v36 = vsel %vm402_vm2, %v12656_v34, 0.0  ;;  %12105 = vmatprep.subr.mxu0 %v5389_v8 }
0x220c   :  { %4804 = vadd.xlane.f32.xlu1 %v4803_v36  ;;  %v5303_v28 = vmul.f32 1.442695, %v5302_v45  ;;  %12106 = vmatpush3.msra.mxu0 %v5389_v8  ;;  %v11194_v36 = vld [vmem:[%s13204_s16 + $0x1] ss:$0 sm:$0xff]  ;;  %s12839_s16 = smov 25  }
0x220d   :  { %s13647_s27 = sld [smem:[%s14402_s0 + %s12839_s16]]   ;;  %s12855_s16 = smov 39  }
0x220e   :  { %12659 = vpow2.f32 %v5303_v28  ;;  %s13963_s1 = sld [smem:[%s14402_s0 + %s12855_s16]]  }
0x2217   :  { %v12658_v38 = vpop.eup %12657 }
0x2218   :  { %v5137_v43 = vsel %vm402_vm2, %v12658_v38, 0.0 }
0x2219   :  { %5138 = vadd.xlane.f32.xlu0 %v5137_v43  ;;  %v11195_v43 = vld [vmem:[%s13209_s24 + $0x1] ss:$0 sm:$0xff]  ;;  %s13701_s24 = sld [smem:[%s14402_s0 + %s12844_s6]]  }
0x221a   :  { %s13759_s6 = sld [smem:[%s14402_s0 + %s12848_s15]]  }
0x221b   :  { %v12660_v37 = vpop.eup %12659 }
0x221c   :  { %v5305_v32 = vsel %vm402_vm2, %v12660_v37, 0.0 }
0x221d   :  { %5144 = vrot.lane.b32.xlu1 %v5142_v39, %s12822_s28 }
0x222f   :  { %4977 = vrot.lane.b32.xlu0 %v4808_v46, %s12822_s28 }
0x2241   :  { %5306 = vadd.xlane.f32.xlu1 %v5305_v32 }
0x224e   :  { %3866 = vadd.xlane.f32.xlu0 %v3865_v50 }
0x2252   :  { %5312 = vrot.lane.b32.xlu1 %v5310_v52, %s12822_s28 }
0x2276   :  { %3869 = vadd.xlane.f32.xlu1 %v3868_v14 }
0x2295   :  { %v4805_v59 = vpop.xlane.xlu1 %4804 }
0x2296   :  { %12661 = vrcp.f32 %v4805_v59 }
0x2299   :  { %v5145_v55 = vpop.permute.xlu1 %5144 }
0x22a2   :  { %v5139_v42 = vpop.xlane.xlu0 %5138 }
0x22a3   :  { %v12662_v13 = vpop.eup %12661  ;;  %12663 = vrcp.f32 %v5139_v42 }
0x22a4   :  { %v4807_v12 = vmul.f32 %v12662_v13, %v12656_v34 }
0x22a6   :  { %v4978_v26 = vpop.permute.xlu0 %4977 }
0x22a7   :  { %12075 = vmatpush3.msra.mxu1 %v4978_v26  ;;  %v11225_v26 = vld [vmem:[%s13647_s27] ss:$0 sm:$0xff] }
0x22a8   :  { %12077 = vmatmul.mubr.msk.f32.vlgmr.msra.gmra.mxu1 %vm402_vm2, %v4807_v12  ;;  %12084 = vmatprep.subr.mxu1 %v12817_v16 }
0x22a9   :  { %12085 = vmatpush3.msra.mxu1 %v5145_v55  ;;  %12086 = vmatprep.mubr.msk.f32.mxu1 %vm12819_vm1, %v12817_v16 }
0x22aa   :  { %12094 = vmatprep.subr.mxu1 %v12817_v16 }
0x22b0   :  { %v12664_v35 = vpop.eup %12663 }
0x22b1   :  { %v5141_v51 = vmul.f32 %v12664_v35, %v12658_v38 }
0x22b3   :  { %12087 = vmatmul.mubr.msk.f32.vlgmr.msra.gmra.mxu1 %vm402_vm2, %v5141_v51 }
0x22b4   :  { %12096 = vmatprep.mubr.msk.f32.mxu1 %vm12819_vm1, %v12817_v16 }
0x22ca   :  { %v5307_v41 = vpop.xlane.xlu1 %5306 }
0x22cb   :  { %12665 = vrcp.f32 %v5307_v41 }
0x22ce   :  { %v5313_v57 = vpop.permute.xlu1 %5312 }
0x22cf   :  { %12095 = vmatpush3.msra.mxu1 %v5313_v57 }
0x22d7   :  { %v3867_v58 = vpop.xlane.xlu0 %3866 }
0x22d8   :  { %v12666_v61 = vpop.eup %12665  ;;  %v3871_v60 = vmul.f32 0.03125, %v3867_v58 }
0x22d9   :  { %v5309_v62 = vmul.f32 %v12666_v61, %v12660_v37 }
0x22da   :  { %v3873_v0 = vsub.f32 %v3859_v49, %v3871_v60 }
0x22db   :  { %12097 = vmatmul.mubr.msk.f32.vlgmr.msra.gmra.mxu1 %vm402_vm2, %v5309_v62 }
0x22dc   :  { %v3875_v1 = vmul.f32 %v3873_v0, %v3873_v0 }
0x22de   :  { %v3877_v63 = vsel %vm230_vm0, %v3875_v1, 0.0 }
0x22df   :  { %3878 = vadd.xlane.f32.xlu0 %v3877_v63 }
0x22ff   :  { %v3870_v3 = vpop.xlane.xlu1 %3869 }
0x2300   :  { %v3872_v4 = vmul.f32 0.03125, %v3870_v3 }
0x2302   :  { %v3874_v5 = vsub.f32 %v3860_v54, %v3872_v4 }
0x2304   :  { %v3876_v6 = vmul.f32 %v3874_v5, %v3874_v5 }
0x2306   :  { %v3880_v53 = vsel %vm230_vm0, %v3876_v6, 0.0  ;;  %v5619_v6 = vld [vmem:[%s13659_s26] sm:$0xff] }
0x2307   :  { %3881 = vadd.xlane.f32.xlu0 %v3880_v53 }
0x2368   :  { %v5049_v10 = vpop.f32.mrf.mxu1  ;;  %v3879_v19 = vpop.xlane.xlu0 %3878 }
0x2369   :  { %v3883_v22 = vmul.f32 0.03125, %v3879_v19  ;;  %v5050_v32 = vadd.f32 %v5049_v10, %v13595_v2 }
0x236a   :  { %v12078_v29 = vpop.f32.mrf.mxu1 }
0x236b   :  { %v3885_v30 = vadd.f32 1e-05, %v3883_v22 }
0x236d   :  { %12667 = vrsqrt.f32 %v3885_v30 }
0x2373   :  { %v5216_v23 = vpop.f32.mrf.mxu1 }
0x2374   :  { %v5220_v47 = vadd.f32 %v5216_v23, %v5050_v32  ;;  %v11197_v32 = vld [vmem:[%s11055_s9] ss:$0 sm:$0xff]  ;;  %s13738_s9 = sld [smem:[%s14402_s0 + %s12847_s8]]  }
0x2375   :  { %v12088_v33 = vpop.f32.mrf.mxu1  ;;  %s13939_s8 = sld [smem:[%s14402_s0 + %s12853_s11]]  }
0x237a   :  { %v12668_v34 = vpop.eup %12667 }
0x237b   :  { %v3889_v38 = vmul.f32 %v12668_v34, %v3873_v0 }
0x237d   :  { %v3897_v39 = vmul.f32 %v11194_v36, %v3889_v38 }
0x237f   :  { %v3905_v44 = vadd.f32 %v11195_v43, %v3897_v39 }
0x2381   :  { %v3909_v45 = vsel %vm230_vm0, %v3905_v44, 0.0 }
0x2382   :  { %3910 = vadd.xlane.f32.xlu1 %v3909_v45 }
0x2390   :  { %v3882_v28 = vpop.xlane.xlu0 %3881 }
0x2391   :  { %v3884_v46 = vmul.f32 0.03125, %v3882_v28 }
0x2393   :  { %v3886_v37 = vadd.f32 1e-05, %v3884_v46 }
0x2395   :  { %12669 = vrsqrt.f32 %v3886_v37 }
0x239b   :  { %v5384_v48 = vpop.f32.mrf.mxu1 }
0x239c   :  { %v5388_v49 = vadd.f32 %v5384_v48, %v5220_v47 }
0x239d   :  { %v12098_v50 = vpop.f32.mrf.mxu1 }
0x239e   :  { %12108 = vmatmul.mubr.msk.f32.vlgmr.msra.gmra.mxu0 %vm230_vm0, %v5388_v49  ;;  %v5530_v50 = vld [vmem:[%s13681_s10 + $0x18] sm:$0xff] }
0x239f   :  { %12110 = vmatprep.subr.mxu1 %v5530_v50 }
0x23a0   :  { %12111 = vmatpush3.msra.mxu1 %v5530_v50 }
0x23a2   :  { %v12670_v52 = vpop.eup %12669 }
0x23a3   :  { %v3890_v15 = vmul.f32 %v12670_v52, %v3874_v5  ;;  %v5620_v5 = vld [vmem:[%s13659_s26 + $0x8] sm:$0xff]  ;;  %v5529_v52 = vld [vmem:[%s13681_s10 + $0x10] sm:$0xff] }
0x23a4   :  { %12112 = vmatprep.subr.mxu1 %v5529_v52 }
0x23a5   :  { %v3898_v54 = vmul.f32 %v11194_v36, %v3890_v15  ;;  %v5528_v15 = vld [vmem:[%s13681_s10 + $0x8] sm:$0xff]  ;;  %12113 = vmatpush3.msra.mxu1 %v5529_v52 }
0x23a6   :  { %12114 = vmatprep.subr.mxu1 %v5528_v15 }
0x23a7   :  { %v3906_v14 = vadd.f32 %v11195_v43, %v3898_v54  ;;  %v5527_v54 = vld [vmem:[%s13681_s10] sm:$0xff]  ;;  %12115 = vmatpush3.msra.mxu1 %v5528_v15 }
0x23a8   :  { %12116 = vmatprep.subr.mxu1 %v5527_v54  ;;  %v13770_v15 = vld [vmem:[%s12882_s17 + $0x2] ss:$0 sm:$0xff] }
0x23a9   :  { %v3912_v59 = vsel %vm230_vm0, %v3906_v14, 0.0  ;;  %12117 = vmatpush3.msra.mxu1 %v5527_v54 }
0x23aa   :  { %3913 = vadd.xlane.f32.xlu0 %v3912_v59  ;;  %12132 = vmatprep.subr.mxu1 %v12817_v16 }
0x240b   :  { %v3911_v42 = vpop.xlane.xlu1 %3910 }
0x240c   :  { %v3915_v12 = vmul.f32 0.03125, %v3911_v42 }
0x240e   :  { %v3917_v57 = vsub.f32 %v3905_v44, %v3915_v12  ;;  %v11196_v44 = vld [vmem:[%s11054_s5] ss:$0 sm:$0xff]  ;;  %s13724_s5 = sld [smem:[%s14402_s0 + %s12846_s30]]  }
0x240f   :  { %s13904_s30 = sld [smem:[%s14402_s0 + %s12849_s18]]  }
0x2410   :  { %v3919_v63 = vmul.f32 %v3917_v57, %v3917_v57 }
0x2412   :  { %v3921_v4 = vsel %vm230_vm0, %v3919_v63, 0.0 }
0x2433   :  { %v3914_v2 = vpop.xlane.xlu0 %3913 }
0x2434   :  { %v3916_v13 = vmul.f32 0.03125, %v3914_v2 }
0x2436   :  { %v3918_v35 = vsub.f32 %v3906_v14, %v3916_v13 }
0x2438   :  { %v3920_v0 = vmul.f32 %v3918_v35, %v3918_v35 }
0x243a   :  { %v3924_v3 = vsel %vm230_vm0, %v3920_v0, 0.0  ;;  %v11233_v0 = vld [vmem:[%s13724_s5] ss:$0 sm:$0xff] }
0x245e   :  { %v12109_v55 = vpop.f32.mrf.mxu0 }
0x245f   :  { %v5478_v51 = vadd.f32 %v12109_v55, %v11225_v26  ;;  %v11228_v55 = vld [vmem:[%s13701_s24] ss:$0 sm:$0xff] }
0x2460   :  { %v5472_v41 = vpop.f32.mrf.mxu0 }
0x2461   :  { %v5482_v58 = vadd.f32 %v5478_v51, %v13434_v40  ;;  %v5473_v61 = vadd.f32 %v11225_v26, %v5472_v41  ;;  %v5621_v40 = vld [vmem:[%s13659_s26 + $0x10] sm:$0xff] }
0x2463   :  { %v5481_v60 = vadd.f32 %v5473_v61, %v13423_v31  ;;  %v5488_v62 = vsel %vm230_vm0, %v5482_v58, 0.0  ;;  %v5622_v31 = vld [vmem:[%s13659_s26 + $0x18] sm:$0xff] }
0x2464   :  { %5489 = vadd.xlane.f32.xlu0 %v5488_v62  ;;  %12121 = vmatprep.subr.mxu0 %v5622_v31 }
0x2465   :  { %v5485_v1 = vsel %vm230_vm0, %v5481_v60, 0.0  ;;  %12122 = vmatpush3.msra.mxu0 %v5622_v31  ;;  %v12801_v31 = vld [vmem:[%s12882_s17] ss:$0 sm:$0xff] }
0x2466   :  { %5486 = vadd.xlane.f32.xlu1 %v5485_v1  ;;  %12123 = vmatprep.subr.mxu0 %v5621_v40 }
0x2467   :  { %12124 = vmatpush3.msra.mxu0 %v5621_v40 }
0x2468   :  { %3925 = vadd.xlane.f32.xlu0 %v3924_v3  ;;  %12125 = vmatprep.subr.mxu0 %v5620_v5 }
0x2469   :  { %12126 = vmatpush3.msra.mxu0 %v5620_v5  ;;  %v11230_v5 = vld [vmem:[%s13738_s9] ss:$0 sm:$0xff] }
0x246a   :  { %3922 = vadd.xlane.f32.xlu1 %v3921_v4  ;;  %12127 = vmatprep.subr.mxu0 %v5619_v6 }
0x246b   :  { %12128 = vmatpush3.msra.mxu0 %v5619_v6 }
0x246c   :  { %12142 = vmatprep.subr.mxu0 %v12817_v16 }
0x24ed   :  { %v5490_v53 = vpop.xlane.xlu0 %5489 }
0x24ee   :  { %v5492_v25 = vmul.f32 0.03125, %v5490_v53 }
0x24ef   :  { %v5487_v20 = vpop.xlane.xlu1 %5486 }
0x24f0   :  { %v13666_v7 = vsub.f32 %v5482_v58, %v5492_v25  ;;  %v5491_v8 = vmul.f32 0.03125, %v5487_v20  ;;  %v11229_v58 = vld [vmem:[%s13706_s25] ss:$0 sm:$0xff] }
0x24f1   :  { %v3926_v10 = vpop.xlane.xlu0 %3925 }
0x24f2   :  { %v5493_v19 = vsub.f32 %v5481_v60, %v5491_v8  ;;  %v3928_v22 = vmul.f32 0.03125, %v3926_v10  ;;  %v5496_v29 = vmul.f32 %v13666_v7, %v13666_v7 }
0x24f3   :  { %v3923_v30 = vpop.xlane.xlu1 %3922 }
0x24f4   :  { %v3930_v23 = vadd.f32 1e-05, %v3928_v22  ;;  %v3927_v33 = vmul.f32 0.03125, %v3923_v30  ;;  %v5500_v34 = vsel %vm230_vm0, %v5496_v29, 0.0  ;;  %v5495_v36 = vmul.f32 %v5493_v19, %v5493_v19  ;;  %v217_v30 = vld [vmem:[%s13759_s6] sm:$0xff] }
0x24f5   :  { %5501 = vadd.xlane.f32.xlu0 %v5500_v34 }
0x24f6   :  { %12671 = vrsqrt.f32 %v3930_v23  ;;  %v3929_v38 = vadd.f32 1e-05, %v3927_v33  ;;  %v5497_v43 = vsel %vm230_vm0, %v5495_v36, 0.0 }
0x24f7   :  { %5498 = vadd.xlane.f32.xlu1 %v5497_v43 }
0x24f8   :  { %12673 = vrsqrt.f32 %v3929_v38 }
0x2503   :  { %v12672_v39 = vpop.eup %12671 }
0x2504   :  { %v3934_v45 = vmul.f32 %v12672_v39, %v3918_v35 }
0x2505   :  { %v12674_v28 = vpop.eup %12673 }
0x2506   :  { %v3933_v46 = vmul.f32 %v12674_v28, %v3917_v57  ;;  %v3942_v37 = vmul.f32 %v11196_v44, %v3934_v45 }
0x2508   :  { %v3941_v47 = vmul.f32 %v11196_v44, %v3933_v46  ;;  %v13685_v49 = vadd.f32 %v11197_v32, %v3942_v37 }
0x250a   :  { %v13683_v48 = vadd.f32 %v11197_v32, %v3941_v47 }
0x250c   :  { %12129 = vmatprep.mubr.msk.f32.mxu0 %vm230_vm0, %v13683_v48 }
0x250d   :  { %12130 = vmatmul.mubr.msk.f32.vlgmr.msra.gmra.mxu0 %vm230_vm0, %v13685_v49 }
0x250e   :  { %12144 = vmatprep.mubr.msk.f32.mxu0 %vm12819_vm1, %v12817_v16 }
0x257e   :  { %v5502_v14 = vpop.xlane.xlu0 %5501 }
0x257f   :  { %v5504_v59 = vmul.f32 0.03125, %v5502_v14  ;;  %v13780_v14 = vld [vmem:[%s12882_s17 + $0x3] ss:$0 sm:$0xff] }
0x2580   :  { %v5499_v2 = vpop.xlane.xlu1 %5498 }
0x2581   :  { %v5506_v42 = vadd.f32 1e-05, %v5504_v59  ;;  %v5503_v13 = vmul.f32 0.03125, %v5499_v2 }
0x2583   :  { %12675 = vrsqrt.f32 %v5506_v42  ;;  %v5505_v26 = vadd.f32 1e-05, %v5503_v13 }
0x2585   :  { %12677 = vrsqrt.f32 %v5505_v26 }
0x2590   :  { %v12676_v12 = vpop.eup %12675 }
0x2591   :  { %v5510_v35 = vmul.f32 %v12676_v12, %v13666_v7  ;;  %v13744_v7 = vld [vmem:[%s12882_s17 + $0x1] ss:$0 sm:$0xff] }
0x2592   :  { %v12678_v51 = vpop.eup %12677 }
0x2593   :  { %v5509_v41 = vmul.f32 %v12678_v51, %v5493_v19  ;;  %v5518_v57 = vmul.f32 %v11228_v55, %v5510_v35 }
0x2595   :  { %v5517_v61 = vmul.f32 %v11228_v55, %v5509_v41  ;;  %v13713_v62 = vadd.f32 %v11229_v58, %v5518_v57 }
0x2597   :  { %v13711_v60 = vadd.f32 %v11229_v58, %v5517_v61 }
0x2599   :  { %12118 = vmatprep.mubr.msk.f32.mxu1 %vm230_vm0, %v13711_v60 }
0x259a   :  { %12119 = vmatmul.mubr.msk.f32.vlgmr.msra.gmra.mxu1 %vm230_vm0, %v13713_v62 }
0x259b   :  { %12134 = vmatprep.mubr.msk.f32.mxu1 %vm12819_vm1, %v12817_v16 }
0x25cd   :  { %v12131_v1 = vpop.f32.mrf.mxu0 }
0x25ce   :  { %v13727_v63 = vadd.f32 %v12131_v1, %v11233_v0 }
0x25cf   :  { %v5702_v3 = vpop.f32.mrf.mxu0 }
0x25d0   :  { %v13729_v4 = vadd.f32 %v11233_v0, %v5702_v3  ;;  %v6376_v2 = vmul.f32 %v12801_v31, %v13727_v63 }
0x25d2   :  { %v5711_v40 = vmul.f32 %v12801_v31, %v13729_v4  ;;  %v5802_v8 = vmul.f32 %v13744_v7, %v13729_v4  ;;  %v5889_v36 = vmul.f32 %v13729_v4, %v12936_v24  ;;  %v6044_v54 = vmul.f32 %v13770_v15, %v13729_v4 }
0x25d3   :  { %v6210_v59 = vmul.f32 %v13780_v14, %v13729_v4 }
0x25d4   :  { %12133 = vmatpush3.xpose.msk.msra.mxu1 %vm230_vm0, %v5711_v40 }
0x25d5   :  { %12137 = vmatprep.subr.mxu1 %v12817_v16 }
0x265a   :  { %v12120_v6 = vpop.f32.mrf.mxu1 }
0x265b   :  { %v13741_v53 = vadd.f32 %v12120_v6, %v11230_v5 }
0x265c   :  { %v5610_v25 = vpop.f32.mrf.mxu1 }
0x265d   :  { %v5611_v20 = vadd.f32 %v11230_v5, %v5610_v25 }
0x265f   :  { %12135 = vmatmul.mubr.msk.f32.vlgmr.msra.gmra.mxu1 %vm230_vm0, %v5611_v20 }
0x2660   :  { %12138 = vmatpush3.xpose.msk.msra.mxu1 %vm230_vm0, %v5802_v8  ;;  %12139 = vmatprep.mubr.msk.f32.mxu1 %vm12819_vm1, %v12817_v16  ;;  %v6131_v8 = vmul.f32 %v13729_v4, %v12932_v21 }
0x2661   :  { %12147 = vmatprep.subr.mxu1 %v12817_v16 }
0x2663   :  { %12140 = vmatmul.mubr.msk.f32.vlgmr.msra.gmra.mxu1 %vm230_vm0, %v5611_v20 }
0x2664   :  { %12149 = vmatprep.mubr.msk.f32.mxu1 %vm12819_vm1, %v12817_v16 }
0x271f   :  { %v5784_v10 = vpop.f32.mrf.mxu1 }
0x2720   :  { %v5788_v45 = vmul.f32 0.35355338, %v5784_v10 }
0x2721   :  { %v12136_v19 = vpop.f32.mrf.mxu1 }
0x2722   :  { %v5789_v46 = vadd.f32 %v5788_v45, %v217_v30 }
0x2723   :  { %v5872_v22 = vpop.f32.mrf.mxu1 }
0x2724   :  { %v5876_v29 = vmul.f32 0.35355338, %v5872_v22  ;;  %v5790_v32 = vsel %vm402_vm2, %v5789_v46, -inf }
0x2725   :  { %v12141_v23 = vpop.f32.mrf.mxu1 }
0x2726   :  { %v5877_v33 = vadd.f32 %v5876_v29, %v217_v30 }
0x2728   :  { %v5878_v34 = vsel %vm402_vm2, %v5877_v33, -inf }
0x2729   :  { %5879 = vmax.xlane.f32.xlu1 %v5878_v34 }
0x273a   :  { %5891 = vrot.lane.b32.xlu1 %v5889_v36, %s12820_s23 }
0x27b2   :  { %v5880_v38 = vpop.xlane.xlu1 %5879 }
0x27b3   :  { %v5881_v43 = vsub.f32 %v5877_v33, %v5880_v38 }
0x27b5   :  { %v5882_v39 = vmul.f32 1.442695, %v5881_v43 }
0x27b6   :  { %v5892_v44 = vpop.permute.xlu1 %5891 }
0x27b7   :  { %12679 = vpow2.f32 %v5882_v39  ;;  %12143 = vmatpush3.msra.mxu0 %v5892_v44 }
0x27b8   :  { %12152 = vmatprep.subr.mxu0 %v12817_v16 }
0x27c4   :  { %v12680_v28 = vpop.eup %12679 }
0x27c5   :  { %v5884_v37 = vsel %vm402_vm2, %v12680_v28, 0.0 }
0x27c6   :  { %5885 = vadd.xlane.f32.xlu0 %v5884_v37 }
0x27ca   :  { %5791 = vmax.xlane.f32.xlu0 %v5790_v32 }
0x284f   :  { %v5886_v47 = vpop.xlane.xlu0 %5885 }
0x2850   :  { %12681 = vrcp.f32 %v5886_v47 }
0x2853   :  { %v5792_v42 = vpop.xlane.xlu0 %5791 }
0x2854   :  { %v5793_v13 = vsub.f32 %v5789_v46, %v5792_v42  ;;  %v6297_v46 = vmul.f32 %v13729_v4, %v12944_v27 }
0x2856   :  { %v5794_v26 = vmul.f32 1.442695, %v5793_v13 }
0x2858   :  { %12683 = vpow2.f32 %v5794_v26 }
0x285d   :  { %v12682_v50 = vpop.eup %12681 }
0x285e   :  { %v5888_v52 = vmul.f32 %v12682_v50, %v12680_v28 }
0x2860   :  { %12145 = vmatmul.mubr.msk.f32.vlgmr.msra.gmra.mxu0 %vm402_vm2, %v5888_v52 }
0x2861   :  { %12153 = vmatpush3.xpose.msk.msra.mxu0 %vm230_vm0, %v6044_v54  ;;  %12154 = vmatprep.mubr.msk.f32.mxu0 %vm12819_vm1, %v12817_v16 }
0x2862   :  { %12162 = vmatprep.subr.mxu0 %v12817_v16 }
0x2864   :  { %12155 = vmatmul.mubr.msk.f32.vlgmr.msra.gmra.mxu0 %vm230_vm0, %v5611_v20 }
0x2865   :  { %12163 = vmatpush3.xpose.msk.msra.mxu0 %vm230_vm0, %v6210_v59  ;;  %12164 = vmatprep.mubr.msk.f32.mxu0 %vm12819_vm1, %v12817_v16  ;;  %v12684_v5 = vpop.eup %12683 }
0x2866   :  { %12172 = vmatprep.subr.mxu0 %v12817_v16  ;;  %v5796_v25 = vsel %vm402_vm2, %v12684_v5, 0.0 }
0x2868   :  { %12165 = vmatmul.mubr.msk.f32.vlgmr.msra.gmra.mxu0 %vm230_vm0, %v5611_v20  ;;  %v5801_v20 = vmul.f32 %v13729_v4, %v12927_v17  ;;  %v6467_v4 = vmul.f32 %v13744_v7, %v13727_v63 }
0x2869   :  { %12173 = vmatpush3.xpose.msk.msra.mxu0 %vm230_vm0, %v6376_v2  ;;  %12174 = vmatprep.mubr.msk.f32.mxu0 %vm12819_vm1, %v12817_v16 }
0x286a   :  { %12182 = vmatprep.subr.mxu0 %v12817_v16 }
0x286c   :  { %12175 = vmatmul.mubr.msk.f32.vlgmr.msra.gmra.mxu0 %vm230_vm0, %v13741_v53 }
0x286d   :  { %12184 = vmatprep.mubr.msk.f32.mxu0 %vm12819_vm1, %v12817_v16 }
0x2920   :  { %v13799_v12 = vpop.f32.mrf.mxu0 }
0x2922   :  { %v12146_v55 = vpop.f32.mrf.mxu0 }
0x2924   :  { %v6114_v35 = vpop.f32.mrf.mxu0 }
0x2925   :  { %v6118_v51 = vmul.f32 0.35355338, %v6114_v35 }
0x2926   :  { %v12156_v41 = vpop.f32.mrf.mxu0 }
0x2927   :  { %v6119_v57 = vadd.f32 %v6118_v51, %v217_v30 }
0x2928   :  { %v6280_v58 = vpop.f32.mrf.mxu0 }
0x2929   :  { %v6284_v61 = vmul.f32 0.35355338, %v6280_v58  ;;  %v6120_v0 = vsel %vm402_vm2, %v6119_v57, -inf }
0x292a   :  { %6121 = vmax.xlane.f32.xlu0 %v6120_v0  ;;  %v12166_v1 = vpop.f32.mrf.mxu0 }
0x292b   :  { %v6285_v3 = vadd.f32 %v6284_v61, %v217_v30  ;;  %v218_v61 = vld [vmem:[%s13759_s6 + $0x8] sm:$0xff] }
0x292c   :  { %v13802_v31 = vpop.f32.mrf.mxu0 }
0x292d   :  { %v6286_v40 = vsel %vm402_vm2, %v6285_v3, -inf }
0x292e   :  { %6287 = vmax.xlane.f32.xlu0 %v6286_v40  ;;  %v12176_v6 = vpop.f32.mrf.mxu0 }
0x2932   :  { %5797 = vadd.xlane.f32.xlu0 %v5796_v25 }
0x2948   :  { %5968 = vrot.lane.b32.xlu0 %v5801_v20, %s12820_s23  ;;  %v6554_v20 = vmul.f32 %v13727_v63, %v12936_v24 }
0x294c   :  { %6133 = vrot.lane.b32.xlu0 %v6131_v8, %s12820_s23  ;;  %v6453_v8 = vmul.f32 0.35355338, %v13802_v31  ;;  %v6709_v31 = vmul.f32 %v13770_v15, %v13727_v63 }
0x29b3   :  { %v6122_v10 = vpop.xlane.xlu0 %6121 }
0x29b4   :  { %v6123_v19 = vsub.f32 %v6119_v57, %v6122_v10  ;;  %v6454_v10 = vadd.f32 %v6453_v8, %v218_v61 }
0x29b6   :  { %v6124_v22 = vmul.f32 1.442695, %v6123_v19  ;;  %v6455_v19 = vsel %vm402_vm2, %v6454_v10, -inf }
0x29b7   :  { %v6288_v29 = vpop.xlane.xlu0 %6287 }
0x29b8   :  { %12685 = vpow2.f32 %v6124_v22  ;;  %v6289_v30 = vsub.f32 %v6285_v3, %v6288_v29  ;;  %v6796_v22 = vmul.f32 %v13727_v63, %v12932_v21 }
0x29ba   :  { %v6290_v23 = vmul.f32 1.442695, %v6289_v30 }
0x29bb   :  { %v5798_v33 = vpop.xlane.xlu0 %5797 }
0x29bc   :  { %12687 = vpow2.f32 %v6290_v23 }
0x29bd   :  { %12689 = vrcp.f32 %v5798_v33 }
0x29bf   :  { %v5969_v34 = vpop.permute.xlu0 %5968 }
0x29c0   :  { %12148 = vmatpush3.msra.mxu1 %v5969_v34  ;;  %v6875_v34 = vmul.f32 %v13780_v14, %v13727_v63 }
0x29c1   :  { %12157 = vmatprep.subr.mxu1 %v12817_v16 }
0x29c3   :  { %v6134_v28 = vpop.permute.xlu0 %6133 }
0x29c5   :  { %v12686_v36 = vpop.eup %12685 }
0x29c6   :  { %v6126_v38 = vsel %vm402_vm2, %v12686_v36, 0.0 }
0x29c7   :  { %6127 = vadd.xlane.f32.xlu1 %v6126_v38 }
0x29c9   :  { %v12688_v43 = vpop.eup %12687 }
0x29ca   :  { %v12690_v39 = vpop.eup %12689  ;;  %v6292_v44 = vsel %vm402_vm2, %v12688_v43, 0.0 }
0x29cb   :  { %6293 = vadd.xlane.f32.xlu0 %v6292_v44  ;;  %v5800_v45 = vmul.f32 %v12690_v39, %v12684_v5 }
0x29cd   :  { %12150 = vmatmul.mubr.msk.f32.vlgmr.msra.gmra.mxu1 %vm402_vm2, %v5800_v45 }
0x29ce   :  { %12158 = vmatpush3.msra.mxu1 %v6134_v28  ;;  %12159 = vmatprep.mubr.msk.f32.mxu1 %vm12819_vm1, %v12817_v16 }
0x29cf   :  { %12167 = vmatprep.subr.mxu1 %v12817_v16 }
0x29e1   :  { %6299 = vrot.lane.b32.xlu0 %v6297_v46, %s12820_s23 }
0x2a50   :  { %v6128_v37 = vpop.xlane.xlu1 %6127 }
0x2a51   :  { %12691 = vrcp.f32 %v6128_v37 }
0x2a54   :  { %v6294_v32 = vpop.xlane.xlu0 %6293 }
0x2a55   :  { %12693 = vrcp.f32 %v6294_v32 }
0x2a58   :  { %v6300_v52 = vpop.permute.xlu0 %6299 }
0x2a5e   :  { %v12692_v47 = vpop.eup %12691 }
0x2a5f   :  { %v6130_v50 = vmul.f32 %v12692_v47, %v12686_v36 }
0x2a61   :  { %12160 = vmatmul.mubr.msk.f32.vlgmr.msra.gmra.mxu1 %vm402_vm2, %v6130_v50 }
0x2a62   :  { %v12694_v54 = vpop.eup %12693  ;;  %12168 = vmatpush3.msra.mxu1 %v6300_v52  ;;  %12169 = vmatprep.mubr.msk.f32.mxu1 %vm12819_vm1, %v12817_v16 }
0x2a63   :  { %12177 = vmatprep.subr.mxu1 %v12817_v16  ;;  %v6296_v59 = vmul.f32 %v12694_v54, %v12688_v43 }
0x2a65   :  { %12170 = vmatmul.mubr.msk.f32.vlgmr.msra.gmra.mxu1 %vm402_vm2, %v6296_v59  ;;  %v6466_v59 = vmul.f32 %v13727_v63, %v12927_v17 }
0x2a66   :  { %12178 = vmatpush3.xpose.msk.msra.mxu1 %vm230_vm0, %v6467_v4  ;;  %12179 = vmatprep.mubr.msk.f32.mxu1 %vm12819_vm1, %v12817_v16 }
0x2a67   :  { %12187 = vmatprep.subr.mxu1 %v12817_v16 }
0x2a69   :  { %12180 = vmatmul.mubr.msk.f32.vlgmr.msra.gmra.mxu1 %vm230_vm0, %v13741_v53 }
0x2a6a   :  { %12189 = vmatprep.mubr.msk.f32.mxu1 %vm12819_vm1, %v12817_v16 }
0x2a8d   :  { %v6040_v2 = vpop.f32.mrf.mxu1 }
0x2a8e   :  { %v6041_v7 = vadd.f32 %v6040_v2, %v13799_v12 }
0x2a8f   :  { %v12151_v42 = vpop.f32.mrf.mxu1 }
0x2b21   :  { %v6205_v13 = vpop.f32.mrf.mxu1 }
0x2b22   :  { %v6209_v26 = vadd.f32 %v6205_v13, %v6041_v7 }
0x2b23   :  { %v12161_v55 = vpop.f32.mrf.mxu1 }
0x2b25   :  { %v6371_v35 = vpop.f32.mrf.mxu1 }
0x2b26   :  { %v6375_v51 = vadd.f32 %v6371_v35, %v6209_v26 }
0x2b27   :  { %v12171_v41 = vpop.f32.mrf.mxu1 }
0x2b29   :  { %v6537_v57 = vpop.f32.mrf.mxu1 }
0x2b2a   :  { %v6541_v58 = vmul.f32 0.35355338, %v6537_v57 }
0x2b2b   :  { %v12181_v0 = vpop.f32.mrf.mxu1 }
0x2b2c   :  { %v6542_v1 = vadd.f32 %v6541_v58, %v218_v61 }
0x2b2e   :  { %v6543_v3 = vsel %vm402_vm2, %v6542_v1, -inf }
0x2b2f   :  { %6544 = vmax.xlane.f32.xlu0 %v6543_v3  ;;  %v6962_v3 = vmul.f32 %v13727_v63, %v12944_v27 }
0x2bb8   :  { %v6545_v40 = vpop.xlane.xlu0 %6544 }
0x2bb9   :  { %v6546_v5 = vsub.f32 %v6542_v1, %v6545_v40  ;;  %v7044_v40 = vld [vmem:[%s13889_s22 + $0x18] sm:$0xff] }
0x2bbb   :  { %v6547_v6 = vmul.f32 1.442695, %v6546_v5 }
0x2bbd   :  { %12695 = vpow2.f32 %v6547_v6 }
0x2bca   :  { %v12696_v25 = vpop.eup %12695 }
0x2bcb   :  { %v6549_v12 = vsel %vm402_vm2, %v12696_v25, 0.0 }
0x2bcc   :  { %6550 = vadd.xlane.f32.xlu1 %v6549_v12 }
0x2bdd   :  { %6556 = vrot.lane.b32.xlu1 %v6554_v20, %s12820_s23 }
0x2c01   :  { %6456 = vmax.xlane.f32.xlu1 %v6455_v19 }
0x2c12   :  { %6798 = vrot.lane.b32.xlu1 %v6796_v22, %s12820_s23  ;;  %v7043_v22 = vld [vmem:[%s13889_s22 + $0x10] sm:$0xff] }
0x2c55   :  { %v6551_v29 = vpop.xlane.xlu1 %6550 }
0x2c56   :  { %12697 = vrcp.f32 %v6551_v29  ;;  %v7042_v29 = vld [vmem:[%s13889_s22 + $0x8] sm:$0xff] }
0x2c59   :  { %v6557_v30 = vpop.permute.xlu1 %6556 }
0x2c5a   :  { %12183 = vmatpush3.msra.mxu0 %v6557_v30  ;;  %v7041_v30 = vld [vmem:[%s13889_s22] sm:$0xff] }
0x2c5b   :  { %12192 = vmatprep.subr.mxu0 %v12817_v16 }
0x2c63   :  { %v12698_v23 = vpop.eup %12697 }
0x2c64   :  { %v6553_v33 = vmul.f32 %v12698_v23, %v12696_v25 }
0x2c66   :  { %12185 = vmatmul.mubr.msk.f32.vlgmr.msra.gmra.mxu0 %vm402_vm2, %v6553_v33 }
0x2c67   :  { %12193 = vmatpush3.xpose.msk.msra.mxu0 %vm230_vm0, %v6709_v31  ;;  %12194 = vmatprep.mubr.msk.f32.mxu0 %vm12819_vm1, %v12817_v16 }
0x2c68   :  { %12202 = vmatprep.subr.mxu0 %v12817_v16 }
0x2c6a   :  { %12195 = vmatmul.mubr.msk.f32.vlgmr.msra.gmra.mxu0 %vm230_vm0, %v13741_v53 }
0x2c6b   :  { %12203 = vmatpush3.xpose.msk.msra.mxu0 %vm230_vm0, %v6875_v34  ;;  %12204 = vmatprep.mubr.msk.f32.mxu0 %vm12819_vm1, %v12817_v16 }
0x2c6c   :  { %12212 = vmatprep.subr.mxu0 %v7044_v40 }
0x2c6e   :  { %12205 = vmatmul.mubr.msk.f32.vlgmr.msra.gmra.mxu0 %vm230_vm0, %v13741_v53 }
0x2c6f   :  { %12220 = vmatprep.mubr.msk.f32.mxu0 %vm230_vm0, %v6375_v51  ;;  %12213 = vmatpush3.msra.mxu0 %v7044_v40 }
0x2c70   :  { %12214 = vmatprep.subr.mxu0 %v7043_v22 }
0x2c71   :  { %12215 = vmatpush3.msra.mxu0 %v7043_v22  ;;  %v7276_v22 = vld [vmem:[%s13925_s13 + $0x18] sm:$0xff] }
0x2c72   :  { %12216 = vmatprep.subr.mxu0 %v7042_v29 }
0x2c73   :  { %12217 = vmatpush3.msra.mxu0 %v7042_v29  ;;  %v7275_v29 = vld [vmem:[%s13925_s13 + $0x10] sm:$0xff] }
0x2c74   :  { %12218 = vmatprep.subr.mxu0 %v7041_v30 }
0x2c75   :  { %12219 = vmatpush3.msra.mxu0 %v7041_v30  ;;  %v7274_v30 = vld [vmem:[%s13925_s13 + $0x8] sm:$0xff] }
0x2c8a   :  { %v6457_v15 = vpop.xlane.xlu1 %6456 }
0x2c8b   :  { %v6458_v36 = vsub.f32 %v6454_v10, %v6457_v15 }
0x2c8d   :  { %v6459_v38 = vmul.f32 1.442695, %v6458_v36 }
0x2c8e   :  { %v6799_v1 = vpop.permute.xlu1 %6798 }
0x2c8f   :  { %12699 = vpow2.f32 %v6459_v38 }
0x2c9c   :  { %v12700_v52 = vpop.eup %12699 }
0x2c9d   :  { %v6461_v54 = vsel %vm402_vm2, %v12700_v52, 0.0 }
0x2d26   :  { %v13867_v43 = vpop.f32.mrf.mxu0 }
0x2d28   :  { %v12186_v14 = vpop.f32.mrf.mxu0 }
0x2d29   :  { %v11260_v14 = vld [vmem:[%s13904_s30] ss:$0 sm:$0xff] }
0x2d2a   :  { %v6779_v39 = vpop.f32.mrf.mxu0 }
0x2d2b   :  { %v6783_v44 = vmul.f32 0.35355338, %v6779_v39 }
0x2d2c   :  { %v12196_v45 = vpop.f32.mrf.mxu0 }
0x2d2d   :  { %v6784_v28 = vadd.f32 %v6783_v44, %v218_v61 }
0x2d2e   :  { %v6945_v46 = vpop.f32.mrf.mxu0 }
0x2d2f   :  { %v6949_v37 = vmul.f32 0.35355338, %v6945_v46  ;;  %v6785_v32 = vsel %vm402_vm2, %v6784_v28, -inf }
0x2d30   :  { %6786 = vmax.xlane.f32.xlu0 %v6785_v32  ;;  %v12206_v47 = vpop.f32.mrf.mxu0 }
0x2d31   :  { %v6950_v53 = vadd.f32 %v6949_v37, %v218_v61 }
0x2d33   :  { %v6951_v50 = vsel %vm402_vm2, %v6950_v53, -inf }
0x2d34   :  { %6952 = vmax.xlane.f32.xlu0 %v6951_v50 }
0x2d38   :  { %6462 = vadd.xlane.f32.xlu0 %v6461_v54 }
0x2d4e   :  { %6633 = vrot.lane.b32.xlu0 %v6466_v59, %s12820_s23 }
0x2db9   :  { %v6787_v4 = vpop.xlane.xlu0 %6786 }
0x2dba   :  { %v6788_v2 = vsub.f32 %v6784_v28, %v6787_v4 }
0x2dbc   :  { %v6789_v42 = vmul.f32 1.442695, %v6788_v2 }
0x2dbd   :  { %v6953_v7 = vpop.xlane.xlu0 %6952 }
0x2dbe   :  { %12701 = vpow2.f32 %v6789_v42  ;;  %v6954_v13 = vsub.f32 %v6950_v53, %v6953_v7  ;;  %v7181_v7 = vld [vmem:[%s13916_s21 + $0x10] sm:$0xff] }
0x2dc0   :  { %v6955_v26 = vmul.f32 1.442695, %v6954_v13  ;;  %v7180_v13 = vld [vmem:[%s13916_s21 + $0x8] sm:$0xff] }
0x2dc1   :  { %v6463_v55 = vpop.xlane.xlu0 %6462 }
0x2dc2   :  { %12703 = vpow2.f32 %v6955_v26  ;;  %v7179_v26 = vld [vmem:[%s13916_s21] sm:$0xff] }
0x2dc3   :  { %12705 = vrcp.f32 %v6463_v55  ;;  %v7280_v55 = vld [vmem:[%s13925_s13 + $0x38] sm:$0xff] }
0x2dc4   :  { %12234 = vmatprep.subr.mxu0 %v7280_v55 }
0x2dc5   :  { %v6634_v35 = vpop.permute.xlu0 %6633 }
0x2dc6   :  { %12188 = vmatpush3.msra.mxu1 %v6634_v35  ;;  %v7279_v35 = vld [vmem:[%s13925_s13 + $0x30] sm:$0xff] }
0x2dc7   :  { %12197 = vmatprep.subr.mxu1 %v12817_v16 }
0x2dcb   :  { %v12702_v51 = vpop.eup %12701 }
0x2dcc   :  { %v6791_v41 = vsel %vm402_vm2, %v12702_v51, 0.0 }
0x2dcd   :  { %6792 = vadd.xlane.f32.xlu0 %v6791_v41  ;;  %v7277_v41 = vld [vmem:[%s13925_s13 + $0x20] sm:$0xff] }
0x2dcf   :  { %v12704_v57 = vpop.eup %12703 }
0x2dd0   :  { %v12706_v58 = vpop.eup %12705  ;;  %v6957_v61 = vsel %vm402_vm2, %v12704_v57, 0.0 }
0x2dd1   :  { %6958 = vadd.xlane.f32.xlu0 %v6957_v61  ;;  %v6465_v0 = vmul.f32 %v12706_v58, %v12700_v52 }
0x2dd3   :  { %12190 = vmatmul.mubr.msk.f32.vlgmr.msra.gmra.mxu1 %vm402_vm2, %v6465_v0 }
0x2dd4   :  { %12198 = vmatpush3.msra.mxu1 %v6799_v1  ;;  %12199 = vmatprep.mubr.msk.f32.mxu1 %vm12819_vm1, %v12817_v16 }
0x2dd5   :  { %12207 = vmatprep.subr.mxu1 %v12817_v16 }
0x2de7   :  { %6964 = vrot.lane.b32.xlu0 %v6962_v3, %s12820_s23 }
0x2e56   :  { %v6793_v5 = vpop.xlane.xlu0 %6792 }
0x2e57   :  { %12707 = vrcp.f32 %v6793_v5  ;;  %v11263_v5 = vld [vmem:[%s13934_s2] ss:$0 sm:$0xff] }
0x2e5a   :  { %v6959_v6 = vpop.xlane.xlu0 %6958 }
0x2e5b   :  { %12709 = vrcp.f32 %v6959_v6 }
0x2e5e   :  { %v6965_v12 = vpop.permute.xlu0 %6964 }
0x2e64   :  { %v12708_v25 = vpop.eup %12707 }
0x2e65   :  { %v6795_v63 = vmul.f32 %v12708_v25, %v12702_v51  ;;  %v7278_v51 = vld [vmem:[%s13925_s13 + $0x28] sm:$0xff] }
0x2e67   :  { %12200 = vmatmul.mubr.msk.f32.vlgmr.msra.gmra.mxu1 %vm402_vm2, %v6795_v63 }
0x2e68   :  { %v12710_v20 = vpop.eup %12709  ;;  %12208 = vmatpush3.msra.mxu1 %v6965_v12  ;;  %12209 = vmatprep.mubr.msk.f32.mxu1 %vm12819_vm1, %v12817_v16 }
0x2e69   :  { %v6961_v8 = vmul.f32 %v12710_v20, %v12704_v57  ;;  %v11264_v20 = vld [vmem:[%s13939_s8] ss:$0 sm:$0xff] }
0x2e6b   :  { %12210 = vmatmul.mubr.msk.f32.vlgmr.msra.gmra.mxu1 %vm402_vm2, %v6961_v8 }
0x2e93   :  { %v6705_v10 = vpop.f32.mrf.mxu1 }
0x2e94   :  { %v6706_v33 = vadd.f32 %v6705_v10, %v13867_v43 }
0x2e95   :  { %v12191_v19 = vpop.f32.mrf.mxu1 }
0x2f27   :  { %v6870_v23 = vpop.f32.mrf.mxu1 }
0x2f28   :  { %v6874_v34 = vadd.f32 %v6870_v23, %v6706_v33  ;;  %v7273_v23 = vld [vmem:[%s13925_s13] sm:$0xff] }
0x2f29   :  { %v12201_v31 = vpop.f32.mrf.mxu1  ;;  %v11265_v33 = vld [vmem:[%s13953_s19] ss:$0 sm:$0xff] }
0x2f2b   :  { %v7036_v15 = vpop.f32.mrf.mxu1 }
0x2f2c   :  { %v7040_v36 = vadd.f32 %v7036_v15, %v6874_v34 }
0x2f2d   :  { %v12211_v38 = vpop.f32.mrf.mxu1 }
0x2f2e   :  { %12221 = vmatmul.mubr.msk.f32.vlgmr.msra.gmra.mxu0 %vm230_vm0, %v7040_v36 }
0x2f2f   :  { %12235 = vmatpush3.msra.mxu0 %v7280_v55  ;;  %v11273_v55 = vld [vmem:[%s13403_s7 + $0x20] sm:$0xff] }
0x2f30   :  { %12236 = vmatprep.subr.mxu0 %v7279_v35 }
0x2f31   :  { %12237 = vmatpush3.msra.mxu0 %v7279_v35 }
0x2f32   :  { %12238 = vmatprep.subr.mxu0 %v7278_v51 }
0x2f33   :  { %12239 = vmatpush3.msra.mxu0 %v7278_v51 }
0x2f34   :  { %12240 = vmatprep.subr.mxu0 %v7277_v41 }
0x2f35   :  { %12241 = vmatpush3.msra.mxu0 %v7277_v41 }
0x2f36   :  { %12242 = vmatprep.subr.mxu0 %v7276_v22 }
0x2f37   :  { %12243 = vmatpush3.msra.mxu0 %v7276_v22 }
0x2f38   :  { %12244 = vmatprep.subr.mxu0 %v7275_v29 }
0x2f39   :  { %12245 = vmatpush3.msra.mxu0 %v7275_v29 }
0x2f3a   :  { %12246 = vmatprep.subr.mxu0 %v7274_v30 }
0x2f3b   :  { %12247 = vmatpush3.msra.mxu0 %v7274_v30 }
0x2f3c   :  { %12248 = vmatprep.subr.mxu0 %v7273_v23 }
0x2f3d   :  { %12249 = vmatpush3.msra.mxu0 %v7273_v23 }
0x2f3e   :  { %12274 = vmatprep.subr.mxu0 %v12817_v16 }
0x2fee   :  { %v12222_v39 = vpop.f32.mrf.mxu0 }
0x2fef   :  { %v7130_v44 = vadd.f32 %v12222_v39, %v11260_v14  ;;  %v11268_v39 = vld [vmem:[%s13963_s1] ss:$0 sm:$0xff] }
0x2ff0   :  { %v7124_v45 = vpop.f32.mrf.mxu0 }
0x2ff1   :  { %v7134_v43 = vadd.f32 %v7130_v44, %v13713_v62  ;;  %v7125_v28 = vadd.f32 %v11260_v14, %v7124_v45 }
0x2ff3   :  { %v7133_v46 = vadd.f32 %v7125_v28, %v13711_v60  ;;  %v7140_v37 = vsel %vm230_vm0, %v7134_v43, 0.0  ;;  %v7182_v60 = vld [vmem:[%s13916_s21 + $0x18] sm:$0xff] }
0x2ff4   :  { %7141 = vadd.xlane.f32.xlu0 %v7140_v37  ;;  %12223 = vmatprep.subr.mxu1 %v7182_v60 }
0x2ff5   :  { %v7137_v32 = vsel %vm230_vm0, %v7133_v46, 0.0  ;;  %12224 = vmatpush3.msra.mxu1 %v7182_v60 }
0x2ff6   :  { %7138 = vadd.xlane.f32.xlu1 %v7137_v32  ;;  %12225 = vmatprep.subr.mxu1 %v7181_v7 }
0x2ff7   :  { %12226 = vmatpush3.msra.mxu1 %v7181_v7  ;;  %v11276_v7 = vld [vmem:[%s13403_s7 + $0x38] sm:$0xff] }
0x2ff8   :  { %12227 = vmatprep.subr.mxu1 %v7180_v13 }
0x2ff9   :  { %12228 = vmatpush3.msra.mxu1 %v7180_v13  ;;  %v11275_v13 = vld [vmem:[%s13403_s7 + $0x30] sm:$0xff] }
0x2ffa   :  { %12229 = vmatprep.subr.mxu1 %v7179_v26 }
0x2ffb   :  { %12230 = vmatpush3.msra.mxu1 %v7179_v26  ;;  %v11274_v26 = vld [vmem:[%s13403_s7 + $0x28] sm:$0xff]  ;;  %s12857_s7 = smov 41  }
0x2ffc   :  { %12253 = vmatprep.subr.mxu1 %v11276_v7  ;;  %s13983_s11 = sld [smem:[%s14402_s0 + %s12857_s7]]  }
0x307d   :  { %v7142_v47 = vpop.xlane.xlu0 %7141 }
0x307e   :  { %v7144_v53 = vmul.f32 0.03125, %v7142_v47 }
0x307f   :  { %v7139_v50 = vpop.xlane.xlu1 %7138 }
0x3080   :  { %v7146_v52 = vsub.f32 %v7134_v43, %v7144_v53  ;;  %v7143_v54 = vmul.f32 0.03125, %v7139_v50 }
0x3082   :  { %v7145_v59 = vsub.f32 %v7133_v46, %v7143_v54  ;;  %v7148_v4 = vmul.f32 %v7146_v52, %v7146_v52 }
0x3084   :  { %v7152_v2 = vsel %vm230_vm0, %v7148_v4, 0.0  ;;  %v7147_v42 = vmul.f32 %v7145_v59, %v7145_v59 }
0x3085   :  { %7153 = vadd.xlane.f32.xlu1 %v7152_v2 }
0x3086   :  { %v7149_v62 = vsel %vm230_vm0, %v7147_v42, 0.0 }
0x3087   :  { %7150 = vadd.xlane.f32.xlu0 %v7149_v62 }
0x310e   :  { %v7154_v57 = vpop.xlane.xlu1 %7153 }
0x310f   :  { %v7156_v58 = vmul.f32 0.03125, %v7154_v57 }
0x3110   :  { %v7151_v61 = vpop.xlane.xlu0 %7150 }
0x3111   :  { %v7158_v0 = vadd.f32 1e-05, %v7156_v58  ;;  %v7155_v1 = vmul.f32 0.03125, %v7151_v61 }
0x3113   :  { %12711 = vrsqrt.f32 %v7158_v0  ;;  %v7157_v3 = vadd.f32 1e-05, %v7155_v1  ;;  %v11271_v1 = vld [vmem:[%s13978_s4] ss:$0 sm:$0xff] }
0x3115   :  { %12713 = vrsqrt.f32 %v7157_v3 }
0x3120   :  { %v12712_v40 = vpop.eup %12711 }
0x3121   :  { %v7162_v6 = vmul.f32 %v12712_v40, %v7146_v52 }
0x3122   :  { %v12714_v25 = vpop.eup %12713 }
0x3123   :  { %v7161_v63 = vmul.f32 %v12714_v25, %v7145_v59  ;;  %v7170_v12 = vmul.f32 %v11263_v5, %v7162_v6  ;;  %v11272_v25 = vld [vmem:[%s13983_s11] ss:$0 sm:$0xff] }
0x3125   :  { %v7169_v8 = vmul.f32 %v11263_v5, %v7161_v63  ;;  %v7178_v19 = vadd.f32 %v11264_v20, %v7170_v12 }
0x3127   :  { %v7177_v10 = vadd.f32 %v11264_v20, %v7169_v8  ;;  %v11278_v8 = vld [vmem:[%s13449_s12 + $0x1] ss:$0 sm:$0xff] }
0x3129   :  { %12231 = vmatprep.mubr.msk.f32.mxu1 %vm230_vm0, %v7177_v10 }
0x312a   :  { %12232 = vmatmul.mubr.msk.f32.vlgmr.msra.gmra.mxu1 %vm230_vm0, %v7178_v19 }
0x312b   :  { %12254 = vmatpush3.msra.mxu1 %v11276_v7 }
0x312c   :  { %12255 = vmatprep.subr.mxu1 %v11275_v13 }
0x312d   :  { %12256 = vmatpush3.msra.mxu1 %v11275_v13 }
0x312e   :  { %12257 = vmatprep.subr.mxu1 %v11274_v26 }
0x312f   :  { %12258 = vmatpush3.msra.mxu1 %v11274_v26 }
0x3130   :  { %12259 = vmatprep.subr.mxu1 %v11273_v55 }
0x3131   :  { %12260 = vmatpush3.msra.mxu1 %v11273_v55 }
0x3132   :  { %12264 = vmatprep.subr.mxu1 %v12817_v16 }
0x31ea   :  { %v12233_v31 = vpop.f32.mrf.mxu1 }
0x31eb   :  { %v7268_v34 = vadd.f32 %v12233_v31, %v11265_v33 }
0x31ec   :  { %v7262_v15 = vpop.f32.mrf.mxu1 }
0x31ed   :  { %v7263_v36 = vadd.f32 %v11265_v33, %v7262_v15  ;;  %v7272_v14 = vmax.f32 %v7268_v34, 0.0 }
0x31ef   :  { %v7271_v38 = vmax.f32 %v7263_v36, 0.0 }
0x31f1   :  { %12250 = vmatprep.mubr.msk.f32.mxu0 %vm1955_vm3, %v7271_v38 }
0x31f2   :  { %12251 = vmatmul.mubr.msk.f32.vlgmr.msra.gmra.mxu0 %vm1955_vm3, %v7272_v14 }
0x31f3   :  { %12276 = vmatprep.mubr.msk.f32.mxu0 %vm12819_vm1, %v12817_v16 }
0x32b2   :  { %v12252_v44 = vpop.f32.mrf.mxu0 }
0x32b3   :  { %v7366_v45 = vadd.f32 %v12252_v44, %v11268_v39 }
0x32b4   :  { %v7360_v43 = vpop.f32.mrf.mxu0 }
0x32b5   :  { %v7370_v28 = vadd.f32 %v7366_v45, %v7178_v19  ;;  %v7361_v46 = vadd.f32 %v11268_v39, %v7360_v43  ;;  %v12805_v39 = vld [vmem:[%s13482_s14] sm:$0xff] }
0x32b7   :  { %v7369_v37 = vadd.f32 %v7361_v46, %v7177_v10  ;;  %v7376_v32 = vsel %vm230_vm0, %v7370_v28, 0.0 }
0x32b8   :  { %7377 = vadd.xlane.f32.xlu1 %v7376_v32 }
0x32b9   :  { %v7373_v47 = vsel %vm230_vm0, %v7369_v37, 0.0 }
0x32ba   :  { %7374 = vadd.xlane.f32.xlu0 %v7373_v47 }
0x3341   :  { %v7378_v53 = vpop.xlane.xlu1 %7377 }
0x3342   :  { %v7380_v50 = vmul.f32 0.03125, %v7378_v53 }
0x3343   :  { %v7375_v52 = vpop.xlane.xlu0 %7374 }
0x3344   :  { %v7382_v54 = vsub.f32 %v7370_v28, %v7380_v50  ;;  %v7379_v59 = vmul.f32 0.03125, %v7375_v52 }
0x3346   :  { %v7381_v4 = vsub.f32 %v7369_v37, %v7379_v59  ;;  %v7384_v2 = vmul.f32 %v7382_v54, %v7382_v54 }
0x3348   :  { %v7388_v42 = vsel %vm230_vm0, %v7384_v2, 0.0  ;;  %v7383_v62 = vmul.f32 %v7381_v4, %v7381_v4 }
0x3349   :  { %7389 = vadd.xlane.f32.xlu1 %v7388_v42 }
0x334a   :  { %v7385_v60 = vsel %vm230_vm0, %v7383_v62, 0.0 }
0x334b   :  { %7386 = vadd.xlane.f32.xlu0 %v7385_v60 }
0x33d2   :  { %v7390_v35 = vpop.xlane.xlu1 %7389 }
0x33d3   :  { %v7392_v51 = vmul.f32 0.03125, %v7390_v35 }
0x33d4   :  { %v7387_v41 = vpop.xlane.xlu0 %7386 }
0x33d5   :  { %v7394_v57 = vadd.f32 1e-05, %v7392_v51  ;;  %v7391_v58 = vmul.f32 0.03125, %v7387_v41 }
0x33d7   :  { %12715 = vrsqrt.f32 %v7394_v57  ;;  %v7393_v61 = vadd.f32 1e-05, %v7391_v58 }
0x33d9   :  { %12717 = vrsqrt.f32 %v7393_v61 }
0x33e4   :  { %v12716_v0 = vpop.eup %12715 }
0x33e5   :  { %v7398_v3 = vmul.f32 %v12716_v0, %v7382_v54 }
0x33e6   :  { %v12718_v40 = vpop.eup %12717 }
0x33e7   :  { %v7397_v5 = vmul.f32 %v12718_v40, %v7381_v4  ;;  %v7406_v6 = vmul.f32 %v11271_v1, %v7398_v3 }
0x33e9   :  { %v7405_v63 = vmul.f32 %v11271_v1, %v7397_v5  ;;  %v13989_v20 = vadd.f32 %v11272_v25, %v7406_v6 }
0x33eb   :  { %v13987_v12 = vadd.f32 %v11272_v25, %v7405_v63 }
0x33ed   :  { %12261 = vmatprep.mubr.msk.f32.mxu1 %vm230_vm0, %v13987_v12 }
0x33ee   :  { %12262 = vmatmul.mubr.msk.f32.vlgmr.msra.gmra.mxu1 %vm230_vm0, %v13989_v20 }
0x33ef   :  { %12266 = vmatprep.mubr.msk.f32.mxu1 %vm12819_vm1, %v12817_v16 }
0x34ae   :  { %v12263_v10 = vpop.f32.mrf.mxu1 }
0x34af   :  { %v13998_v19 = vadd.f32 %v12263_v10, %v11278_v8 }
0x34b0   :  { %v7500_v22 = vpop.f32.mrf.mxu1 }
0x34b1   :  { %v14000_v29 = vadd.f32 %v11278_v8, %v7500_v22 }
0x34b3   :  { %v7602_v30 = vmul.f32 %v14000_v29, %v12936_v24  ;;  %v7509_v23 = vmul.f32 %v14000_v29, %v12927_v17  ;;  %v7846_v43 = vmul.f32 %v14000_v29, %v12932_v21  ;;  %v8014_v28 = vmul.f32 %v14000_v29, %v12944_v27 }
0x34b4   :  { %v7691_v50 = vmul.f32 %v14000_v29, %v13000_v56  ;;  %v7601_v8 = vmul.f32 %v14000_v29, %v13008_v9 }
0x34b5   :  { %7604 = vrot.lane.b32.xlu1 %v7602_v30, %s12820_s23  ;;  %7511 = vrot.lane.b32.xlu0 %v7509_v23, %s12820_s23 }
0x3527   :  { %v7512_v33 = vpop.permute.xlu0 %7511  ;;  %v7605_v31 = vpop.permute.xlu1 %7604 }
0x3528   :  { %12265 = vmatpush3.xpose.msk.msra.mxu1 %vm230_vm0, %v7512_v33 }
0x3529   :  { %12269 = vmatprep.subr.mxu1 %v12817_v16 }
0x352b   :  { %12267 = vmatmul.mubr.msk.f32.vlgmr.msra.gmra.mxu1 %vm230_vm0, %v14000_v29 }
0x352c   :  { %12270 = vmatpush3.xpose.msk.msra.mxu1 %vm230_vm0, %v7605_v31  ;;  %12271 = vmatprep.mubr.msk.f32.mxu1 %vm12819_vm1, %v12817_v16 }
0x352d   :  { %12279 = vmatprep.subr.mxu1 %v12817_v16 }
0x352f   :  { %12272 = vmatmul.mubr.msk.f32.vlgmr.msra.gmra.mxu1 %vm230_vm0, %v14000_v29 }
0x3530   :  { %12281 = vmatprep.mubr.msk.f32.mxu1 %vm12819_vm1, %v12817_v16 }
0x35eb   :  { %v7584_v34 = vpop.f32.mrf.mxu1 }
0x35ec   :  { %v7588_v52 = vmul.f32 0.35355338, %v7584_v34 }
0x35ed   :  { %v12268_v15 = vpop.f32.mrf.mxu1 }
0x35ee   :  { %v7589_v54 = vadd.f32 %v12805_v39, %v7588_v52 }
0x35ef   :  { %v7674_v36 = vpop.f32.mrf.mxu1 }
0x35f0   :  { %v7678_v38 = vmul.f32 0.35355338, %v7674_v36  ;;  %v7590_v59 = vsel %vm402_vm2, %v7589_v54, -inf }
0x35f1   :  { %v12273_v14 = vpop.f32.mrf.mxu1 }
0x35f2   :  { %v7679_v44 = vadd.f32 %v12805_v39, %v7678_v38 }
0x35f4   :  { %v7680_v45 = vsel %vm402_vm2, %v7679_v44, -inf }
0x35f5   :  { %7681 = vmax.xlane.f32.xlu1 %v7680_v45 }
0x3606   :  { %7848 = vrot.lane.b32.xlu1 %v7846_v43, %s12820_s23  ;;  %v8103_v43 = vmul.f32 %v14000_v29, %v13017_v18 }
0x360a   :  { %8016 = vrot.lane.b32.xlu1 %v8014_v28, %s12820_s23  ;;  %v8275_v28 = vmul.f32 %v13998_v19, %v12936_v24 }
0x367e   :  { %v7682_v46 = vpop.xlane.xlu1 %7681 }
0x367f   :  { %v7683_v37 = vsub.f32 %v7679_v44, %v7682_v46  ;;  %v8364_v46 = vmul.f32 %v13998_v19, %v13000_v56 }
0x3681   :  { %v7684_v32 = vmul.f32 1.442695, %v7683_v37  ;;  %v7935_v37 = vmul.f32 %v14000_v29, %v13013_v11 }
0x3682   :  { %v7849_v62 = vpop.permute.xlu1 %7848 }
0x3683   :  { %12719 = vpow2.f32 %v7684_v32 }
0x3686   :  { %v8017_v7 = vpop.permute.xlu1 %8016 }
0x3690   :  { %v12720_v47 = vpop.eup %12719 }
0x3691   :  { %v7686_v53 = vsel %vm402_vm2, %v12720_v47, 0.0 }
0x3692   :  { %7687 = vadd.xlane.f32.xlu0 %v7686_v53 }
0x36a8   :  { %7693 = vrot.lane.b32.xlu0 %v7691_v50, %s12822_s28 }
0x36c7   :  { %7591 = vmax.xlane.f32.xlu0 %v7590_v59 }
0x371b   :  { %v7688_v4 = vpop.xlane.xlu0 %7687 }
0x371c   :  { %12721 = vrcp.f32 %v7688_v4 }
0x371f   :  { %v7694_v2 = vpop.permute.xlu0 %7693 }
0x3720   :  { %12275 = vmatpush3.msra.mxu0 %v7694_v2 }
0x3721   :  { %12284 = vmatprep.subr.mxu0 %v12817_v16 }
0x3729   :  { %v12722_v42 = vpop.eup %12721 }
0x372a   :  { %v7690_v60 = vmul.f32 %v12722_v42, %v12720_v47 }
0x372c   :  { %12277 = vmatmul.mubr.msk.f32.vlgmr.msra.gmra.mxu0 %vm402_vm2, %v7690_v60 }
0x372d   :  { %12285 = vmatpush3.xpose.msk.msra.mxu0 %vm230_vm0, %v7849_v62  ;;  %12286 = vmatprep.mubr.msk.f32.mxu0 %vm12819_vm1, %v12817_v16 }
0x372e   :  { %12294 = vmatprep.subr.mxu0 %v12817_v16 }
0x3730   :  { %12287 = vmatmul.mubr.msk.f32.vlgmr.msra.gmra.mxu0 %vm230_vm0, %v14000_v29 }
0x3731   :  { %12295 = vmatpush3.xpose.msk.msra.mxu0 %vm230_vm0, %v8017_v7  ;;  %12296 = vmatprep.mubr.msk.f32.mxu0 %vm12819_vm1, %v12817_v16 }
0x3732   :  { %12304 = vmatprep.subr.mxu0 %v12817_v16 }
0x3734   :  { %12297 = vmatmul.mubr.msk.f32.vlgmr.msra.gmra.mxu0 %vm230_vm0, %v14000_v29 }
0x3735   :  { %12306 = vmatprep.mubr.msk.f32.mxu0 %vm12819_vm1, %v12817_v16 }
0x3750   :  { %v7592_v13 = vpop.xlane.xlu0 %7591 }
0x3751   :  { %v7593_v26 = vsub.f32 %v7589_v54, %v7592_v13 }
0x3753   :  { %v7594_v55 = vmul.f32 1.442695, %v7593_v26 }
0x3755   :  { %12723 = vpow2.f32 %v7594_v55 }
0x3762   :  { %v12724_v25 = vpop.eup %12723 }
0x3763   :  { %v7596_v63 = vsel %vm402_vm2, %v12724_v25, 0.0 }
0x37ec   :  { %v14049_v35 = vpop.f32.mrf.mxu0 }
0x37ee   :  { %v12278_v51 = vpop.f32.mrf.mxu0 }
0x37f0   :  { %v7918_v41 = vpop.f32.mrf.mxu0 }
0x37f1   :  { %v7922_v57 = vmul.f32 0.35355338, %v7918_v41 }
0x37f2   :  { %v12288_v58 = vpop.f32.mrf.mxu0 }
0x37f3   :  { %v7923_v61 = vadd.f32 %v12805_v39, %v7922_v57  ;;  %v12806_v58 = vld [vmem:[%s13482_s14 + $0x8] sm:$0xff]  ;;  %s12859_s14 = smov 42  }
0x37f4   :  { %v8086_v0 = vpop.f32.mrf.mxu0 }
0x37f5   :  { %v8090_v1 = vmul.f32 0.35355338, %v8086_v0  ;;  %v7924_v3 = vsel %vm402_vm2, %v7923_v61, -inf }
0x37f6   :  { %7925 = vmax.xlane.f32.xlu1 %v7924_v3  ;;  %v12298_v40 = vpop.f32.mrf.mxu0 }
0x37f7   :  { %v8091_v5 = vadd.f32 %v12805_v39, %v8090_v1  ;;  %v8182_v1 = vmul.f32 %v13998_v19, %v12927_v17 }
0x37f9   :  { %v8092_v6 = vsel %vm402_vm2, %v8091_v5, -inf }
0x37fa   :  { %8093 = vmax.xlane.f32.xlu0 %v8092_v6 }
0x37fe   :  { %7597 = vadd.xlane.f32.xlu0 %v7596_v63 }
0x3807   :  { %7770 = vrot.lane.b32.xlu1 %v7601_v8, %s12822_s28 }
0x387f   :  { %v7926_v10 = vpop.xlane.xlu1 %7925 }
0x3880   :  { %v7927_v22 = vsub.f32 %v7923_v61, %v7926_v10  ;;  %v8687_v10 = vmul.f32 %v13998_v19, %v12944_v27 }
0x3882   :  { %v7928_v30 = vmul.f32 1.442695, %v7927_v22 }
0x3883   :  { %v8094_v23 = vpop.xlane.xlu0 %8093  ;;  %v7771_v33 = vpop.permute.xlu1 %7770 }
0x3884   :  { %12725 = vpow2.f32 %v7928_v30  ;;  %v8095_v31 = vsub.f32 %v8091_v5, %v8094_v23  ;;  %12280 = vmatpush3.msra.mxu1 %v7771_v33 }
0x3885   :  { %12289 = vmatprep.subr.mxu1 %v12817_v16 }
0x3886   :  { %v8096_v34 = vmul.f32 1.442695, %v8095_v31 }
0x3887   :  { %v7598_v15 = vpop.xlane.xlu0 %7597 }
0x3888   :  { %12727 = vpow2.f32 %v8096_v34 }
0x3889   :  { %12729 = vrcp.f32 %v7598_v15 }
0x3891   :  { %v12726_v36 = vpop.eup %12725 }
0x3892   :  { %v7930_v38 = vsel %vm402_vm2, %v12726_v36, 0.0 }
0x3893   :  { %7931 = vadd.xlane.f32.xlu1 %v7930_v38 }
0x3895   :  { %v12728_v14 = vpop.eup %12727 }
0x3896   :  { %v12730_v39 = vpop.eup %12729  ;;  %v8098_v44 = vsel %vm402_vm2, %v12728_v14, 0.0 }
0x3897   :  { %8099 = vadd.xlane.f32.xlu0 %v8098_v44  ;;  %v7600_v45 = vmul.f32 %v12730_v39, %v12724_v25 }
0x3899   :  { %12282 = vmatmul.mubr.msk.f32.vlgmr.msra.gmra.mxu1 %vm402_vm2, %v7600_v45 }
0x389a   :  { %12291 = vmatprep.mubr.msk.f32.mxu1 %vm12819_vm1, %v12817_v16 }
0x38a4   :  { %8105 = vrot.lane.b32.xlu1 %v8103_v43, %s12822_s28 }
0x38a8   :  { %8277 = vrot.lane.b32.xlu1 %v8275_v28, %s12820_s23 }
0x38ac   :  { %8366 = vrot.lane.b32.xlu1 %v8364_v46, %s12822_s28 }
0x38ad   :  { %7937 = vrot.lane.b32.xlu0 %v7935_v37, %s12822_s28 }
0x391c   :  { %v7932_v32 = vpop.xlane.xlu1 %7931 }
0x391d   :  { %12731 = vrcp.f32 %v7932_v32 }
0x3920   :  { %v8100_v47 = vpop.xlane.xlu0 %8099  ;;  %v8106_v52 = vpop.permute.xlu1 %8105 }
0x3921   :  { %12733 = vrcp.f32 %v8100_v47 }
0x3924   :  { %v7938_v53 = vpop.permute.xlu0 %7937  ;;  %v8278_v59 = vpop.permute.xlu1 %8277 }
0x3925   :  { %12290 = vmatpush3.msra.mxu1 %v7938_v53 }
0x3926   :  { %12299 = vmatprep.subr.mxu1 %v12817_v16 }
0x3928   :  { %v8367_v25 = vpop.permute.xlu1 %8366 }
0x392a   :  { %v12732_v50 = vpop.eup %12731 }
0x392b   :  { %v7934_v54 = vmul.f32 %v12732_v50, %v12726_v36 }
0x392d   :  { %12292 = vmatmul.mubr.msk.f32.vlgmr.msra.gmra.mxu1 %vm402_vm2, %v7934_v54 }
0x392e   :  { %v12734_v56 = vpop.eup %12733  ;;  %12300 = vmatpush3.msra.mxu1 %v8106_v52  ;;  %12301 = vmatprep.mubr.msk.f32.mxu1 %vm12819_vm1, %v12817_v16 }
0x392f   :  { %12309 = vmatprep.subr.mxu1 %v12817_v16  ;;  %v8102_v29 = vmul.f32 %v12734_v56, %v12728_v14 }
0x3931   :  { %12302 = vmatmul.mubr.msk.f32.vlgmr.msra.gmra.mxu1 %vm402_vm2, %v8102_v29 }
0x3932   :  { %12310 = vmatpush3.xpose.msk.msra.mxu1 %vm230_vm0, %v8278_v59  ;;  %12311 = vmatprep.mubr.msk.f32.mxu1 %vm12819_vm1, %v12817_v16 }
0x3933   :  { %12319 = vmatprep.subr.mxu1 %v12817_v16 }
0x3935   :  { %12312 = vmatmul.mubr.msk.f32.vlgmr.msra.gmra.mxu1 %vm230_vm0, %v13998_v19 }
0x3936   :  { %12321 = vmatprep.mubr.msk.f32.mxu1 %vm12819_vm1, %v12817_v16 }
0x3959   :  { %v7842_v4 = vpop.f32.mrf.mxu1 }
0x395a   :  { %v7843_v42 = vadd.f32 %v7842_v4, %v14049_v35  ;;  %v8519_v35 = vmul.f32 %v13998_v19, %v12932_v21 }
0x395b   :  { %v12283_v2 = vpop.f32.mrf.mxu1 }
0x395c   :  { %v8274_v2 = vmul.f32 %v13998_v19, %v13008_v9 }
0x39ed   :  { %v8009_v62 = vpop.f32.mrf.mxu1 }
0x39ee   :  { %v8013_v60 = vadd.f32 %v8009_v62, %v7843_v42 }
0x39ef   :  { %v12293_v7 = vpop.f32.mrf.mxu1 }
0x39f1   :  { %v8177_v13 = vpop.f32.mrf.mxu1 }
0x39f2   :  { %v8181_v26 = vadd.f32 %v8177_v13, %v8013_v60 }
0x39f3   :  { %v12303_v55 = vpop.f32.mrf.mxu1 }
0x39f5   :  { %v8347_v51 = vpop.f32.mrf.mxu1 }
0x39f6   :  { %v8351_v41 = vmul.f32 0.35355338, %v8347_v51 }
0x39f7   :  { %v12313_v57 = vpop.f32.mrf.mxu1 }
0x39f8   :  { %v8352_v61 = vadd.f32 %v12806_v58, %v8351_v41 }
0x39fa   :  { %v8353_v0 = vsel %vm402_vm2, %v8352_v61, -inf }
0x39fb   :  { %8354 = vmax.xlane.f32.xlu0 %v8353_v0 }
0x3a11   :  { %8184 = vrot.lane.b32.xlu0 %v8182_v1, %s12820_s23  ;;  %v8776_v1 = vmul.f32 %v13998_v19, %v13017_v18 }
0x3a15   :  { %8521 = vrot.lane.b32.xlu0 %v8519_v35, %s12820_s23  ;;  %v8608_v35 = vmul.f32 %v13998_v19, %v13013_v11 }
0x3a84   :  { %v8355_v3 = vpop.xlane.xlu0 %8354 }
0x3a85   :  { %v8356_v40 = vsub.f32 %v8352_v61, %v8355_v3  ;;  %v11308_v3 = vld [vmem:[%s13632_s20 + $0x38] sm:$0xff] }
0x3a87   :  { %v8357_v5 = vmul.f32 1.442695, %v8356_v40 }
0x3a88   :  { %v8185_v6 = vpop.permute.xlu0 %8184 }
0x3a89   :  { %12735 = vpow2.f32 %v8357_v5  ;;  %12305 = vmatpush3.xpose.msk.msra.mxu0 %vm230_vm0, %v8185_v6 }
0x3a8a   :  { %12314 = vmatprep.subr.mxu0 %v12817_v16 }
0x3a8c   :  { %12307 = vmatmul.mubr.msk.f32.vlgmr.msra.gmra.mxu0 %vm230_vm0, %v13998_v19  ;;  %v8522_v33 = vpop.permute.xlu0 %8521 }
0x3a8d   :  { %12315 = vmatpush3.msra.mxu0 %v8367_v25  ;;  %12316 = vmatprep.mubr.msk.f32.mxu0 %vm12819_vm1, %v12817_v16 }
0x3a8e   :  { %12324 = vmatprep.subr.mxu0 %v12817_v16 }
0x3a96   :  { %v12736_v63 = vpop.eup %12735 }
0x3a97   :  { %v8359_v8 = vsel %vm402_vm2, %v12736_v63, 0.0 }
0x3a98   :  { %8360 = vadd.xlane.f32.xlu1 %v8359_v8 }
0x3aa9   :  { %8689 = vrot.lane.b32.xlu1 %v8687_v10, %s12820_s23 }
0x3b21   :  { %v8361_v22 = vpop.xlane.xlu1 %8360 }
0x3b22   :  { %12737 = vrcp.f32 %v8361_v22  ;;  %v11307_v22 = vld [vmem:[%s13632_s20 + $0x30] sm:$0xff] }
0x3b25   :  { %v8690_v31 = vpop.permute.xlu1 %8689 }
0x3b2f   :  { %v12738_v30 = vpop.eup %12737 }
0x3b30   :  { %v8363_v23 = vmul.f32 %v12738_v30, %v12736_v63  ;;  %v11306_v30 = vld [vmem:[%s13632_s20 + $0x28] sm:$0xff] }
0x3b32   :  { %12317 = vmatmul.mubr.msk.f32.vlgmr.msra.gmra.mxu0 %vm402_vm2, %v8363_v23  ;;  %v11305_v23 = vld [vmem:[%s13632_s20 + $0x20] sm:$0xff] }
0x3b33   :  { %12325 = vmatpush3.xpose.msk.msra.mxu0 %vm230_vm0, %v8522_v33  ;;  %12326 = vmatprep.mubr.msk.f32.mxu0 %vm12819_vm1, %v12817_v16  ;;  %v11328_v33 = vld [vmem:[%s13659_s26 + $0x38] sm:$0xff] }
0x3b34   :  { %12334 = vmatprep.subr.mxu0 %v12817_v16 }
0x3b36   :  { %12327 = vmatmul.mubr.msk.f32.vlgmr.msra.gmra.mxu0 %vm230_vm0, %v13998_v19 }
0x3b37   :  { %12335 = vmatpush3.xpose.msk.msra.mxu0 %vm230_vm0, %v8690_v31  ;;  %12336 = vmatprep.mubr.msk.f32.mxu0 %vm12819_vm1, %v12817_v16 }
0x3b38   :  { %12344 = vmatprep.subr.mxu0 %v11308_v3 }
0x3b3a   :  { %12337 = vmatmul.mubr.msk.f32.vlgmr.msra.gmra.mxu0 %vm230_vm0, %v13998_v19 }
0x3b3b   :  { %12352 = vmatprep.mubr.msk.f32.mxu0 %vm230_vm0, %v8181_v26  ;;  %12345 = vmatpush3.msra.mxu0 %v11308_v3 }
0x3b3c   :  { %12346 = vmatprep.subr.mxu0 %v11307_v22 }
0x3b3d   :  { %12347 = vmatpush3.msra.mxu0 %v11307_v22 }
0x3b3e   :  { %12348 = vmatprep.subr.mxu0 %v11306_v30 }
0x3b3f   :  { %12349 = vmatpush3.msra.mxu0 %v11306_v30  ;;  %v11322_v30 = vld [vmem:[%s13738_s9 + $0x1] ss:$0 sm:$0xff]  ;;  %s12861_s9 = smov 45  }
0x3b40   :  { %12350 = vmatprep.subr.mxu0 %v11305_v23 }
0x3b41   :  { %12351 = vmatpush3.msra.mxu0 %v11305_v23 }
0x3b42   :  { %12366 = vmatprep.subr.mxu0 %v11328_v33 }
0x3b4c   :  { %v8257_v34 = vpop.f32.mrf.mxu0 }
0x3b4d   :  { %v8261_v15 = vmul.f32 0.35355338, %v8257_v34 }
0x3b4e   :  { %v12308_v36 = vpop.f32.mrf.mxu0 }
0x3b4f   :  { %v8262_v38 = vadd.f32 %v12806_v58, %v8261_v15 }
0x3b51   :  { %v8263_v14 = vsel %vm402_vm2, %v8262_v38, -inf }
0x3b52   :  { %8264 = vmax.xlane.f32.xlu0 %v8263_v14 }
0x3bdb   :  { %v8265_v39 = vpop.xlane.xlu0 %8264 }
0x3bdc   :  { %v8266_v44 = vsub.f32 %v8262_v38, %v8265_v39 }
0x3bde   :  { %v8267_v45 = vmul.f32 1.442695, %v8266_v44  ;;  %v11327_v44 = vld [vmem:[%s13659_s26 + $0x30] sm:$0xff] }
0x3be0   :  { %12739 = vpow2.f32 %v8267_v45  ;;  %v11326_v45 = vld [vmem:[%s13659_s26 + $0x28] sm:$0xff] }
0x3bed   :  { %v12740_v59 = vpop.eup %12739 }
0x3bee   :  { %v8269_v4 = vsel %vm402_vm2, %v12740_v59, 0.0 }
0x3bf2   :  { %v14123_v43 = vpop.f32.mrf.mxu0 }
0x3bf4   :  { %v12318_v28 = vpop.f32.mrf.mxu0 }
0x3bf5   :  { %v11325_v28 = vld [vmem:[%s13659_s26 + $0x20] sm:$0xff]  ;;  %s11076_s26 = sld [smem:[%s14402_s0 + %s12859_s14]]  }
0x3bf6   :  { %v8591_v46 = vpop.f32.mrf.mxu0 }
0x3bf7   :  { %v8595_v37 = vmul.f32 0.35355338, %v8591_v46 }
0x3bf8   :  { %v12328_v32 = vpop.f32.mrf.mxu0 }
0x3bf9   :  { %v8596_v47 = vadd.f32 %v12806_v58, %v8595_v37 }
0x3bfa   :  { %v8759_v53 = vpop.f32.mrf.mxu0 }
0x3bfb   :  { %v8763_v50 = vmul.f32 0.35355338, %v8759_v53  ;;  %v8597_v52 = vsel %vm402_vm2, %v8596_v47, -inf }
0x3bfc   :  { %8598 = vmax.xlane.f32.xlu1 %v8597_v52  ;;  %v12338_v54 = vpop.f32.mrf.mxu0  ;;  %v11330_v52 = vld [vmem:[%s13724_s5 + $0x1] ss:$0 sm:$0xff] }
0x3bfd   :  { %v8764_v56 = vadd.f32 %v12806_v58, %v8763_v50 }
0x3bff   :  { %v8765_v29 = vsel %vm402_vm2, %v8764_v56, -inf }
0x3c00   :  { %8766 = vmax.xlane.f32.xlu0 %v8765_v29 }
0x3c04   :  { %8270 = vadd.xlane.f32.xlu0 %v8269_v4 }
0x3c0d   :  { %8443 = vrot.lane.b32.xlu1 %v8274_v2, %s12822_s28 }
0x3c85   :  { %v8599_v42 = vpop.xlane.xlu1 %8598 }
0x3c86   :  { %v8600_v62 = vsub.f32 %v8596_v47, %v8599_v42 }
0x3c88   :  { %v8601_v60 = vmul.f32 1.442695, %v8600_v62 }
0x3c89   :  { %v8444_v7 = vpop.permute.xlu1 %8443  ;;  %v8767_v13 = vpop.xlane.xlu0 %8766 }
0x3c8a   :  { %12741 = vpow2.f32 %v8601_v60  ;;  %v8768_v26 = vsub.f32 %v8764_v56, %v8767_v13  ;;  %12320 = vmatpush3.msra.mxu1 %v8444_v7  ;;  %v11320_v13 = vld [vmem:[%s13681_s10 + $0x38] sm:$0xff] }
0x3c8b   :  { %12329 = vmatprep.subr.mxu1 %v12817_v16 }
0x3c8c   :  { %v8769_v55 = vmul.f32 1.442695, %v8768_v26  ;;  %v11319_v26 = vld [vmem:[%s13681_s10 + $0x30] sm:$0xff] }
0x3c8d   :  { %v8271_v51 = vpop.xlane.xlu0 %8270 }
0x3c8e   :  { %12743 = vpow2.f32 %v8769_v55  ;;  %v11318_v55 = vld [vmem:[%s13681_s10 + $0x28] sm:$0xff] }
0x3c8f   :  { %12745 = vrcp.f32 %v8271_v51  ;;  %v11317_v51 = vld [vmem:[%s13681_s10 + $0x20] sm:$0xff]  ;;  %s12860_s10 = smov 43  }
0x3c90   :  { %s11077_s5 = sld [smem:[%s14402_s0 + %s12860_s10]]  }
0x3c97   :  { %v12742_v41 = vpop.eup %12741 }
0x3c98   :  { %v8603_v9 = vsel %vm402_vm2, %v12742_v41, 0.0 }
0x3c99   :  { %8604 = vadd.xlane.f32.xlu1 %v8603_v9 }
0x3c9b   :  { %v12744_v57 = vpop.eup %12743 }
0x3c9c   :  { %v12746_v58 = vpop.eup %12745  ;;  %v8771_v61 = vsel %vm402_vm2, %v12744_v57, 0.0 }
0x3c9d   :  { %8772 = vadd.xlane.f32.xlu0 %v8771_v61  ;;  %v8273_v0 = vmul.f32 %v12746_v58, %v12740_v59 }
0x3c9f   :  { %12322 = vmatmul.mubr.msk.f32.vlgmr.msra.gmra.mxu1 %vm402_vm2, %v8273_v0 }
0x3ca0   :  { %12331 = vmatprep.mubr.msk.f32.mxu1 %vm12819_vm1, %v12817_v16 }
0x3caa   :  { %8778 = vrot.lane.b32.xlu1 %v8776_v1, %s12822_s28 }
0x3cb3   :  { %8610 = vrot.lane.b32.xlu0 %v8608_v35, %s12822_s28  ;;  %v11315_v35 = vld [vmem:[%s13701_s24 + $0x1] ss:$0 sm:$0xff] }
0x3d22   :  { %v8605_v40 = vpop.xlane.xlu1 %8604 }
0x3d23   :  { %12747 = vrcp.f32 %v8605_v40 }
0x3d26   :  { %v8773_v5 = vpop.xlane.xlu0 %8772  ;;  %v8779_v63 = vpop.permute.xlu1 %8778 }
0x3d27   :  { %12749 = vrcp.f32 %v8773_v5 }
0x3d2a   :  { %v8611_v6 = vpop.permute.xlu0 %8610 }
0x3d2b   :  { %12330 = vmatpush3.msra.mxu1 %v8611_v6 }
0x3d2c   :  { %12339 = vmatprep.subr.mxu1 %v12817_v16 }
0x3d30   :  { %v12748_v18 = vpop.eup %12747 }
0x3d31   :  { %v8607_v25 = vmul.f32 %v12748_v18, %v12742_v41 }
0x3d33   :  { %12332 = vmatmul.mubr.msk.f32.vlgmr.msra.gmra.mxu1 %vm402_vm2, %v8607_v25 }
0x3d34   :  { %v12750_v11 = vpop.eup %12749  ;;  %12340 = vmatpush3.msra.mxu1 %v8779_v63  ;;  %12341 = vmatprep.mubr.msk.f32.mxu1 %vm12819_vm1, %v12817_v16  ;;  %v11316_v63 = vld [vmem:[%s13706_s25 + $0x1] ss:$0 sm:$0xff] }
0x3d35   :  { %v8775_v19 = vmul.f32 %v12750_v11, %v12744_v57  ;;  %12355 = vmatprep.subr.mxu1 %v11320_v13 }
0x3d37   :  { %12342 = vmatmul.mubr.msk.f32.vlgmr.msra.gmra.mxu1 %vm402_vm2, %v8775_v19 }
0x3d38   :  { %12356 = vmatpush3.msra.mxu1 %v11320_v13 }
0x3d39   :  { %12357 = vmatprep.subr.mxu1 %v11319_v26 }
0x3d3a   :  { %12358 = vmatpush3.msra.mxu1 %v11319_v26 }
0x3d3b   :  { %12359 = vmatprep.subr.mxu1 %v11318_v55 }
0x3d3c   :  { %12360 = vmatpush3.msra.mxu1 %v11318_v55 }
0x3d3d   :  { %12361 = vmatprep.subr.mxu1 %v11317_v51 }
0x3d3e   :  { %12362 = vmatpush3.msra.mxu1 %v11317_v51 }
0x3d3f   :  { %12377 = vmatprep.subr.mxu1 %v12817_v16 }
0x3d5f   :  { %v8515_v8 = vpop.f32.mrf.mxu1 }
0x3d60   :  { %v8516_v34 = vadd.f32 %v8515_v8, %v14123_v43  ;;  %v11310_v43 = vld [vmem:[%s13647_s27 + $0x1] ss:$0 sm:$0xff] }
0x3d61   :  { %v12323_v10 = vpop.f32.mrf.mxu1 }
0x3d62   :  { %v12807_v10 = vld [vmem:[%s12882_s17] ss:$0 sm:$0xff] }
0x3df3   :  { %v8682_v31 = vpop.f32.mrf.mxu1 }
0x3df4   :  { %v8686_v36 = vadd.f32 %v8682_v31, %v8516_v34 }
0x3df5   :  { %v12333_v15 = vpop.f32.mrf.mxu1 }
0x3df6   :  { %v14202_v15 = vld [vmem:[%s12882_s17 + $0x1] ss:$0 sm:$0xff] }
0x3df7   :  { %v8850_v38 = vpop.f32.mrf.mxu1 }
0x3df8   :  { %v8854_v14 = vadd.f32 %v8850_v38, %v8686_v36 }
0x3df9   :  { %v12343_v39 = vpop.f32.mrf.mxu1 }
0x3dfa   :  { %12353 = vmatmul.mubr.msk.f32.vlgmr.msra.gmra.mxu0 %vm230_vm0, %v8854_v14 }
0x3dfb   :  { %12367 = vmatpush3.msra.mxu0 %v11328_v33  ;;  %12374 = vmatprep.mubr.msk.f32.mxu0 %vm230_vm0, %v13683_v48 }
0x3dfc   :  { %12368 = vmatprep.subr.mxu0 %v11327_v44 }
0x3dfd   :  { %12369 = vmatpush3.msra.mxu0 %v11327_v44 }
0x3dfe   :  { %12370 = vmatprep.subr.mxu0 %v11326_v45 }
0x3dff   :  { %12371 = vmatpush3.msra.mxu0 %v11326_v45 }
0x3e00   :  { %12372 = vmatprep.subr.mxu0 %v11325_v28 }
0x3e01   :  { %12373 = vmatpush3.msra.mxu0 %v11325_v28  ;;  %v12809_v28 = vld [vmem:[%s13759_s6] sm:$0xff] }
0x3e02   :  { %12375 = vmatmul.mubr.msk.f32.vlgmr.msra.gmra.mxu0 %vm230_vm0, %v13685_v49  ;;  %12387 = vmatprep.subr.mxu0 %v12817_v16 }
0x3e03   :  { %12389 = vmatprep.mubr.msk.f32.mxu0 %vm12819_vm1, %v12817_v16 }
0x3eba   :  { %v12354_v46 = vpop.f32.mrf.mxu0 }
0x3ebb   :  { %v8946_v48 = vadd.f32 %v12354_v46, %v11310_v43 }
0x3ebc   :  { %v8940_v37 = vpop.f32.mrf.mxu0 }
0x3ebd   :  { %v8950_v32 = vadd.f32 %v8946_v48, %v13989_v20  ;;  %v8941_v47 = vadd.f32 %v11310_v43, %v8940_v37 }
0x3ebf   :  { %v8949_v53 = vadd.f32 %v8941_v47, %v13987_v12  ;;  %v8958_v50 = vsel %vm230_vm0, %v8950_v32, 0.0 }
0x3ec0   :  { %8959 = vadd.xlane.f32.xlu0 %v8958_v50 }
0x3ec1   :  { %v8955_v49 = vsel %vm230_vm0, %v8949_v53, 0.0 }
0x3ec2   :  { %v12376_v54 = vpop.f32.mrf.mxu0  ;;  %8956 = vadd.xlane.f32.xlu1 %v8955_v49 }
0x3ec3   :  { %v14171_v56 = vadd.f32 %v12376_v54, %v11330_v52 }
0x3ec4   :  { %v9170_v5 = vpop.f32.mrf.mxu0 }
0x3ec5   :  { %v14181_v25 = vadd.f32 %v11330_v52, %v9170_v5 }
0x3ec7   :  { %v9179_v22 = vmul.f32 %v12807_v10, %v14181_v25  ;;  %v9270_v36 = vmul.f32 %v14202_v15, %v14181_v25  ;;  %v9357_v48 = vmul.f32 %v14181_v25, %v12936_v24 }
0x3f49   :  { %v8960_v29 = vpop.xlane.xlu0 %8959 }
0x3f4a   :  { %v8962_v59 = vmul.f32 0.03125, %v8960_v29 }
0x3f4b   :  { %v8957_v4 = vpop.xlane.xlu1 %8956 }
0x3f4c   :  { %v8964_v20 = vsub.f32 %v8950_v32, %v8962_v59  ;;  %v8961_v2 = vmul.f32 0.03125, %v8957_v4 }
0x3f4e   :  { %v8963_v12 = vsub.f32 %v8949_v53, %v8961_v2  ;;  %v8966_v42 = vmul.f32 %v8964_v20, %v8964_v20  ;;  %v14223_v2 = vld [vmem:[%s12882_s17 + $0x2] ss:$0 sm:$0xff] }
0x3f50   :  { %v8970_v62 = vsel %vm230_vm0, %v8966_v42, 0.0  ;;  %v8965_v60 = vmul.f32 %v8963_v12, %v8963_v12  ;;  %v14233_v42 = vld [vmem:[%s12882_s17 + $0x3] ss:$0 sm:$0xff]  ;;  %s12858_s17 = smov 44  }
0x3f51   :  { %8971 = vadd.xlane.f32.xlu1 %v8970_v62  ;;  %v9678_v62 = vmul.f32 %v14233_v42, %v14181_v25  ;;  %s11078_s12 = sld [smem:[%s14402_s0 + %s12858_s17]]  }
0x3f52   :  { %v8967_v7 = vsel %vm230_vm0, %v8965_v60, 0.0  ;;  %v9844_v60 = vmul.f32 %v12807_v10, %v14171_v56 }
0x3f53   :  { %8968 = vadd.xlane.f32.xlu0 %v8967_v7 }
0x3fda   :  { %v8972_v41 = vpop.xlane.xlu1 %8971 }
0x3fdb   :  { %v8974_v9 = vmul.f32 0.03125, %v8972_v41 }
0x3fdc   :  { %v8969_v57 = vpop.xlane.xlu0 %8968 }
0x3fdd   :  { %v8976_v58 = vadd.f32 1e-05, %v8974_v9  ;;  %v8973_v61 = vmul.f32 0.03125, %v8969_v57 }
0x3fdf   :  { %12751 = vrsqrt.f32 %v8976_v58  ;;  %v8975_v0 = vadd.f32 1e-05, %v8973_v61 }
0x3fe1   :  { %12753 = vrsqrt.f32 %v8975_v0 }
0x3fec   :  { %v12752_v1 = vpop.eup %12751 }
0x3fed   :  { %v8980_v3 = vmul.f32 %v12752_v1, %v8964_v20 }
0x3fee   :  { %v12754_v40 = vpop.eup %12753 }
0x3fef   :  { %v8979_v6 = vmul.f32 %v12754_v40, %v8963_v12  ;;  %v8988_v18 = vmul.f32 %v11315_v35, %v8980_v3  ;;  %v9512_v12 = vmul.f32 %v14223_v2, %v14181_v25 }
0x3ff1   :  { %v8987_v11 = vmul.f32 %v11315_v35, %v8979_v6  ;;  %v14186_v8 = vadd.f32 %v11316_v63, %v8988_v18 }
0x3ff3   :  { %v14184_v19 = vadd.f32 %v11316_v63, %v8987_v11 }
0x3ff5   :  { %12363 = vmatprep.mubr.msk.f32.mxu1 %vm230_vm0, %v14184_v19 }
0x3ff6   :  { %12364 = vmatmul.mubr.msk.f32.vlgmr.msra.gmra.mxu1 %vm230_vm0, %v14186_v8 }
0x3ff7   :  { %12378 = vmatpush3.xpose.msk.msra.mxu1 %vm230_vm0, %v9179_v22  ;;  %12379 = vmatprep.mubr.msk.f32.mxu1 %vm12819_vm1, %v12817_v16 }
0x3ff8   :  { %12382 = vmatprep.subr.mxu1 %v12817_v16 }
0x40b6   :  { %v12365_v23 = vpop.f32.mrf.mxu1 }
0x40b7   :  { %v14199_v33 = vadd.f32 %v12365_v23, %v11322_v30 }
0x40b8   :  { %v9082_v31 = vpop.f32.mrf.mxu1 }
0x40b9   :  { %v9083_v34 = vadd.f32 %v11322_v30, %v9082_v31 }
0x40bb   :  { %12380 = vmatmul.mubr.msk.f32.vlgmr.msra.gmra.mxu1 %vm230_vm0, %v9083_v34 }
0x40bc   :  { %12383 = vmatpush3.xpose.msk.msra.mxu1 %vm230_vm0, %v9270_v36  ;;  %12384 = vmatprep.mubr.msk.f32.mxu1 %vm12819_vm1, %v12817_v16 }
0x40bd   :  { %12392 = vmatprep.subr.mxu1 %v12817_v16 }
0x40bf   :  { %12385 = vmatmul.mubr.msk.f32.vlgmr.msra.gmra.mxu1 %vm230_vm0, %v9083_v34 }
0x40c0   :  { %12394 = vmatprep.mubr.msk.f32.mxu1 %vm12819_vm1, %v12817_v16 }
0x417b   :  { %v9252_v38 = vpop.f32.mrf.mxu1 }
0x417c   :  { %v9256_v50 = vmul.f32 0.35355338, %v9252_v38 }
0x417d   :  { %v12381_v14 = vpop.f32.mrf.mxu1 }
0x417e   :  { %v9257_v49 = vadd.f32 %v12809_v28, %v9256_v50 }
0x417f   :  { %v9340_v39 = vpop.f32.mrf.mxu1 }
0x4180   :  { %v9344_v44 = vmul.f32 0.35355338, %v9340_v39  ;;  %v9258_v29 = vsel %vm402_vm2, %v9257_v49, -inf  ;;  %v9269_v39 = vmul.f32 %v14181_v25, %v12927_v17 }
0x4181   :  { %v12386_v45 = vpop.f32.mrf.mxu1 }
0x4182   :  { %v9345_v43 = vadd.f32 %v12809_v28, %v9344_v44  ;;  %v9599_v44 = vmul.f32 %v14181_v25, %v12932_v21  ;;  %v9765_v45 = vmul.f32 %v14181_v25, %v12944_v27 }
0x4184   :  { %v9346_v46 = vsel %vm402_vm2, %v9345_v43, -inf }
0x4185   :  { %9347 = vmax.xlane.f32.xlu0 %v9346_v46 }
0x419b   :  { %9359 = vrot.lane.b32.xlu0 %v9357_v48, %s12820_s23 }
0x420e   :  { %v9348_v37 = vpop.xlane.xlu0 %9347 }
0x420f   :  { %v9349_v32 = vsub.f32 %v9345_v43, %v9348_v37 }
0x4211   :  { %v9350_v47 = vmul.f32 1.442695, %v9349_v32 }
0x4212   :  { %v9360_v53 = vpop.permute.xlu0 %9359 }
0x4213   :  { %12755 = vpow2.f32 %v9350_v47  ;;  %12388 = vmatpush3.msra.mxu0 %v9360_v53 }
0x4214   :  { %12397 = vmatprep.subr.mxu0 %v12817_v16 }
0x4220   :  { %v12756_v52 = vpop.eup %12755 }
0x4221   :  { %v9352_v54 = vsel %vm402_vm2, %v12756_v52, 0.0 }
0x4222   :  { %9353 = vadd.xlane.f32.xlu1 %v9352_v54  ;;  %v9935_v54 = vmul.f32 %v14202_v15, %v14171_v56 }
0x4226   :  { %9259 = vmax.xlane.f32.xlu1 %v9258_v29 }
0x42ab   :  { %v9354_v59 = vpop.xlane.xlu1 %9353 }
0x42ac   :  { %12757 = vrcp.f32 %v9354_v59 }
0x42af   :  { %v9260_v7 = vpop.xlane.xlu1 %9259 }
0x42b0   :  { %v9261_v13 = vsub.f32 %v9257_v49, %v9260_v7 }
0x42b2   :  { %v9262_v26 = vmul.f32 1.442695, %v9261_v13 }
0x42b4   :  { %12759 = vpow2.f32 %v9262_v26 }
0x42b9   :  { %v12758_v4 = vpop.eup %12757 }
0x42ba   :  { %v9356_v20 = vmul.f32 %v12758_v4, %v12756_v52 }
0x42bc   :  { %12390 = vmatmul.mubr.msk.f32.vlgmr.msra.gmra.mxu0 %vm402_vm2, %v9356_v20 }
0x42bd   :  { %12398 = vmatpush3.xpose.msk.msra.mxu0 %vm230_vm0, %v9512_v12  ;;  %12399 = vmatprep.mubr.msk.f32.mxu0 %vm12819_vm1, %v12817_v16 }
0x42be   :  { %12407 = vmatprep.subr.mxu0 %v12817_v16 }
0x42c0   :  { %12400 = vmatmul.mubr.msk.f32.vlgmr.msra.gmra.mxu0 %vm230_vm0, %v9083_v34 }
0x42c1   :  { %12408 = vmatpush3.xpose.msk.msra.mxu0 %vm230_vm0, %v9678_v62  ;;  %12409 = vmatprep.mubr.msk.f32.mxu0 %vm12819_vm1, %v12817_v16  ;;  %v12760_v6 = vpop.eup %12759 }
0x42c2   :  { %12417 = vmatprep.subr.mxu0 %v12817_v16  ;;  %v9264_v63 = vsel %vm402_vm2, %v12760_v6, 0.0 }
0x42c4   :  { %12410 = vmatmul.mubr.msk.f32.vlgmr.msra.gmra.mxu0 %vm230_vm0, %v9083_v34 }
0x42c5   :  { %12418 = vmatpush3.xpose.msk.msra.mxu0 %vm230_vm0, %v9844_v60  ;;  %12419 = vmatprep.mubr.msk.f32.mxu0 %vm12819_vm1, %v12817_v16 }
0x42c6   :  { %12427 = vmatprep.subr.mxu0 %v12817_v16 }
0x42c8   :  { %12420 = vmatmul.mubr.msk.f32.vlgmr.msra.gmra.mxu0 %vm230_vm0, %v14199_v33 }
0x42c9   :  { %12429 = vmatprep.mubr.msk.f32.mxu0 %vm12819_vm1, %v12817_v16 }
0x437c   :  { %v14252_v55 = vpop.f32.mrf.mxu0 }
0x437e   :  { %v12391_v51 = vpop.f32.mrf.mxu0 }
0x4380   :  { %v9582_v41 = vpop.f32.mrf.mxu0 }
0x4381   :  { %v9586_v9 = vmul.f32 0.35355338, %v9582_v41  ;;  %v12812_v41 = vld [vmem:[%s13759_s6 + $0x8] sm:$0xff] }
0x4382   :  { %v12401_v57 = vpop.f32.mrf.mxu0 }
0x4383   :  { %v9587_v58 = vadd.f32 %v12809_v28, %v9586_v9 }
0x4384   :  { %v9748_v61 = vpop.f32.mrf.mxu0 }
0x4385   :  { %v9752_v0 = vmul.f32 0.35355338, %v9748_v61  ;;  %v9588_v1 = vsel %vm402_vm2, %v9587_v58, -inf }
0x4386   :  { %9589 = vmax.xlane.f32.xlu1 %v9588_v1  ;;  %v12411_v35 = vpop.f32.mrf.mxu0 }
0x4387   :  { %v9753_v3 = vadd.f32 %v12809_v28, %v9752_v0  ;;  %v10022_v35 = vmul.f32 %v14171_v56, %v12936_v24 }
0x4388   :  { %v14255_v40 = vpop.f32.mrf.mxu0 }
0x4389   :  { %v9754_v5 = vsel %vm402_vm2, %v9753_v3, -inf }
0x438a   :  { %9755 = vmax.xlane.f32.xlu1 %v9754_v5  ;;  %v12421_v18 = vpop.f32.mrf.mxu0 }
0x438b   :  { %v10264_v18 = vmul.f32 %v14171_v56, %v12932_v21  ;;  %v10343_v21 = vmul.f32 %v14233_v42, %v14171_v56 }
0x438e   :  { %9265 = vadd.xlane.f32.xlu1 %v9264_v63 }
0x440f   :  { %v9590_v11 = vpop.xlane.xlu1 %9589 }
0x4410   :  { %v9591_v10 = vsub.f32 %v9587_v58, %v9590_v11 }
0x4412   :  { %v9592_v22 = vmul.f32 1.442695, %v9591_v10 }
0x4413   :  { %v9756_v30 = vpop.xlane.xlu1 %9755 }
0x4414   :  { %12761 = vpow2.f32 %v9592_v22  ;;  %v9757_v23 = vsub.f32 %v9753_v3, %v9756_v30  ;;  %v9921_v3 = vmul.f32 0.35355338, %v14255_v40  ;;  %v10177_v40 = vmul.f32 %v14223_v2, %v14171_v56 }
0x4416   :  { %v9758_v31 = vmul.f32 1.442695, %v9757_v23  ;;  %v9922_v5 = vadd.f32 %v12812_v41, %v9921_v3 }
0x4417   :  { %v9266_v28 = vpop.xlane.xlu1 %9265 }
0x4418   :  { %12763 = vpow2.f32 %v9758_v31 }
0x4419   :  { %12765 = vrcp.f32 %v9266_v28 }
0x4421   :  { %v12762_v34 = vpop.eup %12761 }
0x4422   :  { %v9594_v36 = vsel %vm402_vm2, %v12762_v34, 0.0 }
0x4423   :  { %9595 = vadd.xlane.f32.xlu1 %v9594_v36 }
0x4425   :  { %v12764_v38 = vpop.eup %12763 }
0x4426   :  { %v9760_v14 = vsel %vm402_vm2, %v12764_v38, 0.0  ;;  %v12766_v46 = vpop.eup %12765 }
0x4427   :  { %9761 = vadd.xlane.f32.xlu0 %v9760_v14  ;;  %v9268_v48 = vmul.f32 %v12766_v46, %v12760_v6  ;;  %v9923_v6 = vsel %vm402_vm2, %v9922_v5, -inf }
0x4434   :  { %9436 = vrot.lane.b32.xlu1 %v9269_v39, %s12820_s23 }
0x4438   :  { %9601 = vrot.lane.b32.xlu1 %v9599_v44, %s12820_s23 }
0x443c   :  { %9767 = vrot.lane.b32.xlu1 %v9765_v45, %s12820_s23 }
0x44ac   :  { %v9596_v43 = vpop.xlane.xlu1 %9595 }
0x44ad   :  { %12767 = vrcp.f32 %v9596_v43 }
0x44b0   :  { %v9762_v37 = vpop.xlane.xlu0 %9761  ;;  %v9437_v32 = vpop.permute.xlu1 %9436 }
0x44b1   :  { %12769 = vrcp.f32 %v9762_v37  ;;  %12393 = vmatpush3.msra.mxu1 %v9437_v32 }
0x44b2   :  { %12395 = vmatmul.mubr.msk.f32.vlgmr.msra.gmra.mxu1 %vm402_vm2, %v9268_v48  ;;  %12402 = vmatprep.subr.mxu1 %v12817_v16  ;;  %v9934_v48 = vmul.f32 %v14171_v56, %v12927_v17 }
0x44b3   :  { %12404 = vmatprep.mubr.msk.f32.mxu1 %vm12819_vm1, %v12817_v16 }
0x44b4   :  { %v9602_v25 = vpop.permute.xlu1 %9601 }
0x44b5   :  { %12403 = vmatpush3.msra.mxu1 %v9602_v25 }
0x44b6   :  { %12412 = vmatprep.subr.mxu1 %v12817_v16 }
0x44b8   :  { %v9768_v50 = vpop.permute.xlu1 %9767 }
0x44ba   :  { %v12768_v47 = vpop.eup %12767 }
0x44bb   :  { %v9598_v53 = vmul.f32 %v12768_v47, %v12762_v34 }
0x44bd   :  { %12405 = vmatmul.mubr.msk.f32.vlgmr.msra.gmra.mxu1 %vm402_vm2, %v9598_v53 }
0x44be   :  { %v12770_v52 = vpop.eup %12769  ;;  %12413 = vmatpush3.msra.mxu1 %v9768_v50  ;;  %12414 = vmatprep.mubr.msk.f32.mxu1 %vm12819_vm1, %v12817_v16 }
0x44bf   :  { %v9764_v49 = vmul.f32 %v12770_v52, %v12764_v38  ;;  %12422 = vmatprep.subr.mxu1 %v12817_v16 }
0x44c1   :  { %12415 = vmatmul.mubr.msk.f32.vlgmr.msra.gmra.mxu1 %vm402_vm2, %v9764_v49 }
0x44c2   :  { %12423 = vmatpush3.xpose.msk.msra.mxu1 %vm230_vm0, %v9935_v54  ;;  %12424 = vmatprep.mubr.msk.f32.mxu1 %vm12819_vm1, %v12817_v16 }
0x44c3   :  { %12432 = vmatprep.subr.mxu1 %v12817_v16 }
0x44c5   :  { %12425 = vmatmul.mubr.msk.f32.vlgmr.msra.gmra.mxu1 %vm230_vm0, %v14199_v33 }
0x44c6   :  { %12434 = vmatprep.mubr.msk.f32.mxu1 %vm12819_vm1, %v12817_v16 }
0x4572   :  { %v9508_v29 = vpop.f32.mrf.mxu1 }
0x4573   :  { %v9509_v15 = vadd.f32 %v9508_v29, %v14252_v55 }
0x4574   :  { %v12396_v59 = vpop.f32.mrf.mxu1 }
0x457d   :  { %v9673_v4 = vpop.f32.mrf.mxu1 }
0x457e   :  { %v9677_v20 = vadd.f32 %v9673_v4, %v9509_v15 }
0x457f   :  { %v12406_v12 = vpop.f32.mrf.mxu1 }
0x4580   :  { %v10430_v12 = vmul.f32 %v14171_v56, %v12944_v27 }
0x4581   :  { %v9839_v62 = vpop.f32.mrf.mxu1 }
0x4582   :  { %v9843_v60 = vadd.f32 %v9839_v62, %v9677_v20  ;;  %v11360_v62 = vld [vmem:[%s13889_s22 + $0x38] sm:$0xff] }
0x4583   :  { %v12416_v7 = vpop.f32.mrf.mxu1 }
0x4585   :  { %v10005_v13 = vpop.f32.mrf.mxu1 }
0x4586   :  { %v10009_v26 = vmul.f32 0.35355338, %v10005_v13 }
0x4587   :  { %v12426_v51 = vpop.f32.mrf.mxu1 }
0x4588   :  { %v10010_v9 = vadd.f32 %v12812_v41, %v10009_v26 }
0x458a   :  { %v10011_v57 = vsel %vm402_vm2, %v10010_v9, -inf }
0x458b   :  { %10012 = vmax.xlane.f32.xlu1 %v10011_v57  ;;  %v11359_v57 = vld [vmem:[%s13889_s22 + $0x30] sm:$0xff] }
0x4614   :  { %v10013_v58 = vpop.xlane.xlu1 %10012 }
0x4615   :  { %v10014_v61 = vsub.f32 %v10010_v9, %v10013_v58  ;;  %v11358_v58 = vld [vmem:[%s13889_s22 + $0x28] sm:$0xff] }
0x4617   :  { %v10015_v0 = vmul.f32 1.442695, %v10014_v61  ;;  %v11357_v61 = vld [vmem:[%s13889_s22 + $0x20] sm:$0xff] }
0x4619   :  { %12771 = vpow2.f32 %v10015_v0 }
0x4626   :  { %v12772_v1 = vpop.eup %12771 }
0x4627   :  { %v10017_v55 = vsel %vm402_vm2, %v12772_v1, 0.0 }
0x4628   :  { %10018 = vadd.xlane.f32.xlu0 %v10017_v55 }
0x463e   :  { %10024 = vrot.lane.b32.xlu0 %v10022_v35, %s12820_s23 }
0x465d   :  { %9924 = vmax.xlane.f32.xlu0 %v9923_v6  ;;  %v11362_v6 = vld [vmem:[%s13904_s30 + $0x1] ss:$0 sm:$0xff]  ;;  %s11079_s30 = sld [smem:[%s14402_s0 + %s12861_s9]]  }
0x4673   :  { %10266 = vrot.lane.b32.xlu0 %v10264_v18, %s12820_s23 }
0x46b1   :  { %v10019_v63 = vpop.xlane.xlu0 %10018 }
0x46b2   :  { %12773 = vrcp.f32 %v10019_v63 }
0x46b5   :  { %v10025_v11 = vpop.permute.xlu0 %10024 }
0x46b6   :  { %12428 = vmatpush3.msra.mxu0 %v10025_v11 }
0x46b7   :  { %12437 = vmatprep.subr.mxu0 %v12817_v16 }
0x46bf   :  { %v12774_v24 = vpop.eup %12773 }
0x46c0   :  { %v10021_v10 = vmul.f32 %v12774_v24, %v12772_v1 }
0x46c2   :  { %12430 = vmatmul.mubr.msk.f32.vlgmr.msra.gmra.mxu0 %vm402_vm2, %v10021_v10 }
0x46c3   :  { %12438 = vmatpush3.xpose.msk.msra.mxu0 %vm230_vm0, %v10177_v40  ;;  %12439 = vmatprep.mubr.msk.f32.mxu0 %vm12819_vm1, %v12817_v16 }
0x46c4   :  { %12447 = vmatprep.subr.mxu0 %v12817_v16 }
0x46c6   :  { %12440 = vmatmul.mubr.msk.f32.vlgmr.msra.gmra.mxu0 %vm230_vm0, %v14199_v33 }
0x46c7   :  { %12448 = vmatpush3.xpose.msk.msra.mxu0 %vm230_vm0, %v10343_v21  ;;  %12449 = vmatprep.mubr.msk.f32.mxu0 %vm12819_vm1, %v12817_v16 }
0x46c8   :  { %12457 = vmatprep.subr.mxu0 %v11360_v62 }
0x46ca   :  { %12450 = vmatmul.mubr.msk.f32.vlgmr.msra.gmra.mxu0 %vm230_vm0, %v14199_v33 }
0x46cb   :  { %12465 = vmatprep.mubr.msk.f32.mxu0 %vm230_vm0, %v9843_v60  ;;  %12458 = vmatpush3.msra.mxu0 %v11360_v62  ;;  %v11379_v62 = vld [vmem:[%s13925_s13 + $0x50] sm:$0xff] }
0x46cc   :  { %12459 = vmatprep.subr.mxu0 %v11359_v57 }
0x46cd   :  { %12460 = vmatpush3.msra.mxu0 %v11359_v57  ;;  %v11386_v57 = vld [vmem:[%s13963_s1 + $0x1] ss:$0 sm:$0xff] }
0x46ce   :  { %12461 = vmatprep.subr.mxu0 %v11358_v58 }
0x46cf   :  { %12462 = vmatpush3.msra.mxu0 %v11358_v58 }
0x46d0   :  { %12463 = vmatprep.subr.mxu0 %v11357_v61 }
0x46d1   :  { %12464 = vmatpush3.msra.mxu0 %v11357_v61 }
0x46e6   :  { %v9925_v2 = vpop.xlane.xlu0 %9924 }
0x46e7   :  { %v9926_v22 = vsub.f32 %v9922_v5, %v9925_v2 }
0x46e9   :  { %v9927_v30 = vmul.f32 1.442695, %v9926_v22 }
0x46ea   :  { %v10267_v20 = vpop.permute.xlu0 %10266 }
0x46eb   :  { %12775 = vpow2.f32 %v9927_v30 }
0x46f8   :  { %v12776_v43 = vpop.eup %12775 }
0x46f9   :  { %v9929_v46 = vsel %vm402_vm2, %v12776_v43, 0.0 }
0x4782   :  { %v14320_v23 = vpop.f32.mrf.mxu0 }
0x4784   :  { %v12431_v42 = vpop.f32.mrf.mxu0 }
0x4786   :  { %v10247_v31 = vpop.f32.mrf.mxu0 }
0x4787   :  { %v10251_v34 = vmul.f32 0.35355338, %v10247_v31 }
0x4788   :  { %v12441_v36 = vpop.f32.mrf.mxu0 }
0x4789   :  { %v10252_v38 = vadd.f32 %v12812_v41, %v10251_v34 }
0x478a   :  { %v10413_v14 = vpop.f32.mrf.mxu0 }
0x478b   :  { %v10417_v39 = vmul.f32 0.35355338, %v10413_v14  ;;  %v10253_v44 = vsel %vm402_vm2, %v10252_v38, -inf  ;;  %v11372_v14 = vld [vmem:[%s13916_s21 + $0x38] sm:$0xff] }
0x478c   :  { %10254 = vmax.xlane.f32.xlu1 %v10253_v44  ;;  %v12451_v45 = vpop.f32.mrf.mxu0  ;;  %v11370_v44 = vld [vmem:[%s13916_s21 + $0x28] sm:$0xff] }
0x478d   :  { %v10418_v33 = vadd.f32 %v12812_v41, %v10417_v39  ;;  %v11371_v39 = vld [vmem:[%s13916_s21 + $0x30] sm:$0xff]  ;;  %v11369_v45 = vld [vmem:[%s13916_s21 + $0x20] sm:$0xff]  ;;  %s12862_s21 = smov 46  }
0x478f   :  { %v10419_v28 = vsel %vm402_vm2, %v10418_v33, -inf }
0x4790   :  { %10420 = vmax.xlane.f32.xlu1 %v10419_v28  ;;  %v11383_v28 = vld [vmem:[%s13925_s13 + $0x70] sm:$0xff] }
0x4794   :  { %9930 = vadd.xlane.f32.xlu1 %v9929_v46  ;;  %v11381_v46 = vld [vmem:[%s13925_s13 + $0x60] sm:$0xff] }
0x47a5   :  { %10101 = vrot.lane.b32.xlu1 %v9934_v48, %s12820_s23 }
0x4815   :  { %v10255_v37 = vpop.xlane.xlu1 %10254 }
0x4816   :  { %v10256_v32 = vsub.f32 %v10252_v38, %v10255_v37 }
0x4818   :  { %v10257_v25 = vmul.f32 1.442695, %v10256_v32 }
0x4819   :  { %v10421_v47 = vpop.xlane.xlu1 %10420 }
0x481a   :  { %12777 = vpow2.f32 %v10257_v25  ;;  %v10422_v53 = vsub.f32 %v10418_v33, %v10421_v47  ;;  %v11384_v33 = vld [vmem:[%s13925_s13 + $0x78] sm:$0xff] }
0x481b   :  { %12479 = vmatprep.subr.mxu0 %v11384_v33 }
0x481c   :  { %v10423_v50 = vmul.f32 1.442695, %v10422_v53 }
0x481d   :  { %v9931_v52 = vpop.xlane.xlu1 %9930 }
0x481e   :  { %12779 = vpow2.f32 %v10423_v50 }
0x481f   :  { %12781 = vrcp.f32 %v9931_v52  ;;  %v11367_v52 = vld [vmem:[%s13934_s2 + $0x1] ss:$0 sm:$0xff] }
0x4821   :  { %v10102_v49 = vpop.permute.xlu1 %10101 }
0x4822   :  { %12433 = vmatpush3.msra.mxu1 %v10102_v49 }
0x4823   :  { %12442 = vmatprep.subr.mxu1 %v12817_v16 }
0x4827   :  { %v12778_v54 = vpop.eup %12777 }
0x4828   :  { %v10259_v17 = vsel %vm402_vm2, %v12778_v54, 0.0 }
0x4829   :  { %10260 = vadd.xlane.f32.xlu1 %v10259_v17 }
0x482b   :  { %v12780_v29 = vpop.eup %12779 }
0x482c   :  { %v12782_v59 = vpop.eup %12781  ;;  %v10425_v15 = vsel %vm402_vm2, %v12780_v29, 0.0 }
0x482d   :  { %v9933_v4 = vmul.f32 %v12782_v59, %v12776_v43  ;;  %10426 = vadd.xlane.f32.xlu1 %v10425_v15  ;;  %v11382_v43 = vld [vmem:[%s13925_s13 + $0x68] sm:$0xff]  ;;  %v11368_v59 = vld [vmem:[%s13939_s8 + $0x1] ss:$0 sm:$0xff]  ;;  %s11080_s8 = sld [smem:[%s14402_s0 + %s12862_s21]]  }
0x482f   :  { %12435 = vmatmul.mubr.msk.f32.vlgmr.msra.gmra.mxu1 %vm402_vm2, %v9933_v4 }
0x4830   :  { %12443 = vmatpush3.msra.mxu1 %v10267_v20  ;;  %12444 = vmatprep.mubr.msk.f32.mxu1 %vm12819_vm1, %v12817_v16 }
0x4831   :  { %12452 = vmatprep.subr.mxu1 %v12817_v16 }
0x483e   :  { %10432 = vrot.lane.b32.xlu1 %v10430_v12, %s12820_s23  ;;  %v11380_v12 = vld [vmem:[%s13925_s13 + $0x58] sm:$0xff] }
0x48b2   :  { %v10261_v60 = vpop.xlane.xlu1 %10260 }
0x48b3   :  { %12783 = vrcp.f32 %v10261_v60  ;;  %v11378_v60 = vld [vmem:[%s13925_s13 + $0x48] sm:$0xff] }
0x48b6   :  { %v10427_v7 = vpop.xlane.xlu1 %10426 }
0x48b7   :  { %12785 = vrcp.f32 %v10427_v7  ;;  %v11377_v7 = vld [vmem:[%s13925_s13 + $0x40] sm:$0xff] }
0x48ba   :  { %v10433_v51 = vpop.permute.xlu1 %10432 }
0x48c0   :  { %v12784_v13 = vpop.eup %12783 }
0x48c1   :  { %v10263_v26 = vmul.f32 %v12784_v13, %v12778_v54  ;;  %v11374_v13 = vld [vmem:[%s13953_s19 + $0x1] ss:$0 sm:$0xff] }
0x48c3   :  { %12445 = vmatmul.mubr.msk.f32.vlgmr.msra.gmra.mxu1 %vm402_vm2, %v10263_v26 }
0x48c4   :  { %v12786_v41 = vpop.eup %12785  ;;  %12453 = vmatpush3.msra.mxu1 %v10433_v51  ;;  %12454 = vmatprep.mubr.msk.f32.mxu1 %vm12819_vm1, %v12817_v16 }
0x48c5   :  { %v10429_v27 = vmul.f32 %v12786_v41, %v12780_v29  ;;  %12468 = vmatprep.subr.mxu1 %v11372_v14 }
0x48c7   :  { %12455 = vmatmul.mubr.msk.f32.vlgmr.msra.gmra.mxu1 %vm402_vm2, %v10429_v27 }
0x48c8   :  { %12469 = vmatpush3.msra.mxu1 %v11372_v14  ;;  %v11392_v14 = vld [vmem:[%s13983_s11 + $0x1] ss:$0 sm:$0xff] }
0x48c9   :  { %12470 = vmatprep.subr.mxu1 %v11371_v39 }
0x48ca   :  { %12471 = vmatpush3.msra.mxu1 %v11371_v39 }
0x48cb   :  { %12472 = vmatprep.subr.mxu1 %v11370_v44 }
0x48cc   :  { %12473 = vmatpush3.msra.mxu1 %v11370_v44 }
0x48cd   :  { %12474 = vmatprep.subr.mxu1 %v11369_v45 }
0x48ce   :  { %12475 = vmatpush3.msra.mxu1 %v11369_v45 }
0x48ef   :  { %v10173_v56 = vpop.f32.mrf.mxu1 }
0x48f0   :  { %v10174_v1 = vadd.f32 %v10173_v56, %v14320_v23 }
0x48f1   :  { %v12436_v9 = vpop.f32.mrf.mxu1 }
0x4983   :  { %v10338_v0 = vpop.f32.mrf.mxu1 }
0x4984   :  { %v10342_v16 = vadd.f32 %v10338_v0, %v10174_v1 }
0x4985   :  { %v12446_v55 = vpop.f32.mrf.mxu1 }
0x4987   :  { %v10504_v35 = vpop.f32.mrf.mxu1 }
0x4988   :  { %v10508_v3 = vadd.f32 %v10504_v35, %v10342_v16 }
0x4989   :  { %v12456_v5 = vpop.f32.mrf.mxu1 }
0x498a   :  { %12466 = vmatmul.mubr.msk.f32.vlgmr.msra.gmra.mxu0 %vm230_vm0, %v10508_v3 }
0x498b   :  { %12480 = vmatpush3.msra.mxu0 %v11384_v33 }
0x498c   :  { %12481 = vmatprep.subr.mxu0 %v11383_v28 }
0x498d   :  { %12482 = vmatpush3.msra.mxu0 %v11383_v28 }
0x498e   :  { %12483 = vmatprep.subr.mxu0 %v11382_v43 }
0x498f   :  { %12484 = vmatpush3.msra.mxu0 %v11382_v43 }
0x4990   :  { %12485 = vmatprep.subr.mxu0 %v11381_v46 }
0x4991   :  { %12486 = vmatpush3.msra.mxu0 %v11381_v46 }
0x4992   :  { %12487 = vmatprep.subr.mxu0 %v11380_v12 }
0x4993   :  { %12488 = vmatpush3.msra.mxu0 %v11380_v12 }
0x4994   :  { %12489 = vmatprep.subr.mxu0 %v11379_v62 }
0x4995   :  { %12490 = vmatpush3.msra.mxu0 %v11379_v62 }
0x4996   :  { %12491 = vmatprep.subr.mxu0 %v11378_v60 }
0x4997   :  { %12492 = vmatpush3.msra.mxu0 %v11378_v60 }
0x4998   :  { %12493 = vmatprep.subr.mxu0 %v11377_v7 }
0x4999   :  { %12494 = vmatpush3.msra.mxu0 %v11377_v7 }
0x4a4a   :  { %v12467_v18 = vpop.f32.mrf.mxu0 }
0x4a4b   :  { %v10600_v63 = vadd.f32 %v12467_v18, %v11362_v6 }
0x4a4c   :  { %v10594_v11 = vpop.f32.mrf.mxu0 }
0x4a4d   :  { %v10604_v24 = vadd.f32 %v10600_v63, %v14186_v8  ;;  %v10595_v10 = vadd.f32 %v11362_v6, %v10594_v11 }
0x4a4f   :  { %v10603_v40 = vadd.f32 %v10595_v10, %v14184_v19  ;;  %v10612_v21 = vsel %vm230_vm0, %v10604_v24, 0.0 }
0x4a50   :  { %10613 = vadd.xlane.f32.xlu0 %v10612_v21 }
0x4a51   :  { %v10609_v2 = vsel %vm230_vm0, %v10603_v40, 0.0 }
0x4a52   :  { %10610 = vadd.xlane.f32.xlu1 %v10609_v2 }
0x4ad9   :  { %v10614_v22 = vpop.xlane.xlu0 %10613 }
0x4ada   :  { %v10616_v30 = vmul.f32 0.03125, %v10614_v22 }
0x4adb   :  { %v10611_v23 = vpop.xlane.xlu1 %10610 }
0x4adc   :  { %v10618_v42 = vsub.f32 %v10604_v24, %v10616_v30  ;;  %v10615_v31 = vmul.f32 0.03125, %v10611_v23 }
0x4ade   :  { %v10617_v34 = vsub.f32 %v10603_v40, %v10615_v31  ;;  %v10620_v8 = vmul.f32 %v10618_v42, %v10618_v42 }
0x4ae0   :  { %v10624_v36 = vsel %vm230_vm0, %v10620_v8, 0.0  ;;  %v10619_v19 = vmul.f32 %v10617_v34, %v10617_v34 }
0x4ae1   :  { %10625 = vadd.xlane.f32.xlu0 %v10624_v36  ;;  %v11391_v36 = vld [vmem:[%s13978_s4 + $0x1] ss:$0 sm:$0xff] }
0x4ae2   :  { %v10621_v38 = vsel %vm230_vm0, %v10619_v19, 0.0 }
0x4ae3   :  { %10622 = vadd.xlane.f32.xlu1 %v10621_v38 }
0x4b6a   :  { %v10626_v48 = vpop.xlane.xlu0 %10625 }
0x4b6b   :  { %v10628_v37 = vmul.f32 0.03125, %v10626_v48 }
0x4b6c   :  { %v10623_v32 = vpop.xlane.xlu1 %10622 }
0x4b6d   :  { %v10630_v25 = vadd.f32 1e-05, %v10628_v37  ;;  %v10627_v47 = vmul.f32 0.03125, %v10623_v32 }
0x4b6f   :  { %12787 = vrsqrt.f32 %v10630_v25  ;;  %v10629_v53 = vadd.f32 1e-05, %v10627_v47 }
0x4b71   :  { %12789 = vrsqrt.f32 %v10629_v53 }
0x4b7c   :  { %v12788_v50 = vpop.eup %12787 }
0x4b7d   :  { %v10634_v49 = vmul.f32 %v12788_v50, %v10618_v42 }
0x4b7e   :  { %v12790_v54 = vpop.eup %12789 }
0x4b7f   :  { %v10633_v17 = vmul.f32 %v12790_v54, %v10617_v34  ;;  %v10642_v29 = vmul.f32 %v11367_v52, %v10634_v49 }
0x4b81   :  { %v10641_v15 = vmul.f32 %v11367_v52, %v10633_v17  ;;  %v10650_v20 = vadd.f32 %v11368_v59, %v10642_v29  ;;  %v10940_v17 = vld [vmem:[%s11078_s12 + $0x18] sm:$0xff]  ;;  %v10939_v29 = vld [vmem:[%s11078_s12 + $0x10] sm:$0xff] }
0x4b82   :  { %12498 = vmatprep.subr.mxu1 %v10940_v17 }
0x4b83   :  { %v10649_v4 = vadd.f32 %v11368_v59, %v10641_v15  ;;  %v10938_v59 = vld [vmem:[%s11078_s12 + $0x8] sm:$0xff]  ;;  %v10937_v15 = vld [vmem:[%s11078_s12] sm:$0xff] }
0x4b85   :  { %12476 = vmatprep.mubr.msk.f32.mxu1 %vm230_vm0, %v10649_v4 }
0x4b86   :  { %12477 = vmatmul.mubr.msk.f32.vlgmr.msra.gmra.mxu1 %vm230_vm0, %v10650_v20 }
0x4b87   :  { %12499 = vmatpush3.msra.mxu1 %v10940_v17 }
0x4b88   :  { %12500 = vmatprep.subr.mxu1 %v10939_v29 }
0x4b89   :  { %12501 = vmatpush3.msra.mxu1 %v10939_v29 }
0x4b8a   :  { %12502 = vmatprep.subr.mxu1 %v10938_v59 }
0x4b8b   :  { %12503 = vmatpush3.msra.mxu1 %v10938_v59 }
0x4b8c   :  { %12504 = vmatprep.subr.mxu1 %v10937_v15 }
0x4b8d   :  { %12505 = vmatpush3.msra.mxu1 %v10937_v15 }
0x4c46   :  { %v12478_v26 = vpop.f32.mrf.mxu1 }
0x4c47   :  { %v10742_v51 = vadd.f32 %v12478_v26, %v11374_v13  ;;  %v11393_v26 = vld [vmem:[%s11076_s26] ss:$0 sm:$0xff] }
0x4c48   :  { %v10736_v41 = vpop.f32.mrf.mxu1 }
0x4c49   :  { %v10737_v27 = vadd.f32 %v11374_v13, %v10736_v41  ;;  %v10746_v9 = vmax.f32 %v10742_v51, 0.0 }
0x4c4b   :  { %v10745_v56 = vmax.f32 %v10737_v27, 0.0 }
0x4c4d   :  { %12495 = vmatprep.mubr.msk.f32.mxu0 %vm1955_vm3, %v10745_v56 }
0x4c4e   :  { %12496 = vmatmul.mubr.msk.f32.vlgmr.msra.gmra.mxu0 %vm1955_vm3, %v10746_v9  ;;  %v11394_v9 = vld [vmem:[%s11077_s5] ss:$0 sm:$0xff] }
0x4d0e   :  { %v12497_v58 = vpop.f32.mrf.mxu0 }
0x4d0f   :  { %v10842_v61 = vadd.f32 %v12497_v58, %v11386_v57 }
0x4d10   :  { %v10836_v0 = vpop.f32.mrf.mxu0 }
0x4d11   :  { %v10846_v1 = vadd.f32 %v10842_v61, %v10650_v20  ;;  %v10837_v55 = vadd.f32 %v11386_v57, %v10836_v0  ;;  %v11395_v0 = vld [vmem:[%s11079_s30] ss:$0 sm:$0xff] }
0x4d13   :  { %v10845_v16 = vadd.f32 %v10837_v55, %v10649_v4  ;;  %v10854_v35 = vsel %vm230_vm0, %v10846_v1, 0.0 }
0x4d14   :  { %10855 = vadd.xlane.f32.xlu0 %v10854_v35 }
0x4d15   :  { %v10851_v3 = vsel %vm230_vm0, %v10845_v16, 0.0 }
0x4d16   :  { %10852 = vadd.xlane.f32.xlu1 %v10851_v3 }
0x4d9d   :  { %v10856_v5 = vpop.xlane.xlu0 %10855 }
0x4d9e   :  { %v10858_v6 = vmul.f32 0.03125, %v10856_v5 }
0x4d9f   :  { %v10853_v18 = vpop.xlane.xlu1 %10852 }
0x4da0   :  { %v10860_v63 = vsub.f32 %v10846_v1, %v10858_v6  ;;  %v10857_v11 = vmul.f32 0.03125, %v10853_v18 }
0x4da2   :  { %v10859_v24 = vsub.f32 %v10845_v16, %v10857_v11  ;;  %v10862_v10 = vmul.f32 %v10860_v63, %v10860_v63 }
0x4da4   :  { %v10866_v40 = vsel %vm230_vm0, %v10862_v10, 0.0  ;;  %v10861_v21 = vmul.f32 %v10859_v24, %v10859_v24 }
0x4da5   :  { %10867 = vadd.xlane.f32.xlu0 %v10866_v40 }
0x4da6   :  { %v10863_v2 = vsel %vm230_vm0, %v10861_v21, 0.0 }
0x4da7   :  { %10864 = vadd.xlane.f32.xlu1 %v10863_v2 }
0x4e2e   :  { %v10868_v22 = vpop.xlane.xlu0 %10867 }
0x4e2f   :  { %v10870_v30 = vmul.f32 0.03125, %v10868_v22 }
0x4e30   :  { %v10865_v23 = vpop.xlane.xlu1 %10864 }
0x4e31   :  { %v10872_v42 = vadd.f32 1e-05, %v10870_v30  ;;  %v10869_v31 = vmul.f32 0.03125, %v10865_v23 }
0x4e33   :  { %12791 = vrsqrt.f32 %v10872_v42  ;;  %v10871_v34 = vadd.f32 1e-05, %v10869_v31 }
0x4e35   :  { %12793 = vrsqrt.f32 %v10871_v34 }
0x4e40   :  { %v12792_v8 = vpop.eup %12791 }
0x4e41   :  { %v10876_v19 = vmul.f32 %v12792_v8, %v10860_v63 }
0x4e42   :  { %v12794_v38 = vpop.eup %12793 }
0x4e43   :  { %v10884_v39 = vmul.f32 %v11391_v36, %v10876_v19  ;;  %v10875_v44 = vmul.f32 %v12794_v38, %v10859_v24 }
0x4e45   :  { %v10892_v45 = vadd.f32 %v11392_v14, %v10884_v39  ;;  %v10883_v33 = vmul.f32 %v11391_v36, %v10875_v44 }
0x4e47   :  { %v10898_v28 = vsel %vm230_vm0, %v10892_v45, 0.0  ;;  %v10891_v43 = vadd.f32 %v11392_v14, %v10883_v33 }
0x4e48   :  { %10899 = vadd.xlane.f32.xlu0 %v10898_v28 }
0x4e49   :  { %v10895_v46 = vsel %vm230_vm0, %v10891_v43, 0.0 }
0x4e4a   :  { %10896 = vadd.xlane.f32.xlu1 %v10895_v46 }
0x4ed1   :  { %v10900_v48 = vpop.xlane.xlu0 %10899 }
0x4ed2   :  { %v10902_v37 = vmul.f32 0.03125, %v10900_v48 }
0x4ed3   :  { %v10897_v32 = vpop.xlane.xlu1 %10896 }
0x4ed4   :  { %v10904_v25 = vsub.f32 %v10892_v45, %v10902_v37  ;;  %v10901_v47 = vmul.f32 0.03125, %v10897_v32 }
0x4ed6   :  { %v10903_v53 = vsub.f32 %v10891_v43, %v10901_v47  ;;  %v10906_v50 = vmul.f32 %v10904_v25, %v10904_v25 }
0x4ed8   :  { %v10910_v52 = vsel %vm230_vm0, %v10906_v50, 0.0  ;;  %v10905_v49 = vmul.f32 %v10903_v53, %v10903_v53 }
0x4ed9   :  { %10911 = vadd.xlane.f32.xlu0 %v10910_v52 }
0x4eda   :  { %v10907_v54 = vsel %vm230_vm0, %v10905_v49, 0.0 }
0x4edb   :  { %10908 = vadd.xlane.f32.xlu1 %v10907_v54 }
0x4f62   :  { %v10912_v4 = vpop.xlane.xlu0 %10911 }
0x4f63   :  { %v10914_v20 = vmul.f32 0.03125, %v10912_v4 }
0x4f64   :  { %v10909_v12 = vpop.xlane.xlu1 %10908 }
0x4f65   :  { %v10916_v62 = vadd.f32 1e-05, %v10914_v20  ;;  %v10913_v60 = vmul.f32 0.03125, %v10909_v12 }
0x4f67   :  { %12795 = vrsqrt.f32 %v10916_v62  ;;  %v10915_v7 = vadd.f32 1e-05, %v10913_v60 }
0x4f69   :  { %12797 = vrsqrt.f32 %v10915_v7 }
0x4f74   :  { %v12796_v13 = vpop.eup %12795 }
0x4f75   :  { %v10920_v51 = vmul.f32 %v12796_v13, %v10904_v25 }
0x4f76   :  { %v12798_v41 = vpop.eup %12797 }
0x4f77   :  { %v10919_v27 = vmul.f32 %v12798_v41, %v10903_v53  ;;  %v10928_v56 = vmul.f32 %v11393_v26, %v10920_v51 }
0x4f79   :  { %v10927_v57 = vmul.f32 %v11393_v26, %v10919_v27  ;;  %v10936_v61 = vadd.f32 %v11394_v9, %v10928_v56 }
0x4f7b   :  { %v10935_v58 = vadd.f32 %v11394_v9, %v10927_v57 }
0x4f7d   :  { %12506 = vmatprep.mubr.msk.f32.mxu1 %vm230_vm0, %v10935_v58 }
0x4f7e   :  { %12507 = vmatmul.mubr.msk.f32.vlgmr.msra.gmra.mxu1 %vm230_vm0, %v10936_v61 }
0x503e   :  { %v12508_v1 = vpop.f32.mrf.mxu1 }
0x503f   :  { %v11026_v55 = vadd.f32 %v12508_v1, %v11395_v0 }
0x5040   :  { %v11020_v16 = vpop.f32.mrf.mxu1 }
0x5041   :  { %11030 = vst [vmem:[%s11080_s8 + $0x8] sm:$0xff] %v11026_v55  ;;  %v11021_v35 = vadd.f32 %v11395_v0, %v11020_v16 }
0x5043   :  { %11029 = vst [vmem:[%s11080_s8] sm:$0xff] %v11021_v35 }

</bundles_post_ra>
